<compile_context>
chip_gen: v7x
topology: tpu7x:2x2x1
jax: 0.10.0
libtpu: 0.0.40
codegen_flags: <defaults>
</compile_context>

<pallas_src>
import functools

import jax
import jax.numpy as jnp
from jax import lax
from jax.experimental import pallas as pl
from jax.experimental.pallas import tpu as pltpu


ROW_ALIGN = 16  # bf16 native sublane tile is (16, 128); also fine for f32.


def _round_up(x: int, m: int) -> int:
  return ((x + m - 1) // m) * m


def _num_tensorcores() -> int:
  """Best-effort TensorCore count (v7x = 2; everything else Pallas targets = 1)."""
  try:
    info = pltpu.get_tpu_info()
    for attr in ("num_cores", "core_count", "num_tensorcores", "tensorcore_count"):
      v = getattr(info, attr, None)
      if isinstance(v, int) and v > 0:
        return v
  except Exception:
    pass
  try:
    kind = jax.devices()[0].device_kind.lower()
    if "v7" in kind or "tpu7" in kind:
      return 2
  except Exception:
    pass
  return 1


# ----------------------------- Pallas kernel --------------------------------
def qmixer_kernel(sq_ref, ln_ref, w1_ref, b1_ref, e_ref, w2_ref, b2_ref, out_ref,
                  *, num_agents, state_dim, hidden_dim, hypernet_hidden_dim):
  A, S, H, HH = num_agents, state_dim, hidden_dim, hypernet_hidden_dim

  sq_raw = sq_ref[...]                         # (tn, S+A), f32 or bf16 over HBM
  sq = sq_raw.astype(jnp.float32)              # all VPU math in f32 (v5e-safe)

  ln = ln_ref[...]                             # (3, S+A): gamma | beta | state mask
  gamma, beta, smask = ln[0:1, :], ln[1:2, :], ln[2:3, :]

  # LayerNorm over the S state lanes only (torch default eps = 1e-5). Masked
  # full-width statistics: the merged (state|q) input is never lane-sliced.
  inv_s = 1.0 / S
  mean = jnp.sum(sq * smask, axis=-1, keepdims=True) * inv_s
  dev = (sq - mean) * smask
  var = jnp.sum(dev * dev, axis=-1, keepdims=True) * inv_s
  s_norm = dev * lax.rsqrt(var + 1e-5) * gamma + beta   # q lanes -> exactly 0

  # Stage 1 (fused): cols = [hyper_w1.l0 | hyper_w2.l0 | hyper_b2.l0 | hyper_b1].
  # bf16 MXU operands, f32 accumulation; f32 biases added on the VPU.
  z1 = jnp.dot(s_norm.astype(jnp.bfloat16), w1_ref[...],
               preferred_element_type=jnp.float32) + b1_ref[...]
  z1_relu = jnp.maximum(z1, 0.0)               # b1 columns hit zero rows in W2.
  b1 = z1[:, 3 * HH:3 * HH + H]                # hyper_b1 output: no ReLU, no abs.

  # Agent broadcast q -> (tn, A*H) as one tiny MXU push against a 0/1 indicator
  # (replaces A single-lane lane-broadcasts + A sub-vreg w1 slices).
  q_expand = jnp.dot(sq_raw.astype(jnp.bfloat16), e_ref[...],
                     preferred_element_type=jnp.float32)

  # Stage 2 (fused block-diag): cols = [hyper_w1.l1 | hyper_w2.l1 | hyper_b2.l1].
  z2 = jnp.dot(z1_relu.astype(jnp.bfloat16), w2_ref[...],
               preferred_element_type=jnp.float32) + b2_ref[...]
  w1 = jnp.abs(z2[:, :A * H])                  # (tn, A*H)
  w2 = jnp.abs(z2[:, A * H:A * H + H])         # (tn, H)
  b2 = z2[:, A * H + H:A * H + H + 1]          # (tn, 1)

  # hidden = ELU(sum_a q_a * w1[a] + b1): full-width multiply, then group-sum.
  prod = q_expand * w1
  if A & (A - 1) == 0:
    # Power-of-two agent count: XLU roll-halving reduction over the A segments
    # (sign-agnostic because every step halves a periodic pattern).
    seg = A * H
    while seg > H:
      seg //= 2
      prod = prod + pltpu.roll(prod, shift=seg, axis=1)
    acc = prod[:, :H] + b1
  else:
    acc = prod[:, :H]
    for a in range(1, A):
      acc = acc + prod[:, a * H:(a + 1) * H]
    acc = acc + b1
  # ELU with the exp argument clamped to <= 0 (no non-finite intermediates).
  hidden = jnp.where(acc > 0, acc, jnp.exp(jnp.minimum(acc, 0.0)) - 1.0)

  # q_tot[j] = sum_h hidden[j,h]*w2[j,h] + b2[j]. Fold b2/H into every lane so a
  # single transposed-RHS ones-matmul both reduces over H and emits the output
  # lane-dense as (1, tile_n) (no width-(H+1) lane concat, no masked stores).
  hw = (hidden * w2 + b2 * (1.0 / H)).astype(jnp.bfloat16)
  ones_h = jnp.ones((8, H), jnp.bfloat16)
  rows = lax.dot_general(ones_h, hw,
                         dimension_numbers=(((1,), (1,)), ((), ())),
                         preferred_element_type=jnp.float32)   # (8, tn)
  out_ref[0] = rows[0:1, :].astype(out_ref.dtype)


# --------------------------- Weight packing ----------------------------------
def pack_params(p, *, num_agents, state_dim, hidden_dim, hypernet_hidden_dim):
  A, S, H, HH = num_agents, state_dim, hidden_dim, hypernet_hidden_dim
  SA = S + A
  D1 = 3 * HH + H
  D2 = A * H + H + 1

  # LayerNorm constants + state-lane mask, padded to the merged (state|q) width.
  ln = jnp.zeros((3, SA), jnp.float32)
  ln = ln.at[0, :S].set(p["ln_gamma"][0])
  ln = ln.at[1, :S].set(p["ln_beta"][0])
  ln = ln.at[2, :S].set(1.0)

  # Stage 1 (shared-LHS concat), zero rows under the q lanes.
  w_s1 = jnp.zeros((SA, D1), jnp.float32)
  w_s1 = w_s1.at[:S, 0:HH].set(p["w1a"])
  w_s1 = w_s1.at[:S, HH:2 * HH].set(p["w2a"])
  w_s1 = w_s1.at[:S, 2 * HH:3 * HH].set(p["wb2a"])
  w_s1 = w_s1.at[:S, 3 * HH:].set(p["wb1"])
  b_s1 = jnp.concatenate([p["b1a"], p["b2a"], p["bb2a"], p["bb1"]], axis=1)

  # Agent-broadcast indicator: row (S + a) -> ones over columns [a*H, (a+1)*H).
  e_pad = jnp.zeros((SA, A * H), jnp.float32)
  for a in range(A):
    e_pad = e_pad.at[S + a, a * H:(a + 1) * H].set(1.0)

  # Stage 2: block-diagonal, zero rows under the b1 passthrough columns.
  w_s2 = jnp.zeros((D1, D2), jnp.float32)
  w_s2 = w_s2.at[0:HH, 0:A * H].set(p["w1b"])
  w_s2 = w_s2.at[HH:2 * HH, A * H:A * H + H].set(p["w2b"])
  w_s2 = w_s2.at[2 * HH:3 * HH, A * H + H:].set(p["wb2b"])
  b_s2 = jnp.concatenate([p["b1b"], p["b2b"], p["bb2b"]], axis=1)

  # Weight matrices travel as bf16 (native MXU operands, half the DMA); the
  # tiny bias rows stay f32 and are added on the VPU after the f32-accum dots.
  return (ln, w_s1.astype(jnp.bfloat16), b_s1,
          e_pad.astype(jnp.bfloat16), w_s2.astype(jnp.bfloat16), b_s2)


# ------------------------------ Wrapper --------------------------------------
def qmixer_forward(q_i, state, params, *, num_agents, state_dim, hidden_dim,
                   hypernet_hidden_dim, max_tile_n=2048, bf16_inputs_min_rows=8192):
  """q_i: (T, B, A), state: (T, B, S) -> q_tot: (T, B, 1, 1)."""
  T, B = q_i.shape[0], q_i.shape[1]
  A, S, H = num_agents, state_dim, hidden_dim
  SA = S + A
  D1 = 3 * hypernet_hidden_dim + H
  D2 = A * H + H + 1
  N = T * B

  # Row-tile selection: a single tile on single-TensorCore chips (each extra
  # grid step is pure pipeline overhead there); on v7x keep >= 1 tile per core,
  # and >= 2 per core once N is large enough so each core still double-buffers.
  cores = _num_tensorcores()
  tile_cap = _round_up(max(ROW_ALIGN, max_tile_n), ROW_ALIGN)
  if cores <= 1:
    tile_n = min(tile_cap, _round_up(N, ROW_ALIGN))
  else:
    want_tiles = 2 * cores if N > cores * tile_cap else cores
    tile_n = min(tile_cap, max(ROW_ALIGN, _round_up(pl.cdiv(N, want_tiles), ROW_ALIGN)))
  num_tiles = pl.cdiv(N, tile_n)
  Np = num_tiles * tile_n

  # Single merged (state | q) per-row input: one DMA / double-buffer per step.
  # bf16 over HBM only once N is large enough for bandwidth to matter; at small
  # N keep f32 (fewer wrapper ops, parity with an f32 QMixer).
  in_dtype = jnp.bfloat16 if N >= bf16_inputs_min_rows else jnp.float32
  sq = jnp.concatenate(
      [state.reshape(N, S), q_i.reshape(N, A)], axis=1).astype(in_dtype)
  if Np != N:  # tail handling: pad rows, sliced off after the call
    sq = jnp.pad(sq, ((0, Np - N), (0, 0)))

  ln, w_s1, b_s1, e_pad, w_s2, b_s2 = pack_params(
      params, num_agents=A, state_dim=S, hidden_dim=H,
      hypernet_hidden_dim=hypernet_hidden_dim)

  def const_spec(arr):  # whole (tiny) constant buffer, same block every step
    return pl.BlockSpec(arr.shape, lambda i: (0, 0))

  kernel = functools.partial(
      qmixer_kernel, num_agents=A, state_dim=S, hidden_dim=H,
      hypernet_hidden_dim=hypernet_hidden_dim)

  # ~6-8 KB of f32 intermediates per row: raise the scoped VMEM limit only when
  # the tile actually needs more than the conservative default.
  vmem_est = tile_n * 8 * 1024 + (8 << 20)
  vmem_limit = int(min(vmem_est, 100 << 20)) if vmem_est > (16 << 20) else None

  weight_bytes = sum(int(x.size) * x.dtype.itemsize
                     for x in (ln, w_s1, b_s1, e_pad, w_s2, b_s2))
  cost = pl.CostEstimate(
      flops=2 * Np * (SA * D1 + SA * A * H + D1 * D2 + 8 * H),
      transcendentals=Np * (H + 1),
      bytes_accessed=Np * SA * jnp.dtype(in_dtype).itemsize + Np * 4 + weight_bytes)

  out = pl.pallas_call(
      kernel,
      out_shape=jax.ShapeDtypeStruct((num_tiles, 1, tile_n), jnp.float32),
      grid_spec=pltpu.PrefetchScalarGridSpec(
          num_scalar_prefetch=0,
          grid=(num_tiles,),
          in_specs=[
              pl.BlockSpec((tile_n, SA), lambda i: (i, 0)),   # merged state|q
              const_spec(ln), const_spec(w_s1), const_spec(b_s1),
              const_spec(e_pad), const_spec(w_s2), const_spec(b_s2),
          ],
          out_specs=pl.BlockSpec((1, 1, tile_n), lambda i: (i, 0, 0)),
      ),
      compiler_params=pltpu.CompilerParams(
          dimension_semantics=("parallel",),
          vmem_limit_bytes=vmem_limit),
      cost_estimate=cost,
  )(sq, ln, w_s1, b_s1, e_pad, w_s2, b_s2)

  return out.reshape(Np)[:N].reshape(T, B, 1, 1)


# -------------------------- Param init (deterministic) -----------------------
def init_params(key, *, num_agents, state_dim, hidden_dim, hypernet_hidden_dim):
  S, H, A, HH = state_dim, hidden_dim, num_agents, hypernet_hidden_dim
  ks = jax.random.split(key, 8)
  g = 0.01  # mimic orthogonal_(gain=0.01): small-magnitude weights

  def lin(k, fin, fout):
    kw, kb = jax.random.split(k)
    w = g * jax.random.normal(kw, (fin, fout), jnp.float32)
    bound = 1.0 / jnp.sqrt(fin)
    b = jax.random.uniform(kb, (1, fout), jnp.float32, -bound, bound)
    return w, b

  w1a, b1a = lin(ks[0], S, HH)
  w1b, b1b = lin(ks[1], HH, A * H)
  w2a, b2a = lin(ks[2], S, HH)
  w2b, b2b = lin(ks[3], HH, H)
  wb1, bb1 = lin(ks[4], S, H)
  wb2a, bb2a = lin(ks[5], S, HH)
  wb2b, bb2b = lin(ks[6], HH, 1)

  return dict(
      ln_gamma=jnp.ones((1, S), jnp.float32),
      ln_beta=jnp.zeros((1, S), jnp.float32),
      w1a=w1a, b1a=b1a, w1b=w1b, b1b=b1b,
      wb1=wb1, bb1=bb1,
      w2a=w2a, b2a=b2a, w2b=w2b, b2b=b2b,
      wb2a=wb2a, bb2a=bb2a, wb2b=wb2b, bb2b=bb2b,
  )


# ------------------------------ Reference ------------------------------------
def qmixer_reference(q_i, state, p, *, num_agents, state_dim, hidden_dim):
  T, B = q_i.shape[0], q_i.shape[1]
  s = state.reshape(-1, B, state_dim).astype(jnp.float32)
  q = q_i.reshape(-1, B, 1, num_agents).astype(jnp.float32)
  mean = s.mean(-1, keepdims=True)
  var = ((s - mean) ** 2).mean(-1, keepdims=True)
  s = (s - mean) / jnp.sqrt(var + 1e-5) * p["ln_gamma"][0] + p["ln_beta"][0]
  relu = lambda x: jnp.maximum(x, 0.0)
  w1 = jnp.abs(relu(s @ p["w1a"] + p["b1a"][0]) @ p["w1b"] + p["b1b"][0])
  b1 = s @ p["wb1"] + p["bb1"][0]
  w1 = w1.reshape(-1, B, num_agents, hidden_dim)
  b1 = b1.reshape(-1, B, 1, hidden_dim)
  hidden = jax.nn.elu(jnp.matmul(q, w1) + b1)
  w2 = jnp.abs(relu(s @ p["w2a"] + p["b2a"][0]) @ p["w2b"] + p["b2b"][0])
  b2 = relu(s @ p["wb2a"] + p["bb2a"][0]) @ p["wb2b"] + p["bb2b"][0]
  w2 = w2.reshape(-1, B, hidden_dim, 1)
  b2 = b2.reshape(-1, B, 1, 1)
  out = jnp.matmul(hidden, w2) + b2
  return out.reshape(-1, B, 1, 1)


# -------------------------------- Main ----------------------------------------
if __name__ == "__main__":
  NUM_AGENTS = 4
  STATE_DIM = 32
  HIDDEN_DIM = 32
  HYPERNET_HIDDEN_DIM = 64
  T, B = 63, 8   # N = 504 rows -> a single 512-row tile on 1-TC chips

  key = jax.random.PRNGKey(0)
  k_p, k_q, k_s = jax.random.split(key, 3)

  params = init_params(
      k_p, num_agents=NUM_AGENTS, state_dim=STATE_DIM,
      hidden_dim=HIDDEN_DIM, hypernet_hidden_dim=HYPERNET_HIDDEN_DIM)

  q_i = jax.random.normal(k_q, (T, B, NUM_AGENTS), jnp.float32)
  state = jax.random.normal(k_s, (T, B, STATE_DIM), jnp.float32)

  q_tot = qmixer_forward(
      q_i, state, params,
      num_agents=NUM_AGENTS, state_dim=STATE_DIM, hidden_dim=HIDDEN_DIM,
      hypernet_hidden_dim=HYPERNET_HIDDEN_DIM)
  q_tot = jax.block_until_ready(q_tot)

  # Honest f32 reference (kernel keeps f32 row inputs at this small N; only the
  # MXU operands are bf16, mirroring XLA's default TPU matmul precision).
  ref = qmixer_reference(
      q_i, state, params,
      num_agents=NUM_AGENTS, state_dim=STATE_DIM, hidden_dim=HIDDEN_DIM)

  assert q_tot.shape == (T, B, 1, 1)
  max_err = float(jnp.max(jnp.abs(q_tot - ref)))
  assert jnp.allclose(q_tot, ref, rtol=2e-2, atol=5e-3), f"mismatch: {max_err}"

  # TODO(synk): popart head not implemented (popart=False configuration).
  print("KERNEL_OK")
</pallas_src>

<mosaic_0001>
module attributes {stable_mosaic.version = 11 : i64} {
  func.func @qmixer_kernel(%arg0: i32, %arg1: memref<512x36xf32, #tpu.memory_space<vmem>>, %arg2: memref<3x36xf32, #tpu.memory_space<vmem>>, %arg3: memref<36x224xbf16, #tpu.memory_space<vmem>>, %arg4: memref<1x224xf32, #tpu.memory_space<vmem>>, %arg5: memref<36x128xbf16, #tpu.memory_space<vmem>>, %arg6: memref<224x161xbf16, #tpu.memory_space<vmem>>, %arg7: memref<1x161xf32, #tpu.memory_space<vmem>>, %arg8: memref<1x1x512xf32, #tpu.memory_space<vmem>>) attributes {dimension_semantics = [#tpu.dimension_semantics<parallel>], iteration_bounds = array<i64: 1>, scalar_prefetch = 0 : i64, scratch_operands = 0 : i64, tpu.core_type = #tpu.core_type<tc>, window_params = [{transform_indices = @transform_0, window_bounds = array<i64: 512, 36>}, {pipeline_mode = #tpu.pipeline_mode<synchronous>, transform_indices = @transform_1, window_bounds = array<i64: 3, 36>}, {pipeline_mode = #tpu.pipeline_mode<synchronous>, transform_indices = @transform_2, window_bounds = array<i64: 36, 224>}, {pipeline_mode = #tpu.pipeline_mode<synchronous>, transform_indices = @transform_3, window_bounds = array<i64: 1, 224>}, {pipeline_mode = #tpu.pipeline_mode<synchronous>, transform_indices = @transform_4, window_bounds = array<i64: 36, 128>}, {pipeline_mode = #tpu.pipeline_mode<synchronous>, transform_indices = @transform_5, window_bounds = array<i64: 224, 161>}, {pipeline_mode = #tpu.pipeline_mode<synchronous>, transform_indices = @transform_6, window_bounds = array<i64: 1, 161>}, {transform_indices = @transform_7, window_bounds = array<i64: 1, 1, 512>}]} {
    %c0 = arith.constant 0 : index
    %c0_0 = arith.constant 0 : index
    %0 = vector.load %arg1[%c0, %c0_0] : memref<512x36xf32, #tpu.memory_space<vmem>>, vector<512x36xf32>
    %c0_1 = arith.constant 0 : index
    %c0_2 = arith.constant 0 : index
    %1 = vector.load %arg2[%c0_1, %c0_2] : memref<3x36xf32, #tpu.memory_space<vmem>>, vector<3x36xf32>
    %2 = vector.extract_strided_slice %1 {offsets = [0, 0], sizes = [1, 36], strides = [1, 1]} : vector<3x36xf32> to vector<1x36xf32>
    %3 = vector.extract_strided_slice %1 {offsets = [1, 0], sizes = [1, 36], strides = [1, 1]} : vector<3x36xf32> to vector<1x36xf32>
    %4 = vector.extract_strided_slice %1 {offsets = [2, 0], sizes = [1, 36], strides = [1, 1]} : vector<3x36xf32> to vector<1x36xf32>
    %5 = vector.broadcast %4 : vector<1x36xf32> to vector<512x36xf32>
    %6 = arith.mulf %0, %5 : vector<512x36xf32>
    %cst = arith.constant dense<0.000000e+00> : vector<512xf32>
    %7 = vector.multi_reduction <add>, %6, %cst [1] : vector<512x36xf32> to vector<512xf32>
    %8 = vector.shape_cast %7 : vector<512xf32> to vector<512x1xf32>
    %cst_3 = arith.constant 3.125000e-02 : f32
    %9 = vector.broadcast %cst_3 : f32 to vector<512x1xf32>
    %10 = arith.mulf %8, %9 : vector<512x1xf32>
    %11 = vector.broadcast %10 : vector<512x1xf32> to vector<512x36xf32>
    %12 = arith.subf %0, %11 : vector<512x36xf32>
    %13 = vector.broadcast %4 : vector<1x36xf32> to vector<512x36xf32>
    %14 = arith.mulf %12, %13 : vector<512x36xf32>
    %15 = arith.mulf %14, %14 : vector<512x36xf32>
    %cst_4 = arith.constant dense<0.000000e+00> : vector<512xf32>
    %16 = vector.multi_reduction <add>, %15, %cst_4 [1] : vector<512x36xf32> to vector<512xf32>
    %17 = vector.shape_cast %16 : vector<512xf32> to vector<512x1xf32>
    %cst_5 = arith.constant 3.125000e-02 : f32
    %18 = vector.broadcast %cst_5 : f32 to vector<512x1xf32>
    %19 = arith.mulf %17, %18 : vector<512x1xf32>
    %cst_6 = arith.constant 9.99999974E-6 : f32
    %20 = vector.broadcast %cst_6 : f32 to vector<512x1xf32>
    %21 = arith.addf %19, %20 : vector<512x1xf32>
    %22 = math.rsqrt %21 : vector<512x1xf32>
    %23 = vector.broadcast %22 : vector<512x1xf32> to vector<512x36xf32>
    %24 = arith.mulf %14, %23 : vector<512x36xf32>
    %25 = vector.broadcast %2 : vector<1x36xf32> to vector<512x36xf32>
    %26 = arith.mulf %24, %25 : vector<512x36xf32>
    %27 = vector.broadcast %3 : vector<1x36xf32> to vector<512x36xf32>
    %28 = arith.addf %26, %27 : vector<512x36xf32>
    %29 = arith.truncf %28 : vector<512x36xf32> to vector<512x36xbf16>
    %c0_7 = arith.constant 0 : index
    %c0_8 = arith.constant 0 : index
    %30 = vector.load %arg3[%c0_7, %c0_8] : memref<36x224xbf16, #tpu.memory_space<vmem>>, vector<36x224xbf16>
    %cst_9 = arith.constant dense<0.000000e+00> : vector<512x224xf32>
    %31 = tpu.matmul %29, %30, %cst_9 {dimension_numbers = #tpu.dot_dimension_numbers<[1], [0], [0], [1], [0, 0, 1, 1], [], []>} : vector<512x36xbf16>, vector<36x224xbf16>, vector<512x224xf32> -> vector<512x224xf32>
    %c0_10 = arith.constant 0 : index
    %c0_11 = arith.constant 0 : index
    %32 = vector.load %arg4[%c0_10, %c0_11] : memref<1x224xf32, #tpu.memory_space<vmem>>, vector<1x224xf32>
    %33 = vector.broadcast %32 : vector<1x224xf32> to vector<512x224xf32>
    %34 = arith.addf %31, %33 : vector<512x224xf32>
    %cst_12 = arith.constant 0.000000e+00 : f32
    %35 = vector.broadcast %cst_12 : f32 to vector<512x224xf32>
    %36 = arith.maximumf %34, %35 : vector<512x224xf32>
    %37 = vector.extract_strided_slice %34 {offsets = [0, 192], sizes = [512, 32], strides = [1, 1]} : vector<512x224xf32> to vector<512x32xf32>
    %38 = arith.truncf %0 : vector<512x36xf32> to vector<512x36xbf16>
    %c0_13 = arith.constant 0 : index
    %c0_14 = arith.constant 0 : index
    %39 = vector.load %arg5[%c0_13, %c0_14] : memref<36x128xbf16, #tpu.memory_space<vmem>>, vector<36x128xbf16>
    %cst_15 = arith.constant dense<0.000000e+00> : vector<512x128xf32>
    %40 = tpu.matmul %38, %39, %cst_15 {dimension_numbers = #tpu.dot_dimension_numbers<[1], [0], [0], [1], [0, 0, 1, 1], [], []>} : vector<512x36xbf16>, vector<36x128xbf16>, vector<512x128xf32> -> vector<512x128xf32>
    %41 = arith.truncf %36 : vector<512x224xf32> to vector<512x224xbf16>
    %c0_16 = arith.constant 0 : index
    %c0_17 = arith.constant 0 : index
    %42 = vector.load %arg6[%c0_16, %c0_17] : memref<224x161xbf16, #tpu.memory_space<vmem>>, vector<224x161xbf16>
    %cst_18 = arith.constant dense<0.000000e+00> : vector<512x161xf32>
    %43 = tpu.matmul %41, %42, %cst_18 {dimension_numbers = #tpu.dot_dimension_numbers<[1], [0], [0], [1], [0, 0, 1, 1], [], []>} : vector<512x224xbf16>, vector<224x161xbf16>, vector<512x161xf32> -> vector<512x161xf32>
    %c0_19 = arith.constant 0 : index
    %c0_20 = arith.constant 0 : index
    %44 = vector.load %arg7[%c0_19, %c0_20] : memref<1x161xf32, #tpu.memory_space<vmem>>, vector<1x161xf32>
    %45 = vector.broadcast %44 : vector<1x161xf32> to vector<512x161xf32>
    %46 = arith.addf %43, %45 : vector<512x161xf32>
    %47 = vector.extract_strided_slice %46 {offsets = [0, 0], sizes = [512, 128], strides = [1, 1]} : vector<512x161xf32> to vector<512x128xf32>
    %48 = math.absf %47 : vector<512x128xf32>
    %49 = vector.extract_strided_slice %46 {offsets = [0, 128], sizes = [512, 32], strides = [1, 1]} : vector<512x161xf32> to vector<512x32xf32>
    %50 = math.absf %49 : vector<512x32xf32>
    %51 = vector.extract_strided_slice %46 {offsets = [0, 160], sizes = [512, 1], strides = [1, 1]} : vector<512x161xf32> to vector<512x1xf32>
    %52 = arith.mulf %40, %48 : vector<512x128xf32>
    %c64_i32 = arith.constant 64 : i32
    %53 = tpu.dynamic_rotate %52 by %c64_i32 dim 1 : vector<512x128xf32>, i32 -> vector<512x128xf32>
    %54 = arith.addf %52, %53 : vector<512x128xf32>
    %c32_i32 = arith.constant 32 : i32
    %55 = tpu.dynamic_rotate %54 by %c32_i32 dim 1 : vector<512x128xf32>, i32 -> vector<512x128xf32>
    %56 = arith.addf %54, %55 : vector<512x128xf32>
    %57 = vector.extract_strided_slice %56 {offsets = [0, 0], sizes = [512, 32], strides = [1, 1]} : vector<512x128xf32> to vector<512x32xf32>
    %58 = arith.addf %57, %37 : vector<512x32xf32>
    %cst_21 = arith.constant 0.000000e+00 : f32
    %59 = vector.broadcast %cst_21 : f32 to vector<512x32xf32>
    %60 = arith.cmpf ogt, %58, %59 : vector<512x32xf32>
    %cst_22 = arith.constant 0.000000e+00 : f32
    %61 = vector.broadcast %cst_22 : f32 to vector<512x32xf32>
    %62 = arith.minimumf %58, %61 : vector<512x32xf32>
    %63 = math.exp %62 : vector<512x32xf32>
    %cst_23 = arith.constant 1.000000e+00 : f32
    %64 = vector.broadcast %cst_23 : f32 to vector<512x32xf32>
    %65 = arith.subf %63, %64 : vector<512x32xf32>
    %66 = arith.select %60, %58, %65 : vector<512x32xi1>, vector<512x32xf32>
    %67 = arith.mulf %66, %50 : vector<512x32xf32>
    %cst_24 = arith.constant 3.125000e-02 : f32
    %68 = vector.broadcast %cst_24 : f32 to vector<512x1xf32>
    %69 = arith.mulf %51, %68 : vector<512x1xf32>
    %70 = vector.broadcast %69 : vector<512x1xf32> to vector<512x32xf32>
    %71 = arith.addf %67, %70 : vector<512x32xf32>
    %72 = arith.truncf %71 : vector<512x32xf32> to vector<512x32xbf16>
    %cst_25 = arith.constant 1.000000e+00 : bf16
    %73 = vector.broadcast %cst_25 : bf16 to vector<8x32xbf16>
    %cst_26 = arith.constant dense<0.000000e+00> : vector<8x512xf32>
    %74 = tpu.matmul %73, %72, %cst_26 {dimension_numbers = #tpu.dot_dimension_numbers<[1], [1], [0], [0], [0, 0, 1, 0], [], []>} : vector<8x32xbf16>, vector<512x32xbf16>, vector<8x512xf32> -> vector<8x512xf32>
    %75 = vector.extract_strided_slice %74 {offsets = [0, 0], sizes = [1, 512], strides = [1, 1]} : vector<8x512xf32> to vector<1x512xf32>
    %c0_27 = arith.constant 0 : index
    %c0_28 = arith.constant 0 : index
    %c0_29 = arith.constant 0 : index
    %76 = vector.load %arg8[%c0_27, %c0_28, %c0_29] : memref<1x1x512xf32, #tpu.memory_space<vmem>>, vector<1x1x512xf32>
    %77 = vector.shape_cast %76 : vector<1x1x512xf32> to vector<1x512xf32>
    %78 = vector.shape_cast %75 : vector<1x512xf32> to vector<1x1x512xf32>
    tpu.vector_store %arg8[%c0_27, %c0_28, %c0_29], %78 {strides = array<i32>} : memref<1x1x512xf32, #tpu.memory_space<vmem>>, vector<1x1x512xf32>,
    return
  }
  func.func @transform_0(%arg0: i32) -> (i32, i32) {
    %c0_i32 = arith.constant 0 : i32
    %c0_i32_0 = arith.constant 0 : i32
    return %arg0, %c0_i32 : i32, i32
  }
  func.func @transform_1(%arg0: i32) -> (i32, i32) {
    %c0_i32 = arith.constant 0 : i32
    %c0_i32_0 = arith.constant 0 : i32
    %c0_i32_1 = arith.constant 0 : i32
    return %c0_i32, %c0_i32_0 : i32, i32
  }
  func.func @transform_2(%arg0: i32) -> (i32, i32) {
    %c0_i32 = arith.constant 0 : i32
    %c0_i32_0 = arith.constant 0 : i32
    %c0_i32_1 = arith.constant 0 : i32
    return %c0_i32, %c0_i32_0 : i32, i32
  }
  func.func @transform_3(%arg0: i32) -> (i32, i32) {
    %c0_i32 = arith.constant 0 : i32
    %c0_i32_0 = arith.constant 0 : i32
    %c0_i32_1 = arith.constant 0 : i32
    return %c0_i32, %c0_i32_0 : i32, i32
  }
  func.func @transform_4(%arg0: i32) -> (i32, i32) {
    %c0_i32 = arith.constant 0 : i32
    %c0_i32_0 = arith.constant 0 : i32
    %c0_i32_1 = arith.constant 0 : i32
    return %c0_i32, %c0_i32_0 : i32, i32
  }
  func.func @transform_5(%arg0: i32) -> (i32, i32) {
    %c0_i32 = arith.constant 0 : i32
    %c0_i32_0 = arith.constant 0 : i32
    %c0_i32_1 = arith.constant 0 : i32
    return %c0_i32, %c0_i32_0 : i32, i32
  }
  func.func @transform_6(%arg0: i32) -> (i32, i32) {
    %c0_i32 = arith.constant 0 : i32
    %c0_i32_0 = arith.constant 0 : i32
    %c0_i32_1 = arith.constant 0 : i32
    return %c0_i32, %c0_i32_0 : i32, i32
  }
  func.func @transform_7(%arg0: i32) -> (i32, i32, i32) {
    %c0_i32 = arith.constant 0 : i32
    %c0_i32_0 = arith.constant 0 : i32
    %c0_i32_1 = arith.constant 0 : i32
    return %arg0, %c0_i32, %c0_i32_0 : i32, i32, i32
  }
}

</mosaic_0001>

<bundles_post_ra>
// kernel: tpu_custom_call.1
= control target key start
LH: loop header
LB: loop body
LE: loop exit
PB: predicated region body
PF: predicated region fallthrough
CT: control target
= control target key end

     0   :  { %v9820_v0 = vlaneseq  ;;  %vm162_vm0 = vcmask 293888   ;;  %s9812_s0 = inlined_call_operand.vmem [shape: f32[512,36], index: 0, kind: input, shape index: {}]   ;;  %s9813_s1 = inlined_call_operand.vmem [shape: f32[3,36], index: 1, kind: input, shape index: {}]   ;;  %s9814_s2 = inlined_call_operand.vmem [shape: bf16[36,224], index: 2, kind: input, shape index: {}]   ;;  %s9815_s3 = inlined_call_operand.vmem [shape: f32[1,224], index: 3, kind: input, shape index: {}]   ;;  %s9816_s4 = inlined_call_operand.vmem [shape: bf16[36,128], index: 4, kind: input, shape index: {}]   ;;  %s9817_s5 = inlined_call_operand.vmem [shape: bf16[224,161], index: 5, kind: input, shape index: {}]   ;;  %s9818_s6 = inlined_call_operand.vmem [shape: f32[1,161], index: 6, kind: input, shape index: {}]   ;;  %s9819_s7 = inlined_call_operand.hbm [shape: f32[1,1,512], index: 7, kind: output, shape index: {}]  }
   0x1   :  { %v5801_v2 = vld [vmem:[%s9813_s1] sm:$0x7]  ;;  %v5812_v5 = vld [vmem:[%s9812_s0 + $0x8] sm:$0xff]  ;;  %v5817_v6 = vld [vmem:[%s9812_s0 + $0x10] sm:$0xff] }
   0x2   :  { %v5796_v1 = vshrl.u32 %v9820_v0, 7  ;;  %v5806_v3 = vld [vmem:[%s9812_s0] sm:$0xff]  ;;  %v5822_v7 = vld [vmem:[%s9812_s0 + $0x18] sm:$0xff]  ;;  %v5835_v10 = vld [vmem:[%s9812_s0 + $0x28] sm:$0xff] }
   0x3   :  { %v5830_v9 = vld [vmem:[%s9812_s0 + $0x20] sm:$0xff]  ;;  %v5850_v17 = vld [vmem:[%s9812_s0 + $0x30] sm:$0xff]  ;;  %v5855_v18 = vld [vmem:[%s9812_s0 + $0x38] sm:$0xff] }
   0x4   :  { %9978 = vst [vmem:[#allocation5_spill] sm:$0xff] %v5796_v1  ;;  %v96_v4 = vsub.s32 2, %v5796_v1  ;;  %v5866_v23 = vld [vmem:[%s9812_s0 + $0x40] sm:$0xff]  ;;  %v5871_v24 = vld [vmem:[%s9812_s0 + $0x48] sm:$0xff]  ;;  %v5882_v29 = vld [vmem:[%s9812_s0 + $0x50] sm:$0xff] }
   0x5   :  { %v5887_v30 = vld [vmem:[%s9812_s0 + $0x58] sm:$0xff] }
   0x6   :  { %v5825_v8 = vrot.slane %v5801_v2, %v96_v4 }
   0x8   :  { %v98_v11 = vmul.f32 %v5825_v8, %v5806_v3  ;;  %v99_v12 = vmul.f32 %v5825_v8, %v5812_v5  ;;  %v100_v13 = vmul.f32 %v5825_v8, %v5817_v6  ;;  %v101_v14 = vmul.f32 %v5825_v8, %v5822_v7 }
   0x9   :  { %v102_v21 = vmul.f32 %v5825_v8, %v5830_v9  ;;  %v103_v22 = vmul.f32 %v5825_v8, %v5835_v10  ;;  %v104_v27 = vmul.f32 %v5825_v8, %v5850_v17  ;;  %v105_v28 = vmul.f32 %v5825_v8, %v5855_v18 }
   0xa   :  { %v163_v15 = vsel %vm162_vm0, %v98_v11, 0.0  ;;  %v169_v16 = vsel %vm162_vm0, %v100_v13, 0.0  ;;  %v166_v19 = vsel %vm162_vm0, %v99_v12, 0.0  ;;  %v172_v20 = vsel %vm162_vm0, %v101_v14, 0.0 }
   0xb   :  { %164 = vadd.xlane.f32.xlu0 %v163_v15  ;;  %170 = vadd.xlane.f32.xlu1 %v169_v16  ;;  %v175_v25 = vsel %vm162_vm0, %v102_v21, 0.0  ;;  %v178_v26 = vsel %vm162_vm0, %v103_v22, 0.0  ;;  %v181_v31 = vsel %vm162_vm0, %v104_v27, 0.0  ;;  %v184_v32 = vsel %vm162_vm0, %v105_v28, 0.0 }
   0xc   :  { %v106_v33 = vmul.f32 %v5825_v8, %v5866_v23  ;;  %v107_v34 = vmul.f32 %v5825_v8, %v5871_v24 }
   0xf   :  { %167 = vadd.xlane.f32.xlu0 %v166_v19  ;;  %173 = vadd.xlane.f32.xlu1 %v172_v20 }
  0x13   :  { %176 = vadd.xlane.f32.xlu0 %v175_v25  ;;  %179 = vadd.xlane.f32.xlu1 %v178_v26 }
  0x14   :  { %12 = vsyncpa [#allocation3], 0  ;;  %v187_v35 = vsel %vm162_vm0, %v106_v33, 0.0  ;;  %v190_v36 = vsel %vm162_vm0, %v107_v34, 0.0  ;;  %v108_v37 = vmul.f32 %v5825_v8, %v5882_v29  ;;  %v109_v38 = vmul.f32 %v5825_v8, %v5887_v30  ;;  %v5904_v39 = vld [vmem:[%s9812_s0 + $0x60] sm:$0xff]  ;;  %v5909_v40 = vld [vmem:[%s9812_s0 + $0x68] sm:$0xff] }
  0x15   :  { %v110_v43 = vmul.f32 %v5825_v8, %v5904_v39  ;;  %v111_v44 = vmul.f32 %v5825_v8, %v5909_v40  ;;  %v5920_v45 = vld [vmem:[%s9812_s0 + $0x70] sm:$0xff]  ;;  %v5925_v46 = vld [vmem:[%s9812_s0 + $0x78] sm:$0xff]  ;;  %v5936_v51 = vld [vmem:[%s9812_s0 + $0x80] sm:$0xff]  ;;  %vm1365_vm1 = vcmask 1041408   ;;  %vm2537_vm2 = vcmask 785408   ;;  %s5754_s15 = smov [#allocation2]  }
  0x16   :  { %v193_v41 = vsel %vm162_vm0, %v108_v37, 0.0  ;;  %v196_v42 = vsel %vm162_vm0, %v109_v38, 0.0  ;;  %v112_v49 = vmul.f32 %v5825_v8, %v5920_v45  ;;  %v113_v50 = vmul.f32 %v5825_v8, %v5925_v46  ;;  %v5941_v52 = vld [vmem:[%s9812_s0 + $0x88] sm:$0xff]  ;;  %v5952_v57 = vld [vmem:[%s9812_s0 + $0x90] sm:$0xff]  ;;  %v5957_v58 = vld [vmem:[%s9812_s0 + $0x98] sm:$0xff]  ;;  %s5033_s16 = sshll.u32 %s5754_s15, 4  ;;  %s5034_s16 = int_to_ptr.vmem [resolvable:$true] %s5033_s16 }
  0x17   :  { %182 = vadd.xlane.f32.xlu0 %v181_v31  ;;  %185 = vadd.xlane.f32.xlu1 %v184_v32  ;;  %v199_v47 = vsel %vm162_vm0, %v110_v43, 0.0  ;;  %v202_v48 = vsel %vm162_vm0, %v111_v44, 0.0  ;;  %v114_v55 = vmul.f32 %v5825_v8, %v5936_v51  ;;  %v115_v56 = vmul.f32 %v5825_v8, %v5941_v52  ;;  %v5968_v63 = vld [vmem:[%s9812_s0 + $0xa0] sm:$0xff]  ;;  %v5973_v4 = vld [vmem:[%s9812_s0 + $0xa8] sm:$0xff]  ;;  %v5988_v27 = vld [vmem:[%s9812_s0 + $0xb0] sm:$0xff]  ;;  %s5724_s17 = scalar_lea.vmem %s5034_s16, 64  ;;  %p5729_p1 = scmp.lt.s32.totalorder %s5034_s16, %s5034_s16 }
  0x18   :  { %v205_v53 = vsel %vm162_vm0, %v112_v49, 0.0  ;;  %v208_v54 = vsel %vm162_vm0, %v113_v50, 0.0  ;;  %v116_v61 = vmul.f32 %v5825_v8, %v5952_v57  ;;  %v117_v62 = vmul.f32 %v5825_v8, %v5957_v58  ;;  %p5725_p0 = scmp.ne.s32.totalorder %s5034_s16, %s5724_s17  ;;  %p5730_p2 = scmp.lt.s32.totalorder %s5724_s17, %s5724_s17 }
  0x19   :  { %v211_v59 = vsel %vm162_vm0, %v114_v55, 0.0  ;;  %v214_v60 = vsel %vm162_vm0, %v115_v56, 0.0  ;;  %v118_v13 = vmul.f32 %v5825_v8, %v5968_v63  ;;  %v119_v14 = vmul.f32 %v5825_v8, %v5973_v4 }
  0x1a   :  { %v217_v11 = vsel %vm162_vm0, %v116_v61, 0.0  ;;  %v220_v12 = vsel %vm162_vm0, %v117_v62, 0.0  ;;  %p5731_p3 = por %p5730_p2, %p5729_p1 }
  0x1b   :  { %188 = vadd.xlane.f32.xlu0 %v187_v35  ;;  %191 = vadd.xlane.f32.xlu1 %v190_v36  ;;  %v223_v15 = vsel %vm162_vm0, %v118_v13, 0.0  ;;  %v226_v16 = vsel %vm162_vm0, %v119_v14, 0.0  ;;  %v120_v35 = vmul.f32 %v5825_v8, %v5988_v27 }
  0x1c   :  { %p5732_p4 = pnand %p5731_p3, %p5725_p0 }
  0x1d   :  { %v229_v50 = vsel %vm162_vm0, %v120_v35, 0.0 }
  0x1f   :  { %194 = vadd.xlane.f32.xlu0 %v193_v41  ;;  %197 = vadd.xlane.f32.xlu1 %v196_v42  ;;  %v6005_v42 = vld [vmem:[%s9812_s0 + $0xb8] sm:$0xff] }
  0x23   :  { %200 = vadd.xlane.f32.xlu0 %v199_v47  ;;  %203 = vadd.xlane.f32.xlu1 %v202_v48 }
  0x27   :  { %206 = vadd.xlane.f32.xlu0 %v205_v53  ;;  %209 = vadd.xlane.f32.xlu1 %v208_v54  ;;  %v121_v54 = vmul.f32 %v5825_v8, %v6005_v42 }
  0x29   :  { %v232_v13 = vsel %vm162_vm0, %v121_v54, 0.0 }
  0x2b   :  { %212 = vadd.xlane.f32.xlu0 %v211_v59  ;;  %215 = vadd.xlane.f32.xlu1 %v214_v60  ;;  %v6022_v60 = vld [vmem:[%s9812_s0 + $0xc0] sm:$0xff] }
  0x2c   :  { %v122_v14 = vmul.f32 %v5825_v8, %v6022_v60 }
  0x2f   :  { %218 = vadd.xlane.f32.xlu0 %v217_v11  ;;  %221 = vadd.xlane.f32.xlu1 %v220_v12 }
  0x33   :  { %224 = vadd.xlane.f32.xlu0 %v223_v15  ;;  %227 = vadd.xlane.f32.xlu1 %v226_v16 }
  0x98   :  { %v165_v19 = vpop.xlane.xlu0 %164  ;;  %v171_v20 = vpop.xlane.xlu1 %170 }
  0x99   :  { %v355_v21 = vmul.f32 0.03125, %v165_v19  ;;  %v357_v22 = vmul.f32 0.03125, %v171_v20  ;;  %v6038_v20 = vld [vmem:[%s9812_s0 + $0xc8] sm:$0xff] }
  0x9b   :  { %v419_v25 = vsub.f32 %v5806_v3, %v355_v21  ;;  %v421_v26 = vsub.f32 %v5817_v6, %v357_v22 }
  0x9c   :  { %v168_v28 = vpop.xlane.xlu0 %167  ;;  %v174_v31 = vpop.xlane.xlu1 %173 }
  0x9d   :  { %v356_v32 = vmul.f32 0.03125, %v168_v28  ;;  %v5991_v33 = vmul.f32 %v419_v25, %v5825_v8  ;;  %v358_v34 = vmul.f32 0.03125, %v174_v31  ;;  %v5996_v36 = vmul.f32 %v421_v26, %v5825_v8 }
  0x9e   :  { %v235_v25 = vsel %vm162_vm0, %v122_v14, 0.0  ;;  %v123_v26 = vmul.f32 %v5825_v8, %v6038_v20 }
  0x9f   :  { %v420_v37 = vsub.f32 %v5812_v5, %v356_v32  ;;  %v547_v38 = vmul.f32 %v5991_v33, %v5991_v33  ;;  %v422_v41 = vsub.f32 %v5822_v7, %v358_v34  ;;  %v549_v53 = vmul.f32 %v5996_v36, %v5996_v36 }
  0xa0   :  { %v177_v43 = vpop.xlane.xlu0 %176  ;;  %v180_v44 = vpop.xlane.xlu1 %179 }
  0xa1   :  { %v611_v47 = vsel %vm162_vm0, %v547_v38, 0.0  ;;  %v6009_v48 = vmul.f32 %v420_v37, %v5825_v8  ;;  %v359_v49 = vmul.f32 0.03125, %v177_v43  ;;  %v360_v59 = vmul.f32 0.03125, %v180_v44  ;;  %v6056_v37 = vld [vmem:[%s9812_s0 + $0xd0] sm:$0xff] }
  0xa2   :  { %612 = vadd.xlane.f32.xlu0 %v611_v47  ;;  %v6025_v61 = vmul.f32 %v422_v41, %v5825_v8  ;;  %v617_v12 = vsel %vm162_vm0, %v549_v53, 0.0  ;;  %v238_v41 = vsel %vm162_vm0, %v123_v26, 0.0  ;;  %v124_v44 = vmul.f32 %v5825_v8, %v6056_v37  ;;  %v6068_v53 = vld [vmem:[%s9812_s0 + $0xd8] sm:$0xff] }
  0xa3   :  { %v548_v55 = vmul.f32 %v6009_v48, %v6009_v48  ;;  %v423_v56 = vsub.f32 %v5830_v9, %v359_v49  ;;  %v424_v15 = vsub.f32 %v5835_v10, %v360_v59  ;;  %v125_v59 = vmul.f32 %v5825_v8, %v6068_v53 }
  0xa4   :  { %v183_v62 = vpop.xlane.xlu0 %182  ;;  %v550_v16 = vmul.f32 %v6025_v61, %v6025_v61  ;;  %v186_v22 = vpop.xlane.xlu1 %185 }
  0xa5   :  { %v614_v11 = vsel %vm162_vm0, %v548_v55, 0.0  ;;  %v361_v19 = vmul.f32 0.03125, %v183_v62  ;;  %v6041_v21 = vmul.f32 %v423_v56, %v5825_v8  ;;  %v362_v28 = vmul.f32 0.03125, %v186_v22 }
  0xa6   :  { %230 = vadd.xlane.f32.xlu0 %v229_v50  ;;  %615 = vadd.xlane.f32.xlu1 %v614_v11  ;;  %v620_v31 = vsel %vm162_vm0, %v550_v16, 0.0  ;;  %v6051_v35 = vmul.f32 %v424_v15, %v5825_v8  ;;  %v241_v56 = vsel %vm162_vm0, %v124_v44, 0.0  ;;  %v6086_v15 = vld [vmem:[%s9812_s0 + $0xe0] sm:$0xff] }
  0xa7   :  { %v425_v32 = vsub.f32 %v5850_v17, %v361_v19  ;;  %v551_v34 = vmul.f32 %v6041_v21, %v6041_v21  ;;  %v426_v43 = vsub.f32 %v5855_v18, %v362_v28  ;;  %v244_v19 = vsel %vm162_vm0, %v125_v59, 0.0 }
  0xa8   :  { %v189_v38 = vpop.xlane.xlu0 %188  ;;  %v552_v49 = vmul.f32 %v6051_v35, %v6051_v35  ;;  %v192_v55 = vpop.xlane.xlu1 %191 }
  0xa9   :  { %v623_v47 = vsel %vm162_vm0, %v551_v34, 0.0  ;;  %v363_v50 = vmul.f32 0.03125, %v189_v38  ;;  %v6071_v54 = vmul.f32 %v425_v32, %v5825_v8  ;;  %v364_v62 = vmul.f32 0.03125, %v192_v55  ;;  %v6098_v32 = vld [vmem:[%s9812_s0 + $0xe8] sm:$0xff] }
  0xaa   :  { %618 = vadd.xlane.f32.xlu0 %v617_v12  ;;  %233 = vadd.xlane.f32.xlu1 %v232_v13  ;;  %v626_v11 = vsel %vm162_vm0, %v552_v49, 0.0  ;;  %v6081_v14 = vmul.f32 %v426_v43, %v5825_v8  ;;  %v127_v43 = vmul.f32 %v5825_v8, %v6098_v32 }
  0xab   :  { %v427_v12 = vsub.f32 %v5866_v23, %v363_v50  ;;  %v553_v13 = vmul.f32 %v6071_v54, %v6071_v54  ;;  %v428_v22 = vsub.f32 %v5871_v24, %v364_v62  ;;  %v5408_v62 = vld [vmem:[%s9814_s2 + $0x4] ss:$8 sps:$4 sm:$0xff]  }
  0xac   :  { %v195_v16 = vpop.xlane.xlu0 %194  ;;  %v554_v28 = vmul.f32 %v6081_v14, %v6081_v14  ;;  %v198_v38 = vpop.xlane.xlu1 %197  ;;  %1372 = vmatprep.subr.bf16.mxu0 %v5408_v62 }
  0xad   :  { %v629_v26 = vsel %vm162_vm0, %v553_v13, 0.0  ;;  %v6101_v34 = vmul.f32 %v427_v12, %v5825_v8  ;;  %v366_v44 = vmul.f32 0.03125, %v198_v38  ;;  %v6111_v55 = vmul.f32 %v428_v22, %v5825_v8 }
  0xae   :  { %236 = vadd.xlane.f32.xlu0 %v235_v25  ;;  %621 = vadd.xlane.f32.xlu1 %v620_v31  ;;  %v126_v25 = vmul.f32 %v5825_v8, %v6086_v15  ;;  %v365_v31 = vmul.f32 0.03125, %v195_v16 }
  0xaf   :  { %v555_v50 = vmul.f32 %v6101_v34, %v6101_v34  ;;  %v430_v12 = vsub.f32 %v5887_v30, %v366_v44  ;;  %v6147_v44 = vld [vmem:[%s9812_s0 + $0x100] sm:$0xff] }
  0xb0   :  { %v429_v49 = vsub.f32 %v5882_v29, %v365_v31  ;;  %v201_v59 = vpop.xlane.xlu0 %200  ;;  %v204_v16 = vpop.xlane.xlu1 %203 }
  0xb1   :  { %v635_v22 = vsel %vm162_vm0, %v555_v50, 0.0  ;;  %v368_v38 = vmul.f32 0.03125, %v204_v16 }
  0xb2   :  { %239 = vadd.xlane.f32.xlu1 %v238_v41  ;;  %624 = vadd.xlane.f32.xlu0 %v623_v47  ;;  %v247_v41 = vsel %vm162_vm0, %v126_v25, 0.0  ;;  %v632_v47 = vsel %vm162_vm0, %v554_v28, 0.0  ;;  %v556_v25 = vmul.f32 %v6111_v55, %v6111_v55  ;;  %v6134_v28 = vld [vmem:[%s9812_s0 + $0xf8] sm:$0xff]  ;;  %v6137_v31 = vmul.f32 %v429_v49, %v5825_v8 }
  0xb3   :  { %v432_v16 = vsub.f32 %v5909_v40, %v368_v38 }
  0xb4   :  { %9979 = vst [vmem:[#allocation6_spill] sm:$0xff] %v6137_v31  ;;  %v638_v49 = vsel %vm162_vm0, %v556_v25, 0.0  ;;  %v557_v62 = vmul.f32 %v6137_v31, %v6137_v31 }
  0xb6   :  { %627 = vadd.xlane.f32.xlu1 %v626_v11  ;;  %242 = vadd.xlane.f32.xlu0 %v241_v56  ;;  %v6116_v56 = vld [vmem:[%s9812_s0 + $0xf0] sm:$0xff]  ;;  %v250_v11 = vsel %vm162_vm0, %v127_v43, 0.0  ;;  %v6142_v43 = vmul.f32 %v430_v12, %v5825_v8  ;;  %v207_v12 = vpop.xlane.xlu0 %206 }
  0xb7   :  { %v128_v13 = vmul.f32 %v5825_v8, %v6116_v56  ;;  %v369_v38 = vmul.f32 0.03125, %v207_v12 }
  0xb8   :  { %9980 = vst [vmem:[#allocation7_spill] sm:$0xff] %v6142_v43  ;;  %v558_v25 = vmul.f32 %v6142_v43, %v6142_v43 }
  0xb9   :  { %v253_v50 = vsel %vm162_vm0, %v128_v13, 0.0  ;;  %v1231_v13 = vld [vmem:[%s9814_s2 + $0x20] sm:$0x33] }
  0xba   :  { %245 = vadd.xlane.f32.xlu1 %v244_v19  ;;  %630 = vadd.xlane.f32.xlu0 %v629_v26  ;;  %v5410_v19 = vld [vmem:[%s9814_s2] ss:$8 sps:$4 sm:$0xff]   ;;  %v367_v26 = vmul.f32 0.03125, %v201_v59  ;;  %v5045_v0 = vcombine.low %v1231_v13, %v1231_v13 }
  0xbb   :  { %1373 = vmatpush1.bf16.msra.mxu0 %v5410_v19  ;;  %v130_v19 = vmul.f32 %v5825_v8, %v6147_v44 }
  0xbc   :  { %v431_v59 = vsub.f32 %v5904_v39, %v367_v26  ;;  %v5046_v26 = vcombine.high %v1231_v13, %v1231_v13  ;;  %v644_v13 = vsel %vm162_vm0, %v558_v25, 0.0 }
  0xbe   :  { %633 = vadd.xlane.f32.xlu1 %v632_v47  ;;  %248 = vadd.xlane.f32.xlu0 %v247_v41  ;;  %v129_v41 = vmul.f32 %v5825_v8, %v6134_v28  ;;  %v5411_v47 = vld [vmem:[%s9814_s2 + $0x14] ss:$8 sps:$4 sm:$0xff]   ;;  %v6176_v31 = vmul.f32 %v431_v59, %v5825_v8  ;;  %v433_v59 = vsub.f32 %v5920_v45, %v369_v38 }
  0xbf   :  { %1374 = vmatprep.subr.bf16.mxu0 %v5411_v47  ;;  %v641_v47 = vsel %vm162_vm0, %v557_v62, 0.0 }
  0xc0   :  { %9981 = vst [vmem:[#allocation8_spill] sm:$0xff] %v6176_v31  ;;  %v559_v43 = vmul.f32 %v6176_v31, %v6176_v31 }
  0xc2   :  { %251 = vadd.xlane.f32.xlu1 %v250_v11  ;;  %636 = vadd.xlane.f32.xlu0 %v635_v22  ;;  %v5413_v11 = vld [vmem:[%s9814_s2 + $0x10] ss:$8 sps:$4 sm:$0xff]   ;;  %v256_v22 = vsel %vm162_vm0, %v129_v41, 0.0  ;;  %v1367_v41 = vsel %vm1365_vm1, %v5045_v0, 0 }
  0xc3   :  { %1375 = vmatpush1.bf16.msra.mxu0 %v5413_v11  ;;  %v6173_v11 = vld [vmem:[%s9812_s0 + $0x108] sm:$0xff]  ;;  %v6193_v0 = vld [vmem:[%s9812_s0 + $0x110] sm:$0xff] }
  0xc4   :  { %5047 = vmatprep.subr.msk.bf16.mxu0 %vm1365_vm1, %v5046_v26  ;;  %v131_v62 = vmul.f32 %v5825_v8, %v6173_v11  ;;  %v6188_v26 = vmul.f32 %v432_v16, %v5825_v8  ;;  %9983 = vst [vmem:[#allocation10_spill] sm:$0xff] %v6193_v0  ;;  %v132_v38 = vmul.f32 %v5825_v8, %v6193_v0  ;;  %v647_v16 = vsel %vm162_vm0, %v559_v43, 0.0 }
  0xc6   :  { %639 = vadd.xlane.f32.xlu1 %v638_v49  ;;  %254 = vadd.xlane.f32.xlu0 %v253_v50  ;;  %v210_v49 = vpop.xlane.xlu1 %209  ;;  %v259_v50 = vsel %vm162_vm0, %v130_v19, 0.0  ;;  %9982 = vst [vmem:[#allocation9_spill] sm:$0xff] %v6188_v26  ;;  %v9823_v19 = vmov 0   ;;  %v262_v25 = vsel %vm162_vm0, %v131_v62, 0.0 }
  0xc7   :  { %1377 = vmatpush1.bf16.msra.mxu0 %v1367_v41  ;;  %v370_v12 = vmul.f32 0.03125, %v210_v49  ;;  %1404 = vmatprep.mubr.bf16.mxu0 %v9823_v19  ;;  %v560_v49 = vmul.f32 %v6188_v26, %v6188_v26  ;;  %v6206_v19 = vld [vmem:[%s9812_s0 + $0x118] sm:$0xff] }
  0xc8   :  { %9984 = vst [vmem:[#allocation11_spill] sm:$0xff] %v6206_v19  ;;  %v133_v43 = vmul.f32 %v5825_v8, %v6206_v19 }
  0xc9   :  { %v650_v26 = vsel %vm162_vm0, %v560_v49, 0.0 }
  0xca   :  { %257 = vadd.xlane.f32.xlu1 %v256_v22  ;;  %642 = vadd.xlane.f32.xlu0 %v641_v47  ;;  %v213_v22 = vpop.xlane.xlu0 %212  ;;  %v434_v47 = vsub.f32 %v5925_v46, %v370_v12  ;;  %v216_v62 = vpop.xlane.xlu1 %215  ;;  %v265_v12 = vsel %vm162_vm0, %v132_v38, 0.0  ;;  %v268_v38 = vsel %vm162_vm0, %v133_v43, 0.0 }
  0xcb   :  { %v371_v41 = vmul.f32 0.03125, %v213_v22 }
  0xcc   :  { %v6219_v0 = vmul.f32 %v434_v47, %v5825_v8 }
  0xcd   :  { %v435_v22 = vsub.f32 %v5936_v51, %v371_v41 }
  0xce   :  { %645 = vadd.xlane.f32.xlu1 %v644_v13  ;;  %260 = vadd.xlane.f32.xlu0 %v259_v50  ;;  %v6209_v50 = vmul.f32 %v433_v59, %v5825_v8  ;;  %v372_v13 = vmul.f32 0.03125, %v216_v62  ;;  %9986 = vst [vmem:[#allocation13_spill] sm:$0xff] %v6219_v0  ;;  %v6224_v59 = vld [vmem:[%s9812_s0 + $0x120] sm:$0xff]  ;;  %v562_v47 = vmul.f32 %v6219_v0, %v6219_v0 }
  0xcf   :  { %9987 = vst [vmem:[#allocation14_spill] sm:$0xff] %v6224_v59  ;;  %v134_v49 = vmul.f32 %v5825_v8, %v6224_v59 }
  0xd0   :  { %9985 = vst [vmem:[#allocation12_spill] sm:$0xff] %v6209_v50  ;;  %v561_v31 = vmul.f32 %v6209_v50, %v6209_v50  ;;  %v6236_v50 = vld [vmem:[%s9812_s0 + $0x128] sm:$0xff]  ;;  %v656_v0 = vsel %vm162_vm0, %v562_v47, 0.0 }
  0xd1   :  { %9988 = vst [vmem:[#allocation15_spill] sm:$0xff] %v6236_v50  ;;  %v271_v43 = vsel %vm162_vm0, %v134_v49, 0.0 }
  0xd2   :  { %263 = vadd.xlane.f32.xlu1 %v262_v25  ;;  %648 = vadd.xlane.f32.xlu0 %v647_v16  ;;  %v219_v25 = vpop.xlane.xlu0 %218  ;;  %v436_v16 = vsub.f32 %v5941_v52, %v372_v13  ;;  %v653_v41 = vsel %vm162_vm0, %v561_v31, 0.0  ;;  %v135_v31 = vmul.f32 %v5825_v8, %v6236_v50 }
  0xd3   :  { %v373_v62 = vmul.f32 0.03125, %v219_v25 }
  0xd4   :  { %v6249_v19 = vmul.f32 %v436_v16, %v5825_v8  ;;  %v274_v49 = vsel %vm162_vm0, %v135_v31, 0.0 }
  0xd5   :  { %v437_v25 = vsub.f32 %v5952_v57, %v373_v62 }
  0xd6   :  { %651 = vadd.xlane.f32.xlu1 %v650_v26  ;;  %266 = vadd.xlane.f32.xlu0 %v265_v12  ;;  %v6239_v26 = vmul.f32 %v435_v22, %v5825_v8  ;;  %v222_v12 = vpop.xlane.xlu1 %221  ;;  %9990 = vst [vmem:[#allocation17_spill] sm:$0xff] %v6249_v19  ;;  %v6254_v22 = vld [vmem:[%s9812_s0 + $0x130] sm:$0xff]  ;;  %v564_v16 = vmul.f32 %v6249_v19, %v6249_v19 }
  0xd7   :  { %v374_v13 = vmul.f32 0.03125, %v222_v12  ;;  %9991 = vst [vmem:[#allocation18_spill] sm:$0xff] %v6254_v22  ;;  %v136_v47 = vmul.f32 %v5825_v8, %v6254_v22 }
  0xd8   :  { %9989 = vst [vmem:[#allocation16_spill] sm:$0xff] %v6239_v26  ;;  %v563_v59 = vmul.f32 %v6239_v26, %v6239_v26  ;;  %v6266_v26 = vld [vmem:[%s9812_s0 + $0x138] sm:$0xff]  ;;  %v662_v19 = vsel %vm162_vm0, %v564_v16, 0.0 }
  0xd9   :  { %v277_v31 = vsel %vm162_vm0, %v136_v47, 0.0 }
  0xda   :  { %269 = vadd.xlane.f32.xlu1 %v268_v38  ;;  %654 = vadd.xlane.f32.xlu0 %v653_v41  ;;  %v225_v38 = vpop.xlane.xlu0 %224  ;;  %v438_v41 = vsub.f32 %v5957_v58, %v374_v13  ;;  %v659_v62 = vsel %vm162_vm0, %v563_v59, 0.0  ;;  %v137_v59 = vmul.f32 %v5825_v8, %v6266_v26 }
  0xdb   :  { %v375_v12 = vmul.f32 0.03125, %v225_v38 }
  0xdc   :  { %v6279_v50 = vmul.f32 %v438_v41, %v5825_v8 }
  0xdd   :  { %v439_v38 = vsub.f32 %v5968_v63, %v375_v12 }
  0xde   :  { %657 = vadd.xlane.f32.xlu1 %v656_v0  ;;  %272 = vadd.xlane.f32.xlu0 %v271_v43  ;;  %v6269_v0 = vmul.f32 %v437_v25, %v5825_v8  ;;  %v228_v43 = vpop.xlane.xlu1 %227  ;;  %v6284_v25 = vld [vmem:[%s9812_s0 + $0x140] sm:$0xff]  ;;  %v566_v41 = vmul.f32 %v6279_v50, %v6279_v50 }
  0xdf   :  { %v376_v13 = vmul.f32 0.03125, %v228_v43  ;;  %v138_v47 = vmul.f32 %v5825_v8, %v6284_v25  ;;  %v6294_v12 = vmul.f32 %v439_v38, %v5825_v8  ;;  %v6313_v38 = vld [vmem:[%s9812_s0 + $0x150] sm:$0xff] }
  0xe0   :  { %v565_v22 = vmul.f32 %v6269_v0, %v6269_v0 }
  0xe1   :  { %v440_v16 = vsub.f32 %v5973_v4, %v376_v13  ;;  %v283_v43 = vsel %vm162_vm0, %v138_v47, 0.0 }
  0xe2   :  { %275 = vadd.xlane.f32.xlu1 %v274_v49  ;;  %660 = vadd.xlane.f32.xlu0 %v659_v62  ;;  %v280_v49 = vsel %vm162_vm0, %v137_v59, 0.0  ;;  %v665_v62 = vsel %vm162_vm0, %v565_v22, 0.0  ;;  %v567_v59 = vmul.f32 %v6294_v12, %v6294_v12 }
  0xe3   :  { %v6308_v13 = vmul.f32 %v440_v16, %v5825_v8  ;;  %v6324_v16 = vld [vmem:[%s9812_s0 + $0x158] sm:$0xff] }
  0xe4   :  { %v671_v47 = vsel %vm162_vm0, %v567_v59, 0.0 }
  0xe5   :  { %9992 = vst [vmem:[#allocation19_spill] sm:$0xff] %v6308_v13 }
  0xe6   :  { %663 = vadd.xlane.f32.xlu1 %v662_v19  ;;  %278 = vadd.xlane.f32.xlu0 %v277_v31  ;;  %v6299_v19 = vld [vmem:[%s9812_s0 + $0x148] sm:$0xff]  ;;  %v668_v31 = vsel %vm162_vm0, %v566_v41, 0.0  ;;  %v140_v41 = vmul.f32 %v5825_v8, %v6313_v38 }
  0xe7   :  { %v139_v22 = vmul.f32 %v5825_v8, %v6299_v19 }
  0xea   :  { %281 = vadd.xlane.f32.xlu1 %v280_v49  ;;  %666 = vadd.xlane.f32.xlu0 %v665_v62  ;;  %v286_v49 = vsel %vm162_vm0, %v139_v22, 0.0  ;;  %v568_v62 = vmul.f32 %v6308_v13, %v6308_v13  ;;  %v141_v22 = vmul.f32 %v5825_v8, %v6324_v16  ;;  %v5416_v13 = vld [vmem:[%s9816_s4] sm:$0xff]  }
  0xeb   :  { %5312 = vmatprep.subr.bf16.mxu1 %v5416_v13 }
  0xec   :  { %v292_v59 = vsel %vm162_vm0, %v141_v22, 0.0  ;;  %5313 = vmatpush3.bf16.msra.mxu1 %v5416_v13  ;;  %v1857_v13 = vpack.c.bf16 %v5871_v24, %v5866_v23 }
  0xee   :  { %669 = vadd.xlane.f32.xlu1 %v668_v31  ;;  %284 = vadd.xlane.f32.xlu0 %v283_v43  ;;  %v674_v31 = vsel %vm162_vm0, %v568_v62, 0.0  ;;  %v289_v43 = vsel %vm162_vm0, %v140_v41, 0.0  ;;  %v5418_v62 = vld [vmem:[%s9816_s4 + $0x10] ss:$0 sps:$4 sm:$0x33]  }
  0xef   :  { %v2002_v41 = vsel %vm1365_vm1, %v5418_v62, 0 }
  0xf2   :  { %287 = vadd.xlane.f32.xlu1 %v286_v49  ;;  %672 = vadd.xlane.f32.xlu0 %v671_v47  ;;  %v5417_v49 = vld [vmem:[%s9816_s4 + $0x8] sm:$0xff]   ;;  %v1853_v47 = vpack.c.bf16 %v5812_v5, %v5806_v3  ;;  %v1855_v3 = vpack.c.bf16 %v5835_v10, %v5830_v9  ;;  %v1856_v5 = vpack.c.bf16 %v5855_v18, %v5850_v17 }
  0xf3   :  { %5314 = vmatprep.subr.bf16.mxu1 %v5417_v49  ;;  %v1859_v17 = vpack.c.bf16 %v5909_v40, %v5904_v39 }
  0xf4   :  { %5318 = vmatprep.mubr.msk.bf16.mxu1 %vm162_vm0, %v1853_v47  ;;  %5315 = vmatpush3.bf16.msra.mxu1 %v5417_v49  ;;  %v1858_v49 = vpack.c.bf16 %v5887_v30, %v5882_v29  ;;  %v6371_v29 = vsub.s32 0, %v5796_v1 }
  0xf5   :  { %5382 = vmatprep.subr.msk.bf16.mxu1 %vm1365_vm1, %v5418_v62  ;;  %v6365_v62 = vld [vmem:[%s9812_s0 + $0x160] sm:$0xff] }
  0xf6   :  { %675 = vadd.xlane.f32.xlu1 %v674_v31  ;;  %290 = vadd.xlane.f32.xlu0 %v289_v43  ;;  %v1854_v31 = vpack.c.bf16 %v5822_v7, %v5817_v6  ;;  %9993 = vst [vmem:[#allocation20_spill] sm:$0xff] %v6371_v29 }
  0xf8   :  { %5317 = vmatpush3.bf16.msra.mxu1 %v2002_v41 }
  0xfa   :  { %293 = vadd.xlane.f32.xlu1 %v292_v59 }
  0xfb   :  { %5319 = vmatmul.mubr.msk.bf16.vlgmr.msra.gmra.mrb[0].mxu1 %vm162_vm0, %v1854_v31 }
  0xfc   :  { %5322 = vmatprep.mubr.msk.bf16.mxu1 %vm162_vm0, %v1855_v3 }
 0x103   :  { %5323 = vmatmul.mubr.msk.bf16.gmra.mrb[4].mxu1 %vm162_vm0, %v1856_v5  ;;  %v142_v5 = vmul.f32 %v5825_v8, %v6365_v62 }
 0x104   :  { %5326 = vmatprep.mubr.msk.bf16.mxu1 %vm162_vm0, %v1857_v13 }
 0x10b   :  { %5327 = vmatmul.mubr.msk.bf16.gmra.mrb[8].mxu1 %vm162_vm0, %v1858_v49 }
 0x10c   :  { %5330 = vmatprep.mubr.msk.bf16.mxu1 %vm162_vm0, %v1859_v17 }
 0x12f   :  { %v613_v43 = vpop.xlane.xlu0 %612 }
 0x130   :  { %v803_v22 = vmul.f32 0.03125, %v613_v43 }
 0x132   :  { %v867_v59 = vadd.f32 1e-05, %v803_v22 }
 0x133   :  { %v616_v6 = vpop.xlane.xlu1 %615  ;;  %v231_v7 = vpop.xlane.xlu0 %230 }
 0x134   :  { %5461 = vrsqrt.f32 %v867_v59  ;;  %v804_v9 = vmul.f32 0.03125, %v616_v6  ;;  %v377_v10 = vmul.f32 0.03125, %v231_v7  ;;  %v6384_v7 = vld [vmem:[%s9812_s0 + $0x168] sm:$0xff] }
 0x136   :  { %v868_v18 = vadd.f32 1e-05, %v804_v9  ;;  %v441_v23 = vsub.f32 %v5988_v27, %v377_v10  ;;  %v1860_v9 = vpack.c.bf16 %v5925_v46, %v5920_v45  ;;  %v1861_v10 = vpack.c.bf16 %v5941_v52, %v5936_v51  ;;  %v6406_v51 = vld [vmem:[%s9812_s0 + $0x170] sm:$0xff] }
 0x137   :  { %v234_v24 = vpop.xlane.xlu1 %233  ;;  %v619_v47 = vpop.xlane.xlu0 %618  ;;  %v143_v46 = vmul.f32 %v5825_v8, %v6384_v7 }
 0x138   :  { %5463 = vrsqrt.f32 %v868_v18  ;;  %v378_v41 = vmul.f32 0.03125, %v234_v24  ;;  %v805_v31 = vmul.f32 0.03125, %v619_v47  ;;  %v6368_v3 = vmul.f32 %v441_v23, %v5825_v8  ;;  %5331 = vmatmul.mubr.msk.bf16.gmra.mrb[12].mxu1 %vm162_vm0, %v1860_v9 }
 0x139   :  { %v295_v24 = vsel %vm162_vm0, %v142_v5, 0.0  ;;  %v6397_v47 = vrot.slane %v5801_v2, %v6371_v29  ;;  %5334 = vmatprep.mubr.msk.bf16.mxu1 %vm162_vm0, %v1861_v10 }
 0x13a   :  { %v442_v30 = vsub.f32 %v6005_v42, %v378_v41  ;;  %v869_v39 = vadd.f32 1e-05, %v805_v31  ;;  %v569_v40 = vmul.f32 %v6368_v3, %v6368_v3 }
 0x13b   :  { %v622_v13 = vpop.xlane.xlu1 %621  ;;  %v237_v43 = vpop.xlane.xlu0 %236 }
 0x13c   :  { %5465 = vrsqrt.f32 %v869_v39  ;;  %v806_v22 = vmul.f32 0.03125, %v622_v13  ;;  %v379_v59 = vmul.f32 0.03125, %v237_v43  ;;  %v677_v6 = vsel %vm162_vm0, %v569_v40, 0.0 }
 0x13d   :  { %678 = vadd.xlane.f32.xlu0 %v677_v6  ;;  %v6391_v49 = vmul.f32 %v442_v30, %v5825_v8  ;;  %v6410_v30 = vsub.s32 1, %v5796_v1  ;;  %v144_v6 = vmul.f32 %v5825_v8, %v6406_v51 }
 0x13e   :  { %v5462_v17 = vpop.eup %5461  ;;  %v870_v18 = vadd.f32 1e-05, %v806_v22  ;;  %v443_v23 = vsub.f32 %v6022_v60, %v379_v59 }
 0x13f   :  { %v240_v41 = vpop.xlane.xlu1 %239  ;;  %v625_v31 = vpop.xlane.xlu0 %624  ;;  %v570_v45 = vmul.f32 %v6391_v49, %v6391_v49  ;;  %v995_v52 = vmul.f32 %v5462_v17, %v5991_v33  ;;  %9994 = vst [vmem:[#allocation21_spill] sm:$0xff] %v6410_v30 }
 0x140   :  { %5467 = vrsqrt.f32 %v870_v18  ;;  %v380_v39 = vmul.f32 0.03125, %v240_v41  ;;  %v807_v40 = vmul.f32 0.03125, %v625_v31  ;;  %v6413_v5 = vmul.f32 %v443_v23, %v5825_v8  ;;  %v6433_v31 = vld [vmem:[%s9812_s0 + $0x178] sm:$0xff] }
 0x141   :  { %v680_v13 = vsel %vm162_vm0, %v570_v45, 0.0  ;;  %296 = vadd.xlane.f32.xlu0 %v295_v24  ;;  %v298_v23 = vsel %vm162_vm0, %v143_v46, 0.0  ;;  %v1063_v9 = vmul.f32 %v6397_v47, %v995_v52  ;;  %v6428_v41 = vrot.slane %v5801_v2, %v6410_v30  ;;  %v5421_v30 = vld [vmem:[%s9817_s5 + $0x4] ss:$8 sps:$4 sm:$0xff]  }
 0x142   :  { %v5464_v43 = vpop.eup %5463  ;;  %v444_v22 = vsub.f32 %v6038_v20, %v380_v39  ;;  %v871_v59 = vadd.f32 1e-05, %v807_v40  ;;  %681 = vadd.xlane.f32.xlu1 %v680_v13  ;;  %v571_v33 = vmul.f32 %v6413_v5, %v6413_v5  ;;  %v1862_v46 = vpack.c.bf16 %v5957_v58, %v5952_v57  ;;  %2634 = vmatprep.subr.bf16.mxu1 %v5421_v30 }
 0x143   :  { %v628_v17 = vpop.xlane.xlu1 %627  ;;  %v243_v18 = vpop.xlane.xlu0 %242  ;;  %v996_v24 = vmul.f32 %v5464_v43, %v6009_v48  ;;  %v1863_v48 = vpack.c.bf16 %v5973_v4, %v5968_v63  ;;  %v1131_v4 = vadd.f32 %v6428_v41, %v1063_v9 }
 0x144   :  { %5469 = vrsqrt.f32 %v871_v59  ;;  %v808_v45 = vmul.f32 0.03125, %v628_v17  ;;  %v381_v10 = vmul.f32 0.03125, %v243_v18  ;;  %v683_v39 = vsel %vm162_vm0, %v571_v33, 0.0  ;;  %v6455_v17 = vld [vmem:[%s9812_s0 + $0x180] sm:$0xff]  ;;  %5335 = vmatmul.mubr.msk.bf16.gmra.mrb[16].mxu1 %vm162_vm0, %v1862_v46 }
 0x145   :  { %684 = vadd.xlane.f32.xlu0 %v683_v39  ;;  %v6441_v2 = vmul.f32 %v444_v22, %v5825_v8  ;;  %v1064_v52 = vmul.f32 %v6397_v47, %v996_v24  ;;  %v301_v59 = vsel %vm162_vm0, %v144_v6, 0.0  ;;  %v145_v33 = vmul.f32 %v5825_v8, %v6433_v31  ;;  %5338 = vmatprep.mubr.msk.bf16.mxu1 %vm162_vm0, %v1863_v48 }
 0x146   :  { %v5466_v40 = vpop.eup %5465  ;;  %v872_v13 = vadd.f32 1e-05, %v808_v45  ;;  %v445_v43 = vsub.f32 %v6056_v37, %v381_v10  ;;  %299 = vadd.xlane.f32.xlu1 %v298_v23 }
 0x147   :  { %v246_v57 = vpop.xlane.xlu1 %245  ;;  %v631_v58 = vpop.xlane.xlu0 %630  ;;  %v572_v63 = vmul.f32 %v6441_v2, %v6441_v2  ;;  %v1132_v22 = vadd.f32 %v6428_v41, %v1064_v52  ;;  %v997_v18 = vmul.f32 %v5466_v40, %v5996_v36  ;;  %v146_v40 = vmul.f32 %v5825_v8, %v6455_v17 }
 0x148   :  { %5471 = vrsqrt.f32 %v872_v13  ;;  %v382_v6 = vmul.f32 0.03125, %v246_v57  ;;  %v809_v23 = vmul.f32 0.03125, %v631_v58  ;;  %v6459_v24 = vmul.f32 %v445_v43, %v5825_v8  ;;  %v6476_v58 = vld [vmem:[%s9812_s0 + $0x188] sm:$0xff] }
 0x149   :  { %v686_v45 = vsel %vm162_vm0, %v572_v63, 0.0  ;;  %302 = vadd.xlane.f32.xlu0 %v301_v59  ;;  %v1195_v10 = vpack.c.bf16 %v1132_v22, %v1131_v4  ;;  %v304_v59 = vsel %vm162_vm0, %v145_v33, 0.0  ;;  %v1065_v57 = vmul.f32 %v6397_v47, %v997_v18 }
 0x14a   :  { %v5468_v9 = vpop.eup %5467  ;;  %v446_v39 = vsub.f32 %v6068_v53, %v382_v6  ;;  %v873_v52 = vadd.f32 1e-05, %v809_v23  ;;  %687 = vadd.xlane.f32.xlu1 %v686_v45  ;;  %v573_v36 = vmul.f32 %v6459_v24, %v6459_v24  ;;  %v9995_v22 = vmov 0  }
 0x14b   :  { %v634_v13 = vpop.xlane.xlu1 %633  ;;  %5048 = vmatmul.mubr.msk.bf16.vlgmr.msra.gmra.mrb[0].mxu0 %vm162_vm0, %v1195_v10  ;;  %v249_v43 = vpop.xlane.xlu0 %248  ;;  %v998_v46 = vmul.f32 %v5468_v9, %v6025_v61  ;;  %v1864_v6 = vpack.c.bf16 %v6005_v42, %v5988_v27  ;;  %v1865_v61 = vpack.c.bf16 %v6038_v20, %v6022_v60  ;;  %v307_v9 = vsel %vm162_vm0, %v146_v40, 0.0 }
 0x14c   :  { %5473 = vrsqrt.f32 %v873_v52  ;;  %v810_v63 = vmul.f32 0.03125, %v634_v13  ;;  %v383_v4 = vmul.f32 0.03125, %v249_v43  ;;  %v689_v48 = vsel %vm162_vm0, %v573_v36, 0.0  ;;  %1414 = vmatprep.mubr.bf16.mxu0 %v9995_v22  ;;  %v6499_v36 = vld [vmem:[%s9812_s0 + $0x190] sm:$0xff] }
 0x14d   :  { %690 = vadd.xlane.f32.xlu0 %v689_v48  ;;  %v6485_v33 = vmul.f32 %v446_v39, %v5825_v8  ;;  %v1066_v18 = vmul.f32 %v6397_v47, %v998_v46  ;;  %v147_v52 = vmul.f32 %v5825_v8, %v6476_v58  ;;  %v1133_v20 = vadd.f32 %v6428_v41, %v1065_v57 }
 0x14e   :  { %v5470_v23 = vpop.eup %5469  ;;  %v874_v45 = vadd.f32 1e-05, %v810_v63  ;;  %v447_v10 = vsub.f32 %v6086_v15, %v383_v4  ;;  %305 = vadd.xlane.f32.xlu1 %v304_v59  ;;  %5339 = vmatmul.mubr.msk.bf16.gmra.mrb[20].mxu1 %vm162_vm0, %v1864_v6 }
 0x14f   :  { %v252_v27 = vpop.xlane.xlu1 %251  ;;  %v637_v42 = vpop.xlane.xlu0 %636  ;;  %v574_v60 = vmul.f32 %v6485_v33, %v6485_v33  ;;  %v1134_v39 = vadd.f32 %v6428_v41, %v1066_v18  ;;  %v999_v13 = vmul.f32 %v5470_v23, %v6041_v21  ;;  %v148_v18 = vmul.f32 %v5825_v8, %v6499_v36  ;;  %5342 = vmatprep.mubr.msk.bf16.mxu1 %vm162_vm0, %v1865_v61 }
 0x150   :  { %5475 = vrsqrt.f32 %v874_v45  ;;  %v384_v40 = vmul.f32 0.03125, %v252_v27  ;;  %v811_v43 = vmul.f32 0.03125, %v637_v42  ;;  %v6503_v59 = vmul.f32 %v447_v10, %v5825_v8  ;;  %v6520_v27 = vld [vmem:[%s9812_s0 + $0x198] sm:$0xff] }
 0x151   :  { %v692_v46 = vsel %vm162_vm0, %v574_v60, 0.0  ;;  %308 = vadd.xlane.f32.xlu0 %v307_v9  ;;  %v1196_v63 = vpack.c.bf16 %v1134_v39, %v1133_v20  ;;  %v310_v10 = vsel %vm162_vm0, %v147_v52, 0.0  ;;  %v1067_v9 = vmul.f32 %v6397_v47, %v999_v13 }
 0x152   :  { %v5472_v57 = vpop.eup %5471  ;;  %v448_v4 = vsub.f32 %v6098_v32, %v384_v40  ;;  %v875_v48 = vadd.f32 1e-05, %v811_v43  ;;  %693 = vadd.xlane.f32.xlu1 %v692_v46  ;;  %v575_v21 = vmul.f32 %v6503_v59, %v6503_v59  ;;  %v1866_v20 = vpack.c.bf16 %v6068_v53, %v6056_v37 }
 0x153   :  { %v640_v23 = vpop.xlane.xlu1 %639  ;;  %5049 = vmatmul.mubr.msk.bf16.gmra.mrb[4].mxu0 %vm162_vm0, %v1196_v63  ;;  %v255_v45 = vpop.xlane.xlu0 %254  ;;  %v1000_v6 = vmul.f32 %v5472_v57, %v6051_v35  ;;  %v1867_v35 = vpack.c.bf16 %v6098_v32, %v6086_v15  ;;  %v313_v46 = vsel %vm162_vm0, %v148_v18, 0.0  ;;  %v149_v63 = vmul.f32 %v5825_v8, %v6520_v27 }
 0x154   :  { %5477 = vrsqrt.f32 %v875_v48  ;;  %v812_v42 = vmul.f32 0.03125, %v640_v23  ;;  %v385_v60 = vmul.f32 0.03125, %v255_v45  ;;  %v695_v61 = vsel %vm162_vm0, %v575_v21, 0.0  ;;  %1424 = vmatprep.mubr.bf16.mxu0 %v9995_v22 }
 0x155   :  { %696 = vadd.xlane.f32.xlu0 %v695_v61  ;;  %v6529_v52 = vmul.f32 %v448_v4, %v5825_v8  ;;  %v1068_v39 = vmul.f32 %v6397_v47, %v1000_v6  ;;  %v1135_v32 = vadd.f32 %v6428_v41, %v1067_v9  ;;  %v6543_v4 = vld [vmem:[%s9812_s0 + $0x1a0] sm:$0xff] }
 0x156   :  { %v5474_v13 = vpop.eup %5473  ;;  %v876_v40 = vadd.f32 1e-05, %v812_v42  ;;  %v449_v43 = vsub.f32 %v6116_v56, %v385_v60  ;;  %311 = vadd.xlane.f32.xlu1 %v310_v10  ;;  %5343 = vmatmul.mubr.msk.bf16.gmra.mrb[24].mxu1 %vm162_vm0, %v1866_v20  ;;  %v150_v60 = vmul.f32 %v5825_v8, %v6543_v4 }
 0x157   :  { %v258_v37 = vpop.xlane.xlu1 %257  ;;  %v643_v53 = vpop.xlane.xlu0 %642  ;;  %v576_v15 = vmul.f32 %v6529_v52, %v6529_v52  ;;  %v1136_v57 = vadd.f32 %v6428_v41, %v1068_v39  ;;  %v1001_v48 = vmul.f32 %v5474_v13, %v6071_v54  ;;  %5346 = vmatprep.mubr.msk.bf16.mxu1 %vm162_vm0, %v1867_v35  ;;  %v316_v13 = vsel %vm162_vm0, %v149_v63, 0.0 }
 0x158   :  { %5479 = vrsqrt.f32 %v876_v40  ;;  %v386_v21 = vmul.f32 0.03125, %v258_v37  ;;  %v813_v18 = vmul.f32 0.03125, %v643_v53  ;;  %v6547_v23 = vmul.f32 %v449_v43, %v5825_v8  ;;  %v6564_v43 = vld [vmem:[%s9812_s0 + $0x1a8] sm:$0xff] }
 0x159   :  { %v698_v45 = vsel %vm162_vm0, %v576_v15, 0.0  ;;  %314 = vadd.xlane.f32.xlu0 %v313_v46  ;;  %v1197_v10 = vpack.c.bf16 %v1136_v57, %v1135_v32  ;;  %v1069_v40 = vmul.f32 %v6397_v47, %v1001_v48  ;;  %v1868_v53 = vpack.c.bf16 %v6134_v28, %v6116_v56 }
 0x15a   :  { %v5476_v6 = vpop.eup %5475  ;;  %v450_v9 = vsub.f32 %v6134_v28, %v386_v21  ;;  %v877_v42 = vadd.f32 1e-05, %v813_v18  ;;  %699 = vadd.xlane.f32.xlu1 %v698_v45  ;;  %v577_v54 = vmul.f32 %v6547_v23, %v6547_v23  ;;  %v319_v21 = vsel %vm162_vm0, %v150_v60, 0.0 }
 0x15b   :  { %v646_v61 = vpop.xlane.xlu1 %645  ;;  %5050 = vmatmul.mubr.msk.bf16.gmra.mrb[8].mxu0 %vm162_vm0, %v1197_v10  ;;  %v261_v39 = vpop.xlane.xlu0 %260  ;;  %v1002_v20 = vmul.f32 %v5476_v6, %v6081_v14  ;;  %v1869_v14 = vpack.c.bf16 %v6173_v11, %v6147_v44  ;;  %v151_v18 = vmul.f32 %v5825_v8, %v6564_v43  ;;  %v1137_v10 = vadd.f32 %v6428_v41, %v1069_v40 }
 0x15c   :  { %5481 = vrsqrt.f32 %v877_v42  ;;  %v814_v46 = vmul.f32 0.03125, %v646_v61  ;;  %v387_v37 = vmul.f32 0.03125, %v261_v39  ;;  %v701_v35 = vsel %vm162_vm0, %v577_v54, 0.0  ;;  %1434 = vmatprep.mubr.bf16.mxu0 %v9995_v22 }
 0x15d   :  { %702 = vadd.xlane.f32.xlu0 %v701_v35  ;;  %v6573_v63 = vmul.f32 %v450_v9, %v5825_v8  ;;  %v1070_v15 = vmul.f32 %v6397_v47, %v1002_v20  ;;  %v6587_v9 = vld [vmem:[%s9812_s0 + $0x1b0] sm:$0xff] }
 0x15e   :  { %v5478_v32 = vpop.eup %5477  ;;  %v878_v57 = vadd.f32 1e-05, %v814_v46  ;;  %v451_v48 = vsub.f32 %v6147_v44, %v387_v37  ;;  %317 = vadd.xlane.f32.xlu1 %v316_v13  ;;  %5347 = vmatmul.mubr.msk.bf16.gmra.mrb[28].mxu1 %vm162_vm0, %v1868_v53  ;;  %v152_v46 = vmul.f32 %v5825_v8, %v6587_v9 }
 0x15f   :  { %v264_v56 = vpop.xlane.xlu1 %263  ;;  %v649_v28 = vpop.xlane.xlu0 %648  ;;  %v578_v45 = vmul.f32 %v6573_v63, %v6573_v63  ;;  %v1138_v6 = vadd.f32 %v6428_v41, %v1070_v15  ;;  %v1003_v44 = vmul.f32 %v5478_v32, %v6101_v34  ;;  %5350 = vmatprep.mubr.msk.bf16.mxu1 %vm162_vm0, %v1869_v14  ;;  %v322_v15 = vsel %vm162_vm0, %v151_v18, 0.0  ;;  %v6608_v32 = vld [vmem:[%s9812_s0 + $0x1b8] sm:$0xff]  ;;  %v9998_v18 = vld [vmem:[#allocation14_spill] sm:$0xff] }
 0x160   :  { %5483 = vrsqrt.f32 %v878_v57  ;;  %v388_v42 = vmul.f32 0.03125, %v264_v56  ;;  %v815_v54 = vmul.f32 0.03125, %v649_v28  ;;  %v6591_v60 = vmul.f32 %v451_v48, %v5825_v8  ;;  %v9997_v56 = vld [vmem:[#allocation11_spill] sm:$0xff] }
 0x161   :  { %v704_v61 = vsel %vm162_vm0, %v578_v45, 0.0  ;;  %320 = vadd.xlane.f32.xlu0 %v319_v21  ;;  %v1198_v39 = vpack.c.bf16 %v1138_v6, %v1137_v10  ;;  %v9996_v21 = vld [vmem:[#allocation10_spill] sm:$0xff]  ;;  %v9999_v45 = vld [vmem:[#allocation15_spill] sm:$0xff] }
 0x162   :  { %v5480_v13 = vpop.eup %5479  ;;  %v452_v20 = vsub.f32 %v6173_v11, %v388_v42  ;;  %v879_v40 = vadd.f32 1e-05, %v815_v54  ;;  %705 = vadd.xlane.f32.xlu1 %v704_v61  ;;  %v579_v34 = vmul.f32 %v6591_v60, %v6591_v60  ;;  %v1071_v11 = vmul.f32 %v6397_v47, %v1003_v44 }
 0x163   :  { %v652_v37 = vpop.xlane.xlu1 %651  ;;  %5051 = vmatmul.mubr.msk.bf16.gmra.mrb[12].mxu0 %vm162_vm0, %v1198_v39  ;;  %v267_v35 = vpop.xlane.xlu0 %266  ;;  %v1004_v53 = vmul.f32 %v5480_v13, %v6111_v55  ;;  %v1870_v28 = vpack.c.bf16 %v9997_v56, %v9996_v21  ;;  %v1871_v55 = vpack.c.bf16 %v9999_v45, %v9998_v18  ;;  %v325_v61 = vsel %vm162_vm0, %v152_v46, 0.0 }
 0x164   :  { %5485 = vrsqrt.f32 %v879_v40  ;;  %v816_v57 = vmul.f32 0.03125, %v652_v37  ;;  %v389_v48 = vmul.f32 0.03125, %v267_v35  ;;  %v707_v14 = vsel %vm162_vm0, %v579_v34, 0.0  ;;  %1444 = vmatprep.mubr.bf16.mxu0 %v9995_v22  ;;  %v6631_v35 = vld [vmem:[%s9812_s0 + $0x1c0] sm:$0xff] }
 0x165   :  { %708 = vadd.xlane.f32.xlu0 %v707_v14  ;;  %v6617_v10 = vmul.f32 %v452_v20, %v5825_v8  ;;  %v1072_v6 = vmul.f32 %v6397_v47, %v1004_v53  ;;  %v153_v39 = vmul.f32 %v5825_v8, %v6608_v32  ;;  %v1139_v20 = vadd.f32 %v6428_v41, %v1071_v11 }
 0x166   :  { %v5482_v44 = vpop.eup %5481  ;;  %v880_v42 = vadd.f32 1e-05, %v816_v57  ;;  %v453_v54 = vsub.f32 %v9996_v21, %v389_v48  ;;  %323 = vadd.xlane.f32.xlu1 %v322_v15  ;;  %v10000_v15 = vld [vmem:[#allocation6_spill] sm:$0xff]  ;;  %5351 = vmatmul.mubr.msk.bf16.gmra.mrb[32].mxu1 %vm162_vm0, %v1870_v28  ;;  %v10001_v28 = vld [vmem:[#allocation7_spill] sm:$0xff] }
 0x167   :  { %v270_v13 = vpop.xlane.xlu1 %269  ;;  %v655_v40 = vpop.xlane.xlu0 %654  ;;  %v580_v34 = vmul.f32 %v6617_v10, %v6617_v10  ;;  %v1140_v37 = vadd.f32 %v6428_v41, %v1072_v6  ;;  %v1005_v53 = vmul.f32 %v5482_v44, %v10000_v15  ;;  %5354 = vmatprep.mubr.msk.bf16.mxu1 %vm162_vm0, %v1871_v55  ;;  %v10002_v15 = vld [vmem:[#allocation18_spill] sm:$0xff] }
 0x168   :  { %5487 = vrsqrt.f32 %v880_v42  ;;  %v390_v46 = vmul.f32 0.03125, %v270_v13  ;;  %v817_v57 = vmul.f32 0.03125, %v655_v40  ;;  %v6635_v48 = vmul.f32 %v453_v54, %v5825_v8 }
 0x169   :  { %v710_v14 = vsel %vm162_vm0, %v580_v34, 0.0  ;;  %326 = vadd.xlane.f32.xlu0 %v325_v61  ;;  %v1199_v21 = vpack.c.bf16 %v1140_v37, %v1139_v20  ;;  %v154_v42 = vmul.f32 %v5825_v8, %v6631_v35  ;;  %v328_v13 = vsel %vm162_vm0, %v153_v39, 0.0  ;;  %v6652_v34 = vld [vmem:[%s9812_s0 + $0x1c8] sm:$0xff] }
 0x16a   :  { %v5484_v11 = vpop.eup %5483  ;;  %v454_v6 = vsub.f32 %v9997_v56, %v390_v46  ;;  %v881_v1 = vadd.f32 1e-05, %v817_v57  ;;  %711 = vadd.xlane.f32.xlu1 %v710_v14  ;;  %v581_v44 = vmul.f32 %v6635_v48, %v6635_v48  ;;  %v1073_v56 = vmul.f32 %v6397_v47, %v1005_v53 }
 0x16b   :  { %v658_v54 = vpop.xlane.xlu1 %657  ;;  %5052 = vmatmul.mubr.msk.bf16.gmra.mrb[16].mxu0 %vm162_vm0, %v1199_v21  ;;  %v273_v61 = vpop.xlane.xlu0 %272  ;;  %v1006_v40 = vmul.f32 %v5484_v11, %v10001_v28  ;;  %v1872_v46 = vpack.c.bf16 %v6266_v26, %v10002_v15  ;;  %v1873_v39 = vpack.c.bf16 %v6299_v19, %v6284_v25  ;;  %v331_v11 = vsel %vm162_vm0, %v154_v42, 0.0 }
 0x16c   :  { %5489 = vrsqrt.f32 %v881_v1  ;;  %v818_v20 = vmul.f32 0.03125, %v658_v54  ;;  %v391_v37 = vmul.f32 0.03125, %v273_v61  ;;  %v713_v55 = vsel %vm162_vm0, %v581_v44, 0.0  ;;  %1454 = vmatprep.mubr.bf16.mxu0 %v9995_v22 }
 0x16d   :  { %714 = vadd.xlane.f32.xlu0 %v713_v55  ;;  %v6661_v53 = vmul.f32 %v454_v6, %v5825_v8  ;;  %v1074_v57 = vmul.f32 %v6397_v47, %v1006_v40  ;;  %v155_v44 = vmul.f32 %v5825_v8, %v6652_v34  ;;  %v1141_v6 = vadd.f32 %v6428_v41, %v1073_v56  ;;  %v6675_v40 = vld [vmem:[%s9812_s0 + $0x1d0] sm:$0xff] }
 0x16e   :  { %v5486_v14 = vpop.eup %5485  ;;  %v882_v1 = vadd.f32 1e-05, %v818_v20  ;;  %v455_v21 = vsub.f32 %v9998_v18, %v391_v37  ;;  %329 = vadd.xlane.f32.xlu1 %v328_v13  ;;  %v10003_v18 = vld [vmem:[#allocation8_spill] sm:$0xff]  ;;  %5355 = vmatmul.mubr.msk.bf16.gmra.mrb[36].mxu1 %vm162_vm0, %v1872_v46 }
 0x16f   :  { %v276_v54 = vpop.xlane.xlu1 %275  ;;  %v661_v61 = vpop.xlane.xlu0 %660  ;;  %v582_v28 = vmul.f32 %v6661_v53, %v6661_v53  ;;  %v1142_v55 = vadd.f32 %v6428_v41, %v1074_v57  ;;  %v1007_v13 = vmul.f32 %v5486_v14, %v10003_v18  ;;  %v5419_v14 = vld [vmem:[%s9817_s5] ss:$8 sps:$4 sm:$0xff]   ;;  %v156_v18 = vmul.f32 %v5825_v8, %v6675_v40  ;;  %5358 = vmatprep.mubr.msk.bf16.mxu1 %vm162_vm0, %v1873_v39 }
 0x170   :  { %5491 = vrsqrt.f32 %v882_v1  ;;  %v392_v42 = vmul.f32 0.03125, %v276_v54  ;;  %v819_v20 = vmul.f32 0.03125, %v661_v61  ;;  %v6679_v37 = vmul.f32 %v455_v21, %v5825_v8  ;;  %2635 = vmatpush1.bf16.msra.mxu1 %v5419_v14 }
 0x171   :  { %v716_v56 = vsel %vm162_vm0, %v582_v28, 0.0  ;;  %332 = vadd.xlane.f32.xlu0 %v331_v11  ;;  %v1200_v57 = vpack.c.bf16 %v1142_v55, %v1141_v6  ;;  %v334_v28 = vsel %vm162_vm0, %v155_v44, 0.0  ;;  %v10004_v6 = vld [vmem:[#allocation9_spill] sm:$0xff]  ;;  %v1075_v29 = vmul.f32 %v6397_v47, %v1007_v13  ;;  %v5424_v44 = vld [vmem:[%s9817_s5 + $0x14] ss:$8 sps:$4 sm:$0xff]  }
 0x172   :  { %v5488_v1 = vpop.eup %5487  ;;  %v456_v54 = vsub.f32 %v9999_v45, %v392_v42  ;;  %v883_v61 = vadd.f32 1e-05, %v819_v20  ;;  %717 = vadd.xlane.f32.xlu1 %v716_v56  ;;  %v583_v21 = vmul.f32 %v6679_v37, %v6679_v37  ;;  %v6701_v45 = vld [vmem:[%s9812_s0 + $0x1d8] sm:$0xff]  ;;  %v1874_v13 = vpack.c.bf16 %v6324_v16, %v6313_v38  ;;  %2636 = vmatprep.subr.bf16.mxu1 %v5424_v44 }
 0x173   :  { %v664_v11 = vpop.xlane.xlu1 %663  ;;  %5053 = vmatmul.mubr.msk.bf16.gmra.mrb[20].mxu0 %vm162_vm0, %v1200_v57  ;;  %v279_v46 = vpop.xlane.xlu0 %278  ;;  %v1008_v55 = vmul.f32 %v5488_v1, %v10004_v6  ;;  %v1875_v56 = vpack.c.bf16 %v6384_v7, %v6365_v62  ;;  %v5422_v1 = vld [vmem:[%s9817_s5 + $0x10] ss:$8 sps:$4 sm:$0xff]   ;;  %v337_v16 = vsel %vm162_vm0, %v156_v18, 0.0  ;;  %v157_v62 = vmul.f32 %v5825_v8, %v6701_v45 }
 0x174   :  { %5493 = vrsqrt.f32 %v883_v61  ;;  %v820_v42 = vmul.f32 0.03125, %v664_v11  ;;  %v393_v20 = vmul.f32 0.03125, %v279_v46  ;;  %v719_v30 = vsel %vm162_vm0, %v583_v21, 0.0  ;;  %1464 = vmatprep.mubr.bf16.mxu0 %v9995_v22  ;;  %2637 = vmatpush1.bf16.msra.mxu1 %v5422_v1 }
 0x175   :  { %720 = vadd.xlane.f32.xlu0 %v719_v30  ;;  %v6714_v57 = vmul.f32 %v456_v54, %v5825_v8  ;;  %v1076_v14 = vmul.f32 %v6397_v47, %v1008_v55  ;;  %v1143_v46 = vadd.f32 %v6428_v41, %v1075_v29  ;;  %v5427_v29 = vld [vmem:[%s9817_s5 + $0x24] ss:$8 sps:$4 sm:$0xff]  }
 0x176   :  { %v5490_v61 = vpop.eup %5489  ;;  %v884_v21 = vadd.f32 1e-05, %v820_v42  ;;  %v457_v39 = vsub.f32 %v10002_v15, %v393_v20  ;;  %335 = vadd.xlane.f32.xlu1 %v334_v28  ;;  %v6731_v15 = vld [vmem:[%s9812_s0 + $0x1e0] sm:$0xff]  ;;  %5359 = vmatmul.mubr.msk.bf16.gmra.mrb[40].mxu1 %vm162_vm0, %v1874_v13 }
 0x177   :  { %v282_v7 = vpop.xlane.xlu1 %281  ;;  %v667_v54 = vpop.xlane.xlu0 %666  ;;  %v584_v11 = vmul.f32 %v6714_v57, %v6714_v57  ;;  %v1144_v6 = vadd.f32 %v6428_v41, %v1076_v14  ;;  %v10005_v28 = vld [vmem:[#allocation12_spill] sm:$0xff]  ;;  %2638 = vmatprep.subr.bf16.mxu1 %v5427_v29  ;;  %5362 = vmatprep.mubr.msk.bf16.mxu1 %vm162_vm0, %v1875_v56  ;;  %v1877_v29 = vpack.c.bf16 %v6476_v58, %v6455_v17 }
 0x178   :  { %v1009_v18 = vmul.f32 %v5490_v61, %v10005_v28  ;;  %5495 = vrsqrt.f32 %v884_v21  ;;  %v394_v55 = vmul.f32 0.03125, %v282_v7  ;;  %v821_v42 = vmul.f32 0.03125, %v667_v54  ;;  %v5425_v14 = vld [vmem:[%s9817_s5 + $0x20] ss:$8 sps:$4 sm:$0xff]  }
 0x179   :  { %v6735_v20 = vmul.f32 %v457_v39, %v5825_v8  ;;  %v722_v30 = vsel %vm162_vm0, %v584_v11, 0.0  ;;  %338 = vadd.xlane.f32.xlu0 %v337_v16  ;;  %v1201_v44 = vpack.c.bf16 %v1144_v6, %v1143_v46  ;;  %v158_v7 = vmul.f32 %v5825_v8, %v6731_v15  ;;  %v10006_v11 = vld [vmem:[#allocation13_spill] sm:$0xff]  ;;  %2639 = vmatpush1.bf16.msra.mxu1 %v5425_v14  ;;  %v5428_v14 = vld [vmem:[%s9817_s5 + $0x30] ss:$8 sps:$4 sm:$0xff]  }
 0x17a   :  { %v5492_v1 = vpop.eup %5491  ;;  %v458_v61 = vsub.f32 %v6266_v26, %v394_v55  ;;  %v885_v21 = vadd.f32 1e-05, %v821_v42  ;;  %723 = vadd.xlane.f32.xlu1 %v722_v30  ;;  %v340_v54 = vsel %vm162_vm0, %v157_v62, 0.0  ;;  %v1077_v6 = vmul.f32 %v6397_v47, %v1009_v18  ;;  %v6757_v26 = vld [vmem:[%s9812_s0 + $0x1e8] sm:$0xff]  ;;  %v5430_v62 = vld [vmem:[%s9817_s5 + $0x34] ss:$8 sps:$4 sm:$0xff]  }
 0x17b   :  { %v585_v39 = vmul.f32 %v6735_v20, %v6735_v20  ;;  %v670_v16 = vpop.xlane.xlu1 %669  ;;  %5054 = vmatmul.mubr.msk.bf16.gmra.mrb[24].mxu0 %vm162_vm0, %v1201_v44  ;;  %v285_v13 = vpop.xlane.xlu0 %284  ;;  %v1010_v46 = vmul.f32 %v5492_v1, %v10006_v11  ;;  %v1876_v18 = vpack.c.bf16 %v6433_v31, %v6406_v51  ;;  %v343_v51 = vsel %vm162_vm0, %v158_v7, 0.0  ;;  %2640 = vmatprep.subr.bf16.mxu1 %v5430_v62 }
 0x17c   :  { %5497 = vrsqrt.f32 %v885_v21  ;;  %v822_v28 = vmul.f32 0.03125, %v670_v16  ;;  %v395_v55 = vmul.f32 0.03125, %v285_v13  ;;  %1474 = vmatprep.mubr.bf16.mxu0 %v9995_v22  ;;  %v6770_v30 = vmul.f32 %v458_v61, %v5825_v8  ;;  %v10007_v13 = vld [vmem:[#allocation16_spill] sm:$0xff] }
 0x17d   :  { %v725_v42 = vsel %vm162_vm0, %v585_v39, 0.0  ;;  %v1078_v44 = vmul.f32 %v6397_v47, %v1010_v46  ;;  %v159_v31 = vmul.f32 %v5825_v8, %v6757_v26  ;;  %v1145_v39 = vadd.f32 %v6428_v41, %v1077_v6  ;;  %2641 = vmatpush1.bf16.msra.mxu1 %v5428_v14  ;;  %v5433_v6 = vld [vmem:[%s9817_s5 + $0x44] ss:$8 sps:$4 sm:$0xff]  }
 0x17e   :  { %726 = vadd.xlane.f32.xlu0 %v725_v42  ;;  %v5494_v1 = vpop.eup %5493  ;;  %v886_v21 = vadd.f32 1e-05, %v822_v28  ;;  %v459_v56 = vsub.f32 %v6284_v25, %v395_v55  ;;  %341 = vadd.xlane.f32.xlu1 %v340_v54  ;;  %v586_v61 = vmul.f32 %v6770_v30, %v6770_v30  ;;  %v6787_v25 = vld [vmem:[%s9812_s0 + $0x1f0] sm:$0xff]  ;;  %v5431_v42 = vld [vmem:[%s9817_s5 + $0x40] ss:$8 sps:$4 sm:$0xff]  }
 0x17f   :  { %v288_v17 = vpop.xlane.xlu1 %287  ;;  %v673_v58 = vpop.xlane.xlu0 %672  ;;  %v1146_v16 = vadd.f32 %v6428_v41, %v1078_v44  ;;  %v1011_v7 = vmul.f32 %v5494_v1, %v10007_v13  ;;  %5363 = vmatmul.mubr.msk.bf16.gmra.mrb[44].mxu1 %vm162_vm0, %v1876_v18  ;;  %2642 = vmatprep.subr.bf16.mxu1 %v5433_v6  ;;  %v5434_v6 = vld [vmem:[%s9817_s5 + $0x50] ss:$8 sps:$4 sm:$0xff]  }
 0x180   :  { %5499 = vrsqrt.f32 %v886_v21  ;;  %v396_v54 = vmul.f32 0.03125, %v288_v17  ;;  %v823_v11 = vmul.f32 0.03125, %v673_v58  ;;  %v6791_v46 = vmul.f32 %v459_v56, %v5825_v8  ;;  %v10008_v17 = vld [vmem:[#allocation17_spill] sm:$0xff]  ;;  %5366 = vmatprep.mubr.msk.bf16.mxu1 %vm162_vm0, %v1877_v29 }
 0x181   :  { %v728_v28 = vsel %vm162_vm0, %v586_v61, 0.0  ;;  %v1202_v55 = vpack.c.bf16 %v1146_v16, %v1145_v39  ;;  %v160_v21 = vmul.f32 %v5825_v8, %v6787_v25  ;;  %v1079_v61 = vmul.f32 %v6397_v47, %v1011_v7  ;;  %2643 = vmatpush1.bf16.msra.mxu1 %v5431_v42 }
 0x182   :  { %344 = vadd.xlane.f32.xlu0 %v343_v51  ;;  %v5496_v62 = vpop.eup %5495  ;;  %v460_v44 = vsub.f32 %v6299_v19, %v396_v54  ;;  %v887_v14 = vadd.f32 1e-05, %v823_v11  ;;  %729 = vadd.xlane.f32.xlu1 %v728_v28  ;;  %v587_v1 = vmul.f32 %v6791_v46, %v6791_v46  ;;  %v346_v51 = vsel %vm162_vm0, %v159_v31, 0.0  ;;  %v6813_v19 = vld [vmem:[%s9812_s0 + $0x1f8] sm:$0xff] }
 0x183   :  { %v676_v56 = vpop.xlane.xlu1 %675  ;;  %5055 = vmatmul.mubr.msk.bf16.gmra.mrb[28].mxu0 %vm162_vm0, %v1202_v55  ;;  %v291_v18 = vpop.xlane.xlu0 %290  ;;  %v1012_v58 = vmul.f32 %v5496_v62, %v10008_v17  ;;  %v5436_v31 = vld [vmem:[%s9817_s5 + $0x54] ss:$8 sps:$4 sm:$0xff]   ;;  %v1878_v7 = vpack.c.bf16 %v6520_v27, %v6499_v36  ;;  %v349_v29 = vsel %vm162_vm0, %v160_v21, 0.0  ;;  %v161_v62 = vmul.f32 %v5825_v8, %v6813_v19  ;;  %v5439_v17 = vld [vmem:[%s9817_s5 + $0x64] ss:$8 sps:$4 sm:$0xff]  }
 0x184   :  { %5501 = vrsqrt.f32 %v887_v14  ;;  %v824_v39 = vmul.f32 0.03125, %v676_v56  ;;  %v397_v16 = vmul.f32 0.03125, %v291_v18  ;;  %v731_v13 = vsel %vm162_vm0, %v587_v1, 0.0  ;;  %1484 = vmatprep.mubr.bf16.mxu0 %v9995_v22  ;;  %2644 = vmatprep.subr.bf16.mxu1 %v5436_v31 }
 0x185   :  { %v6824_v54 = vmul.f32 %v460_v44, %v5825_v8  ;;  %v1080_v11 = vmul.f32 %v6397_v47, %v1012_v58  ;;  %v1147_v1 = vadd.f32 %v6428_v41, %v1079_v61  ;;  %2645 = vmatpush1.bf16.msra.mxu1 %v5434_v6 }
 0x186   :  { %732 = vadd.xlane.f32.xlu0 %v731_v13  ;;  %v5498_v28 = vpop.eup %5497  ;;  %v888_v55 = vadd.f32 1e-05, %v824_v39  ;;  %v461_v42 = vsub.f32 %v6313_v38, %v397_v16  ;;  %347 = vadd.xlane.f32.xlu1 %v346_v51  ;;  %v1879_v38 = vpack.c.bf16 %v6564_v43, %v6543_v4  ;;  %v5717_v16 = vld [vmem:[%s9812_s0 + $0x158] sm:$0xff] }
 0x187   :  { %v294_v14 = vpop.xlane.xlu1 %293  ;;  %v588_v44 = vmul.f32 %v6824_v54, %v6824_v54  ;;  %v1148_v56 = vadd.f32 %v6428_v41, %v1080_v11  ;;  %v1013_v18 = vmul.f32 %v5498_v28, %v6269_v0  ;;  %5367 = vmatmul.mubr.msk.bf16.gmra.mrb[48].mxu1 %vm162_vm0, %v1878_v7  ;;  %v5437_v0 = vld [vmem:[%s9817_s5 + $0x60] ss:$8 sps:$4 sm:$0xff]   ;;  %2646 = vmatprep.subr.bf16.mxu1 %v5439_v17  ;;  %v352_v11 = vsel %vm162_vm0, %v161_v62, 0.0  ;;  %v5440_v62 = vld [vmem:[%s9817_s5 + $0x70] ss:$8 sps:$4 sm:$0xff]  }
 0x188   :  { %5503 = vrsqrt.f32 %v888_v55  ;;  %v398_v21 = vmul.f32 0.03125, %v294_v14  ;;  %v6842_v51 = vmul.f32 %v461_v42, %v5825_v8  ;;  %v5442_v42 = vld [vmem:[%s9817_s5 + $0x74] ss:$8 sps:$4 sm:$0xff]   ;;  %5370 = vmatprep.mubr.msk.bf16.mxu1 %vm162_vm0, %v1879_v38  ;;  %v1881_v38 = vpack.c.bf16 %v6652_v34, %v6631_v35  ;;  %v5445_v17 = vld [vmem:[%s9817_s5 + $0x84] ss:$8 sps:$4 sm:$0xff]  }
 0x189   :  { %v734_v58 = vsel %vm162_vm0, %v588_v44, 0.0  ;;  %v1203_v61 = vpack.c.bf16 %v1148_v56, %v1147_v1  ;;  %v1081_v6 = vmul.f32 %v6397_v47, %v1013_v18  ;;  %2647 = vmatpush1.bf16.msra.mxu1 %v5437_v0 }
 0x18a   :  { %350 = vadd.xlane.f32.xlu0 %v349_v29  ;;  %v5500_v39 = vpop.eup %5499  ;;  %v462_v13 = vsub.f32 %v5717_v16, %v398_v21  ;;  %735 = vadd.xlane.f32.xlu1 %v734_v58  ;;  %v589_v31 = vmul.f32 %v6842_v51, %v6842_v51  ;;  %v1880_v29 = vpack.c.bf16 %v6608_v32, %v6587_v9 }
 0x18b   :  { %5056 = vmatmul.mubr.msk.bf16.gmra.mrb[32].mxu0 %vm162_vm0, %v1203_v61  ;;  %v1014_v7 = vmul.f32 %v5500_v39, %v6279_v50  ;;  %2648 = vmatprep.subr.bf16.mxu1 %v5442_v42  ;;  %v1149_v1 = vadd.f32 %v6428_v41, %v1081_v6  ;;  %v5443_v61 = vld [vmem:[%s9817_s5 + $0x80] ss:$8 sps:$4 sm:$0xff]   ;;  %v5451_v42 = vld [vmem:[%s9817_s5 + $0xa4] ss:$8 sps:$4 sm:$0xff]  }
 0x18c   :  { %v737_v28 = vsel %vm162_vm0, %v589_v31, 0.0  ;;  %v6863_v55 = vmul.f32 %v462_v13, %v5825_v8  ;;  %1494 = vmatprep.mubr.bf16.mxu0 %v9995_v22  ;;  %v5448_v13 = vld [vmem:[%s9817_s5 + $0x94] ss:$8 sps:$4 sm:$0xff]   ;;  %v1882_v31 = vpack.c.bf16 %v6701_v45, %v6675_v40 }
 0x18d   :  { %v1082_v50 = vmul.f32 %v6397_v47, %v1014_v7  ;;  %2649 = vmatpush1.bf16.msra.mxu1 %v5440_v62  ;;  %v5446_v7 = vld [vmem:[%s9817_s5 + $0x90] ss:$8 sps:$4 sm:$0xff]   ;;  %v5454_v62 = vld [vmem:[%s9817_s5 + $0xb4] ss:$8 sps:$4 sm:$0xff]  }
 0x18e   :  { %738 = vadd.xlane.f32.xlu0 %v737_v28  ;;  %v5502_v14 = vpop.eup %5501  ;;  %353 = vadd.xlane.f32.xlu1 %v352_v11  ;;  %v590_v44 = vmul.f32 %v6863_v55, %v6863_v55 }
 0x18f   :  { %v1150_v56 = vadd.f32 %v6428_v41, %v1082_v50  ;;  %v1015_v18 = vmul.f32 %v5502_v14, %v6294_v12  ;;  %5371 = vmatmul.mubr.msk.bf16.gmra.mrb[52].mxu1 %vm162_vm0, %v1880_v29  ;;  %2650 = vmatprep.subr.bf16.mxu1 %v5445_v17  ;;  %v10009_v12 = vld [vmem:[#allocation19_spill] sm:$0xff]  ;;  %v5449_v50 = vld [vmem:[%s9817_s5 + $0xa0] ss:$8 sps:$4 sm:$0xff]  }
 0x190   :  { %v740_v21 = vsel %vm162_vm0, %v590_v44, 0.0  ;;  %5374 = vmatprep.mubr.msk.bf16.mxu1 %vm162_vm0, %v1881_v38  ;;  %v5452_v14 = vld [vmem:[%s9817_s5 + $0xb0] ss:$8 sps:$4 sm:$0xff]   ;;  %v1883_v44 = vpack.c.bf16 %v6757_v26, %v6731_v15  ;;  %v5460_v38 = vld [vmem:[%s9817_s5 + $0xd4] ss:$8 sps:$4 sm:$0xff]  }
 0x191   :  { %v1204_v58 = vpack.c.bf16 %v1150_v56, %v1149_v1  ;;  %v1083_v16 = vmul.f32 %v6397_v47, %v1015_v18  ;;  %2651 = vmatpush1.bf16.msra.mxu1 %v5443_v61  ;;  %v1884_v1 = vpack.c.bf16 %v6813_v19, %v6787_v25  ;;  %v5457_v56 = vld [vmem:[%s9817_s5 + $0xc4] ss:$8 sps:$4 sm:$0xff]   ;;  %v5455_v18 = vld [vmem:[%s9817_s5 + $0xc0] ss:$8 sps:$4 sm:$0xff]  }
 0x192   :  { %v5504_v0 = vpop.eup %5503  ;;  %741 = vadd.xlane.f32.xlu1 %v740_v21  ;;  %2652 = vmatprep.subr.bf16.mxu1 %v5448_v13  ;;  %v5458_v21 = vld [vmem:[%s9817_s5 + $0xd0] ss:$8 sps:$4 sm:$0xff]   ;;  %v5718_v13 = vld [vmem:[%s9812_s0 + $0x160] sm:$0xff] }
 0x193   :  { %5057 = vmatmul.mubr.msk.bf16.gmra.mrb[36].mxu0 %vm162_vm0, %v1204_v58  ;;  %v1016_v39 = vmul.f32 %v5504_v0, %v10009_v12  ;;  %v1151_v6 = vadd.f32 %v6428_v41, %v1083_v16 }
 0x194   :  { %1504 = vmatprep.mubr.bf16.mxu0 %v9995_v22 }
 0x195   :  { %v1084_v11 = vmul.f32 %v6397_v47, %v1016_v39  ;;  %2653 = vmatpush1.bf16.msra.mxu1 %v5446_v7 }
 0x196   :  { %2654 = vmatprep.subr.bf16.mxu1 %v5451_v42 }
 0x197   :  { %v1152_v28 = vadd.f32 %v6428_v41, %v1084_v11  ;;  %5375 = vmatmul.mubr.msk.bf16.gmra.mrb[56].mxu1 %vm162_vm0, %v1882_v31 }
 0x198   :  { %5378 = vmatprep.mubr.msk.bf16.mxu1 %vm162_vm0, %v1883_v44 }
 0x199   :  { %v1205_v29 = vpack.c.bf16 %v1152_v28, %v1151_v6  ;;  %2655 = vmatpush1.bf16.msra.mxu1 %v5449_v50 }
 0x19a   :  { %2656 = vmatprep.subr.bf16.mxu1 %v5454_v62 }
 0x19b   :  { %5058 = vmatmul.mubr.msk.bf16.gmra.mrb[40].mxu0 %vm162_vm0, %v1205_v29 }
 0x19c   :  { %1514 = vmatprep.mubr.bf16.mxu0 %v9995_v22 }
 0x19d   :  { %2657 = vmatpush1.bf16.msra.mxu1 %v5452_v14  ;;  %v5719_v14 = vld [vmem:[%s9812_s0 + $0x168] sm:$0xff] }
 0x19e   :  { %2658 = vmatprep.subr.bf16.mxu1 %v5457_v56 }
 0x19f   :  { %5379 = vmatmul.mubr.msk.bf16.gmra.mrb[60].mxu1 %vm162_vm0, %v1884_v1 }
 0x1a1   :  { %2659 = vmatpush1.bf16.msra.mxu1 %v5455_v18 }
 0x1a2   :  { %2660 = vmatprep.subr.bf16.mxu1 %v5460_v38 }
 0x1a5   :  { %2661 = vmatpush1.bf16.msra.mxu1 %v5458_v21 }
 0x1ca   :  { %v679_v17 = vpop.xlane.xlu0 %678 }
 0x1cb   :  { %v825_v58 = vmul.f32 0.03125, %v679_v17 }
 0x1cd   :  { %v889_v61 = vadd.f32 1e-05, %v825_v58 }
 0x1ce   :  { %v297_v0 = vpop.xlane.xlu0 %296 }
 0x1cf   :  { %5505 = vrsqrt.f32 %v889_v61  ;;  %v682_v12 = vpop.xlane.xlu1 %681  ;;  %v399_v39 = vmul.f32 0.03125, %v297_v0  ;;  %v5720_v61 = vld [vmem:[%s9812_s0 + $0x170] sm:$0xff] }
 0x1d0   :  { %v826_v16 = vmul.f32 0.03125, %v682_v12 }
 0x1d1   :  { %v463_v31 = vsub.f32 %v5718_v13, %v399_v39 }
 0x1d2   :  { %v890_v11 = vadd.f32 1e-05, %v826_v16  ;;  %v685_v7 = vpop.xlane.xlu0 %684 }
 0x1d3   :  { %v300_v6 = vpop.xlane.xlu1 %299  ;;  %v827_v28 = vmul.f32 0.03125, %v685_v7  ;;  %v6944_v42 = vmul.f32 %v463_v31, %v5825_v8 }
 0x1d4   :  { %5507 = vrsqrt.f32 %v890_v11  ;;  %v400_v29 = vmul.f32 0.03125, %v300_v6 }
 0x1d5   :  { %v891_v50 = vadd.f32 1e-05, %v827_v28  ;;  %v591_v62 = vmul.f32 %v6944_v42, %v6944_v42 }
 0x1d6   :  { %v464_v44 = vsub.f32 %v5719_v14, %v400_v29  ;;  %v303_v1 = vpop.xlane.xlu0 %302  ;;  %v5721_v14 = vld [vmem:[%s9812_s0 + $0x178] sm:$0xff] }
 0x1d7   :  { %5509 = vrsqrt.f32 %v891_v50  ;;  %v688_v56 = vpop.xlane.xlu1 %687  ;;  %v401_v18 = vmul.f32 0.03125, %v303_v1  ;;  %v743_v38 = vsel %vm162_vm0, %v591_v62, 0.0 }
 0x1d8   :  { %v828_v21 = vmul.f32 0.03125, %v688_v56  ;;  %744 = vadd.xlane.f32.xlu0 %v743_v38  ;;  %v6953_v17 = vmul.f32 %v464_v44, %v5825_v8 }
 0x1d9   :  { %v5506_v58 = vpop.eup %5505  ;;  %v465_v0 = vsub.f32 %v5720_v61, %v401_v18 }
 0x1da   :  { %v892_v12 = vadd.f32 1e-05, %v828_v21  ;;  %v691_v39 = vpop.xlane.xlu0 %690  ;;  %v592_v16 = vmul.f32 %v6953_v17, %v6953_v17  ;;  %v1017_v13 = vmul.f32 %v5506_v58, %v6368_v3 }
 0x1db   :  { %v306_v31 = vpop.xlane.xlu1 %305  ;;  %v829_v11 = vmul.f32 0.03125, %v691_v39  ;;  %v6962_v7 = vmul.f32 %v465_v0, %v5825_v8 }
 0x1dc   :  { %5511 = vrsqrt.f32 %v892_v12  ;;  %v402_v6 = vmul.f32 0.03125, %v306_v31  ;;  %v746_v28 = vsel %vm162_vm0, %v592_v16, 0.0  ;;  %v1085_v1 = vmul.f32 %v6397_v47, %v1017_v13  ;;  %v5722_v12 = vld [vmem:[%s9812_s0 + $0x180] sm:$0xff] }
 0x1dd   :  { %v893_v29 = vadd.f32 1e-05, %v829_v11  ;;  %747 = vadd.xlane.f32.xlu1 %v746_v28  ;;  %v593_v50 = vmul.f32 %v6962_v7, %v6962_v7 }
 0x1de   :  { %v5508_v62 = vpop.eup %5507  ;;  %v466_v3 = vsub.f32 %v5721_v14, %v402_v6  ;;  %v309_v44 = vpop.xlane.xlu0 %308 }
 0x1df   :  { %5513 = vrsqrt.f32 %v893_v29  ;;  %v694_v56 = vpop.xlane.xlu1 %693  ;;  %v403_v18 = vmul.f32 0.03125, %v309_v44  ;;  %v749_v38 = vsel %vm162_vm0, %v593_v50, 0.0  ;;  %v1018_v21 = vmul.f32 %v5508_v62, %v6391_v49 }
 0x1e0   :  { %v830_v58 = vmul.f32 0.03125, %v694_v56  ;;  %750 = vadd.xlane.f32.xlu0 %v749_v38  ;;  %v6974_v61 = vmul.f32 %v466_v3, %v5825_v8  ;;  %v1153_v29 = vadd.f32 %v6428_v41, %v1085_v1  ;;  %v5723_v1 = vld [vmem:[%s9812_s0 + $0x188] sm:$0xff] }
 0x1e1   :  { %v5510_v0 = vpop.eup %5509  ;;  %v467_v39 = vsub.f32 %v5722_v12, %v403_v18  ;;  %v1086_v16 = vmul.f32 %v6397_v47, %v1018_v21 }
 0x1e2   :  { %v894_v13 = vadd.f32 1e-05, %v830_v58  ;;  %v697_v31 = vpop.xlane.xlu0 %696  ;;  %v594_v11 = vmul.f32 %v6974_v61, %v6974_v61  ;;  %v1019_v49 = vmul.f32 %v5510_v0, %v6413_v5 }
 0x1e3   :  { %v312_v6 = vpop.xlane.xlu1 %311  ;;  %v831_v28 = vmul.f32 0.03125, %v697_v31  ;;  %v1154_v50 = vadd.f32 %v6428_v41, %v1086_v16  ;;  %v6986_v62 = vmul.f32 %v467_v39, %v5825_v8 }
 0x1e4   :  { %5515 = vrsqrt.f32 %v894_v13  ;;  %v404_v14 = vmul.f32 0.03125, %v312_v6  ;;  %v752_v3 = vsel %vm162_vm0, %v594_v11, 0.0  ;;  %v1087_v58 = vmul.f32 %v6397_v47, %v1019_v49 }
 0x1e5   :  { %v895_v44 = vadd.f32 1e-05, %v831_v28  ;;  %753 = vadd.xlane.f32.xlu1 %v752_v3  ;;  %v1206_v56 = vpack.c.bf16 %v1154_v50, %v1153_v29  ;;  %v595_v18 = vmul.f32 %v6986_v62, %v6986_v62 }
 0x1e6   :  { %v5512_v5 = vpop.eup %5511  ;;  %v468_v38 = vsub.f32 %v5723_v1, %v404_v14  ;;  %v315_v21 = vpop.xlane.xlu0 %314 }
 0x1e7   :  { %5517 = vrsqrt.f32 %v895_v44  ;;  %v700_v0 = vpop.xlane.xlu1 %699  ;;  %5059 = vmatmul.mubr.msk.bf16.gmra.mrb[44].mxu0 %vm162_vm0, %v1206_v56  ;;  %v405_v12 = vmul.f32 0.03125, %v315_v21  ;;  %v755_v39 = vsel %vm162_vm0, %v595_v18, 0.0  ;;  %v1020_v16 = vmul.f32 %v5512_v5, %v6441_v2 }
 0x1e8   :  { %v832_v13 = vmul.f32 0.03125, %v700_v0  ;;  %756 = vadd.xlane.f32.xlu0 %v755_v39  ;;  %v6999_v31 = vmul.f32 %v468_v38, %v5825_v8  ;;  %1524 = vmatprep.mubr.bf16.mxu0 %v9995_v22  ;;  %v1155_v44 = vadd.f32 %v6428_v41, %v1087_v58 }
 0x1e9   :  { %v5514_v11 = vpop.eup %5513  ;;  %v469_v6 = vsub.f32 %v6499_v36, %v405_v12  ;;  %v1088_v49 = vmul.f32 %v6397_v47, %v1020_v16 }
 0x1ea   :  { %v896_v28 = vadd.f32 1e-05, %v832_v13  ;;  %v703_v29 = vpop.xlane.xlu0 %702  ;;  %v596_v50 = vmul.f32 %v6999_v31, %v6999_v31  ;;  %v1021_v14 = vmul.f32 %v5514_v11, %v6459_v24 }
 0x1eb   :  { %v318_v2 = vpop.xlane.xlu1 %317  ;;  %v833_v3 = vmul.f32 0.03125, %v703_v29  ;;  %v1156_v56 = vadd.f32 %v6428_v41, %v1088_v49  ;;  %v7010_v18 = vmul.f32 %v469_v6, %v5825_v8 }
 0x1ec   :  { %5519 = vrsqrt.f32 %v896_v28  ;;  %v406_v36 = vmul.f32 0.03125, %v318_v2  ;;  %v758_v5 = vsel %vm162_vm0, %v596_v50, 0.0  ;;  %v1089_v58 = vmul.f32 %v6397_v47, %v1021_v14 }
 0x1ed   :  { %v897_v1 = vadd.f32 1e-05, %v833_v3  ;;  %759 = vadd.xlane.f32.xlu1 %v758_v5  ;;  %v1207_v38 = vpack.c.bf16 %v1156_v56, %v1155_v44  ;;  %v597_v21 = vmul.f32 %v7010_v18, %v7010_v18 }
 0x1ee   :  { %v5516_v24 = vpop.eup %5515  ;;  %v470_v0 = vsub.f32 %v6520_v27, %v406_v36  ;;  %v321_v12 = vpop.xlane.xlu0 %320  ;;  %v1157_v56 = vadd.f32 %v6428_v41, %v1089_v58 }
 0x1ef   :  { %5521 = vrsqrt.f32 %v897_v1  ;;  %v706_v39 = vpop.xlane.xlu1 %705  ;;  %5060 = vmatmul.mubr.msk.bf16.gmra.mrb[48].mxu0 %vm162_vm0, %v1207_v38  ;;  %v407_v16 = vmul.f32 0.03125, %v321_v12  ;;  %v761_v13 = vsel %vm162_vm0, %v597_v21, 0.0  ;;  %v1022_v11 = vmul.f32 %v5516_v24, %v6485_v33 }
 0x1f0   :  { %v834_v6 = vmul.f32 0.03125, %v706_v39  ;;  %762 = vadd.xlane.f32.xlu0 %v761_v13  ;;  %v7021_v49 = vmul.f32 %v470_v0, %v5825_v8  ;;  %1534 = vmatprep.mubr.bf16.mxu0 %v9995_v22 }
 0x1f1   :  { %v5518_v27 = vpop.eup %5517  ;;  %v471_v28 = vsub.f32 %v6543_v4, %v407_v16  ;;  %v1090_v29 = vmul.f32 %v6397_v47, %v1022_v11 }
 0x1f2   :  { %v898_v50 = vadd.f32 1e-05, %v834_v6  ;;  %v709_v14 = vpop.xlane.xlu0 %708  ;;  %v598_v2 = vmul.f32 %v7021_v49, %v7021_v49  ;;  %v1023_v3 = vmul.f32 %v5518_v27, %v6503_v59 }
 0x1f3   :  { %v324_v33 = vpop.xlane.xlu1 %323  ;;  %v835_v44 = vmul.f32 0.03125, %v709_v14  ;;  %v1158_v36 = vadd.f32 %v6428_v41, %v1090_v29  ;;  %v7032_v5 = vmul.f32 %v471_v28, %v5825_v8 }
 0x1f4   :  { %5523 = vrsqrt.f32 %v898_v50  ;;  %v408_v4 = vmul.f32 0.03125, %v324_v33  ;;  %v764_v1 = vsel %vm162_vm0, %v598_v2, 0.0  ;;  %v1091_v58 = vmul.f32 %v6397_v47, %v1023_v3 }
 0x1f5   :  { %v899_v38 = vadd.f32 1e-05, %v835_v44  ;;  %765 = vadd.xlane.f32.xlu1 %v764_v1  ;;  %v1208_v21 = vpack.c.bf16 %v1158_v36, %v1157_v56  ;;  %v599_v24 = vmul.f32 %v7032_v5, %v7032_v5 }
 0x1f6   :  { %v5520_v59 = vpop.eup %5519  ;;  %v472_v0 = vsub.f32 %v6564_v43, %v408_v4  ;;  %v327_v12 = vpop.xlane.xlu0 %326  ;;  %v1159_v44 = vadd.f32 %v6428_v41, %v1091_v58 }
 0x1f7   :  { %5525 = vrsqrt.f32 %v899_v38  ;;  %v712_v39 = vpop.xlane.xlu1 %711  ;;  %5061 = vmatmul.mubr.msk.bf16.gmra.mrb[52].mxu0 %vm162_vm0, %v1208_v21  ;;  %v409_v16 = vmul.f32 0.03125, %v327_v12  ;;  %v767_v13 = vsel %vm162_vm0, %v599_v24, 0.0  ;;  %v1024_v11 = vmul.f32 %v5520_v59, %v6529_v52 }
 0x1f8   :  { %v836_v6 = vmul.f32 0.03125, %v712_v39  ;;  %768 = vadd.xlane.f32.xlu0 %v767_v13  ;;  %v7043_v27 = vmul.f32 %v472_v0, %v5825_v8  ;;  %1544 = vmatprep.mubr.bf16.mxu0 %v9995_v22 }
 0x1f9   :  { %v5522_v43 = vpop.eup %5521  ;;  %v473_v28 = vsub.f32 %v6587_v9, %v409_v16  ;;  %v1092_v29 = vmul.f32 %v6397_v47, %v1024_v11 }
 0x1fa   :  { %v900_v50 = vadd.f32 1e-05, %v836_v6  ;;  %v715_v14 = vpop.xlane.xlu0 %714  ;;  %v600_v2 = vmul.f32 %v7043_v27, %v7043_v27  ;;  %v1025_v3 = vmul.f32 %v5522_v43, %v6547_v23 }
 0x1fb   :  { %v330_v52 = vpop.xlane.xlu1 %329  ;;  %v837_v33 = vmul.f32 0.03125, %v715_v14  ;;  %v1160_v56 = vadd.f32 %v6428_v41, %v1092_v29  ;;  %v7054_v36 = vmul.f32 %v473_v28, %v5825_v8 }
 0x1fc   :  { %5527 = vrsqrt.f32 %v900_v50  ;;  %v410_v9 = vmul.f32 0.03125, %v330_v52  ;;  %v770_v4 = vsel %vm162_vm0, %v600_v2, 0.0  ;;  %v1093_v0 = vmul.f32 %v6397_v47, %v1025_v3 }
 0x1fd   :  { %v901_v1 = vadd.f32 1e-05, %v837_v33  ;;  %771 = vadd.xlane.f32.xlu1 %v770_v4  ;;  %v1209_v38 = vpack.c.bf16 %v1160_v56, %v1159_v44  ;;  %v601_v21 = vmul.f32 %v7054_v36, %v7054_v36 }
 0x1fe   :  { %v5524_v23 = vpop.eup %5523  ;;  %v474_v24 = vsub.f32 %v6608_v32, %v410_v9  ;;  %v333_v59 = vpop.xlane.xlu0 %332  ;;  %v1161_v3 = vadd.f32 %v6428_v41, %v1093_v0 }
 0x1ff   :  { %5529 = vrsqrt.f32 %v901_v1  ;;  %v718_v12 = vpop.xlane.xlu1 %717  ;;  %5062 = vmatmul.mubr.msk.bf16.gmra.mrb[56].mxu0 %vm162_vm0, %v1209_v38  ;;  %v411_v58 = vmul.f32 0.03125, %v333_v59  ;;  %v773_v39 = vsel %vm162_vm0, %v601_v21, 0.0  ;;  %v1026_v16 = vmul.f32 %v5524_v23, %v6573_v63 }
 0x200   :  { %v838_v13 = vmul.f32 0.03125, %v718_v12  ;;  %774 = vadd.xlane.f32.xlu0 %v773_v39  ;;  %v7065_v11 = vmul.f32 %v474_v24, %v5825_v8  ;;  %1554 = vmatprep.mubr.bf16.mxu0 %v9995_v22 }
 0x201   :  { %v5526_v32 = vpop.eup %5525  ;;  %v475_v6 = vsub.f32 %v6631_v35, %v411_v58  ;;  %v1094_v43 = vmul.f32 %v6397_v47, %v1026_v16 }
 0x202   :  { %v902_v28 = vadd.f32 1e-05, %v838_v13  ;;  %v721_v29 = vpop.xlane.xlu0 %720  ;;  %v602_v50 = vmul.f32 %v7065_v11, %v7065_v11  ;;  %v1027_v14 = vmul.f32 %v5526_v32, %v6591_v60 }
 0x203   :  { %v336_v63 = vpop.xlane.xlu1 %335  ;;  %v839_v2 = vmul.f32 0.03125, %v721_v29  ;;  %v1162_v52 = vadd.f32 %v6428_v41, %v1094_v43  ;;  %v7076_v33 = vmul.f32 %v475_v6, %v5825_v8 }
 0x204   :  { %5531 = vrsqrt.f32 %v902_v28  ;;  %v412_v35 = vmul.f32 0.03125, %v336_v63  ;;  %v776_v44 = vsel %vm162_vm0, %v602_v50, 0.0  ;;  %v1095_v21 = vmul.f32 %v6397_v47, %v1027_v14 }
 0x205   :  { %v903_v56 = vadd.f32 1e-05, %v839_v2  ;;  %777 = vadd.xlane.f32.xlu1 %v776_v44  ;;  %v1210_v9 = vpack.c.bf16 %v1162_v52, %v1161_v3  ;;  %v603_v4 = vmul.f32 %v7076_v33, %v7076_v33 }
 0x206   :  { %v5528_v60 = vpop.eup %5527  ;;  %v476_v1 = vsub.f32 %v6652_v34, %v412_v35  ;;  %v339_v38 = vpop.xlane.xlu0 %338  ;;  %v1163_v29 = vadd.f32 %v6428_v41, %v1095_v21 }
 0x207   :  { %5533 = vrsqrt.f32 %v903_v56  ;;  %v724_v23 = vpop.xlane.xlu1 %723  ;;  %5063 = vmatmul.mubr.msk.bf16.gmra.mrb[60].mxu0 %vm162_vm0, %v1210_v9  ;;  %v413_v24 = vmul.f32 0.03125, %v339_v38  ;;  %v779_v59 = vsel %vm162_vm0, %v603_v4, 0.0  ;;  %v1028_v0 = vmul.f32 %v5528_v60, %v6617_v10 }
 0x208   :  { %v840_v12 = vmul.f32 0.03125, %v724_v23  ;;  %780 = vadd.xlane.f32.xlu0 %v779_v59  ;;  %v7087_v58 = vmul.f32 %v476_v1, %v5825_v8  ;;  %1564 = vmatprep.mubr.bf16.mxu0 %v9995_v22 }
 0x209   :  { %v5530_v34 = vpop.eup %5529  ;;  %v477_v39 = vsub.f32 %v6675_v40, %v413_v24  ;;  %v1096_v16 = vmul.f32 %v6397_v47, %v1028_v0 }
 0x20a   :  { %v904_v13 = vadd.f32 1e-05, %v840_v12  ;;  %v604_v6 = vmul.f32 %v7087_v58, %v7087_v58  ;;  %v1029_v43 = vmul.f32 %v5530_v34, %v6635_v48 }
 0x20b   :  { %v727_v32 = vpop.xlane.xlu0 %726  ;;  %v342_v10 = vpop.xlane.xlu1 %341  ;;  %v1164_v50 = vadd.f32 %v6428_v41, %v1096_v16  ;;  %v7098_v14 = vmul.f32 %v477_v39, %v5825_v8 }
 0x20c   :  { %v841_v28 = vmul.f32 0.03125, %v727_v32  ;;  %5535 = vrsqrt.f32 %v904_v13  ;;  %v414_v40 = vmul.f32 0.03125, %v342_v10  ;;  %v782_v63 = vsel %vm162_vm0, %v604_v6, 0.0 }
 0x20d   :  { %783 = vadd.xlane.f32.xlu1 %v782_v63  ;;  %v1211_v3 = vpack.c.bf16 %v1164_v50, %v1163_v29  ;;  %v605_v52 = vmul.f32 %v7098_v14, %v7098_v14  ;;  %v1097_v56 = vmul.f32 %v6397_v47, %v1029_v43 }
 0x20e   :  { %v905_v2 = vadd.f32 1e-05, %v841_v28  ;;  %v5532_v48 = vpop.eup %5531  ;;  %v478_v35 = vsub.f32 %v6701_v45, %v414_v40 }
 0x20f   :  { %v345_v44 = vpop.xlane.xlu0 %344  ;;  %v730_v9 = vpop.xlane.xlu1 %729  ;;  %5064 = vmatmul.mubr.msk.bf16.gmra.mrb[64].mxu0 %vm162_vm0, %v1211_v3  ;;  %v785_v60 = vsel %vm162_vm0, %v605_v52, 0.0  ;;  %v1030_v1 = vmul.f32 %v5532_v48, %v6661_v53  ;;  %v1165_v16 = vadd.f32 %v6428_v41, %v1097_v56  ;;  %v1232_v52 = vld [vmem:[%s9815_s3] sm:$0x3]  ;;  %s5749_s3 = smov 64  }
 0x210   :  { %5537 = vrsqrt.f32 %v905_v2  ;;  %v415_v4 = vmul.f32 0.03125, %v345_v44  ;;  %v842_v38 = vmul.f32 0.03125, %v730_v9  ;;  %786 = vadd.xlane.f32.xlu0 %v785_v60  ;;  %v7109_v21 = vmul.f32 %v478_v35, %v5825_v8  ;;  %1574 = vmatprep.mubr.bf16.mxu0 %v9995_v22 }
 0x211   :  { %v5534_v45 = vpop.eup %5533  ;;  %v1098_v24 = vmul.f32 %v6397_v47, %v1030_v1 }
 0x212   :  { %v479_v23 = vsub.f32 %v6731_v15, %v415_v4  ;;  %v906_v59 = vadd.f32 1e-05, %v842_v38  ;;  %v606_v12 = vmul.f32 %v7109_v21, %v7109_v21  ;;  %v1031_v34 = vmul.f32 %v5534_v45, %v6679_v37  ;;  %v10010_v38 = vld [vmem:[#allocation20_spill] sm:$0xff] }
 0x213   :  { %v733_v0 = vpop.xlane.xlu0 %732  ;;  %v348_v53 = vpop.xlane.xlu1 %347  ;;  %v1166_v13 = vadd.f32 %v6428_v41, %v1098_v24  ;;  %v7142_v45 = vrot.slane %v1232_v52, %v10010_v38 }
 0x214   :  { %v843_v39 = vmul.f32 0.03125, %v733_v0  ;;  %v7120_v32 = vmul.f32 %v479_v23, %v5825_v8  ;;  %5539 = vrsqrt.f32 %v906_v59  ;;  %v416_v15 = vmul.f32 0.03125, %v348_v53  ;;  %v10011_v53 = vld [vmem:[#allocation21_spill] sm:$0xff] }
 0x215   :  { %v788_v6 = vsel %vm162_vm0, %v606_v12, 0.0  ;;  %v1212_v10 = vpack.c.bf16 %v1166_v13, %v1165_v16  ;;  %v1099_v40 = vmul.f32 %v6397_v47, %v1031_v34 }
 0x216   :  { %v907_v43 = vadd.f32 1e-05, %v843_v39  ;;  %789 = vadd.xlane.f32.xlu1 %v788_v6  ;;  %v607_v28 = vmul.f32 %v7120_v32, %v7120_v32  ;;  %v5536_v37 = vpop.eup %5535  ;;  %v480_v29 = vsub.f32 %v6757_v26, %v416_v15  ;;  %v7152_v39 = vrot.slane %v1232_v52, %v10011_v53 }
 0x217   :  { %v351_v50 = vpop.xlane.xlu0 %350  ;;  %v736_v63 = vpop.xlane.xlu1 %735  ;;  %5065 = vmatmul.mubr.msk.bf16.gmra.mrb[68].mxu0 %vm162_vm0, %v1212_v10  ;;  %v1032_v48 = vmul.f32 %v5536_v37, %v6714_v57  ;;  %v1167_v59 = vadd.f32 %v6428_v41, %v1099_v40 }
 0x218   :  { %5541 = vrsqrt.f32 %v907_v43  ;;  %v417_v2 = vmul.f32 0.03125, %v351_v50  ;;  %v791_v3 = vsel %vm162_vm0, %v607_v28, 0.0  ;;  %v844_v35 = vmul.f32 0.03125, %v736_v63  ;;  %1584 = vmatprep.mubr.bf16.mxu0 %v9995_v22 }
 0x219   :  { %792 = vadd.xlane.f32.xlu0 %v791_v3  ;;  %v7134_v26 = vmul.f32 %v480_v29, %v5825_v8  ;;  %v1100_v9 = vmul.f32 %v6397_v47, %v1032_v48 }
 0x21a   :  { %v5538_v44 = vpop.eup %5537  ;;  %v481_v56 = vsub.f32 %v6787_v25, %v417_v2  ;;  %v908_v4 = vadd.f32 1e-05, %v844_v35 }
 0x21b   :  { %v739_v60 = vpop.xlane.xlu0 %738  ;;  %v608_v1 = vmul.f32 %v7134_v26, %v7134_v26  ;;  %v1033_v57 = vmul.f32 %v5538_v44, %v6735_v20  ;;  %v354_v23 = vpop.xlane.xlu1 %353  ;;  %v1168_v0 = vadd.f32 %v6428_v41, %v1100_v9 }
 0x21c   :  { %v845_v24 = vmul.f32 0.03125, %v739_v60  ;;  %v7148_v25 = vmul.f32 %v481_v56, %v5825_v8  ;;  %5543 = vrsqrt.f32 %v908_v4  ;;  %v418_v12 = vmul.f32 0.03125, %v354_v23 }
 0x21d   :  { %v794_v34 = vsel %vm162_vm0, %v608_v1, 0.0  ;;  %v1213_v13 = vpack.c.bf16 %v1168_v0, %v1167_v59  ;;  %v1101_v10 = vmul.f32 %v6397_v47, %v1033_v57 }
 0x21e   :  { %v909_v16 = vadd.f32 1e-05, %v845_v24  ;;  %795 = vadd.xlane.f32.xlu1 %v794_v34  ;;  %v609_v20 = vmul.f32 %v7148_v25, %v7148_v25  ;;  %v5540_v15 = vpop.eup %5539  ;;  %v482_v6 = vsub.f32 %v6813_v19, %v418_v12  ;;  %v1406_v43 = vpop.f32.mrb[0].mxu0 }
 0x21f   :  { %v742_v28 = vpop.xlane.xlu1 %741  ;;  %v1407_v37 = vadd.f32 %v1406_v43, %v7142_v45  ;;  %5066 = vmatmul.mubr.msk.bf16.gmra.mrb[72].mxu0 %vm162_vm0, %v1213_v13  ;;  %v1408_v29 = vpop.f32.mrb[1].mxu0  ;;  %v1034_v40 = vmul.f32 %v5540_v15, %v6770_v30  ;;  %v1169_v4 = vadd.f32 %v6428_v41, %v1101_v10 }
 0x220   :  { %5545 = vrsqrt.f32 %v909_v16  ;;  %v797_v50 = vsel %vm162_vm0, %v609_v20, 0.0  ;;  %v846_v63 = vmul.f32 0.03125, %v742_v28  ;;  %v7163_v2 = vadd.f32 %v1408_v29, %v7152_v39  ;;  %v1410_v3 = vpop.f32.mrb[2].mxu0  ;;  %1594 = vmatprep.mubr.bf16.mxu0 %v9995_v22 }
 0x221   :  { %798 = vadd.xlane.f32.xlu0 %v797_v50  ;;  %v7166_v19 = vmul.f32 %v482_v6, %v5825_v8  ;;  %v1411_v48 = vadd.f32 %v1410_v3, %v7142_v45  ;;  %v1412_v35 = vpop.f32.mrb[3].mxu0  ;;  %v1102_v44 = vmul.f32 %v6397_v47, %v1034_v40  ;;  %v1725_v60 = vmax.f32 %v1407_v37, 0.0 }
 0x222   :  { %v5542_v52 = vpop.eup %5541  ;;  %v910_v56 = vadd.f32 1e-05, %v846_v63  ;;  %v7172_v30 = vadd.f32 %v1412_v35, %v7152_v39  ;;  %v1726_v23 = vmax.f32 %v7163_v2, 0.0 }
 0x223   :  { %v610_v9 = vmul.f32 %v7166_v19, %v7166_v19  ;;  %v1727_v8 = vmax.f32 %v1411_v48, 0.0  ;;  %v1170_v1 = vadd.f32 %v6428_v41, %v1102_v44  ;;  %v1035_v57 = vmul.f32 %v5542_v52, %v6791_v46 }
 0x224   :  { %5547 = vrsqrt.f32 %v910_v56  ;;  %v1728_v24 = vmax.f32 %v7172_v30, 0.0 }
 0x225   :  { %v800_v59 = vsel %vm162_vm0, %v610_v9, 0.0  ;;  %v2293_v0 = vpack.c.bf16 %v1727_v8, %v1725_v60  ;;  %v1214_v12 = vpack.c.bf16 %v1170_v1, %v1169_v4  ;;  %v1103_v20 = vmul.f32 %v6397_v47, %v1035_v57 }
 0x226   :  { %801 = vadd.xlane.f32.xlu1 %v800_v59  ;;  %v5544_v34 = vpop.eup %5543  ;;  %v2294_v16 = vpack.c.bf16 %v1728_v24, %v1726_v23  ;;  %v1416_v13 = vpop.f32.mrb[4].mxu0 }
 0x227   :  { %v1417_v15 = vadd.f32 %v1416_v13, %v7142_v45  ;;  %5067 = vmatmul.mubr.msk.bf16.gmra.mrb[76].mxu0 %vm162_vm0, %v1214_v12  ;;  %v1418_v46 = vpop.f32.mrb[5].mxu0  ;;  %v1036_v6 = vmul.f32 %v5544_v34, %v6824_v54  ;;  %v1171_v63 = vadd.f32 %v6428_v41, %v1103_v20 }
 0x228   :  { %v1419_v43 = vadd.f32 %v1418_v46, %v7152_v39  ;;  %v1420_v10 = vpop.f32.mrb[6].mxu0  ;;  %5143 = vmatprep.mubr.msk.bf16.mxu1 %vm2537_vm2, %v2294_v16  ;;  %1604 = vmatprep.mubr.bf16.mxu0 %v9995_v22 }
 0x229   :  { %v1421_v37 = vadd.f32 %v1420_v10, %v7142_v45  ;;  %v1422_v29 = vpop.f32.mrb[7].mxu0  ;;  %2667 = vmatmul.mubr.bf16.vlgmr.msra.gmra.mrb[64].mxu1 %v2293_v0  ;;  %v1104_v50 = vmul.f32 %v6397_v47, %v1036_v6  ;;  %v1729_v3 = vmax.f32 %v1417_v15, 0.0 }
 0x22a   :  { %v5546_v28 = vpop.eup %5545  ;;  %v1423_v40 = vadd.f32 %v1422_v29, %v7152_v39  ;;  %v1730_v35 = vmax.f32 %v1419_v43, 0.0 }
 0x22b   :  { %v1731_v54 = vmax.f32 %v1421_v37, 0.0  ;;  %v1172_v52 = vadd.f32 %v6428_v41, %v1104_v50  ;;  %v1037_v48 = vmul.f32 %v5546_v28, %v6842_v51 }
 0x22c   :  { %v1732_v44 = vmax.f32 %v1423_v40, 0.0 }
 0x22d   :  { %v2295_v56 = vpack.c.bf16 %v1731_v54, %v1729_v3  ;;  %v1215_v9 = vpack.c.bf16 %v1172_v52, %v1171_v63  ;;  %v1105_v24 = vmul.f32 %v6397_v47, %v1037_v48 }
 0x22e   :  { %v5548_v4 = vpop.eup %5547  ;;  %v2296_v60 = vpack.c.bf16 %v1732_v44, %v1730_v35  ;;  %v1426_v8 = vpop.f32.mrb[8].mxu0 }
 0x22f   :  { %v1427_v1 = vadd.f32 %v1426_v8, %v7142_v45  ;;  %5068 = vmatmul.mubr.msk.bf16.gmra.mrb[80].mxu0 %vm162_vm0, %v1215_v9  ;;  %v1428_v57 = vpop.f32.mrb[9].mxu0  ;;  %v1038_v23 = vmul.f32 %v5548_v4, %v6863_v55  ;;  %v1173_v55 = vadd.f32 %v6428_v41, %v1105_v24  ;;  %v7220_v4 = vpop.f32.mrb[0].mxu1 }
 0x230   :  { %v1429_v59 = vadd.f32 %v1428_v57, %v7152_v39  ;;  %v1430_v0 = vpop.f32.mrb[10].mxu0  ;;  %5144 = vmatprep.mubr.msk.bf16.mxu1 %vm2537_vm2, %v2296_v60  ;;  %1614 = vmatprep.mubr.bf16.mxu0 %v9995_v22 }
 0x231   :  { %v1431_v51 = vadd.f32 %v1430_v0, %v7142_v45  ;;  %v1432_v12 = vpop.f32.mrb[11].mxu0  ;;  %2677 = vmatmul.mubr.bf16.gmra.mrb[68].mxu1 %v2295_v56  ;;  %v1106_v34 = vmul.f32 %v6397_v47, %v1038_v23  ;;  %v1733_v13 = vmax.f32 %v1427_v1, 0.0  ;;  %v7224_v1 = vpop.f32.mrb[1].mxu1 }
 0x232   :  { %v1433_v16 = vadd.f32 %v1432_v12, %v7152_v39  ;;  %v1734_v46 = vmax.f32 %v1429_v59, 0.0  ;;  %v7227_v23 = vpop.f32.mrb[2].mxu1 }
 0x233   :  { %v1735_v20 = vmax.f32 %v1431_v51, 0.0  ;;  %v1174_v15 = vadd.f32 %v6428_v41, %v1106_v34  ;;  %v7231_v0 = vpop.f32.mrb[3].mxu1 }
 0x234   :  { %v1736_v6 = vmax.f32 %v1433_v16, 0.0  ;;  %v7234_v34 = vpop.f32.mrb[4].mxu1 }
 0x235   :  { %v2297_v10 = vpack.c.bf16 %v1735_v20, %v1733_v13  ;;  %v1216_v28 = vpack.c.bf16 %v1174_v15, %v1173_v55 }
 0x236   :  { %v2298_v37 = vpack.c.bf16 %v1736_v6, %v1734_v46  ;;  %v1436_v29 = vpop.f32.mrb[12].mxu0 }
 0x237   :  { %3627 = vrot.lane.b32.xlu1 %v7163_v2, %s5749_s3  ;;  %3629 = vrot.lane.b32.xlu0 %v7172_v30, %s5749_s3  ;;  %v1437_v50 = vadd.f32 %v1436_v29, %v7142_v45  ;;  %v1438_v63 = vpop.f32.mrb[13].mxu0 }
 0x238   :  { %5069 = vmatmul.mubr.msk.bf16.gmra.mrb[84].mxu0 %vm162_vm0, %v1216_v28  ;;  %v1439_v3 = vadd.f32 %v1438_v63, %v7152_v39  ;;  %v1440_v54 = vpop.f32.mrb[14].mxu0  ;;  %5145 = vmatprep.mubr.msk.bf16.mxu1 %vm2537_vm2, %v2298_v37 }
 0x239   :  { %1624 = vmatprep.mubr.bf16.mxu0 %v9995_v22  ;;  %v1441_v52 = vadd.f32 %v1440_v54, %v7142_v45  ;;  %v1442_v48 = vpop.f32.mrb[15].mxu0  ;;  %2687 = vmatmul.mubr.bf16.gmra.mrb[72].mxu1 %v2297_v10  ;;  %v1737_v30 = vmax.f32 %v1437_v50, 0.0 }
 0x23a   :  { %v1443_v2 = vadd.f32 %v1442_v48, %v7152_v39  ;;  %v1738_v44 = vmax.f32 %v1439_v3, 0.0 }
 0x23b   :  { %3631 = vrot.lane.b32.xlu1 %v1419_v43, %s5749_s3  ;;  %3633 = vrot.lane.b32.xlu0 %v1423_v40, %s5749_s3  ;;  %v1739_v35 = vmax.f32 %v1441_v52, 0.0 }
 0x23c   :  { %v1740_v56 = vmax.f32 %v1443_v2, 0.0 }
 0x23d   :  { %v2299_v9 = vpack.c.bf16 %v1739_v35, %v1737_v30 }
 0x23e   :  { %v2300_v60 = vpack.c.bf16 %v1740_v56, %v1738_v44  ;;  %v1446_v8 = vpop.f32.mrb[16].mxu0 }
 0x23f   :  { %3637 = vrot.lane.b32.xlu1 %v1433_v16, %s5749_s3  ;;  %3635 = vrot.lane.b32.xlu0 %v1429_v59, %s5749_s3  ;;  %v1447_v43 = vadd.f32 %v1446_v8, %v7142_v45  ;;  %v1448_v57 = vpop.f32.mrb[17].mxu0  ;;  %v7239_v16 = vpop.f32.mrb[5].mxu1 }
 0x240   :  { %v1449_v40 = vadd.f32 %v1448_v57, %v7152_v39  ;;  %v1450_v24 = vpop.f32.mrb[18].mxu0  ;;  %5146 = vmatprep.mubr.msk.bf16.mxu1 %vm2537_vm2, %v2300_v60  ;;  %v7241_v55 = vpop.f32.mrb[6].mxu1 }
 0x241   :  { %v1451_v51 = vadd.f32 %v1450_v24, %v7142_v45  ;;  %v1452_v12 = vpop.f32.mrb[19].mxu0  ;;  %2697 = vmatmul.mubr.bf16.gmra.mrb[76].mxu1 %v2299_v9  ;;  %v1741_v13 = vmax.f32 %v1447_v43, 0.0  ;;  %v7243_v6 = vpop.f32.mrb[7].mxu1 }
 0x242   :  { %v1453_v59 = vadd.f32 %v1452_v12, %v7152_v39  ;;  %v1742_v15 = vmax.f32 %v1449_v40, 0.0  ;;  %v7245_v28 = vpop.f32.mrb[8].mxu1 }
 0x243   :  { %3641 = vrot.lane.b32.xlu1 %v1443_v2, %s5749_s3  ;;  %3639 = vrot.lane.b32.xlu0 %v1439_v3, %s5749_s3  ;;  %v1743_v20 = vmax.f32 %v1451_v51, 0.0  ;;  %v7249_v50 = vpop.f32.mrb[9].mxu1 }
 0x244   :  { %v1744_v46 = vmax.f32 %v1453_v59, 0.0  ;;  %v7252_v54 = vpop.f32.mrb[10].mxu1 }
 0x245   :  { %v2301_v10 = vpack.c.bf16 %v1743_v20, %v1741_v13  ;;  %v7256_v2 = vpop.f32.mrb[11].mxu1 }
 0x246   :  { %v2302_v37 = vpack.c.bf16 %v1744_v46, %v1742_v15  ;;  %v1456_v29 = vpop.f32.mrb[20].mxu0  ;;  %v7259_v44 = vpop.f32.mrb[12].mxu1 }
 0x247   :  { %3645 = vrot.lane.b32.xlu1 %v1453_v59, %s5749_s3  ;;  %3643 = vrot.lane.b32.xlu0 %v1449_v40, %s5749_s3  ;;  %v1457_v63 = vadd.f32 %v1456_v29, %v7142_v45  ;;  %v1458_v3 = vpop.f32.mrb[21].mxu0  ;;  %v7263_v9 = vpop.f32.mrb[13].mxu1 }
 0x248   :  { %v1459_v52 = vadd.f32 %v1458_v3, %v7152_v39  ;;  %v1460_v48 = vpop.f32.mrb[22].mxu0  ;;  %5147 = vmatprep.mubr.msk.bf16.mxu1 %vm2537_vm2, %v2302_v37  ;;  %v7265_v43 = vpop.f32.mrb[14].mxu1 }
 0x249   :  { %v1461_v30 = vadd.f32 %v1460_v48, %v7142_v45  ;;  %v1462_v35 = vpop.f32.mrb[23].mxu0  ;;  %2707 = vmatmul.mubr.bf16.gmra.mrb[80].mxu1 %v2301_v10  ;;  %v1745_v60 = vmax.f32 %v1457_v63, 0.0  ;;  %v7268_v24 = vpop.f32.mrb[15].mxu1 }
 0x24a   :  { %v1463_v56 = vadd.f32 %v1462_v35, %v7152_v39  ;;  %v1746_v57 = vmax.f32 %v1459_v52, 0.0  ;;  %v7270_v12 = vpop.f32.mrb[16].mxu1 }
 0x24b   :  { %3647 = vrot.lane.b32.xlu0 %v1459_v52, %s5749_s3  ;;  %v1747_v8 = vmax.f32 %v1461_v30, 0.0  ;;  %10012 = vst [vmem:[#allocation10_spill] sm:$0xff] %v7270_v12  ;;  %v7272_v20 = vpop.f32.mrb[17].mxu1 }
 0x24c   :  { %v1748_v40 = vmax.f32 %v1463_v56, 0.0  ;;  %3649 = vrot.lane.b32.xlu1 %v1463_v56, %s5749_s3  ;;  %v7275_v10 = vpop.f32.mrb[18].mxu1 }
 0x24d   :  { %v2303_v51 = vpack.c.bf16 %v1747_v8, %v1745_v60  ;;  %10013 = vst [vmem:[#allocation11_spill] sm:$0xff] %v7275_v10  ;;  %v7279_v63 = vpop.f32.mrb[19].mxu1 }
 0x24e   :  { %v2304_v59 = vpack.c.bf16 %v1748_v40, %v1746_v57  ;;  %v1466_v13 = vpop.f32.mrb[24].mxu0  ;;  %v7282_v48 = vpop.f32.mrb[20].mxu1 }
 0x24f   :  { %v1467_v15 = vadd.f32 %v1466_v13, %v7142_v45  ;;  %v1468_v46 = vpop.f32.mrb[25].mxu0  ;;  %10014 = vst [vmem:[#allocation14_spill] sm:$0xff] %v7282_v48  ;;  %v7286_v35 = vpop.f32.mrb[21].mxu1 }
 0x250   :  { %v1469_v37 = vadd.f32 %v1468_v46, %v7152_v39  ;;  %v1470_v29 = vpop.f32.mrb[26].mxu0  ;;  %5148 = vmatprep.mubr.msk.bf16.mxu1 %vm2537_vm2, %v2304_v59  ;;  %10015 = vst [vmem:[#allocation15_spill] sm:$0xff] %v7286_v35  ;;  %v7288_v8 = vpop.f32.mrb[22].mxu1 }
 0x251   :  { %v1471_v3 = vadd.f32 %v1470_v29, %v7142_v45  ;;  %v1472_v52 = vpop.f32.mrb[27].mxu0  ;;  %2717 = vmatmul.mubr.bf16.gmra.mrb[84].mxu1 %v2303_v51  ;;  %v1749_v56 = vmax.f32 %v1467_v15, 0.0  ;;  %10016 = vst [vmem:[#allocation6_spill] sm:$0xff] %v7288_v8  ;;  %v7291_v59 = vpop.f32.mrb[23].mxu1 }
 0x252   :  { %v1473_v30 = vadd.f32 %v1472_v52, %v7152_v39  ;;  %3651 = vrot.lane.b32.xlu0 %v1469_v37, %s5749_s3  ;;  %v1750_v57 = vmax.f32 %v1469_v37, 0.0  ;;  %10017 = vst [vmem:[#allocation7_spill] sm:$0xff] %v7291_v59  ;;  %v7293_v51 = vpop.f32.mrb[24].mxu1 }
 0x253   :  { %v1751_v60 = vmax.f32 %v1471_v3, 0.0  ;;  %10018 = vst [vmem:[#allocation18_spill] sm:$0xff] %v7293_v51  ;;  %v7295_v52 = vpop.f32.mrb[25].mxu1 }
 0x254   :  { %v1752_v40 = vmax.f32 %v1473_v30, 0.0  ;;  %3653 = vrot.lane.b32.xlu1 %v1473_v30, %s5749_s3  ;;  %10019 = vst [vmem:[#allocation8_spill] sm:$0xff] %v7295_v52  ;;  %v7298_v15 = vpop.f32.mrb[26].mxu1 }
 0x255   :  { %v2305_v13 = vpack.c.bf16 %v1751_v60, %v1749_v56  ;;  %10020 = vst [vmem:[#allocation9_spill] sm:$0xff] %v7298_v15  ;;  %v7302_v30 = vpop.f32.mrb[27].mxu1 }
 0x256   :  { %v2306_v46 = vpack.c.bf16 %v1752_v40, %v1750_v57  ;;  %v1476_v29 = vpop.f32.mrb[28].mxu0  ;;  %10021 = vst [vmem:[#allocation12_spill] sm:$0xff] %v7302_v30  ;;  %v7305_v57 = vpop.f32.mrb[28].mxu1 }
 0x257   :  { %v1477_v48 = vadd.f32 %v1476_v29, %v7142_v45  ;;  %v1478_v53 = vpop.f32.mrb[29].mxu0  ;;  %10022 = vst [vmem:[#allocation13_spill] sm:$0xff] %v7305_v57  ;;  %v7309_v29 = vpop.f32.mrb[29].mxu1 }
 0x258   :  { %v1479_v3 = vadd.f32 %v1478_v53, %v7152_v39  ;;  %v1480_v37 = vpop.f32.mrb[30].mxu0  ;;  %5149 = vmatprep.mubr.msk.bf16.mxu1 %vm2537_vm2, %v2306_v46  ;;  %10023 = vst [vmem:[#allocation16_spill] sm:$0xff] %v7309_v29  ;;  %v7311_v53 = vpop.f32.mrb[30].mxu1 }
 0x259   :  { %v1481_v56 = vadd.f32 %v1480_v37, %v7142_v45  ;;  %v1482_v60 = vpop.f32.mrb[31].mxu0  ;;  %2727 = vmatmul.mubr.bf16.gmra.mrb[88].mxu1 %v2305_v13  ;;  %v1753_v15 = vmax.f32 %v1477_v48, 0.0  ;;  %10024 = vst [vmem:[#allocation17_spill] sm:$0xff] %v7311_v53  ;;  %v7314_v30 = vpop.f32.mrb[31].mxu1 }
 0x25a   :  { %v1483_v40 = vadd.f32 %v1482_v60, %v7152_v39  ;;  %3655 = vrot.lane.b32.xlu0 %v1479_v3, %s5749_s3  ;;  %v1754_v52 = vmax.f32 %v1479_v3, 0.0  ;;  %10025 = vst [vmem:[#allocation19_spill] sm:$0xff] %v7314_v30  ;;  %v7316_v13 = vpop.f32.mrb[32].mxu1 }
 0x25b   :  { %v1755_v51 = vmax.f32 %v1481_v56, 0.0  ;;  %10026 = vst [vmem:[#allocation20_spill] sm:$0xff] %v7316_v13  ;;  %v7318_v60 = vpop.f32.mrb[33].mxu1 }
 0x25c   :  { %v1756_v46 = vmax.f32 %v1483_v40, 0.0  ;;  %3657 = vrot.lane.b32.xlu1 %v1483_v40, %s5749_s3  ;;  %10027 = vst [vmem:[#allocation22_spill] sm:$0xff] %v7318_v60  ;;  %v7321_v48 = vpop.f32.mrb[34].mxu1 }
 0x25d   :  { %v2307_v37 = vpack.c.bf16 %v1755_v51, %v1753_v15  ;;  %10028 = vst [vmem:[#allocation23_spill] sm:$0xff] %v7321_v48  ;;  %v7325_v40 = vpop.f32.mrb[35].mxu1 }
 0x25e   :  { %v2308_v57 = vpack.c.bf16 %v1756_v46, %v1754_v52  ;;  %v1486_v8 = vpop.f32.mrb[32].mxu0  ;;  %10029 = vst [vmem:[#allocation24_spill] sm:$0xff] %v7325_v40  ;;  %v7328_v52 = vpop.f32.mrb[36].mxu1 }
 0x25f   :  { %v1487_v59 = vadd.f32 %v1486_v8, %v7142_v45  ;;  %v1488_v29 = vpop.f32.mrb[33].mxu0  ;;  %10030 = vst [vmem:[#allocation25_spill] sm:$0xff] %v7328_v52  ;;  %v7332_v8 = vpop.f32.mrb[37].mxu1 }
 0x260   :  { %v1489_v56 = vadd.f32 %v1488_v29, %v7152_v39  ;;  %v1490_v3 = vpop.f32.mrb[34].mxu0  ;;  %5150 = vmatprep.mubr.msk.bf16.mxu1 %vm2537_vm2, %v2308_v57  ;;  %10031 = vst [vmem:[#allocation26_spill] sm:$0xff] %v7332_v8  ;;  %v7334_v29 = vpop.f32.mrb[38].mxu1 }
 0x261   :  { %v1491_v51 = vadd.f32 %v1490_v3, %v7142_v45  ;;  %v1492_v15 = vpop.f32.mrb[35].mxu0  ;;  %2737 = vmatmul.mubr.bf16.gmra.mrb[92].mxu1 %v2307_v37  ;;  %v1757_v48 = vmax.f32 %v1487_v59, 0.0  ;;  %10032 = vst [vmem:[#allocation27_spill] sm:$0xff] %v7334_v29  ;;  %v7337_v40 = vpop.f32.mrb[39].mxu1 }
 0x262   :  { %v1493_v46 = vadd.f32 %v1492_v15, %v7152_v39  ;;  %3659 = vrot.lane.b32.xlu1 %v1489_v56, %s5749_s3  ;;  %v1758_v60 = vmax.f32 %v1489_v56, 0.0  ;;  %10033 = vst [vmem:[#allocation28_spill] sm:$0xff] %v7337_v40  ;;  %v7339_v53 = vpop.f32.mrb[40].mxu1 }
 0x263   :  { %v1759_v13 = vmax.f32 %v1491_v51, 0.0  ;;  %10034 = vst [vmem:[#allocation29_spill] sm:$0xff] %v7339_v53  ;;  %v7341_v35 = vpop.f32.mrb[41].mxu1 }
 0x264   :  { %v1760_v57 = vmax.f32 %v1493_v46, 0.0  ;;  %3661 = vrot.lane.b32.xlu0 %v1493_v46, %s5749_s3  ;;  %10035 = vst [vmem:[#allocation30_spill] sm:$0xff] %v7341_v35  ;;  %v7344_v8 = vpop.f32.mrb[42].mxu1 }
 0x265   :  { %v2309_v3 = vpack.c.bf16 %v1759_v13, %v1757_v48  ;;  %v745_v37 = vpop.xlane.xlu0 %744  ;;  %10036 = vst [vmem:[#allocation31_spill] sm:$0xff] %v7344_v8  ;;  %v7348_v13 = vpop.f32.mrb[43].mxu1 }
 0x266   :  { %v2310_v52 = vpack.c.bf16 %v1760_v57, %v1758_v60  ;;  %v847_v15 = vmul.f32 0.03125, %v745_v37  ;;  %v1496_v30 = vpop.f32.mrb[36].mxu0  ;;  %10037 = vst [vmem:[#allocation32_spill] sm:$0xff] %v7348_v13  ;;  %v7351_v57 = vpop.f32.mrb[44].mxu1 }
 0x267   :  { %v1497_v59 = vadd.f32 %v1496_v30, %v7142_v45  ;;  %v1498_v51 = vpop.f32.mrb[37].mxu0  ;;  %10038 = vst [vmem:[#allocation33_spill] sm:$0xff] %v7351_v57 }
 0x268   :  { %v911_v56 = vadd.f32 1e-05, %v847_v15  ;;  %v1499_v29 = vadd.f32 %v1498_v51, %v7152_v39  ;;  %v1500_v46 = vpop.f32.mrb[38].mxu0  ;;  %5151 = vmatprep.mubr.msk.bf16.mxu1 %vm2537_vm2, %v2310_v52  ;;  %v7355_v15 = vpop.f32.mrb[45].mxu1 }
 0x269   :  { %v1501_v48 = vadd.f32 %v1500_v46, %v7142_v45  ;;  %v1502_v60 = vpop.f32.mrb[39].mxu0  ;;  %2747 = vmatmul.mubr.bf16.gmra.mrb[96].mxu1 %v2309_v3  ;;  %10039 = vst [vmem:[#allocation34_spill] sm:$0xff] %v7355_v15  ;;  %v1761_v51 = vmax.f32 %v1497_v59, 0.0  ;;  %v7357_v52 = vpop.f32.mrb[46].mxu1 }
 0x26a   :  { %5549 = vrsqrt.f32 %v911_v56  ;;  %v748_v37 = vpop.xlane.xlu1 %747  ;;  %v1503_v30 = vadd.f32 %v1502_v60, %v7152_v39  ;;  %3663 = vrot.lane.b32.xlu1 %v1499_v29, %s5749_s3  ;;  %10040 = vst [vmem:[#allocation35_spill] sm:$0xff] %v7357_v52  ;;  %v1762_v13 = vmax.f32 %v1499_v29, 0.0  ;;  %v7360_v3 = vpop.f32.mrb[47].mxu1 }
 0x26b   :  { %v1763_v8 = vmax.f32 %v1501_v48, 0.0  ;;  %v848_v53 = vmul.f32 0.03125, %v748_v37  ;;  %10041 = vst [vmem:[#allocation36_spill] sm:$0xff] %v7360_v3  ;;  %v7362_v40 = vpop.f32.mrb[48].mxu1 }
 0x26c   :  { %v1764_v35 = vmax.f32 %v1503_v30, 0.0  ;;  %3665 = vrot.lane.b32.xlu0 %v1503_v30, %s5749_s3  ;;  %10042 = vst [vmem:[#allocation37_spill] sm:$0xff] %v7362_v40  ;;  %v7364_v15 = vpop.f32.mrb[49].mxu1 }
 0x26d   :  { %v2311_v46 = vpack.c.bf16 %v1763_v8, %v1761_v51  ;;  %v912_v56 = vadd.f32 1e-05, %v848_v53  ;;  %v751_v57 = vpop.xlane.xlu0 %750  ;;  %10043 = vst [vmem:[#allocation38_spill] sm:$0xff] %v7364_v15  ;;  %v7367_v29 = vpop.f32.mrb[50].mxu1 }
 0x26e   :  { %v2312_v60 = vpack.c.bf16 %v1764_v35, %v1762_v13  ;;  %v849_v10 = vmul.f32 0.03125, %v751_v57  ;;  %v1506_v12 = vpop.f32.mrb[40].mxu0  ;;  %10044 = vst [vmem:[#allocation39_spill] sm:$0xff] %v7367_v29  ;;  %v7371_v53 = vpop.f32.mrb[51].mxu1 }
 0x26f   :  { %5551 = vrsqrt.f32 %v912_v56  ;;  %v1507_v59 = vadd.f32 %v1506_v12, %v7142_v45  ;;  %v1508_v48 = vpop.f32.mrb[41].mxu0  ;;  %10045 = vst [vmem:[#allocation40_spill] sm:$0xff] %v7371_v53  ;;  %v7374_v13 = vpop.f32.mrb[52].mxu1 }
 0x270   :  { %v913_v37 = vadd.f32 1e-05, %v849_v10  ;;  %v1509_v30 = vadd.f32 %v1508_v48, %v7152_v39  ;;  %v1510_v52 = vpop.f32.mrb[42].mxu0  ;;  %5152 = vmatprep.mubr.msk.bf16.mxu1 %vm2537_vm2, %v2312_v60  ;;  %10046 = vst [vmem:[#allocation41_spill] sm:$0xff] %v7374_v13  ;;  %v7378_v10 = vpop.f32.mrb[53].mxu1 }
 0x271   :  { %v1511_v35 = vadd.f32 %v1510_v52, %v7142_v45  ;;  %v1512_v8 = vpop.f32.mrb[43].mxu0  ;;  %2757 = vmatmul.mubr.bf16.gmra.mrb[100].mxu1 %v2311_v46  ;;  %10047 = vst [vmem:[#allocation42_spill] sm:$0xff] %v7378_v10  ;;  %v1765_v51 = vmax.f32 %v1507_v59, 0.0  ;;  %v7380_v60 = vpop.f32.mrb[54].mxu1 }
 0x272   :  { %5553 = vrsqrt.f32 %v913_v37  ;;  %v754_v57 = vpop.xlane.xlu1 %753  ;;  %v1513_v12 = vadd.f32 %v1512_v8, %v7152_v39  ;;  %3667 = vrot.lane.b32.xlu0 %v1509_v30, %s5749_s3  ;;  %10048 = vst [vmem:[#allocation43_spill] sm:$0xff] %v7380_v60  ;;  %v1766_v40 = vmax.f32 %v1509_v30, 0.0  ;;  %v7383_v46 = vpop.f32.mrb[55].mxu1 }
 0x273   :  { %v1767_v56 = vmax.f32 %v1511_v35, 0.0  ;;  %v850_v48 = vmul.f32 0.03125, %v754_v57  ;;  %10049 = vst [vmem:[#allocation44_spill] sm:$0xff] %v7383_v46  ;;  %v7385_v8 = vpop.f32.mrb[56].mxu1 }
 0x274   :  { %v5550_v29 = vpop.eup %5549  ;;  %v1768_v52 = vmax.f32 %v1513_v12, 0.0  ;;  %3669 = vrot.lane.b32.xlu1 %v1513_v12, %s5749_s3  ;;  %10050 = vst [vmem:[#allocation45_spill] sm:$0xff] %v7385_v8  ;;  %v7388_v35 = vpop.f32.mrb[57].mxu1 }
 0x275   :  { %v2313_v37 = vpack.c.bf16 %v1767_v56, %v1765_v51  ;;  %v914_v13 = vadd.f32 1e-05, %v850_v48  ;;  %v757_v53 = vpop.xlane.xlu0 %756  ;;  %v1039_v59 = vmul.f32 %v5550_v29, %v6944_v42  ;;  %10051 = vst [vmem:[#allocation46_spill] sm:$0xff] %v7388_v35  ;;  %v7390_v57 = vpop.f32.mrb[58].mxu1 }
 0x276   :  { %v2314_v15 = vpack.c.bf16 %v1768_v52, %v1766_v40  ;;  %v851_v3 = vmul.f32 0.03125, %v757_v53  ;;  %10052 = vst [vmem:[#allocation47_spill] sm:$0xff] %v7390_v57  ;;  %v7393_v12 = vpop.f32.mrb[59].mxu1 }
 0x277   :  { %5555 = vrsqrt.f32 %v914_v13  ;;  %10053 = vst [vmem:[#allocation48_spill] sm:$0xff] %v7393_v12  ;;  %v7395_v51 = vpop.f32.mrb[60].mxu1  ;;  %v1107_v42 = vmul.f32 %v6397_v47, %v1039_v59 }
 0x278   :  { %v915_v30 = vadd.f32 1e-05, %v851_v3  ;;  %5153 = vmatprep.mubr.msk.bf16.mxu1 %vm2537_vm2, %v2314_v15  ;;  %10054 = vst [vmem:[#allocation49_spill] sm:$0xff] %v7395_v51  ;;  %v7399_v29 = vpop.f32.mrb[61].mxu1 }
 0x279   :  { %v5552_v60 = vpop.eup %5551  ;;  %2767 = vmatmul.mubr.bf16.gmra.mrb[104].mxu1 %v2313_v37  ;;  %10055 = vst [vmem:[#allocation50_spill] sm:$0xff] %v7399_v29  ;;  %v7401_v13 = vpop.f32.mrb[62].mxu1 }
 0x27a   :  { %5557 = vrsqrt.f32 %v915_v30  ;;  %v760_v56 = vpop.xlane.xlu1 %759  ;;  %v1040_v40 = vmul.f32 %v5552_v60, %v6953_v17  ;;  %10056 = vst [vmem:[#allocation51_spill] sm:$0xff] %v7401_v13  ;;  %v7404_v48 = vpop.f32.mrb[63].mxu1  ;;  %v1175_v30 = vadd.f32 %v6428_v41, %v1107_v42 }
 0x27b   :  { %v852_v53 = vmul.f32 0.03125, %v760_v56  ;;  %10057 = vst [vmem:[#allocation52_spill] sm:$0xff] %v7404_v48 }
 0x27c   :  { %v5554_v3 = vpop.eup %5553  ;;  %v1108_v15 = vmul.f32 %v6397_v47, %v1040_v40 }
 0x27d   :  { %v916_v52 = vadd.f32 1e-05, %v852_v53  ;;  %v763_v37 = vpop.xlane.xlu0 %762  ;;  %v1041_v17 = vmul.f32 %v5554_v3, %v6962_v7 }
 0x27e   :  { %v853_v57 = vmul.f32 0.03125, %v763_v37  ;;  %v1176_v51 = vadd.f32 %v6428_v41, %v1108_v15 }
 0x27f   :  { %5559 = vrsqrt.f32 %v916_v52  ;;  %v1109_v53 = vmul.f32 %v6397_v47, %v1041_v17 }
 0x280   :  { %v917_v60 = vadd.f32 1e-05, %v853_v57  ;;  %v1217_v59 = vpack.c.bf16 %v1176_v51, %v1175_v30 }
 0x281   :  { %v5556_v56 = vpop.eup %5555  ;;  %v1177_v57 = vadd.f32 %v6428_v41, %v1109_v53 }
 0x282   :  { %5561 = vrsqrt.f32 %v917_v60  ;;  %v766_v13 = vpop.xlane.xlu1 %765  ;;  %5070 = vmatmul.mubr.msk.bf16.gmra.mrb[88].mxu0 %vm162_vm0, %v1217_v59  ;;  %v1042_v40 = vmul.f32 %v5556_v56, %v6974_v61 }
 0x283   :  { %v854_v48 = vmul.f32 0.03125, %v766_v13  ;;  %1634 = vmatprep.mubr.bf16.mxu0 %v9995_v22 }
 0x284   :  { %v5558_v42 = vpop.eup %5557  ;;  %v1110_v15 = vmul.f32 %v6397_v47, %v1042_v40 }
 0x285   :  { %v918_v37 = vadd.f32 1e-05, %v854_v48  ;;  %v769_v7 = vpop.xlane.xlu0 %768  ;;  %v1043_v52 = vmul.f32 %v5558_v42, %v6986_v62 }
 0x286   :  { %v855_v3 = vmul.f32 0.03125, %v769_v7  ;;  %v1178_v51 = vadd.f32 %v6428_v41, %v1110_v15 }
 0x287   :  { %5563 = vrsqrt.f32 %v918_v37  ;;  %v1111_v48 = vmul.f32 %v6397_v47, %v1043_v52 }
 0x288   :  { %v919_v30 = vadd.f32 1e-05, %v855_v3  ;;  %v1218_v61 = vpack.c.bf16 %v1178_v51, %v1177_v57 }
 0x289   :  { %v5560_v60 = vpop.eup %5559  ;;  %v1179_v15 = vadd.f32 %v6428_v41, %v1111_v48 }
 0x28a   :  { %5565 = vrsqrt.f32 %v919_v30  ;;  %v772_v13 = vpop.xlane.xlu1 %771  ;;  %5071 = vmatmul.mubr.msk.bf16.gmra.mrb[92].mxu0 %vm162_vm0, %v1218_v61  ;;  %v1044_v17 = vmul.f32 %v5560_v60, %v6999_v31 }
 0x28b   :  { %v856_v59 = vmul.f32 0.03125, %v772_v13  ;;  %1644 = vmatprep.mubr.bf16.mxu0 %v9995_v22 }
 0x28c   :  { %v5562_v56 = vpop.eup %5561  ;;  %v1112_v40 = vmul.f32 %v6397_v47, %v1044_v17 }
 0x28d   :  { %v920_v53 = vadd.f32 1e-05, %v856_v59  ;;  %v775_v62 = vpop.xlane.xlu0 %774  ;;  %v1045_v7 = vmul.f32 %v5562_v56, %v7010_v18 }
 0x28e   :  { %v857_v42 = vmul.f32 0.03125, %v775_v62  ;;  %v1180_v37 = vadd.f32 %v6428_v41, %v1112_v40 }
 0x28f   :  { %5567 = vrsqrt.f32 %v920_v53  ;;  %v1113_v30 = vmul.f32 %v6397_v47, %v1045_v7 }
 0x290   :  { %v921_v3 = vadd.f32 1e-05, %v857_v42  ;;  %v1219_v31 = vpack.c.bf16 %v1180_v37, %v1179_v15 }
 0x291   :  { %v5564_v57 = vpop.eup %5563  ;;  %v1181_v59 = vadd.f32 %v6428_v41, %v1113_v30 }
 0x292   :  { %5569 = vrsqrt.f32 %v921_v3  ;;  %v778_v51 = vpop.xlane.xlu1 %777  ;;  %5072 = vmatmul.mubr.msk.bf16.gmra.mrb[96].mxu0 %vm162_vm0, %v1219_v31  ;;  %v1046_v52 = vmul.f32 %v5564_v57, %v7021_v49 }
 0x293   :  { %v858_v61 = vmul.f32 0.03125, %v778_v51  ;;  %1654 = vmatprep.mubr.bf16.mxu0 %v9995_v22 }
 0x294   :  { %v5566_v60 = vpop.eup %5565  ;;  %v1114_v13 = vmul.f32 %v6397_v47, %v1046_v52 }
 0x295   :  { %v922_v17 = vadd.f32 1e-05, %v858_v61  ;;  %v781_v18 = vpop.xlane.xlu0 %780  ;;  %v1047_v40 = vmul.f32 %v5566_v60, %v7032_v5 }
 0x296   :  { %v859_v48 = vmul.f32 0.03125, %v781_v18  ;;  %v1182_v56 = vadd.f32 %v6428_v41, %v1114_v13 }
 0x297   :  { %5571 = vrsqrt.f32 %v922_v17  ;;  %v1115_v37 = vmul.f32 %v6397_v47, %v1047_v40 }
 0x298   :  { %v923_v53 = vadd.f32 1e-05, %v859_v48  ;;  %v1220_v49 = vpack.c.bf16 %v1182_v56, %v1181_v59 }
 0x299   :  { %v5568_v62 = vpop.eup %5567  ;;  %v1183_v52 = vadd.f32 %v6428_v41, %v1115_v37 }
 0x29a   :  { %5573 = vrsqrt.f32 %v923_v53  ;;  %v784_v42 = vpop.xlane.xlu1 %783  ;;  %5073 = vmatmul.mubr.msk.bf16.gmra.mrb[100].mxu0 %vm162_vm0, %v1220_v49  ;;  %v1048_v15 = vmul.f32 %v5568_v62, %v7043_v27 }
 0x29b   :  { %v860_v7 = vmul.f32 0.03125, %v784_v42  ;;  %1664 = vmatprep.mubr.bf16.mxu0 %v9995_v22 }
 0x29c   :  { %v5570_v3 = vpop.eup %5569  ;;  %v1116_v31 = vmul.f32 %v6397_v47, %v1048_v15 }
 0x29d   :  { %v924_v57 = vadd.f32 1e-05, %v860_v7  ;;  %v787_v5 = vpop.xlane.xlu0 %786  ;;  %v1049_v61 = vmul.f32 %v5570_v3, %v7054_v36 }
 0x29e   :  { %v861_v51 = vmul.f32 0.03125, %v787_v5  ;;  %v1184_v30 = vadd.f32 %v6428_v41, %v1116_v31 }
 0x29f   :  { %5575 = vrsqrt.f32 %v924_v57  ;;  %v1117_v48 = vmul.f32 %v6397_v47, %v1049_v61 }
 0x2a0   :  { %v925_v60 = vadd.f32 1e-05, %v861_v51  ;;  %v1221_v27 = vpack.c.bf16 %v1184_v30, %v1183_v52 }
 0x2a1   :  { %v5572_v13 = vpop.eup %5571  ;;  %v1185_v62 = vadd.f32 %v6428_v41, %v1117_v48 }
 0x2a2   :  { %5577 = vrsqrt.f32 %v925_v60  ;;  %5074 = vmatmul.mubr.msk.bf16.gmra.mrb[104].mxu0 %vm162_vm0, %v1221_v27  ;;  %v1050_v18 = vmul.f32 %v5572_v13, %v7065_v11 }
 0x2a3   :  { %v790_v17 = vpop.xlane.xlu1 %789  ;;  %1674 = vmatprep.mubr.bf16.mxu0 %v9995_v22 }
 0x2a4   :  { %v862_v59 = vmul.f32 0.03125, %v790_v17  ;;  %v5574_v56 = vpop.eup %5573  ;;  %v1118_v40 = vmul.f32 %v6397_v47, %v1050_v18 }
 0x2a5   :  { %v1051_v15 = vmul.f32 %v5574_v56, %v7076_v33 }
 0x2a6   :  { %v926_v53 = vadd.f32 1e-05, %v862_v59  ;;  %v793_v36 = vpop.xlane.xlu0 %792  ;;  %v1186_v42 = vadd.f32 %v6428_v41, %v1118_v40 }
 0x2a7   :  { %v863_v49 = vmul.f32 0.03125, %v793_v36  ;;  %v1119_v57 = vmul.f32 %v6397_v47, %v1051_v15 }
 0x2a8   :  { %5579 = vrsqrt.f32 %v926_v53  ;;  %v1222_v11 = vpack.c.bf16 %v1186_v42, %v1185_v62 }
 0x2a9   :  { %v927_v37 = vadd.f32 1e-05, %v863_v49  ;;  %v5576_v7 = vpop.eup %5575  ;;  %v1187_v60 = vadd.f32 %v6428_v41, %v1119_v57 }
 0x2aa   :  { %5075 = vmatmul.mubr.msk.bf16.gmra.mrb[108].mxu0 %vm162_vm0, %v1222_v11  ;;  %v1052_v31 = vmul.f32 %v5576_v7, %v7087_v58 }
 0x2ab   :  { %5581 = vrsqrt.f32 %v927_v37  ;;  %v796_v3 = vpop.xlane.xlu1 %795  ;;  %1684 = vmatprep.mubr.bf16.mxu0 %v9995_v22 }
 0x2ac   :  { %v864_v5 = vmul.f32 0.03125, %v796_v3  ;;  %v5578_v51 = vpop.eup %5577  ;;  %v1120_v52 = vmul.f32 %v6397_v47, %v1052_v31 }
 0x2ad   :  { %v1053_v13 = vmul.f32 %v5578_v51, %v7098_v14 }
 0x2ae   :  { %v928_v30 = vadd.f32 1e-05, %v864_v5  ;;  %v799_v33 = vpop.xlane.xlu0 %798  ;;  %v1188_v27 = vadd.f32 %v6428_v41, %v1120_v52 }
 0x2af   :  { %v865_v61 = vmul.f32 0.03125, %v799_v33  ;;  %v1121_v56 = vmul.f32 %v6397_v47, %v1053_v13 }
 0x2b0   :  { %5583 = vrsqrt.f32 %v928_v30  ;;  %v1223_v58 = vpack.c.bf16 %v1188_v27, %v1187_v60 }
 0x2b1   :  { %v929_v17 = vadd.f32 1e-05, %v865_v61  ;;  %v1189_v14 = vadd.f32 %v6428_v41, %v1121_v56 }
 0x2b2   :  { %v5580_v18 = vpop.eup %5579  ;;  %5076 = vmatmul.mubr.msk.bf16.gmra.mrb[112].mxu0 %vm162_vm0, %v1223_v58 }
 0x2b3   :  { %5585 = vrsqrt.f32 %v929_v17  ;;  %v802_v48 = vpop.xlane.xlu1 %801  ;;  %v1054_v59 = vmul.f32 %v5580_v18, %v7109_v21  ;;  %1694 = vmatprep.mubr.bf16.mxu0 %v9995_v22 }
 0x2b4   :  { %v866_v40 = vmul.f32 0.03125, %v802_v48 }
 0x2b5   :  { %v5582_v53 = vpop.eup %5581  ;;  %v1122_v36 = vmul.f32 %v6397_v47, %v1054_v59 }
 0x2b6   :  { %v930_v49 = vadd.f32 1e-05, %v866_v40  ;;  %v1055_v42 = vmul.f32 %v5582_v53, %v7120_v32 }
 0x2b7   :  { %v1190_v62 = vadd.f32 %v6428_v41, %v1122_v36 }
 0x2b8   :  { %5587 = vrsqrt.f32 %v930_v49  ;;  %v1123_v7 = vmul.f32 %v6397_v47, %v1055_v42 }
 0x2b9   :  { %v1224_v15 = vpack.c.bf16 %v1190_v62, %v1189_v14 }
 0x2ba   :  { %v5584_v37 = vpop.eup %5583  ;;  %v1516_v11 = vpop.f32.mrb[44].mxu0 }
 0x2bb   :  { %5077 = vmatmul.mubr.msk.bf16.gmra.mrb[116].mxu0 %vm162_vm0, %v1224_v15  ;;  %v1056_v21 = vmul.f32 %v5584_v37, %v7134_v26  ;;  %v1517_v3 = vadd.f32 %v1516_v11, %v7142_v45  ;;  %v1518_v31 = vpop.f32.mrb[45].mxu0  ;;  %v1191_v26 = vadd.f32 %v6428_v41, %v1123_v7 }
 0x2bc   :  { %1704 = vmatprep.mubr.bf16.mxu0 %v9995_v22  ;;  %v1519_v5 = vadd.f32 %v1518_v31, %v7152_v39  ;;  %v1520_v51 = vpop.f32.mrb[46].mxu0 }
 0x2bd   :  { %v5586_v57 = vpop.eup %5585  ;;  %v1124_v32 = vmul.f32 %v6397_v47, %v1056_v21  ;;  %v1521_v52 = vadd.f32 %v1520_v51, %v7142_v45  ;;  %v1522_v30 = vpop.f32.mrb[47].mxu0  ;;  %v1769_v27 = vmax.f32 %v1517_v3, 0.0 }
 0x2be   :  { %v1523_v33 = vadd.f32 %v1522_v30, %v7152_v39  ;;  %3671 = vrot.lane.b32.xlu0 %v1519_v5, %s5749_s3  ;;  %v1057_v60 = vmul.f32 %v5586_v57, %v7148_v25  ;;  %v1770_v17 = vmax.f32 %v1519_v5, 0.0 }
 0x2bf   :  { %v1192_v61 = vadd.f32 %v6428_v41, %v1124_v32  ;;  %v1771_v13 = vmax.f32 %v1521_v52, 0.0 }
 0x2c0   :  { %v1772_v58 = vmax.f32 %v1523_v33, 0.0  ;;  %3673 = vrot.lane.b32.xlu1 %v1523_v33, %s5749_s3  ;;  %v1125_v36 = vmul.f32 %v6397_v47, %v1057_v60 }
 0x2c1   :  { %v1225_v18 = vpack.c.bf16 %v1192_v61, %v1191_v26  ;;  %v2315_v59 = vpack.c.bf16 %v1771_v13, %v1769_v27 }
 0x2c2   :  { %v5588_v48 = vpop.eup %5587  ;;  %v2316_v56 = vpack.c.bf16 %v1772_v58, %v1770_v17  ;;  %v1526_v40 = vpop.f32.mrb[48].mxu0  ;;  %v1193_v11 = vadd.f32 %v6428_v41, %v1125_v36 }
 0x2c3   :  { %5078 = vmatmul.mubr.msk.bf16.gmra.mrb[120].mxu0 %vm162_vm0, %v1225_v18  ;;  %v1058_v53 = vmul.f32 %v5588_v48, %v7166_v19  ;;  %v1527_v49 = vadd.f32 %v1526_v40, %v7142_v45  ;;  %v1528_v25 = vpop.f32.mrb[49].mxu0 }
 0x2c4   :  { %1714 = vmatprep.mubr.bf16.mxu0 %v9995_v22  ;;  %v1529_v14 = vadd.f32 %v1528_v25, %v7152_v39  ;;  %v1530_v62 = vpop.f32.mrb[50].mxu0  ;;  %5154 = vmatprep.mubr.msk.bf16.mxu1 %vm2537_vm2, %v2316_v56 }
 0x2c5   :  { %v1126_v42 = vmul.f32 %v6397_v47, %v1058_v53  ;;  %v1531_v15 = vadd.f32 %v1530_v62, %v7142_v45  ;;  %v1532_v37 = vpop.f32.mrb[51].mxu0  ;;  %2777 = vmatmul.mubr.bf16.gmra.mrb[108].mxu1 %v2315_v59  ;;  %v1773_v22 = vmax.f32 %v1527_v49, 0.0 }
 0x2c6   :  { %v1533_v19 = vadd.f32 %v1532_v37, %v7152_v39  ;;  %3675 = vrot.lane.b32.xlu0 %v1529_v14, %s5749_s3  ;;  %v1774_v3 = vmax.f32 %v1529_v14, 0.0 }
 0x2c7   :  { %v1194_v21 = vadd.f32 %v6428_v41, %v1126_v42  ;;  %v1775_v7 = vmax.f32 %v1531_v15, 0.0 }
 0x2c8   :  { %v1776_v31 = vmax.f32 %v1533_v19, 0.0  ;;  %3677 = vrot.lane.b32.xlu1 %v1533_v19, %s5749_s3 }
 0x2c9   :  { %v1226_v57 = vpack.c.bf16 %v1194_v21, %v1193_v11  ;;  %v2317_v47 = vpack.c.bf16 %v1775_v7, %v1773_v22 }
 0x2ca   :  { %v2318_v5 = vpack.c.bf16 %v1776_v31, %v1774_v3  ;;  %v1536_v51 = vpop.f32.mrb[52].mxu0 }
 0x2cb   :  { %5079 = vmatmul.mubr.msk.bf16.gmra.mrb[124].mxu0 %vm162_vm0, %v1226_v57  ;;  %v1537_v32 = vadd.f32 %v1536_v51, %v7142_v45  ;;  %v1538_v52 = vpop.f32.mrb[53].mxu0 }
 0x2cc   :  { %v1539_v30 = vadd.f32 %v1538_v52, %v7152_v39  ;;  %v1540_v33 = vpop.f32.mrb[54].mxu0  ;;  %5155 = vmatprep.mubr.msk.bf16.mxu1 %vm2537_vm2, %v2318_v5 }
 0x2cd   :  { %v1541_v41 = vadd.f32 %v1540_v33, %v7142_v45  ;;  %v1542_v26 = vpop.f32.mrb[55].mxu0  ;;  %2787 = vmatmul.mubr.bf16.gmra.mrb[112].mxu1 %v2317_v47  ;;  %v1777_v60 = vmax.f32 %v1537_v32, 0.0 }
 0x2ce   :  { %v1543_v61 = vadd.f32 %v1542_v26, %v7152_v39  ;;  %3679 = vrot.lane.b32.xlu0 %v1539_v30, %s5749_s3  ;;  %v1778_v13 = vmax.f32 %v1539_v30, 0.0 }
 0x2cf   :  { %v1779_v27 = vmax.f32 %v1541_v41, 0.0 }
 0x2d0   :  { %v1780_v17 = vmax.f32 %v1543_v61, 0.0  ;;  %3681 = vrot.lane.b32.xlu1 %v1543_v61, %s5749_s3 }
 0x2d1   :  { %v2319_v58 = vpack.c.bf16 %v1779_v27, %v1777_v60 }
 0x2d2   :  { %v2320_v18 = vpack.c.bf16 %v1780_v17, %v1778_v13  ;;  %v1546_v48 = vpop.f32.mrb[56].mxu0 }
 0x2d3   :  { %v1547_v59 = vadd.f32 %v1546_v48, %v7142_v45  ;;  %v1548_v56 = vpop.f32.mrb[57].mxu0 }
 0x2d4   :  { %v1549_v40 = vadd.f32 %v1548_v56, %v7152_v39  ;;  %v1550_v53 = vpop.f32.mrb[58].mxu0  ;;  %5156 = vmatprep.mubr.msk.bf16.mxu1 %vm2537_vm2, %v2320_v18 }
 0x2d5   :  { %v1551_v36 = vadd.f32 %v1550_v53, %v7142_v45  ;;  %v1552_v49 = vpop.f32.mrb[59].mxu0  ;;  %2797 = vmatmul.mubr.bf16.gmra.mrb[116].mxu1 %v2319_v58  ;;  %v1781_v14 = vmax.f32 %v1547_v59, 0.0 }
 0x2d6   :  { %v1553_v25 = vadd.f32 %v1552_v49, %v7152_v39  ;;  %3683 = vrot.lane.b32.xlu0 %v1549_v40, %s5749_s3  ;;  %v1782_v42 = vmax.f32 %v1549_v40, 0.0 }
 0x2d7   :  { %v1783_v62 = vmax.f32 %v1551_v36, 0.0 }
 0x2d8   :  { %v1784_v15 = vmax.f32 %v1553_v25, 0.0  ;;  %3685 = vrot.lane.b32.xlu1 %v1553_v25, %s5749_s3 }
 0x2d9   :  { %v2321_v37 = vpack.c.bf16 %v1783_v62, %v1781_v14 }
 0x2da   :  { %v2322_v19 = vpack.c.bf16 %v1784_v15, %v1782_v42  ;;  %v1556_v11 = vpop.f32.mrb[60].mxu0 }
 0x2db   :  { %v1557_v21 = vadd.f32 %v1556_v11, %v7142_v45  ;;  %v1558_v22 = vpop.f32.mrb[61].mxu0 }
 0x2dc   :  { %v1559_v7 = vadd.f32 %v1558_v22, %v7152_v39  ;;  %v1560_v3 = vpop.f32.mrb[62].mxu0  ;;  %5157 = vmatprep.mubr.msk.bf16.mxu1 %vm2537_vm2, %v2322_v19 }
 0x2dd   :  { %v1561_v31 = vadd.f32 %v1560_v3, %v7142_v45  ;;  %v1562_v57 = vpop.f32.mrb[63].mxu0  ;;  %2807 = vmatmul.mubr.bf16.gmra.mrb[120].mxu1 %v2321_v37  ;;  %v1785_v5 = vmax.f32 %v1557_v21, 0.0 }
 0x2de   :  { %v1563_v47 = vadd.f32 %v1562_v57, %v7152_v39  ;;  %3687 = vrot.lane.b32.xlu0 %v1559_v7, %s5749_s3  ;;  %v1786_v32 = vmax.f32 %v1559_v7, 0.0 }
 0x2df   :  { %v1787_v51 = vmax.f32 %v1561_v31, 0.0 }
 0x2e0   :  { %v1788_v52 = vmax.f32 %v1563_v47, 0.0  ;;  %3689 = vrot.lane.b32.xlu1 %v1563_v47, %s5749_s3 }
 0x2e1   :  { %v2323_v30 = vpack.c.bf16 %v1787_v51, %v1785_v5 }
 0x2e2   :  { %v2324_v33 = vpack.c.bf16 %v1788_v52, %v1786_v32  ;;  %v1566_v41 = vpop.f32.mrb[64].mxu0 }
 0x2e3   :  { %v1567_v26 = vadd.f32 %v1566_v41, %v7142_v45  ;;  %v1568_v61 = vpop.f32.mrb[65].mxu0 }
 0x2e4   :  { %v1569_v60 = vadd.f32 %v1568_v61, %v7152_v39  ;;  %v1570_v27 = vpop.f32.mrb[66].mxu0  ;;  %5158 = vmatprep.mubr.msk.bf16.mxu1 %vm2537_vm2, %v2324_v33  ;;  %v7538_v33 = vld [vmem:[%s9818_s6] sm:$0x3]  ;;  %s5751_s6 = smov 32  }
 0x2e5   :  { %v1571_v13 = vadd.f32 %v1570_v27, %v7142_v45  ;;  %v1572_v17 = vpop.f32.mrb[67].mxu0  ;;  %2817 = vmatmul.mubr.bf16.gmra.mrb[124].mxu1 %v2323_v30  ;;  %v1789_v18 = vmax.f32 %v1567_v26, 0.0 }
 0x2e6   :  { %v1573_v58 = vadd.f32 %v1572_v17, %v7152_v39  ;;  %3691 = vrot.lane.b32.xlu0 %v1569_v60, %s5749_s3  ;;  %v1790_v59 = vmax.f32 %v1569_v60, 0.0 }
 0x2e7   :  { %v1791_v48 = vmax.f32 %v1571_v13, 0.0  ;;  %v7543_v13 = vrot.slane %v7538_v33, %v10010_v38 }
 0x2e8   :  { %v1792_v56 = vmax.f32 %v1573_v58, 0.0  ;;  %3693 = vrot.lane.b32.xlu1 %v1573_v58, %s5749_s3 }
 0x2e9   :  { %v2325_v40 = vpack.c.bf16 %v1791_v48, %v1789_v18 }
 0x2ea   :  { %v2326_v53 = vpack.c.bf16 %v1792_v56, %v1790_v59  ;;  %v1576_v36 = vpop.f32.mrb[68].mxu0 }
 0x2eb   :  { %v1577_v49 = vadd.f32 %v1576_v36, %v7142_v45  ;;  %v1578_v25 = vpop.f32.mrb[69].mxu0 }
 0x2ec   :  { %v1579_v14 = vadd.f32 %v1578_v25, %v7152_v39  ;;  %v1580_v62 = vpop.f32.mrb[70].mxu0  ;;  %5159 = vmatprep.mubr.msk.bf16.mxu1 %vm2537_vm2, %v2326_v53 }
 0x2ed   :  { %v1581_v42 = vadd.f32 %v1580_v62, %v7142_v45  ;;  %v1582_v15 = vpop.f32.mrb[71].mxu0  ;;  %2827 = vmatmul.mubr.bf16.gmra.mrb[128].mxu1 %v2325_v40  ;;  %v1793_v19 = vmax.f32 %v1577_v49, 0.0 }
 0x2ee   :  { %v1583_v37 = vadd.f32 %v1582_v15, %v7152_v39  ;;  %3695 = vrot.lane.b32.xlu0 %v1579_v14, %s5749_s3  ;;  %v1794_v21 = vmax.f32 %v1579_v14, 0.0 }
 0x2ef   :  { %v1795_v11 = vmax.f32 %v1581_v42, 0.0 }
 0x2f0   :  { %v1796_v22 = vmax.f32 %v1583_v37, 0.0  ;;  %3697 = vrot.lane.b32.xlu1 %v1583_v37, %s5749_s3 }
 0x2f1   :  { %v2327_v7 = vpack.c.bf16 %v1795_v11, %v1793_v19 }
 0x2f2   :  { %v2328_v3 = vpack.c.bf16 %v1796_v22, %v1794_v21  ;;  %v1586_v31 = vpop.f32.mrb[72].mxu0 }
 0x2f3   :  { %v1587_v57 = vadd.f32 %v1586_v31, %v7142_v45  ;;  %v1588_v47 = vpop.f32.mrb[73].mxu0 }
 0x2f4   :  { %v1589_v5 = vadd.f32 %v1588_v47, %v7152_v39  ;;  %v1590_v51 = vpop.f32.mrb[74].mxu0  ;;  %5160 = vmatprep.mubr.msk.bf16.mxu1 %vm2537_vm2, %v2328_v3 }
 0x2f5   :  { %v1591_v32 = vadd.f32 %v1590_v51, %v7142_v45  ;;  %v1592_v52 = vpop.f32.mrb[75].mxu0  ;;  %2837 = vmatmul.mubr.bf16.gmra.mrb[132].mxu1 %v2327_v7  ;;  %v1797_v41 = vmax.f32 %v1587_v57, 0.0 }
 0x2f6   :  { %v1593_v30 = vadd.f32 %v1592_v52, %v7152_v39  ;;  %3699 = vrot.lane.b32.xlu0 %v1589_v5, %s5749_s3  ;;  %v1798_v61 = vmax.f32 %v1589_v5, 0.0 }
 0x2f7   :  { %v1799_v26 = vmax.f32 %v1591_v32, 0.0 }
 0x2f8   :  { %v1800_v60 = vmax.f32 %v1593_v30, 0.0  ;;  %3701 = vrot.lane.b32.xlu1 %v1593_v30, %s5749_s3 }
 0x2f9   :  { %v2329_v27 = vpack.c.bf16 %v1799_v26, %v1797_v41  ;;  %v5750_v41 = vmov 32  }
 0x2fa   :  { %v2330_v17 = vpack.c.bf16 %v1800_v60, %v1798_v61  ;;  %v1596_v58 = vpop.f32.mrb[76].mxu0  ;;  %5406 = vset.pattern.permute.xlu1 %v5750_v41  ;;  %5407 = vset.pattern.permute.xlu0 %v5750_v41 }
 0x2fb   :  { %v1597_v18 = vadd.f32 %v1596_v58, %v7142_v45  ;;  %v1598_v48 = vpop.f32.mrb[77].mxu0 }
 0x2fc   :  { %v1599_v59 = vadd.f32 %v1598_v48, %v7152_v39  ;;  %v1600_v56 = vpop.f32.mrb[78].mxu0  ;;  %5161 = vmatprep.mubr.msk.bf16.mxu1 %vm2537_vm2, %v2330_v17  ;;  %v2668_v40 = vpop.f32.mrb[64].mxu1 }
 0x2fd   :  { %v1601_v53 = vadd.f32 %v1600_v56, %v7142_v45  ;;  %v1602_v36 = vpop.f32.mrb[79].mxu0  ;;  %v2669_v49 = vadd.f32 %v2668_v40, %v7543_v13  ;;  %2847 = vmatmul.mubr.bf16.gmra.mrb[136].mxu1 %v2329_v27  ;;  %v7550_v25 = vpop.f32.mrb[65].mxu1  ;;  %v1801_v62 = vmax.f32 %v1597_v18, 0.0 }
 0x2fe   :  { %v1603_v38 = vadd.f32 %v1602_v36, %v7152_v39  ;;  %3703 = vrot.lane.b32.xlu1 %v1599_v59, %s5749_s3  ;;  %v2672_v14 = vpop.f32.mrb[66].mxu1  ;;  %v1802_v11 = vmax.f32 %v1599_v59, 0.0 }
 0x2ff   :  { %v1803_v42 = vmax.f32 %v1601_v53, 0.0  ;;  %v2987_v15 = vand.u32 2147483647, %v2669_v49  ;;  %v2673_v37 = vadd.f32 %v2672_v14, %v7543_v13  ;;  %v7555_v19 = vpop.f32.mrb[67].mxu1 }
 0x300   :  { %v1804_v21 = vmax.f32 %v1603_v38, 0.0  ;;  %3705 = vrot.lane.b32.xlu0 %v1603_v38, %s5749_s3 }
 0x301   :  { %v2331_v22 = vpack.c.bf16 %v1803_v42, %v1801_v62  ;;  %v7559_v7 = vmul.f32 %v2987_v15, %v7224_v1  ;;  %v2988_v3 = vand.u32 2147483647, %v2673_v37 }
 0x302   :  { %v2332_v31 = vpack.c.bf16 %v1804_v21, %v1802_v11  ;;  %v1606_v57 = vpop.f32.mrb[80].mxu0 }
 0x303   :  { %v7562_v47 = vmul.f32 %v2988_v3, %v7231_v0  ;;  %v1607_v5 = vadd.f32 %v1606_v57, %v7142_v45  ;;  %v1608_v51 = vpop.f32.mrb[81].mxu0 }
 0x304   :  { %v1609_v32 = vadd.f32 %v1608_v51, %v7152_v39  ;;  %v1610_v52 = vpop.f32.mrb[82].mxu0  ;;  %5162 = vmatprep.mubr.msk.bf16.mxu1 %vm2537_vm2, %v2332_v31  ;;  %v2678_v30 = vpop.f32.mrb[68].mxu1 }
 0x305   :  { %v1611_v1 = vadd.f32 %v1610_v52, %v7142_v45  ;;  %v1612_v26 = vpop.f32.mrb[83].mxu0  ;;  %v2679_v61 = vadd.f32 %v2678_v30, %v7543_v13  ;;  %2857 = vmatmul.mubr.bf16.gmra.mrb[140].mxu1 %v2331_v22  ;;  %v7569_v60 = vpop.f32.mrb[69].mxu1  ;;  %v1805_v17 = vmax.f32 %v1607_v5, 0.0 }
 0x306   :  { %v1613_v0 = vadd.f32 %v1612_v26, %v7152_v39  ;;  %3707 = vrot.lane.b32.xlu1 %v1609_v32, %s5749_s3  ;;  %v2682_v27 = vpop.f32.mrb[70].mxu1  ;;  %v1806_v56 = vmax.f32 %v1609_v32, 0.0 }
 0x307   :  { %v1807_v58 = vmax.f32 %v1611_v1, 0.0  ;;  %v2989_v18 = vand.u32 2147483647, %v2679_v61  ;;  %v2683_v48 = vadd.f32 %v2682_v27, %v7543_v13  ;;  %v7574_v59 = vpop.f32.mrb[71].mxu1 }
 0x308   :  { %v1808_v40 = vmax.f32 %v1613_v0, 0.0  ;;  %3709 = vrot.lane.b32.xlu0 %v1613_v0, %s5749_s3 }
 0x309   :  { %v2333_v53 = vpack.c.bf16 %v1807_v58, %v1805_v17  ;;  %v7578_v36 = vmul.f32 %v7220_v4, %v2989_v18  ;;  %v2990_v49 = vand.u32 2147483647, %v2683_v48 }
 0x30a   :  { %v2334_v38 = vpack.c.bf16 %v1808_v40, %v1806_v56 }
 0x30b   :  { %v1616_v14 = vpop.f32.mrb[84].mxu0  ;;  %v7581_v62 = vmul.f32 %v7227_v23, %v2990_v49 }
 0x30c   :  { %v1617_v42 = vadd.f32 %v1616_v14, %v7142_v45  ;;  %v1618_v15 = vpop.f32.mrb[85].mxu0  ;;  %5163 = vmatprep.mubr.msk.bf16.mxu1 %vm2537_vm2, %v2334_v38  ;;  %v2688_v21 = vpop.f32.mrb[72].mxu1 }
 0x30d   :  { %v1619_v37 = vadd.f32 %v1618_v15, %v7152_v39  ;;  %v1620_v11 = vpop.f32.mrb[86].mxu0  ;;  %v2689_v4 = vadd.f32 %v2688_v21, %v7543_v13  ;;  %2867 = vmatmul.mubr.bf16.gmra.mrb[144].mxu1 %v2333_v53  ;;  %v7588_v31 = vpop.f32.mrb[73].mxu1 }
 0x30e   :  { %v1621_v22 = vadd.f32 %v1620_v11, %v7142_v45  ;;  %v1622_v3 = vpop.f32.mrb[87].mxu0  ;;  %v2692_v57 = vpop.f32.mrb[74].mxu1  ;;  %v1809_v5 = vmax.f32 %v1617_v42, 0.0 }
 0x30f   :  { %v1623_v23 = vadd.f32 %v1622_v3, %v7152_v39  ;;  %3711 = vrot.lane.b32.xlu1 %v1619_v37, %s5749_s3  ;;  %v2991_v32 = vand.u32 2147483647, %v2689_v4  ;;  %v2693_v52 = vadd.f32 %v2692_v57, %v7543_v13  ;;  %v7593_v30 = vpop.f32.mrb[75].mxu1  ;;  %v1810_v41 = vmax.f32 %v1619_v37, 0.0 }
 0x310   :  { %v1811_v51 = vmax.f32 %v1621_v22, 0.0 }
 0x311   :  { %v1812_v1 = vmax.f32 %v1623_v23, 0.0  ;;  %3713 = vrot.lane.b32.xlu0 %v1623_v23, %s5749_s3  ;;  %v7597_v61 = vmul.f32 %v2991_v32, %v7239_v16  ;;  %v2992_v0 = vand.u32 2147483647, %v2693_v52 }
 0x312   :  { %v2335_v26 = vpack.c.bf16 %v1811_v51, %v1809_v5 }
 0x313   :  { %v2336_v27 = vpack.c.bf16 %v1812_v1, %v1810_v41  ;;  %v7600_v17 = vmul.f32 %v2992_v0, %v7243_v6 }
 0x314   :  { %v2698_v58 = vpop.f32.mrb[76].mxu1 }
 0x315   :  { %5164 = vmatprep.mubr.msk.bf16.mxu1 %vm2537_vm2, %v2336_v27  ;;  %v2699_v18 = vadd.f32 %v2698_v58, %v7543_v13  ;;  %v7604_v48 = vpop.f32.mrb[77].mxu1 }
 0x316   :  { %2877 = vmatmul.mubr.bf16.gmra.mrb[148].mxu1 %v2335_v26  ;;  %v2702_v56 = vpop.f32.mrb[78].mxu1 }
 0x317   :  { %v2993_v40 = vand.u32 2147483647, %v2699_v18  ;;  %v2703_v53 = vadd.f32 %v2702_v56, %v7543_v13  ;;  %v7607_v49 = vpop.f32.mrb[79].mxu1 }
 0x319   :  { %v7610_v16 = vmul.f32 %v7234_v34, %v2993_v40  ;;  %v2994_v38 = vand.u32 2147483647, %v2703_v53 }
 0x31b   :  { %v7613_v6 = vmul.f32 %v7241_v55, %v2994_v38 }
 0x31c   :  { %v2708_v14 = vpop.f32.mrb[80].mxu1 }
 0x31d   :  { %v2709_v42 = vadd.f32 %v2708_v14, %v7543_v13  ;;  %v7616_v15 = vpop.f32.mrb[81].mxu1 }
 0x31e   :  { %v2712_v37 = vpop.f32.mrb[82].mxu1 }
 0x31f   :  { %v2995_v11 = vand.u32 2147483647, %v2709_v42  ;;  %v2713_v21 = vadd.f32 %v2712_v37, %v7543_v13  ;;  %v7619_v22 = vpop.f32.mrb[83].mxu1 }
 0x321   :  { %v7622_v3 = vmul.f32 %v2995_v11, %v7249_v50  ;;  %v2996_v34 = vand.u32 2147483647, %v2713_v21 }
 0x323   :  { %v7625_v4 = vmul.f32 %v2996_v34, %v7256_v2 }
 0x324   :  { %v2718_v55 = vpop.f32.mrb[84].mxu1 }
 0x325   :  { %v2719_v23 = vadd.f32 %v2718_v55, %v7543_v13  ;;  %v7628_v57 = vpop.f32.mrb[85].mxu1 }
 0x326   :  { %v2722_v5 = vpop.f32.mrb[86].mxu1 }
 0x327   :  { %v2997_v51 = vand.u32 2147483647, %v2719_v23  ;;  %v2723_v32 = vadd.f32 %v2722_v5, %v7543_v13  ;;  %v7631_v52 = vpop.f32.mrb[87].mxu1 }
 0x329   :  { %v7634_v41 = vmul.f32 %v7245_v28, %v2997_v51  ;;  %v2998_v50 = vand.u32 2147483647, %v2723_v32 }
 0x32b   :  { %v7637_v1 = vmul.f32 %v7252_v54, %v2998_v50 }
 0x32c   :  { %v2728_v2 = vpop.f32.mrb[88].mxu1 }
 0x32d   :  { %v2729_v26 = vadd.f32 %v2728_v2, %v7543_v13  ;;  %v7640_v0 = vpop.f32.mrb[89].mxu1 }
 0x32e   :  { %v2732_v27 = vpop.f32.mrb[90].mxu1 }
 0x32f   :  { %v2999_v58 = vand.u32 2147483647, %v2729_v26  ;;  %v2733_v18 = vadd.f32 %v2732_v27, %v7543_v13  ;;  %v7643_v56 = vpop.f32.mrb[91].mxu1 }
 0x331   :  { %v7646_v40 = vmul.f32 %v2999_v58, %v7263_v9  ;;  %v3000_v28 = vand.u32 2147483647, %v2733_v18 }
 0x333   :  { %10058 = vst [vmem:[#allocation53_spill] sm:$0xff] %v7646_v40  ;;  %v7649_v53 = vmul.f32 %v3000_v28, %v7268_v24 }
 0x334   :  { %v2738_v54 = vpop.f32.mrb[92].mxu1 }
 0x335   :  { %10059 = vst [vmem:[#allocation54_spill] sm:$0xff] %v7649_v53  ;;  %v2739_v38 = vadd.f32 %v2738_v54, %v7543_v13  ;;  %v7652_v14 = vpop.f32.mrb[93].mxu1 }
 0x336   :  { %v2742_v42 = vpop.f32.mrb[94].mxu1 }
 0x337   :  { %v3001_v37 = vand.u32 2147483647, %v2739_v38  ;;  %v2743_v11 = vadd.f32 %v2742_v42, %v7543_v13  ;;  %v7655_v21 = vpop.f32.mrb[95].mxu1 }
 0x339   :  { %v7658_v34 = vmul.f32 %v7259_v44, %v3001_v37  ;;  %v3002_v9 = vand.u32 2147483647, %v2743_v11  ;;  %v10064_v37 = vld [vmem:[#allocation10_spill] sm:$0xff] }
 0x33b   :  { %10060 = vst [vmem:[#allocation55_spill] sm:$0xff] %v7658_v34  ;;  %v7661_v55 = vmul.f32 %v7265_v43, %v3002_v9  ;;  %v10066_v9 = vld [vmem:[#allocation11_spill] sm:$0xff] }
 0x33c   :  { %v2748_v24 = vpop.f32.mrb[96].mxu1 }
 0x33d   :  { %10061 = vst [vmem:[#allocation56_spill] sm:$0xff] %v7661_v55  ;;  %v2749_v23 = vadd.f32 %v2748_v24, %v7543_v13  ;;  %v7664_v5 = vpop.f32.mrb[97].mxu1 }
 0x33e   :  { %v2752_v51 = vpop.f32.mrb[98].mxu1 }
 0x33f   :  { %v3003_v32 = vand.u32 2147483647, %v2749_v23  ;;  %v2753_v50 = vadd.f32 %v2752_v51, %v7543_v13  ;;  %v7667_v2 = vpop.f32.mrb[99].mxu1 }
 0x341   :  { %v7670_v26 = vmul.f32 %v3003_v32, %v7272_v20  ;;  %v3004_v44 = vand.u32 2147483647, %v2753_v50 }
 0x343   :  { %10062 = vst [vmem:[#allocation57_spill] sm:$0xff] %v7670_v26  ;;  %v7673_v27 = vmul.f32 %v3004_v44, %v7279_v63 }
 0x344   :  { %v2758_v43 = vpop.f32.mrb[100].mxu1 }
 0x345   :  { %10063 = vst [vmem:[#allocation58_spill] sm:$0xff] %v7673_v27  ;;  %v2759_v58 = vadd.f32 %v2758_v43, %v7543_v13  ;;  %v7676_v18 = vpop.f32.mrb[101].mxu1 }
 0x346   :  { %v2762_v28 = vpop.f32.mrb[102].mxu1 }
 0x347   :  { %v3005_v54 = vand.u32 2147483647, %v2759_v58  ;;  %v2763_v38 = vadd.f32 %v2762_v28, %v7543_v13  ;;  %v7679_v42 = vpop.f32.mrb[103].mxu1  ;;  %v10067_v58 = vld [vmem:[#allocation15_spill] sm:$0xff] }
 0x349   :  { %v7682_v11 = vmul.f32 %v10064_v37, %v3005_v54  ;;  %v3006_v20 = vand.u32 2147483647, %v2763_v38  ;;  %v10069_v37 = vld [vmem:[#allocation7_spill] sm:$0xff] }
 0x34b   :  { %10065 = vst [vmem:[#allocation10_spill] sm:$0xff] %v7682_v11  ;;  %v7685_v24 = vmul.f32 %v10066_v9, %v3006_v20 }
 0x34c   :  { %v2768_v63 = vpop.f32.mrb[104].mxu1 }
 0x34d   :  { %v2769_v23 = vadd.f32 %v2768_v63, %v7543_v13  ;;  %v7688_v51 = vpop.f32.mrb[105].mxu1 }
 0x34e   :  { %v2772_v32 = vpop.f32.mrb[106].mxu1 }
 0x34f   :  { %v3007_v50 = vand.u32 2147483647, %v2769_v23  ;;  %v2773_v44 = vadd.f32 %v2772_v32, %v7543_v13  ;;  %v7691_v43 = vpop.f32.mrb[107].mxu1 }
 0x351   :  { %v7694_v28 = vmul.f32 %v3007_v50, %v10067_v58  ;;  %v3008_v54 = vand.u32 2147483647, %v2773_v44 }
 0x353   :  { %10068 = vst [vmem:[#allocation11_spill] sm:$0xff] %v7694_v28  ;;  %v7697_v38 = vmul.f32 %v3008_v54, %v10069_v37 }
 0x355   :  { %10070 = vst [vmem:[#allocation15_spill] sm:$0xff] %v7697_v38  ;;  %v1626_v20 = vpop.f32.mrb[88].mxu0 }
 0x356   :  { %v1627_v9 = vadd.f32 %v1626_v20, %v7142_v45  ;;  %v1628_v29 = vpop.f32.mrb[89].mxu0 }
 0x357   :  { %v7701_v63 = vadd.f32 %v1628_v29, %v7152_v39  ;;  %v1630_v8 = vpop.f32.mrb[90].mxu0 }
 0x358   :  { %v1631_v23 = vadd.f32 %v1630_v8, %v7142_v45  ;;  %v1632_v32 = vpop.f32.mrb[91].mxu0  ;;  %v1813_v50 = vmax.f32 %v1627_v9, 0.0 }
 0x359   :  { %10071 = vst [vmem:[#allocation7_spill] sm:$0xff] %v7701_v63  ;;  %v7705_v12 = vadd.f32 %v1632_v32, %v7152_v39  ;;  %v1814_v44 = vmax.f32 %v7701_v63, 0.0 }
 0x35a   :  { %v1815_v58 = vmax.f32 %v1631_v23, 0.0 }
 0x35b   :  { %10072 = vst [vmem:[#allocation59_spill] sm:$0xff] %v7705_v12  ;;  %v1816_v54 = vmax.f32 %v7705_v12, 0.0 }
 0x35c   :  { %v2337_v37 = vpack.c.bf16 %v1815_v58, %v1813_v50 }
 0x35d   :  { %v2338_v35 = vpack.c.bf16 %v1816_v54, %v1814_v44  ;;  %v1636_v20 = vpop.f32.mrb[92].mxu0 }
 0x35e   :  { %v1637_v46 = vadd.f32 %v1636_v20, %v7142_v45  ;;  %v1638_v29 = vpop.f32.mrb[93].mxu0 }
 0x35f   :  { %v7711_v10 = vadd.f32 %v1638_v29, %v7152_v39  ;;  %v1640_v8 = vpop.f32.mrb[94].mxu0  ;;  %5165 = vmatprep.mubr.msk.bf16.mxu1 %vm2537_vm2, %v2338_v35 }
 0x360   :  { %v1641_v32 = vadd.f32 %v1640_v8, %v7142_v45  ;;  %v1642_v9 = vpop.f32.mrb[95].mxu0  ;;  %2887 = vmatmul.mubr.bf16.gmra.mrb[152].mxu1 %v2337_v37  ;;  %v1817_v63 = vmax.f32 %v1637_v46, 0.0 }
 0x361   :  { %10073 = vst [vmem:[#allocation60_spill] sm:$0xff] %v7711_v10  ;;  %v7716_v23 = vadd.f32 %v1642_v9, %v7152_v39  ;;  %v1818_v58 = vmax.f32 %v7711_v10, 0.0 }
 0x362   :  { %v1819_v50 = vmax.f32 %v1641_v32, 0.0 }
 0x363   :  { %10074 = vst [vmem:[#allocation61_spill] sm:$0xff] %v7716_v23  ;;  %v1820_v44 = vmax.f32 %v7716_v23, 0.0 }
 0x364   :  { %v2339_v54 = vpack.c.bf16 %v1819_v50, %v1817_v63 }
 0x365   :  { %v2340_v20 = vpack.c.bf16 %v1820_v44, %v1818_v58  ;;  %v1646_v29 = vpop.f32.mrb[96].mxu0 }
 0x366   :  { %v1647_v12 = vadd.f32 %v1646_v29, %v7142_v45  ;;  %v1648_v38 = vpop.f32.mrb[97].mxu0 }
 0x367   :  { %v1649_v35 = vadd.f32 %v1648_v38, %v7152_v39  ;;  %v1650_v8 = vpop.f32.mrb[98].mxu0  ;;  %5166 = vmatprep.mubr.msk.bf16.mxu1 %vm2537_vm2, %v2340_v20 }
 0x368   :  { %v1651_v37 = vadd.f32 %v1650_v8, %v7142_v45  ;;  %v1652_v9 = vpop.f32.mrb[99].mxu0  ;;  %2897 = vmatmul.mubr.bf16.gmra.mrb[156].mxu1 %v2339_v54  ;;  %v1821_v32 = vmax.f32 %v1647_v12, 0.0 }
 0x369   :  { %v1653_v46 = vadd.f32 %v1652_v9, %v7152_v39  ;;  %3723 = vrot.lane.b32.xlu0 %v1649_v35, %s5749_s3  ;;  %v1822_v50 = vmax.f32 %v1649_v35, 0.0 }
 0x36a   :  { %v1823_v63 = vmax.f32 %v1651_v37, 0.0 }
 0x36b   :  { %v1824_v58 = vmax.f32 %v1653_v46, 0.0  ;;  %3725 = vrot.lane.b32.xlu1 %v1653_v46, %s5749_s3 }
 0x36c   :  { %v2341_v44 = vpack.c.bf16 %v1823_v63, %v1821_v32 }
 0x36d   :  { %v2342_v29 = vpack.c.bf16 %v1824_v58, %v1822_v50  ;;  %v1656_v38 = vpop.f32.mrb[100].mxu0 }
 0x36e   :  { %v1657_v23 = vadd.f32 %v1656_v38, %v7142_v45  ;;  %v1658_v20 = vpop.f32.mrb[101].mxu0 }
 0x36f   :  { %v1659_v8 = vadd.f32 %v1658_v20, %v7152_v39  ;;  %v1660_v10 = vpop.f32.mrb[102].mxu0  ;;  %5167 = vmatprep.mubr.msk.bf16.mxu1 %vm2537_vm2, %v2342_v29 }
 0x370   :  { %v1661_v54 = vadd.f32 %v1660_v10, %v7142_v45  ;;  %v1662_v9 = vpop.f32.mrb[103].mxu0  ;;  %2907 = vmatmul.mubr.bf16.gmra.mrb[160].mxu1 %v2341_v44  ;;  %v1825_v35 = vmax.f32 %v1657_v23, 0.0 }
 0x371   :  { %v1663_v12 = vadd.f32 %v1662_v9, %v7152_v39  ;;  %3727 = vrot.lane.b32.xlu0 %v1659_v8, %s5749_s3  ;;  %v1826_v46 = vmax.f32 %v1659_v8, 0.0 }
 0x372   :  { %v1827_v37 = vmax.f32 %v1661_v54, 0.0 }
 0x373   :  { %v1828_v32 = vmax.f32 %v1663_v12, 0.0  ;;  %3729 = vrot.lane.b32.xlu1 %v1663_v12, %s5749_s3  ;;  %v10075_v12 = vld [vmem:[#allocation21_spill] sm:$0xff] }
 0x374   :  { %v2343_v63 = vpack.c.bf16 %v1827_v37, %v1825_v35  ;;  %v7742_v35 = vrot.slane %v7538_v33, %v10075_v12 }
 0x375   :  { %v2344_v50 = vpack.c.bf16 %v1828_v32, %v1826_v46  ;;  %v1666_v58 = vpop.f32.mrb[104].mxu0 }
 0x376   :  { %v1667_v38 = vadd.f32 %v1666_v58, %v7142_v45  ;;  %v1668_v29 = vpop.f32.mrb[105].mxu0 }
 0x377   :  { %v1669_v10 = vadd.f32 %v1668_v29, %v7152_v39  ;;  %v1670_v20 = vpop.f32.mrb[106].mxu0  ;;  %5168 = vmatprep.mubr.msk.bf16.mxu1 %vm2537_vm2, %v2344_v50 }
 0x378   :  { %v1671_v44 = vadd.f32 %v1670_v20, %v7142_v45  ;;  %v1672_v9 = vpop.f32.mrb[107].mxu0  ;;  %2917 = vmatmul.mubr.bf16.gmra.mrb[164].mxu1 %v2343_v63  ;;  %v1829_v8 = vmax.f32 %v1667_v38, 0.0  ;;  %v7748_v20 = vadd.f32 %v7550_v25, %v7742_v35 }
 0x379   :  { %v1673_v23 = vadd.f32 %v1672_v9, %v7152_v39  ;;  %3731 = vrot.lane.b32.xlu0 %v1669_v10, %s5749_s3  ;;  %v1830_v37 = vmax.f32 %v1669_v10, 0.0 }
 0x37a   :  { %v1831_v54 = vmax.f32 %v1671_v44, 0.0  ;;  %10076 = vst [vmem:[#allocation21_spill] sm:$0xff] %v7748_v20  ;;  %v4331_v25 = vmul.f32 0.03125, %v7748_v20 }
 0x37b   :  { %v1832_v46 = vmax.f32 %v1673_v23, 0.0  ;;  %3733 = vrot.lane.b32.xlu1 %v1673_v23, %s5749_s3 }
 0x37c   :  { %v2345_v32 = vpack.c.bf16 %v1831_v54, %v1829_v8  ;;  %v7755_v54 = vpop.permute.xlu0 %3629 }
 0x37d   :  { %v2346_v50 = vpack.c.bf16 %v1832_v46, %v1830_v37  ;;  %v1676_v58 = vpop.f32.mrb[108].mxu0  ;;  %10077 = vst [vmem:[#allocation62_spill] sm:$0xff] %v7755_v54 }
 0x37e   :  { %v1677_v29 = vadd.f32 %v1676_v58, %v7142_v45  ;;  %v1678_v63 = vpop.f32.mrb[109].mxu0 }
 0x37f   :  { %v1679_v38 = vadd.f32 %v1678_v63, %v7152_v39  ;;  %v1680_v44 = vpop.f32.mrb[110].mxu0  ;;  %5169 = vmatprep.mubr.msk.bf16.mxu1 %vm2537_vm2, %v2346_v50  ;;  %v7761_v50 = vadd.f32 %v7555_v19, %v7742_v35 }
 0x380   :  { %v1681_v33 = vadd.f32 %v1680_v44, %v7142_v45  ;;  %v1682_v10 = vpop.f32.mrb[111].mxu0  ;;  %2927 = vmatmul.mubr.bf16.gmra.mrb[168].mxu1 %v2345_v32  ;;  %v1833_v23 = vmax.f32 %v1677_v29, 0.0  ;;  %v7769_v19 = vpop.permute.xlu0 %3633 }
 0x381   :  { %v1683_v9 = vadd.f32 %v1682_v10, %v7152_v39  ;;  %3735 = vrot.lane.b32.xlu1 %v1679_v38, %s5749_s3  ;;  %v1834_v12 = vmax.f32 %v1679_v38, 0.0  ;;  %10078 = vst [vmem:[#allocation63_spill] sm:$0xff] %v7761_v50  ;;  %10079 = vst [vmem:[#allocation64_spill] sm:$0xff] %v7769_v19 }
 0x382   :  { %v1835_v8 = vmax.f32 %v1681_v33, 0.0 }
 0x383   :  { %v1836_v37 = vmax.f32 %v1683_v9, 0.0  ;;  %3737 = vrot.lane.b32.xlu0 %v1683_v9, %s5749_s3  ;;  %v4332_v9 = vmul.f32 0.03125, %v7761_v50 }
 0x384   :  { %v2347_v46 = vpack.c.bf16 %v1835_v8, %v1833_v23 }
 0x385   :  { %v2348_v32 = vpack.c.bf16 %v1836_v37, %v1834_v12  ;;  %4397 = vperm.xlu1 %5406, %v4331_v25   ;;  %v1686_v58 = vpop.f32.mrb[112].mxu0  ;;  %v7774_v12 = vpop.permute.xlu1 %3627 }
 0x386   :  { %v1687_v63 = vadd.f32 %v1686_v58, %v7142_v45  ;;  %v1688_v29 = vpop.f32.mrb[113].mxu0  ;;  %10080 = vst [vmem:[#allocation65_spill] sm:$0xff] %v7774_v12 }
 0x387   :  { %v1689_v44 = vadd.f32 %v1688_v29, %v7152_v39  ;;  %3179 = vrot.lane.b32.xlu0 %v7559_v7, %s5749_s3  ;;  %v1690_v38 = vpop.f32.mrb[114].mxu0  ;;  %5170 = vmatprep.mubr.msk.bf16.mxu1 %vm2537_vm2, %v2348_v32  ;;  %v7778_v29 = vadd.f32 %v7569_v60, %v7742_v35 }
 0x388   :  { %v1691_v33 = vadd.f32 %v1690_v38, %v7142_v45  ;;  %v1692_v10 = vpop.f32.mrb[115].mxu0  ;;  %2937 = vmatmul.mubr.bf16.gmra.mrb[172].mxu1 %v2347_v46  ;;  %v1837_v8 = vmax.f32 %v1687_v63, 0.0  ;;  %v7783_v63 = vpop.permute.xlu0 %3635 }
 0x389   :  { %v1693_v23 = vadd.f32 %v1692_v10, %v7152_v39  ;;  %3739 = vrot.lane.b32.xlu1 %v1689_v44, %s5749_s3  ;;  %v1838_v37 = vmax.f32 %v1689_v44, 0.0  ;;  %10081 = vst [vmem:[#allocation66_spill] sm:$0xff] %v7778_v29  ;;  %10082 = vst [vmem:[#allocation67_spill] sm:$0xff] %v7783_v63 }
 0x38a   :  { %v1839_v25 = vmax.f32 %v1691_v33, 0.0 }
 0x38b   :  { %v1840_v58 = vmax.f32 %v1693_v23, 0.0  ;;  %4402 = vperm.xlu0 %5407, %v4332_v9  }
 0x38c   :  { %v2349_v32 = vpack.c.bf16 %v1839_v25, %v1837_v8  ;;  %v7789_v8 = vpop.permute.xlu1 %3631  ;;  %v4333_v25 = vmul.f32 0.03125, %v7778_v29  ;;  %v7798_v63 = vpop.permute.xlu0 %3639 }
 0x38d   :  { %v2350_v46 = vpack.c.bf16 %v1840_v58, %v1838_v37  ;;  %3181 = vrot.lane.b32.xlu1 %v7562_v47, %s5749_s3  ;;  %10083 = vst [vmem:[#allocation68_spill] sm:$0xff] %v7789_v8  ;;  %10085 = vst [vmem:[#allocation70_spill] sm:$0xff] %v7798_v63 }
 0x38e   :  { %v1696_v38 = vpop.f32.mrb[116].mxu0 }
 0x38f   :  { %v1697_v10 = vadd.f32 %v1696_v38, %v7142_v45  ;;  %v1698_v50 = vpop.f32.mrb[117].mxu0  ;;  %3741 = vrot.lane.b32.xlu0 %v1693_v23, %s5749_s3  ;;  %5171 = vmatprep.mubr.msk.bf16.mxu1 %vm2537_vm2, %v2350_v46 }
 0x390   :  { %v1699_v33 = vadd.f32 %v1698_v50, %v7152_v39  ;;  %v1700_v44 = vpop.f32.mrb[118].mxu0  ;;  %2947 = vmatmul.mubr.bf16.gmra.mrb[176].mxu1 %v2349_v32  ;;  %v7796_v50 = vadd.f32 %v7574_v59, %v7742_v35  ;;  %v7802_v32 = vadd.f32 %v7588_v31, %v7742_v35  ;;  %v7807_v59 = vpop.permute.xlu1 %3637 }
 0x391   :  { %v1701_v60 = vadd.f32 %v1700_v44, %v7142_v45  ;;  %v1702_v9 = vpop.f32.mrb[119].mxu0  ;;  %v1841_v58 = vmax.f32 %v1697_v10, 0.0  ;;  %10087 = vst [vmem:[#allocation72_spill] sm:$0xff] %v7807_v59  ;;  %v7827_v59 = vpop.permute.xlu0 %3643 }
 0x392   :  { %v1703_v37 = vadd.f32 %v1702_v9, %v7152_v39  ;;  %3743 = vrot.lane.b32.xlu1 %v1699_v33, %s5749_s3  ;;  %10084 = vst [vmem:[#allocation69_spill] sm:$0xff] %v7796_v50  ;;  %v1842_v23 = vmax.f32 %v1699_v33, 0.0  ;;  %10086 = vst [vmem:[#allocation71_spill] sm:$0xff] %v7802_v32  ;;  %v4334_v33 = vmul.f32 0.03125, %v7796_v50 }
 0x393   :  { %v1843_v38 = vmax.f32 %v1701_v60, 0.0  ;;  %4407 = vperm.xlu0 %5407, %v4333_v25   ;;  %10091 = vst [vmem:[#allocation76_spill] sm:$0xff] %v7827_v59 }
 0x394   :  { %v1844_v46 = vmax.f32 %v1703_v37, 0.0 }
 0x395   :  { %v2351_v44 = vpack.c.bf16 %v1843_v38, %v1841_v58 }
 0x396   :  { %v2352_v29 = vpack.c.bf16 %v1844_v46, %v1842_v23  ;;  %3183 = vrot.lane.b32.xlu1 %v7578_v36, %s5749_s3  ;;  %v1706_v10 = vpop.f32.mrb[120].mxu0  ;;  %v4335_v46 = vmul.f32 0.03125, %v7802_v32 }
 0x397   :  { %v1707_v60 = vadd.f32 %v1706_v10, %v7142_v45  ;;  %v1708_v9 = vpop.f32.mrb[121].mxu0  ;;  %3745 = vrot.lane.b32.xlu0 %v1703_v37, %s5749_s3  ;;  %v7825_v37 = vadd.f32 %v7593_v30, %v7742_v35  ;;  %v7836_v30 = vadd.f32 %v7604_v48, %v7742_v35 }
 0x398   :  { %v7811_v25 = vadd.f32 %v1708_v9, %v7152_v39  ;;  %v1710_v58 = vpop.f32.mrb[122].mxu0  ;;  %5172 = vmatprep.mubr.msk.bf16.mxu1 %vm2537_vm2, %v2352_v29  ;;  %v2778_v23 = vpop.f32.mrb[108].mxu1 }
 0x399   :  { %v1711_v31 = vadd.f32 %v1710_v58, %v7142_v45  ;;  %v1712_v38 = vpop.f32.mrb[123].mxu0  ;;  %2957 = vmatmul.mubr.bf16.gmra.mrb[180].mxu1 %v2351_v44  ;;  %v2779_v63 = vadd.f32 %v2778_v23, %v7543_v13  ;;  %v7821_v50 = vpop.f32.mrb[109].mxu1  ;;  %10090 = vst [vmem:[#allocation75_spill] sm:$0xff] %v7825_v37  ;;  %v1845_v29 = vmax.f32 %v1707_v60, 0.0  ;;  %10092 = vst [vmem:[#allocation77_spill] sm:$0xff] %v7836_v30 }
 0x39a   :  { %10088 = vst [vmem:[#allocation73_spill] sm:$0xff] %v7811_v25  ;;  %v7818_v10 = vadd.f32 %v1712_v38, %v7152_v39  ;;  %4412 = vperm.xlu1 %5406, %v4334_v33   ;;  %v2782_v58 = vpop.f32.mrb[110].mxu1  ;;  %v1846_v44 = vmax.f32 %v7811_v25, 0.0 }
 0x39b   :  { %v1847_v9 = vmax.f32 %v1711_v31, 0.0  ;;  %v3009_v38 = vand.u32 2147483647, %v2779_v63  ;;  %v2783_v20 = vadd.f32 %v2782_v58, %v7543_v13  ;;  %v7832_v23 = vpop.f32.mrb[111].mxu1  ;;  %4417 = vperm.xlu0 %5407, %v4335_v46   ;;  %v10093_v31 = vld [vmem:[#allocation14_spill] sm:$0xff]  ;;  %v7843_v63 = vpop.permute.xlu1 %3641  ;;  %v4336_v46 = vmul.f32 0.03125, %v7825_v37 }
 0x39c   :  { %10089 = vst [vmem:[#allocation74_spill] sm:$0xff] %v7818_v10  ;;  %v1848_v32 = vmax.f32 %v7818_v10, 0.0  ;;  %10095 = vst [vmem:[#allocation78_spill] sm:$0xff] %v7843_v63 }
 0x39d   :  { %v2353_v33 = vpack.c.bf16 %v1847_v9, %v1845_v29  ;;  %v7839_v19 = vmul.f32 %v10093_v31, %v3009_v38  ;;  %v3010_v59 = vand.u32 2147483647, %v2783_v20  ;;  %v10096_v29 = vld [vmem:[#allocation6_spill] sm:$0xff]  ;;  %v4337_v31 = vmul.f32 0.03125, %v7836_v30 }
 0x39e   :  { %v2354_v60 = vpack.c.bf16 %v1848_v32, %v1846_v44  ;;  %3185 = vrot.lane.b32.xlu1 %v7581_v62, %s5749_s3  ;;  %v1716_v25 = vpop.f32.mrb[124].mxu0 }
 0x39f   :  { %10094 = vst [vmem:[#allocation14_spill] sm:$0xff] %v7839_v19  ;;  %v1717_v58 = vadd.f32 %v1716_v25, %v7142_v45  ;;  %v1718_v10 = vpop.f32.mrb[125].mxu0  ;;  %v7848_v9 = vmul.f32 %v10096_v29, %v3010_v59  ;;  %3187 = vrot.lane.b32.xlu0 %v7597_v61, %s5749_s3  ;;  %v7857_v25 = vpop.permute.xlu0 %3647 }
 0x3a0   :  { %v7851_v48 = vadd.f32 %v1718_v10, %v7152_v39  ;;  %v1720_v20 = vpop.f32.mrb[126].mxu0  ;;  %5173 = vmatprep.mubr.msk.bf16.mxu1 %vm2537_vm2, %v2354_v60  ;;  %v2788_v38 = vpop.f32.mrb[112].mxu1  ;;  %10098 = vst [vmem:[#allocation79_spill] sm:$0xff] %v7857_v25  ;;  %v7868_v60 = vadd.f32 %v7607_v49, %v7742_v35  ;;  %v7879_v49 = vadd.f32 %v7616_v15, %v7742_v35 }
 0x3a1   :  { %v1721_v32 = vadd.f32 %v1720_v20, %v7142_v45  ;;  %v1722_v44 = vpop.f32.mrb[127].mxu0  ;;  %2967 = vmatmul.mubr.bf16.gmra.mrb[184].mxu1 %v2353_v33  ;;  %v2789_v10 = vadd.f32 %v2788_v38, %v7543_v13  ;;  %v7864_v29 = vpop.f32.mrb[113].mxu1  ;;  %v1849_v45 = vmax.f32 %v1717_v58, 0.0 }
 0x3a2   :  { %10097 = vst [vmem:[#allocation6_spill] sm:$0xff] %v7851_v48  ;;  %v7861_v59 = vadd.f32 %v1722_v44, %v7152_v39  ;;  %4422 = vperm.xlu1 %5406, %v4336_v46   ;;  %10100 = vst [vmem:[#allocation81_spill] sm:$0xff] %v7868_v60  ;;  %v2792_v37 = vpop.f32.mrb[114].mxu1  ;;  %v1850_v33 = vmax.f32 %v7851_v48, 0.0  ;;  %v7875_v38 = vpop.permute.xlu1 %3645 }
 0x3a3   :  { %v1851_v20 = vmax.f32 %v1721_v32, 0.0  ;;  %v3011_v30 = vand.u32 2147483647, %v2789_v10  ;;  %v2793_v39 = vadd.f32 %v2792_v37, %v7543_v13  ;;  %v7873_v44 = vpop.f32.mrb[115].mxu1  ;;  %4427 = vperm.xlu0 %5407, %v4337_v31   ;;  %10101 = vst [vmem:[#allocation82_spill] sm:$0xff] %v7875_v38  ;;  %10102 = vst [vmem:[#allocation83_spill] sm:$0xff] %v7879_v49  ;;  %v7886_v10 = vpop.permute.xlu0 %3651 }
 0x3a4   :  { %10099 = vst [vmem:[#allocation80_spill] sm:$0xff] %v7861_v59  ;;  %v1852_v25 = vmax.f32 %v7861_v59, 0.0  ;;  %v10103_v32 = vld [vmem:[#allocation8_spill] sm:$0xff]  ;;  %v4338_v37 = vmul.f32 0.03125, %v7868_v60 }
 0x3a5   :  { %v2355_v46 = vpack.c.bf16 %v1851_v20, %v1849_v45  ;;  %v7882_v63 = vmul.f32 %v3011_v30, %v10103_v32  ;;  %v3012_v48 = vand.u32 2147483647, %v2793_v39  ;;  %10104 = vst [vmem:[#allocation8_spill] sm:$0xff] %v7886_v10  ;;  %v10105_v31 = vld [vmem:[#allocation12_spill] sm:$0xff]  ;;  %v4339_v30 = vmul.f32 0.03125, %v7879_v49 }
 0x3a6   :  { %v2356_v58 = vpack.c.bf16 %v1852_v25, %v1850_v33  ;;  %3189 = vrot.lane.b32.xlu1 %v7600_v17, %s5749_s3  ;;  %v7899_v20 = vpop.permute.xlu1 %3649 }
 0x3a7   :  { %v7890_v59 = vmul.f32 %v3012_v48, %v10105_v31  ;;  %3191 = vrot.lane.b32.xlu0 %v7610_v16, %s5749_s3  ;;  %10106 = vst [vmem:[#allocation12_spill] sm:$0xff] %v7899_v20  ;;  %v7903_v48 = vadd.f32 %v7619_v22, %v7742_v35  ;;  %v7912_v31 = vadd.f32 %v7628_v57, %v7742_v35 }
 0x3a8   :  { %5174 = vmatprep.mubr.msk.bf16.mxu1 %vm2537_vm2, %v2356_v58  ;;  %v2798_v15 = vpop.f32.mrb[116].mxu1 }
 0x3a9   :  { %2977 = vmatmul.mubr.bf16.gmra.mrb[188].mxu1 %v2355_v46  ;;  %v2799_v25 = vadd.f32 %v2798_v15, %v7543_v13  ;;  %v7897_v45 = vpop.f32.mrb[117].mxu1  ;;  %10107 = vst [vmem:[#allocation84_spill] sm:$0xff] %v7903_v48  ;;  %v7908_v46 = vpop.permute.xlu0 %3655  ;;  %10109 = vst [vmem:[#allocation86_spill] sm:$0xff] %v7912_v31  ;;  %v4340_v22 = vmul.f32 0.03125, %v7903_v48 }
 0x3aa   :  { %4432 = vperm.xlu1 %5406, %v4338_v37   ;;  %v2802_v33 = vpop.f32.mrb[118].mxu1  ;;  %10108 = vst [vmem:[#allocation85_spill] sm:$0xff] %v7908_v46  ;;  %v10110_v37 = vld [vmem:[#allocation18_spill] sm:$0xff] }
 0x3ab   :  { %v3013_v39 = vand.u32 2147483647, %v2799_v25  ;;  %v2803_v32 = vadd.f32 %v2802_v33, %v7543_v13  ;;  %v7906_v58 = vpop.f32.mrb[119].mxu1  ;;  %4437 = vperm.xlu0 %5407, %v4339_v30   ;;  %v10111_v25 = vld [vmem:[#allocation9_spill] sm:$0xff]  ;;  %v7925_v30 = vpop.permute.xlu1 %3653 }
 0x3ac   :  { %10112 = vst [vmem:[#allocation18_spill] sm:$0xff] %v7925_v30 }
 0x3ad   :  { %v7915_v15 = vmul.f32 %v10110_v37, %v3013_v39  ;;  %v3014_v10 = vand.u32 2147483647, %v2803_v32  ;;  %v7927_v57 = vpop.permute.xlu0 %3661  ;;  %v4341_v39 = vmul.f32 0.03125, %v7912_v31 }
 0x3ae   :  { %3193 = vrot.lane.b32.xlu1 %v7613_v6, %s5749_s3  ;;  %10113 = vst [vmem:[#allocation9_spill] sm:$0xff] %v7927_v57  ;;  %v7944_v57 = vadd.f32 %v7640_v0, %v7742_v35 }
 0x3af   :  { %v7921_v33 = vmul.f32 %v10111_v25, %v3014_v10  ;;  %3195 = vrot.lane.b32.xlu0 %v7622_v3, %s5749_s3  ;;  %v7935_v10 = vadd.f32 %v7631_v52, %v7742_v35  ;;  %v7951_v52 = vpop.permute.xlu1 %3657 }
 0x3b0   :  { %v2808_v46 = vpop.f32.mrb[120].mxu1  ;;  %10116 = vst [vmem:[#allocation89_spill] sm:$0xff] %v7944_v57 }
 0x3b1   :  { %v2809_v32 = vadd.f32 %v2808_v46, %v7543_v13  ;;  %v7931_v37 = vpop.f32.mrb[121].mxu1  ;;  %10114 = vst [vmem:[#allocation87_spill] sm:$0xff] %v7935_v10  ;;  %v7940_v30 = vpop.permute.xlu0 %3665  ;;  %v10117_v46 = vld [vmem:[#allocation16_spill] sm:$0xff] }
 0x3b2   :  { %4442 = vperm.xlu1 %5406, %v4340_v22   ;;  %v2812_v49 = vpop.f32.mrb[122].mxu1  ;;  %10115 = vst [vmem:[#allocation88_spill] sm:$0xff] %v7940_v30  ;;  %10118 = vst [vmem:[#allocation16_spill] sm:$0xff] %v7951_v52  ;;  %v7967_v52 = vadd.f32 %v7643_v56, %v7742_v35 }
 0x3b3   :  { %v3015_v25 = vand.u32 2147483647, %v2809_v32  ;;  %v2813_v48 = vadd.f32 %v2812_v49, %v7543_v13  ;;  %v7938_v20 = vpop.f32.mrb[123].mxu1  ;;  %4447 = vperm.xlu0 %5407, %v4341_v39   ;;  %v4342_v49 = vmul.f32 0.03125, %v7935_v10  ;;  %v10119_v32 = vld [vmem:[#allocation19_spill] sm:$0xff]  ;;  %v7972_v38 = vpop.permute.xlu1 %3659 }
 0x3b4   :  { %10121 = vst [vmem:[#allocation90_spill] sm:$0xff] %v7967_v52  ;;  %10122 = vst [vmem:[#allocation91_spill] sm:$0xff] %v7972_v38  ;;  %v4344_v56 = vmul.f32 0.03125, %v7967_v52 }
 0x3b5   :  { %v7947_v31 = vmul.f32 %v3015_v25, %v10117_v46  ;;  %v3016_v22 = vand.u32 2147483647, %v2813_v48  ;;  %v7959_v0 = vpop.permute.xlu0 %3667  ;;  %v4343_v25 = vmul.f32 0.03125, %v7944_v57 }
 0x3b6   :  { %3197 = vrot.lane.b32.xlu1 %v7625_v4, %s5749_s3  ;;  %10120 = vst [vmem:[#allocation19_spill] sm:$0xff] %v7959_v0 }
 0x3b7   :  { %v7955_v60 = vmul.f32 %v3016_v22, %v10119_v32  ;;  %3199 = vrot.lane.b32.xlu0 %v7634_v41, %s5749_s3 }
 0x3b8   :  { %v2818_v39 = vpop.f32.mrb[124].mxu1 }
 0x3b9   :  { %v2819_v48 = vadd.f32 %v2818_v39, %v7543_v13  ;;  %v7963_v46 = vpop.f32.mrb[125].mxu1  ;;  %v7974_v0 = vpop.permute.xlu0 %3671  ;;  %v7978_v39 = vadd.f32 %v7652_v14, %v7742_v35 }
 0x3ba   :  { %4452 = vperm.xlu1 %5406, %v4342_v49   ;;  %v2822_v30 = vpop.f32.mrb[126].mxu1  ;;  %10123 = vst [vmem:[#allocation92_spill] sm:$0xff] %v7974_v0  ;;  %v10125_v49 = vld [vmem:[#allocation13_spill] sm:$0xff] }
 0x3bb   :  { %v3017_v22 = vand.u32 2147483647, %v2819_v48  ;;  %v2823_v32 = vadd.f32 %v2822_v30, %v7543_v13  ;;  %v7970_v10 = vpop.f32.mrb[127].mxu1  ;;  %4457 = vperm.xlu0 %5407, %v4343_v25   ;;  %10124 = vst [vmem:[#allocation93_spill] sm:$0xff] %v7978_v39  ;;  %v10126_v30 = vld [vmem:[#allocation17_spill] sm:$0xff]  ;;  %v7991_v25 = vpop.permute.xlu1 %3663  ;;  %v4345_v14 = vmul.f32 0.03125, %v7978_v39 }
 0x3bc   :  { %10127 = vst [vmem:[#allocation13_spill] sm:$0xff] %v7991_v25 }
 0x3bd   :  { %v7981_v57 = vmul.f32 %v10125_v49, %v3017_v22  ;;  %v3018_v8 = vand.u32 2147483647, %v2823_v32  ;;  %v7994_v38 = vpop.permute.xlu0 %3675 }
 0x3be   :  { %3201 = vrot.lane.b32.xlu1 %v7637_v1, %s5749_s3  ;;  %10128 = vst [vmem:[#allocation17_spill] sm:$0xff] %v7994_v38  ;;  %v10132_v38 = vld [vmem:[#allocation22_spill] sm:$0xff] }
 0x3bf   :  { %v7987_v48 = vmul.f32 %v10126_v30, %v3018_v8  ;;  %3203 = vrot.lane.b32.xlu0 %v7646_v40, %s5749_s3  ;;  %v8001_v8 = vadd.f32 %v7655_v21, %v7742_v35  ;;  %v8006_v25 = vpop.permute.xlu1 %3669 }
 0x3c0   :  { %v2828_v0 = vpop.f32.mrb[128].mxu1  ;;  %10130 = vst [vmem:[#allocation95_spill] sm:$0xff] %v8006_v25 }
 0x3c1   :  { %v2829_v22 = vadd.f32 %v2828_v0, %v7543_v13  ;;  %v7997_v32 = vpop.f32.mrb[129].mxu1  ;;  %10129 = vst [vmem:[#allocation94_spill] sm:$0xff] %v8001_v8  ;;  %v8008_v39 = vpop.permute.xlu0 %3679  ;;  %v4346_v21 = vmul.f32 0.03125, %v8001_v8 }
 0x3c2   :  { %4462 = vperm.xlu1 %5406, %v4344_v56   ;;  %v2832_v49 = vpop.f32.mrb[130].mxu1  ;;  %10131 = vst [vmem:[#allocation96_spill] sm:$0xff] %v8008_v39  ;;  %v10133_v56 = vld [vmem:[#allocation24_spill] sm:$0xff]  ;;  %v8025_v39 = vadd.f32 %v7676_v18, %v7742_v35 }
 0x3c3   :  { %v3019_v30 = vand.u32 2147483647, %v2829_v22  ;;  %v2833_v52 = vadd.f32 %v2832_v49, %v7543_v13  ;;  %v8004_v54 = vpop.f32.mrb[131].mxu1  ;;  %4467 = vperm.xlu0 %5407, %v4345_v14   ;;  %v8021_v14 = vpop.permute.xlu1 %3673 }
 0x3c4   :  { %10134 = vst [vmem:[#allocation22_spill] sm:$0xff] %v8021_v14  ;;  %10135 = vst [vmem:[#allocation24_spill] sm:$0xff] %v8025_v39 }
 0x3c5   :  { %v8011_v0 = vmul.f32 %v3019_v30, %v10132_v38  ;;  %v3020_v12 = vand.u32 2147483647, %v2833_v52  ;;  %v8027_v38 = vpop.permute.xlu0 %3683 }
 0x3c6   :  { %3205 = vrot.lane.b32.xlu1 %v7649_v53, %s5749_s3  ;;  %10136 = vst [vmem:[#allocation97_spill] sm:$0xff] %v8027_v38 }
 0x3c7   :  { %v8017_v22 = vmul.f32 %v3020_v12, %v10133_v56  ;;  %3207 = vrot.lane.b32.xlu0 %v7658_v34, %s5749_s3  ;;  %v8034_v12 = vadd.f32 %v7664_v5, %v7742_v35  ;;  %v8041_v18 = vpop.permute.xlu1 %3677 }
 0x3c8   :  { %v2838_v49 = vpop.f32.mrb[132].mxu1  ;;  %10138 = vst [vmem:[#allocation99_spill] sm:$0xff] %v8041_v18 }
 0x3c9   :  { %v2839_v52 = vadd.f32 %v2838_v49, %v7543_v13  ;;  %v8030_v30 = vpop.f32.mrb[133].mxu1  ;;  %10137 = vst [vmem:[#allocation98_spill] sm:$0xff] %v8034_v12  ;;  %v4349_v49 = vmul.f32 0.03125, %v8025_v39  ;;  %v8044_v38 = vpop.permute.xlu0 %3687  ;;  %v4347_v5 = vmul.f32 0.03125, %v8034_v12 }
 0x3ca   :  { %4472 = vperm.xlu1 %5406, %v4346_v21   ;;  %v2842_v25 = vpop.f32.mrb[134].mxu1  ;;  %10139 = vst [vmem:[#allocation100_spill] sm:$0xff] %v8044_v38  ;;  %v10140_v21 = vld [vmem:[#allocation20_spill] sm:$0xff] }
 0x3cb   :  { %v3021_v56 = vand.u32 2147483647, %v2839_v52  ;;  %v2843_v14 = vadd.f32 %v2842_v25, %v7543_v13  ;;  %v8037_v8 = vpop.f32.mrb[135].mxu1  ;;  %3211 = vrot.lane.b32.xlu0 %v7670_v26, %s5749_s3  ;;  %v8054_v25 = vadd.f32 %v7667_v2, %v7742_v35  ;;  %v10142_v52 = vld [vmem:[#allocation23_spill] sm:$0xff]  ;;  %v8059_v18 = vpop.permute.xlu1 %3681 }
 0x3cc   :  { %10144 = vst [vmem:[#allocation101_spill] sm:$0xff] %v8059_v18 }
 0x3cd   :  { %v8047_v34 = vmul.f32 %v10140_v21, %v3021_v56  ;;  %v3022_v53 = vand.u32 2147483647, %v2843_v14  ;;  %10141 = vst [vmem:[#allocation20_spill] sm:$0xff] %v8054_v25  ;;  %v8063_v56 = vadd.f32 %v7688_v51, %v7742_v35  ;;  %v8065_v14 = vpop.permute.xlu0 %3691  ;;  %v4348_v12 = vmul.f32 0.03125, %v8054_v25 }
 0x3ce   :  { %3209 = vrot.lane.b32.xlu1 %v7661_v55, %s5749_s3  ;;  %10146 = vst [vmem:[#allocation103_spill] sm:$0xff] %v8065_v14 }
 0x3cf   :  { %v8057_v26 = vmul.f32 %v10142_v52, %v3022_v53  ;;  %4487 = vperm.xlu0 %5407, %v4349_v49   ;;  %10145 = vst [vmem:[#allocation102_spill] sm:$0xff] %v8063_v56  ;;  %v8076_v51 = vpop.permute.xlu1 %3685  ;;  %v4351_v14 = vmul.f32 0.03125, %v8063_v56 }
 0x3d0   :  { %v2848_v38 = vpop.f32.mrb[136].mxu1  ;;  %10147 = vst [vmem:[#allocation104_spill] sm:$0xff] %v8076_v51 }
 0x3d1   :  { %10143 = vst [vmem:[#allocation23_spill] sm:$0xff] %v8057_v26  ;;  %v2849_v21 = vadd.f32 %v2848_v38, %v7543_v13  ;;  %v8068_v39 = vpop.f32.mrb[137].mxu1  ;;  %v8079_v18 = vpop.permute.xlu0 %3695  ;;  %v10149_v38 = vld [vmem:[#allocation26_spill] sm:$0xff] }
 0x3d2   :  { %4477 = vperm.xlu1 %5406, %v4347_v5   ;;  %v2852_v2 = vpop.f32.mrb[138].mxu1  ;;  %10148 = vst [vmem:[#allocation105_spill] sm:$0xff] %v8079_v18  ;;  %v8097_v18 = vadd.f32 %v7821_v50, %v7742_v35 }
 0x3d3   :  { %v3023_v53 = vand.u32 2147483647, %v2849_v21  ;;  %v2853_v49 = vadd.f32 %v2852_v2, %v7543_v13  ;;  %v8072_v52 = vpop.f32.mrb[139].mxu1  ;;  %3215 = vrot.lane.b32.xlu0 %v7682_v11, %s5749_s3  ;;  %v8086_v21 = vadd.f32 %v7679_v42, %v7742_v35  ;;  %v10152_v2 = vld [vmem:[#allocation28_spill] sm:$0xff]  ;;  %v8091_v11 = vpop.permute.xlu1 %3689 }
 0x3d4   :  { %10154 = vst [vmem:[#allocation107_spill] sm:$0xff] %v8091_v11  ;;  %10156 = vst [vmem:[#allocation109_spill] sm:$0xff] %v8097_v18 }
 0x3d5   :  { %v8082_v55 = vmul.f32 %v3023_v53, %v10149_v38  ;;  %v3024_v5 = vand.u32 2147483647, %v2853_v49  ;;  %10151 = vst [vmem:[#allocation106_spill] sm:$0xff] %v8086_v21  ;;  %v8093_v40 = vpop.permute.xlu0 %3699  ;;  %v4350_v49 = vmul.f32 0.03125, %v8086_v21 }
 0x3d6   :  { %4482 = vperm.xlu1 %5406, %v4348_v12   ;;  %10155 = vst [vmem:[#allocation108_spill] sm:$0xff] %v8093_v40  ;;  %v10159_v40 = vld [vmem:[#allocation25_spill] sm:$0xff] }
 0x3d7   :  { %10150 = vst [vmem:[#allocation26_spill] sm:$0xff] %v8082_v55  ;;  %v8089_v25 = vmul.f32 %v3024_v5, %v10152_v2  ;;  %4497 = vperm.xlu0 %5407, %v4351_v14   ;;  %v8110_v50 = vpop.permute.xlu1 %3693 }
 0x3d8   :  { %v2858_v51 = vpop.f32.mrb[140].mxu1  ;;  %10157 = vst [vmem:[#allocation110_spill] sm:$0xff] %v8110_v50 }
 0x3d9   :  { %10153 = vst [vmem:[#allocation28_spill] sm:$0xff] %v8089_v25  ;;  %v2859_v53 = vadd.f32 %v2858_v51, %v7543_v13  ;;  %v8100_v12 = vpop.f32.mrb[141].mxu1  ;;  %v8112_v2 = vpop.permute.xlu0 %3705  ;;  %v4353_v51 = vmul.f32 0.03125, %v8097_v18 }
 0x3da   :  { %3213 = vrot.lane.b32.xlu1 %v7673_v27, %s5749_s3  ;;  %v2862_v42 = vpop.f32.mrb[142].mxu1  ;;  %10158 = vst [vmem:[#allocation111_spill] sm:$0xff] %v8112_v2  ;;  %v8131_v2 = vadd.f32 %v7864_v29, %v7742_v35 }
 0x3db   :  { %v3025_v14 = vand.u32 2147483647, %v2859_v53  ;;  %v2863_v38 = vadd.f32 %v2862_v42, %v7543_v13  ;;  %v8106_v5 = vpop.f32.mrb[143].mxu1  ;;  %3219 = vrot.lane.b32.xlu0 %v7694_v28, %s5749_s3  ;;  %v8120_v53 = vadd.f32 %v7691_v43, %v7742_v35  ;;  %v10162_v42 = vld [vmem:[#allocation27_spill] sm:$0xff]  ;;  %v8125_v28 = vpop.permute.xlu1 %3697 }
 0x3dc   :  { %10164 = vst [vmem:[#allocation113_spill] sm:$0xff] %v8125_v28  ;;  %10166 = vst [vmem:[#allocation115_spill] sm:$0xff] %v8131_v2 }
 0x3dd   :  { %v8116_v11 = vmul.f32 %v10159_v40, %v3025_v14  ;;  %v3026_v56 = vand.u32 2147483647, %v2863_v38  ;;  %10161 = vst [vmem:[#allocation112_spill] sm:$0xff] %v8120_v53  ;;  %v8127_v27 = vpop.permute.xlu0 %3709 }
 0x3de   :  { %4492 = vperm.xlu1 %5406, %v4350_v49   ;;  %10165 = vst [vmem:[#allocation114_spill] sm:$0xff] %v8127_v27  ;;  %v10169_v27 = vld [vmem:[#allocation30_spill] sm:$0xff] }
 0x3df   :  { %10160 = vst [vmem:[#allocation25_spill] sm:$0xff] %v8116_v11  ;;  %v8123_v21 = vmul.f32 %v10162_v42, %v3026_v56  ;;  %4507 = vperm.xlu0 %5407, %v4353_v51   ;;  %v4352_v56 = vmul.f32 0.03125, %v8120_v53  ;;  %v8144_v29 = vpop.permute.xlu1 %3701 }
 0x3e0   :  { %v2868_v50 = vpop.f32.mrb[144].mxu1  ;;  %10167 = vst [vmem:[#allocation116_spill] sm:$0xff] %v8144_v29 }
 0x3e1   :  { %10163 = vst [vmem:[#allocation27_spill] sm:$0xff] %v8123_v21  ;;  %v2869_v40 = vadd.f32 %v2868_v50, %v7543_v13  ;;  %v8134_v49 = vpop.f32.mrb[145].mxu1  ;;  %v8146_v42 = vpop.permute.xlu0 %3713  ;;  %v4355_v50 = vmul.f32 0.03125, %v8131_v2 }
 0x3e2   :  { %3217 = vrot.lane.b32.xlu1 %v7685_v24, %s5749_s3  ;;  %v2872_v43 = vpop.f32.mrb[146].mxu1  ;;  %10168 = vst [vmem:[#allocation117_spill] sm:$0xff] %v8146_v42  ;;  %v8163_v42 = vadd.f32 %v7897_v45, %v7742_v35 }
 0x3e3   :  { %v3027_v14 = vand.u32 2147483647, %v2869_v40  ;;  %v2873_v38 = vadd.f32 %v2872_v43, %v7543_v13  ;;  %v8140_v51 = vpop.f32.mrb[147].mxu1  ;;  %3223 = vrot.lane.b32.xlu0 %v7839_v19, %s5749_s3  ;;  %v8154_v40 = vadd.f32 %v7832_v23, %v7742_v35  ;;  %v10172_v43 = vld [vmem:[#allocation32_spill] sm:$0xff]  ;;  %v8159_v19 = vpop.permute.xlu1 %3703  ;;  %v10178_v23 = vld [vmem:[#allocation15_spill] sm:$0xff] }
 0x3e4   :  { %10174 = vst [vmem:[#allocation119_spill] sm:$0xff] %v8159_v19  ;;  %10175 = vst [vmem:[#allocation120_spill] sm:$0xff] %v8163_v42  ;;  %v10182_v19 = vld [vmem:[#allocation29_spill] sm:$0xff] }
 0x3e5   :  { %v8150_v28 = vmul.f32 %v3027_v14, %v10169_v27  ;;  %v3028_v18 = vand.u32 2147483647, %v2873_v38  ;;  %10171 = vst [vmem:[#allocation118_spill] sm:$0xff] %v8154_v40  ;;  %v8165_v2 = vpop.permute.xlu0 %3723 }
 0x3e6   :  { %4502 = vperm.xlu1 %5406, %v4352_v56   ;;  %10176 = vst [vmem:[#allocation121_spill] sm:$0xff] %v8165_v2 }
 0x3e7   :  { %10170 = vst [vmem:[#allocation30_spill] sm:$0xff] %v8150_v28  ;;  %v8157_v53 = vmul.f32 %v3028_v18, %v10172_v43  ;;  %4517 = vperm.xlu0 %5407, %v4355_v50   ;;  %v4354_v18 = vmul.f32 0.03125, %v8154_v40  ;;  %v8178_v45 = vpop.permute.xlu1 %3707 }
 0x3e8   :  { %10180 = vst [vmem:[#allocation124_spill] sm:$0xff] %v8178_v45  ;;  %v8197_v45 = vadd.f32 %v7931_v37, %v7742_v35  ;;  %v8213_v37 = vadd.f32 %v7906_v58, %v7742_v35 }
 0x3e9   :  { %10173 = vst [vmem:[#allocation32_spill] sm:$0xff] %v8157_v53  ;;  %v2878_v29 = vpop.f32.mrb[148].mxu1  ;;  %v8181_v2 = vpop.permute.xlu0 %3727 }
 0x3ea   :  { %v2879_v27 = vadd.f32 %v2878_v29, %v7543_v13  ;;  %v8168_v56 = vpop.f32.mrb[149].mxu1  ;;  %3221 = vrot.lane.b32.xlu1 %v10178_v23, %s5749_s3  ;;  %v4357_v29 = vmul.f32 0.03125, %v8163_v42  ;;  %10181 = vst [vmem:[#allocation125_spill] sm:$0xff] %v8181_v2  ;;  %10188 = vst [vmem:[#allocation128_spill] sm:$0xff] %v8197_v45 }
 0x3eb   :  { %10177 = vst [vmem:[#allocation122_spill] sm:$0xff] %v8168_v56  ;;  %v2882_v14 = vpop.f32.mrb[150].mxu1  ;;  %3227 = vrot.lane.b32.xlu0 %v7882_v63, %s5749_s3  ;;  %v8193_v40 = vpop.permute.xlu1 %3711  ;;  %10192 = vst [vmem:[#allocation132_spill] sm:$0xff] %v8213_v37 }
 0x3ec   :  { %v3029_v38 = vand.u32 2147483647, %v2879_v27  ;;  %v2883_v50 = vadd.f32 %v2882_v14, %v7543_v13  ;;  %v8174_v43 = vpop.f32.mrb[151].mxu1  ;;  %v8188_v27 = vadd.f32 %v7873_v44, %v7742_v35  ;;  %v10185_v14 = vld [vmem:[#allocation31_spill] sm:$0xff]  ;;  %10187 = vst [vmem:[#allocation127_spill] sm:$0xff] %v8193_v40 }
 0x3ed   :  { %10179 = vst [vmem:[#allocation123_spill] sm:$0xff] %v8174_v43  ;;  %v8199_v2 = vpop.permute.xlu0 %3731 }
 0x3ee   :  { %v8184_v56 = vmul.f32 %v10182_v19, %v3029_v38  ;;  %v3030_v23 = vand.u32 2147483647, %v2883_v50  ;;  %4512 = vperm.xlu1 %5406, %v4354_v18   ;;  %10184 = vst [vmem:[#allocation126_spill] sm:$0xff] %v8188_v27  ;;  %10189 = vst [vmem:[#allocation129_spill] sm:$0xff] %v8199_v2  ;;  %v4356_v19 = vmul.f32 0.03125, %v8188_v27 }
 0x3ef   :  { %4527 = vperm.xlu0 %5407, %v4357_v29   ;;  %v8206_v44 = vpop.permute.xlu1 %3725  ;;  %v4358_v29 = vmul.f32 0.03125, %v8213_v37 }
 0x3f0   :  { %10183 = vst [vmem:[#allocation29_spill] sm:$0xff] %v8184_v56  ;;  %v8191_v43 = vmul.f32 %v10185_v14, %v3030_v23  ;;  %10190 = vst [vmem:[#allocation130_spill] sm:$0xff] %v8206_v44  ;;  %v4359_v23 = vmul.f32 0.03125, %v8197_v45 }
 0x3f2   :  { %10186 = vst [vmem:[#allocation31_spill] sm:$0xff] %v8191_v43  ;;  %3225 = vrot.lane.b32.xlu1 %v7848_v9, %s5749_s3 }
 0x3f3   :  { %3231 = vrot.lane.b32.xlu0 %v7915_v15, %s5749_s3  ;;  %v8215_v38 = vpop.permute.xlu1 %3729 }
 0x3f4   :  { %10193 = vst [vmem:[#allocation133_spill] sm:$0xff] %v8215_v38 }
 0x3f5   :  { %v8209_v18 = vpop.permute.xlu0 %3737 }
 0x3f6   :  { %4522 = vperm.xlu1 %5406, %v4356_v19   ;;  %10191 = vst [vmem:[#allocation131_spill] sm:$0xff] %v8209_v18  ;;  %v8226_v19 = vadd.f32 %v7963_v46, %v7742_v35 }
 0x3f7   :  { %4537 = vperm.xlu0 %5407, %v4359_v23   ;;  %v8222_v14 = vpop.permute.xlu1 %3733  ;;  %v8233_v23 = vadd.f32 %v7938_v20, %v7742_v35 }
 0x3f8   :  { %10194 = vst [vmem:[#allocation134_spill] sm:$0xff] %v8222_v14  ;;  %10195 = vst [vmem:[#allocation135_spill] sm:$0xff] %v8226_v19  ;;  %v4361_v14 = vmul.f32 0.03125, %v8226_v19 }
 0x3f9   :  { %v3180_v50 = vpop.permute.xlu0 %3179  ;;  %10196 = vst [vmem:[#allocation136_spill] sm:$0xff] %v8233_v23  ;;  %v4360_v46 = vmul.f32 0.03125, %v8233_v23 }
 0x3fa   :  { %3229 = vrot.lane.b32.xlu1 %v7890_v59, %s5749_s3  ;;  %v8229_v58 = vadd.f32 %v3180_v50, %v7559_v7 }
 0x3fb   :  { %3235 = vrot.lane.b32.xlu0 %v7947_v31, %s5749_s3  ;;  %v8237_v18 = vpop.permute.xlu1 %3735 }
 0x3fc   :  { %10197 = vst [vmem:[#allocation137_spill] sm:$0xff] %v8237_v18  ;;  %v8255_v18 = vadd.f32 %v7970_v10, %v7742_v35  ;;  %v8271_v10 = vadd.f32 %v7997_v32, %v7742_v35 }
 0x3fe   :  { %4532 = vperm.xlu1 %5406, %v4358_v29   ;;  %10199 = vst [vmem:[#allocation139_spill] sm:$0xff] %v8255_v18  ;;  %10202 = vst [vmem:[#allocation142_spill] sm:$0xff] %v8271_v10 }
 0x3ff   :  { %3371 = vrot.lane.b32.xlu0 %v8229_v58, %s5751_s6 }
 0x402   :  { %3233 = vrot.lane.b32.xlu1 %v7921_v33, %s5749_s3 }
 0x403   :  { %4547 = vperm.xlu0 %5407, %v4361_v14  }
 0x404   :  { %v8243_v7 = vpop.permute.xlu1 %4397 }
 0x406   :  { %4542 = vperm.xlu1 %5406, %v4360_v46  }
 0x407   :  { %3239 = vrot.lane.b32.xlu0 %v7981_v57, %s5749_s3 }
 0x408   :  { %v8247_v20 = vpop.permute.xlu1 %3739 }
 0x409   :  { %10198 = vst [vmem:[#allocation138_spill] sm:$0xff] %v8247_v20  ;;  %v4362_v20 = vmul.f32 0.03125, %v8255_v18 }
 0x40a   :  { %3237 = vrot.lane.b32.xlu1 %v7955_v60, %s5749_s3  ;;  %v8251_v50 = vpop.permute.xlu0 %4402 }
 0x40c   :  { %v3182_v29 = vpop.permute.xlu1 %3181 }
 0x40d   :  { %v8258_v14 = vadd.f32 %v3182_v29, %v7562_v47 }
 0x40e   :  { %v8260_v2 = vpop.permute.xlu0 %3741 }
 0x40f   :  { %10200 = vst [vmem:[#allocation140_spill] sm:$0xff] %v8260_v2  ;;  %3373 = vrot.lane.b32.xlu1 %v8258_v14, %s5751_s6 }
 0x410   :  { %v8264_v46 = vpop.permute.xlu1 %3743 }
 0x411   :  { %10201 = vst [vmem:[#allocation141_spill] sm:$0xff] %v8264_v46 }
 0x412   :  { %v8267_v38 = vpop.permute.xlu0 %4407 }
 0x413   :  { %4552 = vperm.xlu1 %5406, %v4362_v20   ;;  %v4363_v20 = vmul.f32 0.03125, %v8271_v10 }
 0x414   :  { %v3184_v44 = vpop.permute.xlu1 %3183 }
 0x415   :  { %v8274_v47 = vadd.f32 %v3184_v44, %v7578_v36  ;;  %v8289_v36 = vadd.f32 %v8004_v54, %v7742_v35  ;;  %v8310_v54 = vadd.f32 %v8037_v8, %v7742_v35 }
 0x416   :  { %v8276_v29 = vpop.permute.xlu0 %3745 }
 0x417   :  { %10203 = vst [vmem:[#allocation143_spill] sm:$0xff] %v8276_v29  ;;  %3241 = vrot.lane.b32.xlu1 %v7987_v48, %s5749_s3  ;;  %3375 = vrot.lane.b32.xlu0 %v8274_v47, %s5751_s6  ;;  %10205 = vst [vmem:[#allocation145_spill] sm:$0xff] %v8289_v36  ;;  %v4364_v10 = vmul.f32 0.03125, %v8289_v36 }
 0x418   :  { %10208 = vst [vmem:[#allocation148_spill] sm:$0xff] %v8310_v54 }
 0x419   :  { %v8282_v46 = vpop.permute.xlu1 %4412 }
 0x41a   :  { %v8285_v2 = vpop.permute.xlu0 %4417 }
 0x41b   :  { %10204 = vst [vmem:[#allocation144_spill] sm:$0xff] %v8285_v2  ;;  %4557 = vperm.xlu0 %5407, %v4363_v20  }
 0x41d   :  { %v3186_v32 = vpop.permute.xlu1 %3185 }
 0x41e   :  { %v8292_v44 = vadd.f32 %v3186_v32, %v7581_v62  ;;  %v3188_v29 = vpop.permute.xlu0 %3187 }
 0x41f   :  { %3243 = vrot.lane.b32.xlu0 %v8011_v0, %s5749_s3  ;;  %v8302_v20 = vadd.f32 %v3188_v29, %v7597_v61  ;;  %v4366_v29 = vmul.f32 0.03125, %v8310_v54  ;;  %v8353_v54 = vadd.f32 %v8068_v39, %v7742_v35 }
 0x420   :  { %3377 = vrot.lane.b32.xlu1 %v8292_v44, %s5751_s6 }
 0x421   :  { %v8298_v40 = vpop.permute.xlu1 %4422  ;;  %10216 = vst [vmem:[#allocation156_spill] sm:$0xff] %v8353_v54 }
 0x422   :  { %10206 = vst [vmem:[#allocation146_spill] sm:$0xff] %v8298_v40  ;;  %v8304_v18 = vpop.permute.xlu0 %4427 }
 0x423   :  { %10207 = vst [vmem:[#allocation147_spill] sm:$0xff] %v8304_v18  ;;  %3379 = vrot.lane.b32.xlu0 %v8302_v20, %s5751_s6 }
 0x424   :  { %4562 = vperm.xlu1 %5406, %v4364_v10   ;;  %v8320_v10 = vadd.f32 %v8030_v30, %v7742_v35 }
 0x425   :  { %v3190_v62 = vpop.permute.xlu1 %3189 }
 0x426   :  { %v3192_v32 = vpop.permute.xlu0 %3191  ;;  %10210 = vst [vmem:[#allocation150_spill] sm:$0xff] %v8320_v10  ;;  %v8324_v36 = vadd.f32 %v3190_v62, %v7600_v17  ;;  %v4365_v23 = vmul.f32 0.03125, %v8320_v10  ;;  %v8340_v17 = vadd.f32 %v8072_v52, %v7742_v35 }
 0x427   :  { %3247 = vrot.lane.b32.xlu0 %v8047_v34, %s5749_s3  ;;  %v8332_v45 = vadd.f32 %v3192_v32, %v7610_v16 }
 0x428   :  { %3245 = vrot.lane.b32.xlu1 %v8017_v22, %s5749_s3  ;;  %10213 = vst [vmem:[#allocation153_spill] sm:$0xff] %v8340_v17  ;;  %v4368_v52 = vmul.f32 0.03125, %v8340_v17 }
 0x429   :  { %v8316_v61 = vpop.permute.xlu1 %4432 }
 0x42a   :  { %10209 = vst [vmem:[#allocation149_spill] sm:$0xff] %v8316_v61  ;;  %v8326_v8 = vpop.permute.xlu0 %4437 }
 0x42b   :  { %10211 = vst [vmem:[#allocation151_spill] sm:$0xff] %v8326_v8  ;;  %4572 = vperm.xlu0 %5407, %v4366_v29  }
 0x42c   :  { %3381 = vrot.lane.b32.xlu1 %v8324_v36, %s5751_s6 }
 0x42d   :  { %v3194_v19 = vpop.permute.xlu1 %3193 }
 0x42e   :  { %v3196_v37 = vpop.permute.xlu0 %3195  ;;  %v8357_v10 = vadd.f32 %v3194_v19, %v7613_v6  ;;  %v4367_v6 = vmul.f32 0.03125, %v8353_v54 }
 0x42f   :  { %3383 = vrot.lane.b32.xlu0 %v8332_v45, %s5751_s6  ;;  %v8371_v19 = vadd.f32 %v3196_v37, %v7622_v3 }
 0x430   :  { %4567 = vperm.xlu1 %5406, %v4365_v23  }
 0x431   :  { %v8336_v30 = vpop.permute.xlu1 %4442  ;;  %10221 = vst [vmem:[#allocation159_spill] sm:$0xff] %v8371_v19 }
 0x432   :  { %10212 = vst [vmem:[#allocation152_spill] sm:$0xff] %v8336_v30  ;;  %v8342_v62 = vpop.permute.xlu0 %4447 }
 0x433   :  { %10214 = vst [vmem:[#allocation154_spill] sm:$0xff] %v8342_v62  ;;  %v2888_v29 = vpop.f32.mrb[152].mxu1  ;;  %3251 = vrot.lane.b32.xlu0 %v8082_v55, %s5749_s3  ;;  %v10267_v55 = vld [vmem:[#allocation43_spill] sm:$0xff] }
 0x434   :  { %3249 = vrot.lane.b32.xlu1 %v8057_v26, %s5749_s3  ;;  %v2889_v16 = vadd.f32 %v2888_v29, %v7543_v13  ;;  %v8349_v23 = vpop.f32.mrb[153].mxu1  ;;  %v10218_v29 = vld [vmem:[#allocation34_spill] sm:$0xff] }
 0x435   :  { %10215 = vst [vmem:[#allocation155_spill] sm:$0xff] %v8349_v23  ;;  %v3198_v32 = vpop.permute.xlu1 %3197  ;;  %v2892_v42 = vpop.f32.mrb[154].mxu1 }
 0x436   :  { %v3031_v27 = vand.u32 2147483647, %v2889_v16  ;;  %v2893_v62 = vadd.f32 %v2892_v42, %v7543_v13  ;;  %v8360_v30 = vpop.f32.mrb[155].mxu1  ;;  %v3200_v8 = vpop.permute.xlu0 %3199  ;;  %v10222_v16 = vld [vmem:[#allocation36_spill] sm:$0xff] }
 0x437   :  { %10217 = vst [vmem:[#allocation157_spill] sm:$0xff] %v8360_v30  ;;  %4582 = vperm.xlu0 %5407, %v4368_v52  }
 0x438   :  { %3385 = vrot.lane.b32.xlu1 %v8357_v10, %s5751_s6  ;;  %v8365_v23 = vmul.f32 %v3031_v27, %v10218_v29  ;;  %v3032_v39 = vand.u32 2147483647, %v2893_v62  ;;  %v8385_v29 = vadd.f32 %v8106_v5, %v7742_v35  ;;  %v8401_v5 = vadd.f32 %v8100_v12, %v7742_v35 }
 0x439   :  { %v8367_v61 = vpop.permute.xlu1 %4452 }
 0x43a   :  { %10219 = vst [vmem:[#allocation34_spill] sm:$0xff] %v8365_v23  ;;  %10220 = vst [vmem:[#allocation158_spill] sm:$0xff] %v8367_v61  ;;  %v8374_v42 = vmul.f32 %v3032_v39, %v10222_v16  ;;  %v8376_v17 = vpop.permute.xlu0 %4457 }
 0x43b   :  { %10224 = vst [vmem:[#allocation160_spill] sm:$0xff] %v8376_v17  ;;  %v2898_v30 = vpop.f32.mrb[156].mxu1  ;;  %3387 = vrot.lane.b32.xlu0 %v8371_v19, %s5751_s6  ;;  %10226 = vst [vmem:[#allocation162_spill] sm:$0xff] %v8385_v29 }
 0x43c   :  { %10223 = vst [vmem:[#allocation36_spill] sm:$0xff] %v8374_v42  ;;  %4577 = vperm.xlu1 %5406, %v4367_v6   ;;  %v2899_v27 = vadd.f32 %v2898_v30, %v7543_v13  ;;  %v8381_v62 = vpop.f32.mrb[157].mxu1  ;;  %v10228_v30 = vld [vmem:[#allocation33_spill] sm:$0xff]  ;;  %10231 = vst [vmem:[#allocation165_spill] sm:$0xff] %v8401_v5 }
 0x43d   :  { %10225 = vst [vmem:[#allocation161_spill] sm:$0xff] %v8381_v62  ;;  %v3202_v52 = vpop.permute.xlu1 %3201  ;;  %v2902_v3 = vpop.f32.mrb[158].mxu1 }
 0x43e   :  { %v3033_v37 = vand.u32 2147483647, %v2899_v27  ;;  %v2903_v39 = vadd.f32 %v2902_v3, %v7543_v13  ;;  %v8388_v16 = vpop.f32.mrb[159].mxu1  ;;  %v3204_v54 = vpop.permute.xlu0 %3203  ;;  %v4370_v27 = vmul.f32 0.03125, %v8385_v29  ;;  %v8405_v3 = vadd.f32 %v3198_v32, %v7625_v4 }
 0x43f   :  { %10227 = vst [vmem:[#allocation163_spill] sm:$0xff] %v8388_v16  ;;  %3255 = vrot.lane.b32.xlu0 %v8116_v11, %s5749_s3  ;;  %v10233_v16 = vld [vmem:[#allocation35_spill] sm:$0xff]  ;;  %v8419_v4 = vadd.f32 %v3200_v8, %v7634_v41  ;;  %v8433_v41 = vadd.f32 %v8140_v51, %v7742_v35  ;;  %v10241_v8 = vld [vmem:[#allocation40_spill] sm:$0xff]  ;;  %v8447_v51 = vadd.f32 %v8134_v49, %v7742_v35 }
 0x440   :  { %3253 = vrot.lane.b32.xlu1 %v8089_v25, %s5749_s3  ;;  %v8395_v6 = vmul.f32 %v10228_v30, %v3033_v37  ;;  %v3034_v62 = vand.u32 2147483647, %v2903_v39  ;;  %10232 = vst [vmem:[#allocation166_spill] sm:$0xff] %v8405_v3  ;;  %v4369_v30 = vmul.f32 0.03125, %v8401_v5 }
 0x441   :  { %v8397_v17 = vpop.permute.xlu1 %4462  ;;  %10236 = vst [vmem:[#allocation168_spill] sm:$0xff] %v8419_v4  ;;  %10240 = vst [vmem:[#allocation170_spill] sm:$0xff] %v8433_v41 }
 0x442   :  { %10229 = vst [vmem:[#allocation33_spill] sm:$0xff] %v8395_v6  ;;  %10230 = vst [vmem:[#allocation164_spill] sm:$0xff] %v8397_v17  ;;  %v8408_v61 = vmul.f32 %v10233_v16, %v3034_v62  ;;  %v8410_v18 = vpop.permute.xlu0 %4467 }
 0x443   :  { %10235 = vst [vmem:[#allocation167_spill] sm:$0xff] %v8410_v18  ;;  %v2908_v25 = vpop.f32.mrb[160].mxu1  ;;  %4592 = vperm.xlu0 %5407, %v4370_v27   ;;  %10243 = vst [vmem:[#allocation171_spill] sm:$0xff] %v8447_v51 }
 0x444   :  { %10234 = vst [vmem:[#allocation35_spill] sm:$0xff] %v8408_v61  ;;  %3389 = vrot.lane.b32.xlu1 %v8405_v3, %s5751_s6  ;;  %v2909_v37 = vadd.f32 %v2908_v25, %v7543_v13  ;;  %v8415_v39 = vpop.f32.mrb[161].mxu1  ;;  %v10237_v25 = vld [vmem:[#allocation38_spill] sm:$0xff] }
 0x445   :  { %v3206_v12 = vpop.permute.xlu1 %3205  ;;  %v2912_v32 = vpop.f32.mrb[162].mxu1 }
 0x446   :  { %v3035_v62 = vand.u32 2147483647, %v2909_v37  ;;  %v2913_v16 = vadd.f32 %v2912_v32, %v7543_v13  ;;  %v8422_v29 = vpop.f32.mrb[163].mxu1  ;;  %v3208_v18 = vpop.permute.xlu0 %3207 }
 0x447   :  { %3391 = vrot.lane.b32.xlu0 %v8419_v4, %s5751_s6 }
 0x448   :  { %4587 = vperm.xlu1 %5406, %v4369_v30   ;;  %v8427_v27 = vmul.f32 %v3035_v62, %v10237_v25  ;;  %v3036_v17 = vand.u32 2147483647, %v2913_v16  ;;  %v8451_v25 = vadd.f32 %v3202_v52, %v7637_v1  ;;  %v4371_v1 = vmul.f32 0.03125, %v8447_v51  ;;  %v10249_v52 = vld [vmem:[#allocation53_spill] sm:$0xff] }
 0x449   :  { %v8429_v40 = vpop.permute.xlu1 %4472 }
 0x44a   :  { %10238 = vst [vmem:[#allocation38_spill] sm:$0xff] %v8427_v27  ;;  %10239 = vst [vmem:[#allocation169_spill] sm:$0xff] %v8429_v40  ;;  %v8436_v37 = vmul.f32 %v3036_v17, %v10241_v8  ;;  %v3212_v32 = vpop.permute.xlu0 %3211  ;;  %v4372_v17 = vmul.f32 0.03125, %v8433_v41 }
 0x44b   :  { %v2918_v5 = vpop.f32.mrb[164].mxu1  ;;  %3259 = vrot.lane.b32.xlu0 %v8150_v28, %s5749_s3  ;;  %10244 = vst [vmem:[#allocation172_spill] sm:$0xff] %v8451_v25 }
 0x44c   :  { %10242 = vst [vmem:[#allocation40_spill] sm:$0xff] %v8436_v37  ;;  %3257 = vrot.lane.b32.xlu1 %v8123_v21, %s5749_s3  ;;  %v2919_v30 = vadd.f32 %v2918_v5, %v7543_v13  ;;  %v8443_v62 = vpop.f32.mrb[165].mxu1  ;;  %v10246_v5 = vld [vmem:[#allocation37_spill] sm:$0xff] }
 0x44d   :  { %v3210_v16 = vpop.permute.xlu1 %3209  ;;  %v2922_v8 = vpop.f32.mrb[166].mxu1 }
 0x44e   :  { %v3037_v40 = vand.u32 2147483647, %v2919_v30  ;;  %v2923_v21 = vadd.f32 %v2922_v8, %v7543_v13  ;;  %v8454_v4 = vpop.f32.mrb[167].mxu1  ;;  %v8456_v28 = vpop.permute.xlu0 %4487  ;;  %v8467_v30 = vadd.f32 %v3204_v54, %v10249_v52  ;;  %v10251_v8 = vld [vmem:[#allocation39_spill] sm:$0xff] }
 0x44f   :  { %10245 = vst [vmem:[#allocation173_spill] sm:$0xff] %v8456_v28  ;;  %4602 = vperm.xlu0 %5407, %v4372_v17  }
 0x450   :  { %3393 = vrot.lane.b32.xlu1 %v8451_v25, %s5751_s6  ;;  %v8461_v49 = vmul.f32 %v10246_v5, %v3037_v40  ;;  %v3038_v2 = vand.u32 2147483647, %v2923_v21  ;;  %10250 = vst [vmem:[#allocation53_spill] sm:$0xff] %v8467_v30  ;;  %v10259_v25 = vld [vmem:[#allocation44_spill] sm:$0xff] }
 0x451   :  { %v8463_v41 = vpop.permute.xlu1 %4477 }
 0x452   :  { %10247 = vst [vmem:[#allocation37_spill] sm:$0xff] %v8461_v49  ;;  %10248 = vst [vmem:[#allocation174_spill] sm:$0xff] %v8463_v41  ;;  %v8470_v3 = vmul.f32 %v10251_v8, %v3038_v2  ;;  %v3216_v11 = vpop.permute.xlu0 %3215 }
 0x453   :  { %v2928_v28 = vpop.f32.mrb[168].mxu1  ;;  %3395 = vrot.lane.b32.xlu0 %v8467_v30, %s5751_s6 }
 0x454   :  { %4597 = vperm.xlu1 %5406, %v4371_v1   ;;  %v2929_v40 = vadd.f32 %v2928_v28, %v7543_v13  ;;  %v8475_v17 = vpop.f32.mrb[169].mxu1  ;;  %v10254_v1 = vld [vmem:[#allocation42_spill] sm:$0xff] }
 0x455   :  { %v8477_v21 = vpop.permute.xlu1 %4482  ;;  %v2932_v5 = vpop.f32.mrb[170].mxu1 }
 0x456   :  { %10252 = vst [vmem:[#allocation39_spill] sm:$0xff] %v8477_v21  ;;  %v3039_v51 = vand.u32 2147483647, %v2929_v40  ;;  %v2933_v54 = vadd.f32 %v2932_v5, %v7543_v13  ;;  %v8480_v52 = vpop.f32.mrb[171].mxu1  ;;  %v8482_v2 = vpop.permute.xlu0 %4497  ;;  %v10255_v21 = vld [vmem:[#allocation54_spill] sm:$0xff]  ;;  %v10257_v40 = vld [vmem:[#allocation55_spill] sm:$0xff] }
 0x457   :  { %10253 = vst [vmem:[#allocation175_spill] sm:$0xff] %v8482_v2  ;;  %3263 = vrot.lane.b32.xlu0 %v8184_v56, %s5749_s3  ;;  %v8492_v30 = vadd.f32 %v3206_v12, %v10255_v21  ;;  %v8495_v5 = vadd.f32 %v3208_v18, %v10257_v40  ;;  %v10262_v40 = vld [vmem:[#allocation41_spill] sm:$0xff] }
 0x458   :  { %3261 = vrot.lane.b32.xlu1 %v8157_v53, %s5749_s3  ;;  %v8489_v28 = vmul.f32 %v3039_v51, %v10254_v1  ;;  %v3040_v8 = vand.u32 2147483647, %v2933_v54 }
 0x459   :  { %v3214_v41 = vpop.permute.xlu1 %3213  ;;  %10256 = vst [vmem:[#allocation42_spill] sm:$0xff] %v8492_v30  ;;  %10258 = vst [vmem:[#allocation54_spill] sm:$0xff] %v8495_v5 }
 0x45a   :  { %v8498_v26 = vmul.f32 %v3040_v8, %v10259_v25  ;;  %v8500_v2 = vpop.permute.xlu0 %3219 }
 0x45b   :  { %v2938_v53 = vpop.f32.mrb[172].mxu1  ;;  %3399 = vrot.lane.b32.xlu0 %v8495_v5, %s5751_s6 }
 0x45c   :  { %3397 = vrot.lane.b32.xlu1 %v8492_v30, %s5751_s6  ;;  %v2939_v51 = vadd.f32 %v2938_v53, %v7543_v13  ;;  %v8507_v54 = vpop.f32.mrb[173].mxu1 }
 0x45d   :  { %v8509_v12 = vpop.permute.xlu1 %4492  ;;  %v2942_v18 = vpop.f32.mrb[174].mxu1 }
 0x45e   :  { %10260 = vst [vmem:[#allocation55_spill] sm:$0xff] %v8509_v12  ;;  %v3041_v21 = vand.u32 2147483647, %v2939_v51  ;;  %v2943_v25 = vadd.f32 %v2942_v18, %v7543_v13  ;;  %v8512_v1 = vpop.f32.mrb[175].mxu1  ;;  %v8514_v8 = vpop.permute.xlu0 %4507  ;;  %v10263_v12 = vld [vmem:[#allocation57_spill] sm:$0xff]  ;;  %v10265_v51 = vld [vmem:[#allocation56_spill] sm:$0xff] }
 0x45f   :  { %10261 = vst [vmem:[#allocation44_spill] sm:$0xff] %v8514_v8  ;;  %3267 = vrot.lane.b32.xlu0 %v8365_v23, %s5749_s3  ;;  %v8524_v56 = vadd.f32 %v3212_v32, %v10263_v12  ;;  %v8527_v18 = vadd.f32 %v3210_v16, %v10265_v51  ;;  %v10272_v51 = vld [vmem:[#allocation46_spill] sm:$0xff] }
 0x460   :  { %3265 = vrot.lane.b32.xlu1 %v8191_v43, %s5749_s3  ;;  %v8521_v53 = vmul.f32 %v10262_v40, %v3041_v21  ;;  %v3042_v5 = vand.u32 2147483647, %v2943_v25 }
 0x461   :  { %v3218_v30 = vpop.permute.xlu1 %3217  ;;  %10264 = vst [vmem:[#allocation41_spill] sm:$0xff] %v8524_v56  ;;  %10266 = vst [vmem:[#allocation57_spill] sm:$0xff] %v8527_v18 }
 0x462   :  { %v8530_v19 = vmul.f32 %v10267_v55, %v3042_v5  ;;  %v8532_v8 = vpop.permute.xlu0 %3223 }
 0x463   :  { %v2948_v43 = vpop.f32.mrb[176].mxu1  ;;  %3403 = vrot.lane.b32.xlu0 %v8524_v56, %s5751_s6 }
 0x464   :  { %3401 = vrot.lane.b32.xlu1 %v8527_v18, %s5751_s6  ;;  %v2949_v21 = vadd.f32 %v2948_v43, %v7543_v13  ;;  %v8539_v25 = vpop.f32.mrb[177].mxu1  ;;  %v10277_v18 = vld [vmem:[#allocation48_spill] sm:$0xff] }
 0x465   :  { %10268 = vst [vmem:[#allocation56_spill] sm:$0xff] %v8539_v25  ;;  %v8541_v32 = vpop.permute.xlu1 %4502  ;;  %v2952_v16 = vpop.f32.mrb[178].mxu1 }
 0x466   :  { %10269 = vst [vmem:[#allocation43_spill] sm:$0xff] %v8541_v32  ;;  %v3043_v12 = vand.u32 2147483647, %v2949_v21  ;;  %v2953_v55 = vadd.f32 %v2952_v16, %v7543_v13  ;;  %v8544_v5 = vpop.f32.mrb[179].mxu1  ;;  %v8546_v40 = vpop.permute.xlu0 %4517  ;;  %v8557_v21 = vadd.f32 %v8415_v39, %v7742_v35  ;;  %v10274_v16 = vld [vmem:[#allocation10_spill] sm:$0xff] }
 0x467   :  { %10270 = vst [vmem:[#allocation176_spill] sm:$0xff] %v8544_v5  ;;  %10271 = vst [vmem:[#allocation177_spill] sm:$0xff] %v8546_v40  ;;  %3271 = vrot.lane.b32.xlu0 %v8395_v6, %s5749_s3  ;;  %v8560_v32 = vadd.f32 %v3216_v11, %v10274_v16  ;;  %v10276_v5 = vld [vmem:[#allocation58_spill] sm:$0xff]  ;;  %v10282_v6 = vld [vmem:[#allocation45_spill] sm:$0xff] }
 0x468   :  { %3269 = vrot.lane.b32.xlu1 %v8374_v42, %s5749_s3  ;;  %v8553_v43 = vmul.f32 %v3043_v12, %v10272_v51  ;;  %v3044_v25 = vand.u32 2147483647, %v2953_v55  ;;  %10273 = vst [vmem:[#allocation46_spill] sm:$0xff] %v8557_v21  ;;  %v8563_v40 = vadd.f32 %v3214_v41, %v10276_v5  ;;  %v4379_v41 = vmul.f32 0.03125, %v8557_v21 }
 0x469   :  { %v3222_v56 = vpop.permute.xlu1 %3221  ;;  %10275 = vst [vmem:[#allocation10_spill] sm:$0xff] %v8560_v32  ;;  %v8592_v21 = vadd.f32 %v8422_v29, %v7742_v35 }
 0x46a   :  { %v8566_v42 = vmul.f32 %v3044_v25, %v10277_v18  ;;  %v8568_v23 = vpop.permute.xlu0 %3227 }
 0x46b   :  { %3407 = vrot.lane.b32.xlu0 %v8560_v32, %s5751_s6  ;;  %10283 = vst [vmem:[#allocation45_spill] sm:$0xff] %v8592_v21 }
 0x46c   :  { %3405 = vrot.lane.b32.xlu1 %v8563_v40, %s5751_s6  ;;  %v2958_v12 = vpop.f32.mrb[180].mxu1 }
 0x46d   :  { %v2959_v39 = vadd.f32 %v2958_v12, %v7543_v13  ;;  %v8575_v55 = vpop.permute.xlu1 %4512  ;;  %v8577_v11 = vpop.f32.mrb[181].mxu1 }
 0x46e   :  { %10278 = vst [vmem:[#allocation58_spill] sm:$0xff] %v8575_v55  ;;  %10279 = vst [vmem:[#allocation48_spill] sm:$0xff] %v8577_v11  ;;  %v2962_v5 = vpop.f32.mrb[182].mxu1  ;;  %v8583_v16 = vpop.permute.xlu0 %4527 }
 0x46f   :  { %v3045_v18 = vand.u32 2147483647, %v2959_v39  ;;  %v2963_v25 = vadd.f32 %v2962_v5, %v7543_v13  ;;  %v8581_v51 = vpop.f32.mrb[183].mxu1  ;;  %10281 = vst [vmem:[#allocation179_spill] sm:$0xff] %v8583_v16  ;;  %4637 = vperm.xlu0 %5407, %v4379_v41   ;;  %v8595_v39 = vadd.f32 %v3218_v30, %v7685_v24  ;;  %v10285_v5 = vld [vmem:[#allocation47_spill] sm:$0xff]  ;;  %v4380_v24 = vmul.f32 0.03125, %v8592_v21 }
 0x470   :  { %10280 = vst [vmem:[#allocation178_spill] sm:$0xff] %v8581_v51  ;;  %3273 = vrot.lane.b32.xlu1 %v8408_v61, %s5749_s3  ;;  %v10288_v30 = vld [vmem:[#allocation11_spill] sm:$0xff] }
 0x471   :  { %v8588_v12 = vmul.f32 %v10282_v6, %v3045_v18  ;;  %v3046_v55 = vand.u32 2147483647, %v2963_v25  ;;  %v3226_v32 = vpop.permute.xlu1 %3225  ;;  %10284 = vst [vmem:[#allocation180_spill] sm:$0xff] %v8595_v39 }
 0x472   :  { %v8600_v16 = vpop.permute.xlu0 %3231 }
 0x473   :  { %v8598_v51 = vmul.f32 %v10285_v5, %v3046_v55  ;;  %3275 = vrot.lane.b32.xlu0 %v8427_v27, %s5749_s3  ;;  %v8614_v55 = vadd.f32 %v8500_v2, %v10288_v30  ;;  %v8630_v2 = vadd.f32 %v8454_v4, %v7742_v35  ;;  %v8648_v4 = vadd.f32 %v8443_v62, %v7742_v35  ;;  %v10300_v62 = vld [vmem:[#allocation49_spill] sm:$0xff] }
 0x474   :  { %3409 = vrot.lane.b32.xlu1 %v8595_v39, %s5751_s6  ;;  %v2968_v41 = vpop.f32.mrb[184].mxu1 }
 0x475   :  { %v2969_v6 = vadd.f32 %v2968_v41, %v7543_v13  ;;  %v8607_v18 = vpop.permute.xlu1 %4522  ;;  %v8609_v29 = vpop.f32.mrb[185].mxu1  ;;  %10289 = vst [vmem:[#allocation11_spill] sm:$0xff] %v8614_v55  ;;  %v10292_v41 = vld [vmem:[#allocation50_spill] sm:$0xff]  ;;  %10297 = vst [vmem:[#allocation185_spill] sm:$0xff] %v8648_v4 }
 0x476   :  { %10286 = vst [vmem:[#allocation47_spill] sm:$0xff] %v8607_v18  ;;  %10287 = vst [vmem:[#allocation181_spill] sm:$0xff] %v8609_v29  ;;  %v2972_v25 = vpop.f32.mrb[186].mxu1  ;;  %v8619_v39 = vpop.permute.xlu0 %4537 }
 0x477   :  { %v3047_v5 = vand.u32 2147483647, %v2969_v6  ;;  %v2973_v11 = vadd.f32 %v2972_v25, %v7543_v13  ;;  %v8617_v61 = vpop.f32.mrb[187].mxu1  ;;  %10291 = vst [vmem:[#allocation183_spill] sm:$0xff] %v8619_v39  ;;  %3411 = vrot.lane.b32.xlu0 %v8614_v55, %s5751_s6  ;;  %10293 = vst [vmem:[#allocation50_spill] sm:$0xff] %v8630_v2  ;;  %v10294_v6 = vld [vmem:[#allocation52_spill] sm:$0xff] }
 0x478   :  { %10290 = vst [vmem:[#allocation182_spill] sm:$0xff] %v8617_v61  ;;  %4642 = vperm.xlu1 %5406, %v4380_v24  }
 0x479   :  { %v8624_v29 = vmul.f32 %v3047_v5, %v10292_v41  ;;  %v3048_v21 = vand.u32 2147483647, %v2973_v11  ;;  %v8626_v18 = vpop.permute.xlu1 %3229 }
 0x47a   :  { %v8635_v25 = vpop.permute.xlu0 %3235 }
 0x47b   :  { %v8633_v30 = vmul.f32 %v3048_v21, %v10294_v6  ;;  %3279 = vrot.lane.b32.xlu0 %v8461_v49, %s5749_s3  ;;  %v4382_v21 = vmul.f32 0.03125, %v8630_v2  ;;  %v10298_v6 = vld [vmem:[#allocation15_spill] sm:$0xff] }
 0x47c   :  { %3277 = vrot.lane.b32.xlu1 %v8436_v37, %s5749_s3  ;;  %v2978_v24 = vpop.f32.mrb[188].mxu1  ;;  %v8652_v39 = vadd.f32 %v3222_v56, %v10298_v6  ;;  %v4381_v56 = vmul.f32 0.03125, %v8648_v4 }
 0x47d   :  { %v2979_v11 = vadd.f32 %v2978_v24, %v7543_v13  ;;  %v8642_v5 = vpop.permute.xlu1 %4532  ;;  %v8644_v41 = vpop.f32.mrb[189].mxu1 }
 0x47e   :  { %10295 = vst [vmem:[#allocation52_spill] sm:$0xff] %v8642_v5  ;;  %10296 = vst [vmem:[#allocation184_spill] sm:$0xff] %v8644_v41  ;;  %v2982_v61 = vpop.f32.mrb[190].mxu1  ;;  %v3372_v24 = vpop.permute.xlu0 %3371 }
 0x47f   :  { %v3049_v37 = vand.u32 2147483647, %v2979_v11  ;;  %v2983_v55 = vadd.f32 %v2982_v61, %v7543_v13  ;;  %v8655_v49 = vpop.f32.mrb[191].mxu1  ;;  %v3499_v5 = vadd.f32 %v3372_v24, %v8229_v58  ;;  %4652 = vperm.xlu0 %5407, %v4382_v21   ;;  %v10301_v11 = vld [vmem:[#allocation14_spill] sm:$0xff]  ;;  %v10302_v61 = vld [vmem:[#allocation51_spill] sm:$0xff]  ;;  %v10304_v58 = vld [vmem:[#allocation65_spill] sm:$0xff] }
 0x480   :  { %10299 = vst [vmem:[#allocation15_spill] sm:$0xff] %v8655_v49  ;;  %3413 = vrot.lane.b32.xlu1 %v8652_v39, %s5751_s6  ;;  %v8668_v13 = vadd.f32 %v8532_v8, %v10301_v11 }
 0x481   :  { %v8661_v41 = vmul.f32 %v10300_v62, %v3049_v37  ;;  %v3050_v2 = vand.u32 2147483647, %v2983_v55  ;;  %v8663_v27 = vpop.permute.xlu1 %3233  ;;  %v3819_v24 = vadd.f32 %v10304_v58, %v3499_v5  ;;  %v8682_v55 = vadd.f32 %v8480_v52, %v7742_v35 }
 0x482   :  { %v8674_v49 = vpop.permute.xlu0 %4547  ;;  %v8694_v5 = vadd.f32 %v8475_v17, %v7742_v35  ;;  %v8698_v52 = vadd.f32 %v3226_v32, %v7848_v9  ;;  %v8706_v17 = vadd.f32 %v8568_v23, %v7882_v63  ;;  %v10309_v9 = vld [vmem:[#allocation62_spill] sm:$0xff]  ;;  %v8728_v23 = vadd.f32 %v8507_v54, %v7742_v35 }
 0x483   :  { %v8671_v6 = vmul.f32 %v10302_v61, %v3050_v2  ;;  %10305 = vst [vmem:[#allocation14_spill] sm:$0xff] %v8674_v49  ;;  %3415 = vrot.lane.b32.xlu0 %v8668_v13, %s5751_s6  ;;  %10307 = vst [vmem:[#allocation65_spill] sm:$0xff] %v8682_v55  ;;  %v3947_v21 = vmin.f32 %v3819_v24, 0.0  ;;  %v4384_v62 = vmul.f32 0.03125, %v8682_v55  ;;  %v8742_v54 = vadd.f32 %v8600_v16, %v7915_v15  ;;  %v10316_v15 = vld [vmem:[#allocation21_spill] sm:$0xff]  ;;  %v10317_v16 = vld [vmem:[#allocation63_spill] sm:$0xff] }
 0x484   :  { %4647 = vperm.xlu1 %5406, %v4381_v56   ;;  %10308 = vst [vmem:[#allocation186_spill] sm:$0xff] %v8694_v5  ;;  %v4383_v4 = vmul.f32 0.03125, %v8694_v5  ;;  %10313 = vst [vmem:[#allocation187_spill] sm:$0xff] %v8728_v23  ;;  %vm3883_vm3 = vcmp.gt.f32.partialorder %v3819_v24, 0.0 }
 0x485   :  { %10303 = vst [vmem:[#allocation49_spill] sm:$0xff] %v8671_v6  ;;  %v8678_v37 = vpop.permute.xlu1 %4542  ;;  %v4011_v56 = vmul.f32 1.442695, %v3947_v21  ;;  %v10310_v21 = vld [vmem:[#allocation68_spill] sm:$0xff] }
 0x486   :  { %10306 = vst [vmem:[#allocation51_spill] sm:$0xff] %v8678_v37  ;;  %v8684_v8 = vpop.permute.xlu0 %3239 }
 0x487   :  { %3283 = vrot.lane.b32.xlu0 %v8489_v28, %s5749_s3  ;;  %5589 = vpow2.f32 %v4011_v56 }
 0x488   :  { %3281 = vrot.lane.b32.xlu1 %v8470_v3, %s5749_s3 }
 0x489   :  { %v8690_v2 = vpop.permute.xlu1 %3237 }
 0x48a   :  { %v3376_v11 = vpop.permute.xlu0 %3375 }
 0x48b   :  { %4662 = vperm.xlu0 %5407, %v4384_v62   ;;  %v3501_v61 = vadd.f32 %v3376_v11, %v8274_v47  ;;  %v8717_v47 = vadd.f32 %v8512_v1, %v7742_v35  ;;  %v8733_v1 = vadd.f32 %v8626_v18, %v7890_v59 }
 0x48c   :  { %3417 = vrot.lane.b32.xlu1 %v8698_v52, %s5751_s6 }
 0x48d   :  { %v3374_v58 = vpop.permute.xlu1 %3373  ;;  %v8713_v62 = vadd.f32 %v10310_v21, %v3501_v61  ;;  %10311 = vst [vmem:[#allocation62_spill] sm:$0xff] %v8717_v47 }
 0x48e   :  { %v3500_v55 = vadd.f32 %v3374_v58, %v8258_v14  ;;  %v4385_v58 = vmul.f32 0.03125, %v8728_v23 }
 0x48f   :  { %3419 = vrot.lane.b32.xlu0 %v8706_v17, %s5751_s6  ;;  %v3949_v14 = vmin.f32 %v8713_v62, 0.0  ;;  %vm3885_vm5 = vcmp.gt.f32.partialorder %v8713_v62, 0.0 }
 0x490   :  { %v3820_v32 = vadd.f32 %v10309_v9, %v3500_v55  ;;  %4657 = vperm.xlu1 %5406, %v4383_v4   ;;  %v4386_v4 = vmul.f32 0.03125, %v8717_v47 }
 0x491   :  { %v5590_v56 = vpop.eup %5589  ;;  %v4015_v61 = vmul.f32 1.442695, %v3949_v14 }
 0x492   :  { %v3948_v11 = vmin.f32 %v3820_v32, 0.0  ;;  %v8719_v5 = vpop.permute.xlu1 %4552  ;;  %v5175_v59 = vadd.f32 -1.0, %v5590_v56  ;;  %v3052_v56 = vand.u32 2147483647, %v10317_v16  ;;  %vm3884_vm4 = vcmp.gt.f32.partialorder %v3820_v32, 0.0 }
 0x493   :  { %10312 = vst [vmem:[#allocation68_spill] sm:$0xff] %v8719_v5  ;;  %3287 = vrot.lane.b32.xlu0 %v8521_v53, %s5749_s3 }
 0x494   :  { %v4013_v63 = vmul.f32 1.442695, %v3948_v11  ;;  %3285 = vrot.lane.b32.xlu1 %v8498_v26, %s5749_s3  ;;  %v10315_v11 = vld [vmem:[#allocation64_spill] sm:$0xff]  ;;  %v4203_v23 = vsel %vm3883_vm3, %v3819_v24, %v5175_v59 }
 0x496   :  { %5591 = vpow2.f32 %v4013_v63  ;;  %v8735_v55 = vpop.permute.xlu1 %3241 }
 0x497   :  { %4672 = vperm.xlu0 %5407, %v4386_v4   ;;  %5593 = vpow2.f32 %v4015_v61  ;;  %v8758_v61 = vadd.f32 %v8635_v25, %v7947_v31  ;;  %v10319_v31 = vld [vmem:[#allocation67_spill] sm:$0xff] }
 0x498   :  { %3421 = vrot.lane.b32.xlu1 %v8733_v1, %s5751_s6 }
 0x49a   :  { %v3378_v9 = vpop.permute.xlu1 %3377  ;;  %v8744_v21 = vpop.permute.xlu0 %4557 }
 0x49b   :  { %10314 = vst [vmem:[#allocation188_spill] sm:$0xff] %v8744_v21  ;;  %v3502_v18 = vadd.f32 %v3378_v9, %v8292_v44  ;;  %3423 = vrot.lane.b32.xlu0 %v8742_v54, %s5751_s6  ;;  %v3051_v44 = vand.u32 2147483647, %v10316_v15  ;;  %v8762_v9 = vadd.f32 %v8663_v27, %v7921_v33 }
 0x49c   :  { %4667 = vperm.xlu1 %5406, %v4385_v58  }
 0x49d   :  { %v3822_v63 = vadd.f32 %v10315_v11, %v3502_v18  ;;  %v4267_v59 = vmul.f32 %v4203_v23, %v3051_v44 }
 0x49e   :  { %v3244_v14 = vpop.permute.xlu0 %3243 }
 0x49f   :  { %v3950_v47 = vmin.f32 %v3822_v63, 0.0  ;;  %3291 = vrot.lane.b32.xlu0 %v8553_v43, %s5749_s3  ;;  %v8778_v23 = vadd.f32 %v8243_v7, %v4267_v59  ;;  %vm3886_vm6 = vcmp.gt.f32.partialorder %v3822_v63, 0.0 }
 0x4a0   :  { %v5592_v4 = vpop.eup %5591  ;;  %3289 = vrot.lane.b32.xlu1 %v8530_v19, %s5749_s3 }
 0x4a1   :  { %v5176_v58 = vadd.f32 -1.0, %v5592_v4  ;;  %v4017_v24 = vmul.f32 1.442695, %v3950_v47  ;;  %v5594_v25 = vpop.eup %5593 }
 0x4a2   :  { %v3380_v21 = vpop.permute.xlu0 %3379  ;;  %v5177_v7 = vadd.f32 -1.0, %v5594_v25 }
 0x4a3   :  { %v4204_v18 = vsel %vm3884_vm4, %v3820_v32, %v5176_v58  ;;  %v8764_v11 = vpop.permute.xlu1 %4562  ;;  %5595 = vpow2.f32 %v4017_v24  ;;  %v3503_v15 = vadd.f32 %v3380_v21, %v8302_v20  ;;  %3427 = vrot.lane.b32.xlu0 %v8758_v61, %s5751_s6  ;;  %v10322_v58 = vld [vmem:[#allocation66_spill] sm:$0xff] }
 0x4a4   :  { %10318 = vst [vmem:[#allocation64_spill] sm:$0xff] %v8764_v11  ;;  %v4268_v5 = vmul.f32 %v4204_v18, %v3052_v56  ;;  %3425 = vrot.lane.b32.xlu1 %v8762_v9, %s5751_s6  ;;  %v3053_v24 = vand.u32 2147483647, %v10322_v58  ;;  %v10365_v11 = vld [vmem:[#allocation84_spill] sm:$0xff] }
 0x4a5   :  { %v8772_v33 = vadd.f32 %v10319_v31, %v3503_v15  ;;  %v10324_v15 = vld [vmem:[#allocation69_spill] sm:$0xff] }
 0x4a6   :  { %v8775_v27 = vadd.f32 %v8251_v50, %v4268_v5  ;;  %v3248_v47 = vpop.permute.xlu0 %3247  ;;  %v8789_v50 = vadd.f32 %v8684_v8, %v7981_v57  ;;  %v8793_v5 = vadd.f32 %v8690_v2, %v7955_v60  ;;  %v4205_v60 = vsel %vm3885_vm5, %v8713_v62, %v5177_v7  ;;  %v10321_v8 = vld [vmem:[#allocation72_spill] sm:$0xff] }
 0x4a7   :  { %v3246_v32 = vpop.permute.xlu1 %3245  ;;  %v3951_v20 = vmin.f32 %v8772_v33, 0.0  ;;  %3295 = vrot.lane.b32.xlu0 %v8588_v12, %s5749_s3  ;;  %v3054_v31 = vand.u32 2147483647, %v10324_v15  ;;  %v4269_v62 = vmul.f32 %v4205_v60, %v3053_v24  ;;  %v8819_v7 = vadd.f32 %v8735_v55, %v7987_v48 }
 0x4a8   :  { %3293 = vrot.lane.b32.xlu1 %v8566_v42, %s5749_s3  ;;  %vm3887_vm7 = vcmp.gt.f32.partialorder %v8772_v33, 0.0 }
 0x4a9   :  { %v4019_v4 = vmul.f32 1.442695, %v3951_v20  ;;  %v8833_v48 = vadd.f32 %v8267_v38, %v4269_v62 }
 0x4aa   :  { %v8795_v16 = vpop.permute.xlu0 %4572 }
 0x4ab   :  { %v3382_v44 = vpop.permute.xlu1 %3381  ;;  %10320 = vst [vmem:[#allocation21_spill] sm:$0xff] %v8795_v16  ;;  %5597 = vpow2.f32 %v4019_v4  ;;  %3431 = vrot.lane.b32.xlu0 %v8789_v50, %s5751_s6 }
 0x4ac   :  { %v3504_v56 = vadd.f32 %v3382_v44, %v8324_v36  ;;  %3429 = vrot.lane.b32.xlu1 %v8793_v5, %s5751_s6 }
 0x4ad   :  { %v5596_v57 = vpop.eup %5595 }
 0x4ae   :  { %v8805_v2 = vadd.f32 %v10321_v8, %v3504_v56  ;;  %v5178_v59 = vadd.f32 -1.0, %v5596_v57  ;;  %v3384_v36 = vpop.permute.xlu0 %3383  ;;  %v8822_v56 = vadd.f32 %v3244_v14, %v8011_v0  ;;  %v10325_v8 = vld [vmem:[#allocation70_spill] sm:$0xff] }
 0x4af   :  { %v8808_v18 = vpop.permute.xlu1 %4567  ;;  %v3505_v20 = vadd.f32 %v3384_v36, %v8332_v45  ;;  %3299 = vrot.lane.b32.xlu0 %v8624_v29, %s5749_s3 }
 0x4b0   :  { %10323 = vst [vmem:[#allocation63_spill] sm:$0xff] %v8808_v18  ;;  %v3952_v25 = vmin.f32 %v8805_v2, 0.0  ;;  %3297 = vrot.lane.b32.xlu1 %v8598_v51, %s5749_s3  ;;  %v4206_v4 = vsel %vm3886_vm6, %v3822_v63, %v5178_v59  ;;  %vm3888_vm8 = vcmp.gt.f32.partialorder %v8805_v2, 0.0  ;;  %v10352_v18 = vld [vmem:[#allocation27_spill] sm:$0xff]  ;;  %vm4811_vm6 = vcmask 261120  }
 0x4b1   :  { %v4270_v44 = vmul.f32 %v4206_v4, %v3054_v31  ;;  %v8825_v58 = vadd.f32 %v10325_v8, %v3505_v20  ;;  %v8851_v31 = vadd.f32 %v3248_v47, %v8047_v34  ;;  %v10332_v8 = vld [vmem:[#allocation26_spill] sm:$0xff] }
 0x4b2   :  { %v4021_v57 = vmul.f32 1.442695, %v3952_v25  ;;  %v3252_v36 = vpop.permute.xlu0 %3251  ;;  %v10328_v25 = vld [vmem:[#allocation78_spill] sm:$0xff] }
 0x4b3   :  { %v3250_v45 = vpop.permute.xlu1 %3249  ;;  %v3953_v15 = vmin.f32 %v8825_v58, 0.0  ;;  %3435 = vrot.lane.b32.xlu0 %v8822_v56, %s5751_s6  ;;  %v8836_v0 = vadd.f32 %v8282_v46, %v4270_v44  ;;  %v8848_v46 = vadd.f32 %v3246_v32, %v8017_v22  ;;  %10327 = vst [vmem:[#allocation72_spill] sm:$0xff] %v8851_v31  ;;  %v10330_v44 = vld [vmem:[#allocation159_spill] sm:$0xff]  ;;  %vm3889_vm9 = vcmp.gt.f32.partialorder %v8825_v58, 0.0 }
 0x4b4   :  { %5599 = vpow2.f32 %v4021_v57  ;;  %3433 = vrot.lane.b32.xlu1 %v8819_v7, %s5751_s6  ;;  %v10331_v32 = vld [vmem:[#allocation71_spill] sm:$0xff] }
 0x4b5   :  { %v5598_v55 = vpop.eup %5597  ;;  %v4023_v63 = vmul.f32 1.442695, %v3953_v15  ;;  %v3055_v47 = vand.u32 2147483647, %v10331_v32  ;;  %v8868_v15 = vadd.f32 %v3252_v36, %v10332_v8 }
 0x4b6   :  { %v8838_v60 = vpop.permute.xlu0 %4582  ;;  %v5179_v38 = vadd.f32 -1.0, %v5598_v55 }
 0x4b7   :  { %v3386_v14 = vpop.permute.xlu1 %3385  ;;  %10326 = vst [vmem:[#allocation67_spill] sm:$0xff] %v8838_v60  ;;  %5601 = vpow2.f32 %v4023_v63  ;;  %3303 = vrot.lane.b32.xlu0 %v8661_v41, %s5749_s3  ;;  %10333 = vst [vmem:[#allocation69_spill] sm:$0xff] %v8868_v15  ;;  %v10334_v63 = vld [vmem:[#allocation76_spill] sm:$0xff] }
 0x4b8   :  { %v3506_v59 = vadd.f32 %v3386_v14, %v8357_v10  ;;  %3301 = vrot.lane.b32.xlu1 %v8633_v30, %s5749_s3  ;;  %v4207_v34 = vsel %vm3887_vm7, %v8772_v33, %v5179_v38 }
 0x4b9   :  { %v4271_v21 = vmul.f32 %v4207_v34, %v3055_v47  ;;  %v10338_v34 = vld [vmem:[#allocation25_spill] sm:$0xff] }
 0x4ba   :  { %v8854_v20 = vadd.f32 %v10328_v25, %v3506_v59  ;;  %v3388_v4 = vpop.permute.xlu0 %3387  ;;  %v10335_v59 = vld [vmem:[#allocation75_spill] sm:$0xff] }
 0x4bb   :  { %v8856_v62 = vpop.permute.xlu1 %4577  ;;  %v3507_v57 = vadd.f32 %v3388_v4, %v10330_v44  ;;  %3439 = vrot.lane.b32.xlu0 %v8851_v31, %s5751_s6  ;;  %v3056_v25 = vand.u32 2147483647, %v10335_v59 }
 0x4bc   :  { %10329 = vst [vmem:[#allocation66_spill] sm:$0xff] %v8856_v62  ;;  %v3954_v10 = vmin.f32 %v8854_v20, 0.0  ;;  %3437 = vrot.lane.b32.xlu1 %v8848_v46, %s5751_s6  ;;  %vm3890_vm10 = vcmp.gt.f32.partialorder %v8854_v20, 0.0 }
 0x4bd   :  { %v8871_v14 = vadd.f32 %v10334_v63, %v3507_v57  ;;  %v10336_v57 = vld [vmem:[#allocation23_spill] sm:$0xff]  ;;  %v10341_v63 = vld [vmem:[#allocation166_spill] sm:$0xff] }
 0x4be   :  { %v5600_v22 = vpop.eup %5599  ;;  %v4025_v55 = vmul.f32 1.442695, %v3954_v10  ;;  %v3256_v24 = vpop.permute.xlu0 %3255 }
 0x4bf   :  { %v5180_v4 = vadd.f32 -1.0, %v5600_v22  ;;  %v3254_v44 = vpop.permute.xlu1 %3253  ;;  %v3955_v33 = vmin.f32 %v8871_v14, 0.0  ;;  %3443 = vrot.lane.b32.xlu0 %v8868_v15, %s5751_s6  ;;  %v8882_v22 = vadd.f32 %v3250_v45, %v10336_v57  ;;  %v8885_v47 = vadd.f32 %v3256_v24, %v10338_v34  ;;  %v10343_v45 = vld [vmem:[#allocation146_spill] sm:$0xff]  ;;  %v10351_v34 = vld [vmem:[#allocation81_spill] sm:$0xff] }
 0x4c0   :  { %5603 = vpow2.f32 %v4025_v55  ;;  %3305 = vrot.lane.b32.xlu1 %v8671_v6, %s5749_s3  ;;  %v10346_v57 = vld [vmem:[#allocation82_spill] sm:$0xff]  ;;  %vm3891_vm11 = vcmp.gt.f32.partialorder %v8871_v14, 0.0 }
 0x4c1   :  { %v4208_v36 = vsel %vm3888_vm8, %v8805_v2, %v5180_v4  ;;  %v5602_v38 = vpop.eup %5601  ;;  %10337 = vst [vmem:[#allocation70_spill] sm:$0xff] %v8882_v22  ;;  %v4027_v32 = vmul.f32 1.442695, %v3955_v33  ;;  %10339 = vst [vmem:[#allocation78_spill] sm:$0xff] %v8885_v47  ;;  %v10342_v2 = vld [vmem:[#allocation144_spill] sm:$0xff] }
 0x4c2   :  { %v4272_v10 = vmul.f32 %v4208_v36, %v3056_v25  ;;  %v8887_v55 = vpop.permute.xlu0 %4592  ;;  %v8895_v25 = vadd.f32 %v10342_v2, %v4271_v21  ;;  %v5181_v24 = vadd.f32 -1.0, %v5602_v38  ;;  %v10344_v33 = vld [vmem:[#allocation28_spill] sm:$0xff] }
 0x4c3   :  { %v3390_v8 = vpop.permute.xlu1 %3389  ;;  %10340 = vst [vmem:[#allocation159_spill] sm:$0xff] %v8887_v55  ;;  %5605 = vpow2.f32 %v4027_v32  ;;  %3447 = vrot.lane.b32.xlu0 %v8885_v47, %s5751_s6  ;;  %v8901_v36 = vadd.f32 %v3254_v44, %v10344_v33  ;;  %v10348_v21 = vld [vmem:[#allocation168_spill] sm:$0xff]  ;;  %v10350_v33 = vld [vmem:[#allocation79_spill] sm:$0xff] }
 0x4c4   :  { %v3508_v59 = vadd.f32 %v3390_v8, %v10341_v63  ;;  %3441 = vrot.lane.b32.xlu1 %v8882_v22, %s5751_s6  ;;  %v8898_v4 = vadd.f32 %v10343_v45, %v4272_v10  ;;  %v4209_v38 = vsel %vm3889_vm9, %v8825_v58, %v5181_v24  ;;  %v10349_v10 = vld [vmem:[#allocation77_spill] sm:$0xff]  ;;  %v10385_v22 = vld [vmem:[#allocation91_spill] sm:$0xff] }
 0x4c5   :  { %10345 = vst [vmem:[#allocation71_spill] sm:$0xff] %v8901_v36  ;;  %v3057_v45 = vand.u32 2147483647, %v10349_v10 }
 0x4c6   :  { %v3828_v32 = vadd.f32 %v10346_v57, %v3508_v59  ;;  %v3392_v63 = vpop.permute.xlu0 %3391 }
 0x4c7   :  { %v8906_v8 = vpop.permute.xlu1 %4587  ;;  %v3509_v2 = vadd.f32 %v3392_v63, %v10348_v21  ;;  %v4273_v63 = vmul.f32 %v4209_v38, %v3057_v45 }
 0x4c8   :  { %10347 = vst [vmem:[#allocation26_spill] sm:$0xff] %v8906_v8  ;;  %v3956_v55 = vmin.f32 %v3828_v32, 0.0  ;;  %3445 = vrot.lane.b32.xlu1 %v8901_v36, %s5751_s6  ;;  %v3058_v8 = vand.u32 2147483647, %v10351_v34  ;;  %vm3892_vm12 = vcmp.gt.f32.partialorder %v3828_v32, 0.0 }
 0x4c9   :  { %v8915_v57 = vadd.f32 %v10350_v33, %v3509_v2 }
 0x4ca   :  { %v5604_v44 = vpop.eup %5603  ;;  %v4029_v59 = vmul.f32 1.442695, %v3956_v55  ;;  %v3260_v16 = vpop.permute.xlu0 %3259  ;;  %v10354_v55 = vld [vmem:[#allocation30_spill] sm:$0xff] }
 0x4cb   :  { %v5182_v60 = vadd.f32 -1.0, %v5604_v44  ;;  %v3258_v62 = vpop.permute.xlu1 %3257  ;;  %v3957_v21 = vmin.f32 %v8915_v57, 0.0  ;;  %v8925_v10 = vadd.f32 %v3260_v16, %v10354_v55  ;;  %v10359_v16 = vld [vmem:[#allocation149_spill] sm:$0xff]  ;;  %vm3893_vm13 = vcmp.gt.f32.partialorder %v8915_v57, 0.0 }
 0x4cc   :  { %5607 = vpow2.f32 %v4029_v59  ;;  %v8921_v58 = vadd.f32 %v3258_v62, %v10352_v18  ;;  %v10357_v18 = vld [vmem:[#allocation172_spill] sm:$0xff]  ;;  %v10358_v59 = vld [vmem:[#allocation147_spill] sm:$0xff] }
 0x4cd   :  { %v4210_v24 = vsel %vm3890_vm10, %v8854_v20, %v5182_v60  ;;  %10355 = vst [vmem:[#allocation75_spill] sm:$0xff] %v8925_v10  ;;  %v5606_v2 = vpop.eup %5605  ;;  %v4031_v34 = vmul.f32 1.442695, %v3957_v21  ;;  %3451 = vrot.lane.b32.xlu1 %v8925_v10, %s5751_s6  ;;  %v8935_v60 = vadd.f32 %v10358_v59, %v4273_v63 }
 0x4ce   :  { %10353 = vst [vmem:[#allocation76_spill] sm:$0xff] %v8921_v58  ;;  %v4274_v33 = vmul.f32 %v4210_v24, %v3058_v8  ;;  %3449 = vrot.lane.b32.xlu0 %v8921_v58, %s5751_s6  ;;  %v8931_v44 = vpop.permute.xlu0 %4602  ;;  %v5183_v45 = vadd.f32 -1.0, %v5606_v2  ;;  %v10360_v8 = vld [vmem:[#allocation12_spill] sm:$0xff]  ;;  %v3060_v24 = vand.u32 2147483647, %v10365_v11 }
 0x4cf   :  { %v3394_v38 = vpop.permute.xlu1 %3393  ;;  %10356 = vst [vmem:[#allocation23_spill] sm:$0xff] %v8931_v44  ;;  %5609 = vpow2.f32 %v4031_v34 }
 0x4d0   :  { %v3510_v62 = vadd.f32 %v3394_v38, %v10357_v18  ;;  %v8938_v20 = vadd.f32 %v10359_v16, %v4274_v33  ;;  %v4211_v38 = vsel %vm3891_vm11, %v8871_v14, %v5183_v45  ;;  %v10362_v18 = vld [vmem:[#allocation53_spill] sm:$0xff]  ;;  %v10363_v33 = vld [vmem:[#allocation83_spill] sm:$0xff]  ;;  %v10366_v45 = vld [vmem:[#allocation32_spill] sm:$0xff] }
 0x4d1   :  { %v3059_v16 = vand.u32 2147483647, %v10363_v33 }
 0x4d2   :  { %v8941_v21 = vadd.f32 %v10360_v8, %v3510_v62  ;;  %v3396_v2 = vpop.permute.xlu0 %3395  ;;  %v10364_v62 = vld [vmem:[#allocation8_spill] sm:$0xff] }
 0x4d3   :  { %v8946_v55 = vpop.permute.xlu1 %4597  ;;  %v3511_v59 = vadd.f32 %v3396_v2, %v10362_v18  ;;  %v4275_v10 = vmul.f32 %v4211_v38, %v3059_v16  ;;  %v10368_v18 = vld [vmem:[#allocation29_spill] sm:$0xff]  ;;  %v10370_v16 = vld [vmem:[#allocation151_spill] sm:$0xff] }
 0x4d4   :  { %10361 = vst [vmem:[#allocation25_spill] sm:$0xff] %v8946_v55  ;;  %v3958_v63 = vmin.f32 %v8941_v21, 0.0  ;;  %vm3894_vm14 = vcmp.gt.f32.partialorder %v8941_v21, 0.0 }
 0x4d5   :  { %v8953_v8 = vadd.f32 %v10364_v62, %v3511_v59  ;;  %v10373_v62 = vld [vmem:[#allocation152_spill] sm:$0xff] }
 0x4d6   :  { %v5608_v34 = vpop.eup %5607  ;;  %v4033_v44 = vmul.f32 1.442695, %v3958_v63  ;;  %v3264_v55 = vpop.permute.xlu0 %3263 }
 0x4d7   :  { %v5184_v49 = vadd.f32 -1.0, %v5608_v34  ;;  %v3262_v58 = vpop.permute.xlu1 %3261  ;;  %v3959_v14 = vmin.f32 %v8953_v8, 0.0  ;;  %v8961_v33 = vadd.f32 %v3264_v55, %v10368_v18  ;;  %v8968_v34 = vadd.f32 %v10370_v16, %v4275_v10  ;;  %v10375_v18 = vld [vmem:[#allocation85_spill] sm:$0xff] }
 0x4d8   :  { %5611 = vpow2.f32 %v4033_v44  ;;  %v8958_v36 = vadd.f32 %v3262_v58, %v10366_v45  ;;  %v10371_v58 = vld [vmem:[#allocation42_spill] sm:$0xff]  ;;  %vm3895_vm15 = vcmp.gt.f32.partialorder %v8953_v8, 0.0 }
 0x4d9   :  { %v4212_v2 = vsel %vm3892_vm12, %v3828_v32, %v5184_v49  ;;  %10369 = vst [vmem:[#allocation144_spill] sm:$0xff] %v8961_v33  ;;  %v4035_v59 = vmul.f32 1.442695, %v3959_v14  ;;  %v5610_v11 = vpop.eup %5609  ;;  %3455 = vrot.lane.b32.xlu1 %v8961_v33, %s5751_s6  ;;  %v10372_v32 = vld [vmem:[#allocation54_spill] sm:$0xff]  ;;  %v10381_v33 = vld [vmem:[#allocation87_spill] sm:$0xff] }
 0x4da   :  { %10367 = vst [vmem:[#allocation166_spill] sm:$0xff] %v8958_v36  ;;  %v4276_v63 = vmul.f32 %v4212_v2, %v3060_v24  ;;  %3453 = vrot.lane.b32.xlu0 %v8958_v36, %s5751_s6  ;;  %v3400_v44 = vpop.permute.xlu0 %3399  ;;  %v5185_v14 = vadd.f32 -1.0, %v5610_v11  ;;  %v10374_v45 = vld [vmem:[#allocation18_spill] sm:$0xff]  ;;  %v3062_v37 = vand.u32 2147483647, %v10381_v33 }
 0x4db   :  { %v3398_v38 = vpop.permute.xlu1 %3397  ;;  %5613 = vpow2.f32 %v4035_v59  ;;  %v3513_v55 = vadd.f32 %v3400_v44, %v10372_v32  ;;  %v10378_v11 = vld [vmem:[#allocation34_spill] sm:$0xff] }
 0x4dc   :  { %v3512_v49 = vadd.f32 %v3398_v38, %v10371_v58  ;;  %v8973_v24 = vadd.f32 %v10373_v62, %v4276_v63  ;;  %v10376_v63 = vld [vmem:[#allocation31_spill] sm:$0xff]  ;;  %v4213_v32 = vsel %vm3893_vm13, %v8915_v57, %v5185_v14  ;;  %v10383_v14 = vld [vmem:[#allocation41_spill] sm:$0xff] }
 0x4dd   :  { %v8979_v36 = vadd.f32 %v10375_v18, %v3513_v55 }
 0x4de   :  { %v8976_v2 = vadd.f32 %v10374_v45, %v3512_v49  ;;  %v3268_v16 = vpop.permute.xlu0 %3267  ;;  %v10380_v45 = vld [vmem:[#allocation86_spill] sm:$0xff] }
 0x4df   :  { %v3266_v10 = vpop.permute.xlu1 %3265  ;;  %v3961_v38 = vmin.f32 %v8979_v36, 0.0  ;;  %v8990_v58 = vadd.f32 %v3268_v16, %v10378_v11  ;;  %v3061_v18 = vand.u32 2147483647, %v10380_v45  ;;  %v10382_v16 = vld [vmem:[#allocation57_spill] sm:$0xff]  ;;  %v10384_v45 = vld [vmem:[#allocation16_spill] sm:$0xff]  ;;  %vm3897_vm1 = vcmp.gt.f32.partialorder %v8979_v36, 0.0 }
 0x4e0   :  { %v3960_v59 = vmin.f32 %v8976_v2, 0.0  ;;  %v8987_v44 = vadd.f32 %v3266_v10, %v10376_v63  ;;  %vm3896_vm0 = vcmp.gt.f32.partialorder %v8976_v2, 0.0 }
 0x4e1   :  { %10379 = vst [vmem:[#allocation28_spill] sm:$0xff] %v8990_v58  ;;  %v4039_v62 = vmul.f32 1.442695, %v3961_v38  ;;  %3459 = vrot.lane.b32.xlu1 %v8990_v58, %s5751_s6  ;;  %v4277_v38 = vmul.f32 %v4213_v32, %v3061_v18  ;;  %v10386_v32 = vld [vmem:[#allocation36_spill] sm:$0xff] }
 0x4e2   :  { %10377 = vst [vmem:[#allocation146_spill] sm:$0xff] %v8987_v44  ;;  %v5612_v49 = vpop.eup %5611  ;;  %v4037_v55 = vmul.f32 1.442695, %v3960_v59  ;;  %3457 = vrot.lane.b32.xlu0 %v8987_v44, %s5751_s6  ;;  %v3404_v63 = vpop.permute.xlu0 %3403 }
 0x4e3   :  { %v5186_v47 = vadd.f32 -1.0, %v5612_v49  ;;  %v3402_v10 = vpop.permute.xlu1 %3401  ;;  %v3515_v59 = vadd.f32 %v3404_v63, %v10383_v14 }
 0x4e4   :  { %5615 = vpow2.f32 %v4037_v55  ;;  %v3514_v57 = vadd.f32 %v3402_v10, %v10382_v16 }
 0x4e5   :  { %v4214_v11 = vsel %vm3894_vm14, %v8941_v21, %v5186_v47  ;;  %5617 = vpow2.f32 %v4039_v62  ;;  %v5614_v33 = vpop.eup %5613  ;;  %v9007_v58 = vadd.f32 %v10385_v22, %v3515_v59  ;;  %v10388_v47 = vld [vmem:[#allocation154_spill] sm:$0xff] }
 0x4e6   :  { %v4278_v49 = vmul.f32 %v4214_v11, %v3062_v37  ;;  %v9004_v44 = vadd.f32 %v10384_v45, %v3514_v57  ;;  %v9009_v6 = vpop.permute.xlu0 %3271  ;;  %v5187_v55 = vadd.f32 -1.0, %v5614_v33  ;;  %v9017_v21 = vadd.f32 %v10388_v47, %v4277_v38  ;;  %v10390_v37 = vld [vmem:[#allocation158_spill] sm:$0xff]  ;;  %v10395_v47 = vld [vmem:[#allocation13_spill] sm:$0xff] }
 0x4e7   :  { %v3270_v15 = vpop.permute.xlu1 %3269  ;;  %v3963_v63 = vmin.f32 %v9007_v58, 0.0  ;;  %v10392_v11 = vld [vmem:[#allocation10_spill] sm:$0xff]  ;;  %vm3899_vm3 = vcmp.gt.f32.partialorder %v9007_v58, 0.0 }
 0x4e8   :  { %v3962_v10 = vmin.f32 %v9004_v44, 0.0  ;;  %v9014_v18 = vadd.f32 %v3270_v15, %v10386_v32  ;;  %10389 = vst [vmem:[#allocation168_spill] sm:$0xff] %v9017_v21  ;;  %v9020_v62 = vadd.f32 %v10390_v37, %v4278_v49  ;;  %v4215_v15 = vsel %vm3895_vm15, %v8953_v8, %v5187_v55  ;;  %v10393_v49 = vld [vmem:[#allocation89_spill] sm:$0xff] }
 0x4e9   :  { %v4043_v22 = vmul.f32 1.442695, %v3963_v63  ;;  %v3063_v45 = vand.u32 2147483647, %v10393_v49  ;;  %v10394_v63 = vld [vmem:[#allocation9_spill] sm:$0xff]  ;;  %vm3898_vm2 = vcmp.gt.f32.partialorder %v9004_v44, 0.0 }
 0x4ea   :  { %10387 = vst [vmem:[#allocation82_spill] sm:$0xff] %v9014_v18  ;;  %10391 = vst [vmem:[#allocation77_spill] sm:$0xff] %v9020_v62  ;;  %v4041_v16 = vmul.f32 1.442695, %v3962_v10  ;;  %3461 = vrot.lane.b32.xlu0 %v9014_v18, %s5751_s6  ;;  %v3408_v14 = vpop.permute.xlu0 %3407  ;;  %v10403_v62 = vld [vmem:[#allocation38_spill] sm:$0xff] }
 0x4eb   :  { %v3406_v57 = vpop.permute.xlu1 %3405  ;;  %v3517_v33 = vadd.f32 %v3408_v14, %v10392_v11  ;;  %v4279_v31 = vmul.f32 %v4215_v15, %v3063_v45  ;;  %v10398_v15 = vld [vmem:[#allocation176_spill] sm:$0xff] }
 0x4ec   :  { %5619 = vpow2.f32 %v4041_v16  ;;  %v3516_v38 = vadd.f32 %v3406_v57, %v8563_v40  ;;  %v10397_v40 = vld [vmem:[#allocation90_spill] sm:$0xff] }
 0x4ed   :  { %5621 = vpow2.f32 %v4043_v22  ;;  %v9035_v37 = vadd.f32 %v10395_v47, %v3517_v33  ;;  %v3064_v55 = vand.u32 2147483647, %v10397_v40  ;;  %v9048_v33 = vadd.f32 %v10398_v15, %v7742_v35  ;;  %v10402_v40 = vld [vmem:[#allocation180_spill] sm:$0xff] }
 0x4ee   :  { %v5616_v10 = vpop.eup %5615  ;;  %v9032_v32 = vadd.f32 %v10394_v63, %v3516_v38  ;;  %v9039_v8 = vpop.permute.xlu0 %4637  ;;  %v10400_v63 = vld [vmem:[#allocation160_spill] sm:$0xff] }
 0x4ef   :  { %v5618_v18 = vpop.eup %5617  ;;  %v5188_v59 = vadd.f32 -1.0, %v5616_v10  ;;  %v9037_v21 = vpop.permute.xlu1 %3273  ;;  %10396 = vst [vmem:[#allocation79_spill] sm:$0xff] %v9039_v8  ;;  %v3965_v57 = vmin.f32 %v9035_v37, 0.0  ;;  %10399 = vst [vmem:[#allocation81_spill] sm:$0xff] %v9048_v33  ;;  %v9051_v47 = vadd.f32 %v10400_v63, %v4279_v31  ;;  %vm3901_vm5 = vcmp.gt.f32.partialorder %v9035_v37, 0.0 }
 0x4f0   :  { %v3964_v16 = vmin.f32 %v9032_v32, 0.0  ;;  %v5189_v38 = vadd.f32 -1.0, %v5618_v18  ;;  %vm3900_vm4 = vcmp.gt.f32.partialorder %v9032_v32, 0.0 }
 0x4f1   :  { %v4216_v22 = vsel %vm3896_vm0, %v8976_v2, %v5188_v59  ;;  %v4047_v49 = vmul.f32 1.442695, %v3965_v57  ;;  %10401 = vst [vmem:[#allocation27_spill] sm:$0xff] %v9051_v47  ;;  %v10405_v59 = vld [vmem:[#allocation164_spill] sm:$0xff]  ;;  %v10412_v47 = vld [vmem:[#allocation19_spill] sm:$0xff] }
 0x4f2   :  { %v4280_v14 = vmul.f32 %v4216_v22, %v3064_v55  ;;  %v4045_v11 = vmul.f32 1.442695, %v3964_v16  ;;  %v3276_v10 = vpop.permute.xlu0 %3275  ;;  %v4217_v16 = vsel %vm3897_vm1, %v8979_v36, %v5189_v38  ;;  %v10407_v22 = vld [vmem:[#allocation88_spill] sm:$0xff]  ;;  %v4388_v36 = vmul.f32 0.03125, %v9048_v33  ;;  %v10411_v38 = vld [vmem:[#allocation11_spill] sm:$0xff] }
 0x4f3   :  { %v3410_v45 = vpop.permute.xlu1 %3409  ;;  %v9055_v2 = vadd.f32 %v3276_v10, %v10403_v62 }
 0x4f4   :  { %5623 = vpow2.f32 %v4045_v11  ;;  %v3518_v8 = vadd.f32 %v3410_v45, %v10402_v40  ;;  %v9058_v55 = vadd.f32 %v10405_v59, %v4280_v14  ;;  %v10408_v11 = vld [vmem:[#allocation93_spill] sm:$0xff]  ;;  %v10409_v14 = vld [vmem:[#allocation94_spill] sm:$0xff] }
 0x4f5   :  { %10404 = vst [vmem:[#allocation30_spill] sm:$0xff] %v9055_v2  ;;  %5625 = vpow2.f32 %v4047_v49  ;;  %3467 = vrot.lane.b32.xlu0 %v9055_v2, %s5751_s6  ;;  %v3065_v15 = vand.u32 2147483647, %v10408_v11  ;;  %v3066_v45 = vand.u32 2147483647, %v10409_v14 }
 0x4f6   :  { %10406 = vst [vmem:[#allocation172_spill] sm:$0xff] %v9058_v55  ;;  %v5620_v18 = vpop.eup %5619  ;;  %v9063_v57 = vadd.f32 %v10407_v22, %v3518_v8  ;;  %v3412_v49 = vpop.permute.xlu0 %3411 }
 0x4f7   :  { %v5622_v62 = vpop.eup %5621  ;;  %v5190_v10 = vadd.f32 -1.0, %v5620_v18  ;;  %v9071_v63 = vpop.permute.xlu1 %4642  ;;  %v3519_v40 = vadd.f32 %v3412_v49, %v10411_v38  ;;  %v4281_v59 = vmul.f32 %v4217_v16, %v3065_v15  ;;  %v10413_v18 = vld [vmem:[#allocation56_spill] sm:$0xff] }
 0x4f8   :  { %10410 = vst [vmem:[#allocation147_spill] sm:$0xff] %v9071_v63  ;;  %v3966_v8 = vmin.f32 %v9063_v57, 0.0  ;;  %v5191_v31 = vadd.f32 -1.0, %v5622_v62  ;;  %v9083_v63 = vadd.f32 %v10413_v18, %v7742_v35  ;;  %v10415_v15 = vld [vmem:[#allocation40_spill] sm:$0xff]  ;;  %vm3902_vm7 = vcmp.gt.f32.partialorder %v9063_v57, 0.0 }
 0x4f9   :  { %v4218_v22 = vsel %vm3898_vm2, %v9004_v44, %v5190_v10  ;;  %v9079_v14 = vadd.f32 %v10412_v47, %v3519_v40  ;;  %4682 = vperm.xlu0 %5407, %v4388_v36   ;;  %v10419_v10 = vld [vmem:[#allocation167_spill] sm:$0xff]  ;;  %v10420_v36 = vld [vmem:[#allocation169_spill] sm:$0xff]  ;;  %v10421_v40 = vld [vmem:[#allocation98_spill] sm:$0xff] }
 0x4fa   :  { %v4282_v2 = vmul.f32 %v4218_v22, %v3066_v45  ;;  %v4049_v11 = vmul.f32 1.442695, %v3966_v8  ;;  %10414 = vst [vmem:[#allocation149_spill] sm:$0xff] %v9083_v63  ;;  %v3280_v55 = vpop.permute.xlu0 %3279  ;;  %v4219_v62 = vsel %vm3899_vm3, %v9007_v58, %v5191_v31  ;;  %v10417_v45 = vld [vmem:[#allocation37_spill] sm:$0xff]  ;;  %v9095_v49 = vadd.f32 %v10419_v10, %v4281_v59  ;;  %v10422_v18 = vld [vmem:[#allocation20_spill] sm:$0xff] }
 0x4fb   :  { %v3278_v33 = vpop.permute.xlu1 %3277  ;;  %v3967_v16 = vmin.f32 %v9079_v14, 0.0  ;;  %v9092_v47 = vadd.f32 %v3280_v55, %v10417_v45  ;;  %v3067_v22 = vand.u32 2147483647, %v10421_v40  ;;  %v4387_v58 = vmul.f32 0.03125, %v9083_v63  ;;  %v10425_v63 = vld [vmem:[#allocation59_spill] sm:$0xff] }
 0x4fc   :  { %5627 = vpow2.f32 %v4049_v11  ;;  %v9088_v44 = vadd.f32 %v3278_v33, %v10415_v15  ;;  %v9098_v8 = vadd.f32 %v10420_v36, %v4282_v2  ;;  %v3068_v15 = vand.u32 2147483647, %v10422_v18 }
 0x4fd   :  { %10418 = vst [vmem:[#allocation53_spill] sm:$0xff] %v9092_v47  ;;  %v4051_v11 = vmul.f32 1.442695, %v3967_v16  ;;  %3471 = vrot.lane.b32.xlu0 %v9092_v47, %s5751_s6  ;;  %v4283_v45 = vmul.f32 %v4219_v62, %v3067_v22  ;;  %vm3903_vm8 = vcmp.gt.f32.partialorder %v9079_v14, 0.0 }
 0x4fe   :  { %10416 = vst [vmem:[#allocation12_spill] sm:$0xff] %v9088_v44  ;;  %v5624_v38 = vpop.eup %5623  ;;  %3469 = vrot.lane.b32.xlu1 %v9088_v44, %s5751_s6  ;;  %v9107_v59 = vpop.permute.xlu0 %4652 }
 0x4ff   :  { %v5626_v33 = vpop.eup %5625  ;;  %v5192_v55 = vadd.f32 -1.0, %v5624_v38  ;;  %v3414_v31 = vpop.permute.xlu1 %3413  ;;  %10423 = vst [vmem:[#allocation83_spill] sm:$0xff] %v9107_v59  ;;  %5629 = vpow2.f32 %v4051_v11  ;;  %v10424_v38 = vld [vmem:[#allocation95_spill] sm:$0xff] }
 0x500   :  { %v3520_v16 = vadd.f32 %v3414_v31, %v8652_v39  ;;  %v5193_v36 = vadd.f32 -1.0, %v5626_v33  ;;  %v10428_v33 = vld [vmem:[#allocation39_spill] sm:$0xff]  ;;  %v10429_v31 = vld [vmem:[#allocation24_spill] sm:$0xff] }
 0x501   :  { %v4220_v10 = vsel %vm3900_vm4, %v9032_v32, %v5192_v55  ;;  %3717 = vrot.lane.b32.xlu0 %v10425_v63, %s5749_s3  ;;  %v10427_v32 = vld [vmem:[#allocation174_spill] sm:$0xff] }
 0x502   :  { %v4284_v40 = vmul.f32 %v4220_v10, %v3068_v15  ;;  %v9115_v18 = vadd.f32 %v10424_v38, %v3520_v16  ;;  %4677 = vperm.xlu1 %5406, %v4387_v58   ;;  %v3416_v62 = vpop.permute.xlu0 %3415  ;;  %v4731_v11 = vadd.f32 %v10427_v32, %v4283_v45  ;;  %v4221_v55 = vsel %vm3901_vm5, %v9035_v37, %v5193_v36  ;;  %v10430_v38 = vld [vmem:[#allocation92_spill] sm:$0xff] }
 0x503   :  { %v9120_v2 = vpop.permute.xlu1 %4647  ;;  %v3521_v39 = vadd.f32 %v3416_v62, %v8668_v13  ;;  %v3069_v16 = vand.u32 2147483647, %v10429_v31  ;;  %v10432_v45 = vpack.c.bf16 %v8775_v27, %v8778_v23 }
 0x504   :  { %10426 = vst [vmem:[#allocation8_spill] sm:$0xff] %v9120_v2  ;;  %v3968_v22 = vmin.f32 %v9115_v18, 0.0  ;;  %v4732_v15 = vadd.f32 %v10428_v33, %v4284_v40  ;;  %v10431_v2 = vld [vmem:[#allocation106_spill] sm:$0xff]  ;;  %v10433_v33 = vld [vmem:[#allocation173_spill] sm:$0xff]  ;;  %vm3904_vm9 = vcmp.gt.f32.partialorder %v9115_v18, 0.0 }
 0x505   :  { %v9129_v63 = vadd.f32 %v10430_v38, %v3521_v39  ;;  %v3070_v47 = vand.u32 2147483647, %v10431_v2  ;;  %v4816_v37 = vsel %vm4811_vm6, %v10432_v45, 0  ;;  %v4285_v36 = vmul.f32 %v4221_v55, %v3069_v16  ;;  %v10435_v55 = vld [vmem:[#allocation22_spill] sm:$0xff] }
 0x506   :  { %v5628_v58 = vpop.eup %5627  ;;  %v4053_v10 = vmul.f32 1.442695, %v3968_v22  ;;  %v4787_v59 = vpack.c.bf16 %v4732_v15, %v4731_v11  ;;  %v3284_v62 = vpop.permute.xlu0 %3283  ;;  %v10437_v16 = vld [vmem:[#allocation74_spill] sm:$0xff] }
 0x507   :  { %v5194_v44 = vadd.f32 -1.0, %v5628_v58  ;;  %v3282_v13 = vpop.permute.xlu1 %3281  ;;  %v3969_v40 = vmin.f32 %v9129_v63, 0.0  ;;  %v9144_v39 = vadd.f32 %v3284_v62, %v8489_v28  ;;  %v10436_v58 = vld [vmem:[#allocation7_spill] sm:$0xff]  ;;  %v10438_v62 = vpack.c.bf16 %v8836_v0, %v8833_v48 }
 0x508   :  { %5631 = vpow2.f32 %v4053_v10  ;;  %v9139_v22 = vadd.f32 %v3282_v13, %v8470_v3  ;;  %5383 = vmatprep.subr.msk.bf16.mxu0 %vm4811_vm6, %v4787_v59  ;;  %vm3905_vm10 = vcmp.gt.f32.partialorder %v9129_v63, 0.0 }
 0x509   :  { %v4222_v2 = vsel %vm3902_vm7, %v9063_v57, %v5194_v44  ;;  %5277 = vmatpush3.bf16.xpose.msra.mxu0 %v4816_v37  ;;  %v5630_v32 = vpop.eup %5629  ;;  %v4055_v27 = vmul.f32 1.442695, %v3969_v40  ;;  %3475 = vrot.lane.b32.xlu0 %v9144_v39, %s5751_s6  ;;  %v4733_v57 = vadd.f32 %v10433_v33, %v4285_v36  ;;  %v10434_v44 = vld [vmem:[#allocation55_spill] sm:$0xff]  ;;  %v4819_v45 = vsel %vm4811_vm6, %v10438_v62, 0 }
 0x50a   :  { %v4286_v11 = vmul.f32 %v4222_v2, %v3070_v47  ;;  %3473 = vrot.lane.b32.xlu1 %v9139_v22, %s5751_s6  ;;  %v9150_v3 = vpop.permute.xlu0 %4662  ;;  %v5195_v15 = vadd.f32 -1.0, %v5630_v32  ;;  %v9970_v37 = vmov 1065369472   ;;  %v10439_v2 = vld [vmem:[#allocation102_spill] sm:$0xff]  ;;  %v10443_v62 = vld [vmem:[#allocation43_spill] sm:$0xff] }
 0x50b   :  { %v3418_v23 = vpop.permute.xlu1 %3417  ;;  %5633 = vpow2.f32 %v4055_v27  ;;  %5292 = vmatprep.mubr.msk.bf16.mxu0 %vm4811_vm6, %v9970_v37  ;;  %v3071_v32 = vand.u32 2147483647, %v10439_v2  ;;  %v10440_v27 = vld [vmem:[#allocation17_spill] sm:$0xff] }
 0x50c   :  { %v3522_v59 = vadd.f32 %v3418_v23, %v8698_v52  ;;  %v4734_v28 = vadd.f32 %v10434_v44, %v4286_v11  ;;  %v4223_v36 = vsel %vm3903_vm8, %v9079_v14, %v5195_v15  ;;  %v10441_v23 = vld [vmem:[#allocation112_spill] sm:$0xff] }
 0x50d   :  { %3749 = vrot.lane.b32.xlu0 %v10437_v16, %s5749_s3 }
 0x50e   :  { %v9156_v47 = vadd.f32 %v10435_v55, %v3522_v59  ;;  %3715 = vrot.lane.b32.xlu1 %v10436_v58, %s5749_s3  ;;  %v4788_v31 = vpack.c.bf16 %v4734_v28, %v4733_v57  ;;  %v3420_v38 = vpop.permute.xlu0 %3419  ;;  %v3072_v59 = vand.u32 2147483647, %v10441_v23  ;;  %v4287_v57 = vmul.f32 %v4223_v36, %v3071_v32  ;;  %v10444_v36 = vld [vmem:[#allocation99_spill] sm:$0xff] }
 0x50f   :  { %v9162_v10 = vpop.permute.xlu1 %4657  ;;  %v3523_v13 = vadd.f32 %v3420_v38, %v8706_v17 }
 0x510   :  { %v3970_v52 = vmin.f32 %v9156_v47, 0.0  ;;  %5384 = vmatprep.subr.msk.bf16.mxu0 %vm4811_vm6, %v4788_v31  ;;  %vm3906_vm11 = vcmp.gt.f32.partialorder %v9156_v47, 0.0 }
 0x511   :  { %5279 = vmatpush3.bf16.xpose.msra.mxu0 %v4819_v45  ;;  %v9177_v17 = vadd.f32 %v10440_v27, %v3523_v13 }
 0x512   :  { %v5632_v40 = vpop.eup %5631  ;;  %v4057_v11 = vmul.f32 1.442695, %v3970_v52  ;;  %v3288_v33 = vpop.permute.xlu0 %3287  ;;  %v10442_v52 = vld [vmem:[#allocation175_spill] sm:$0xff] }
 0x513   :  { %v5196_v48 = vadd.f32 -1.0, %v5632_v40  ;;  %v3286_v0 = vpop.permute.xlu1 %3285  ;;  %v3971_v44 = vmin.f32 %v9177_v17, 0.0  ;;  %v4735_v13 = vadd.f32 %v10442_v52, %v4287_v57  ;;  %v9201_v27 = vadd.f32 %v3288_v33, %v8521_v53  ;;  %v10447_v53 = vld [vmem:[#allocation96_spill] sm:$0xff] }
 0x514   :  { %5635 = vpow2.f32 %v4057_v11  ;;  %v9183_v14 = vadd.f32 %v3286_v0, %v8498_v26  ;;  %vm3907_vm12 = vcmp.gt.f32.partialorder %v9177_v17, 0.0 }
 0x515   :  { %v4224_v28 = vsel %vm3904_vm9, %v9115_v18, %v5196_v48  ;;  %v4059_v55 = vmul.f32 1.442695, %v3971_v44  ;;  %v5634_v58 = vpop.eup %5633  ;;  %v10445_v18 = vld [vmem:[#allocation73_spill] sm:$0xff] }
 0x516   :  { %v4288_v15 = vmul.f32 %v4224_v28, %v3072_v59  ;;  %3477 = vrot.lane.b32.xlu1 %v9183_v14, %s5751_s6  ;;  %v9188_v16 = vpop.permute.xlu0 %4672  ;;  %v5197_v26 = vadd.f32 -1.0, %v5634_v58  ;;  %v10446_v59 = vpack.c.bf16 %v8898_v4, %v8895_v25  ;;  %v10450_v25 = vld [vmem:[#allocation33_spill] sm:$0xff] }
 0x517   :  { %v3422_v31 = vpop.permute.xlu1 %3421  ;;  %5637 = vpow2.f32 %v4059_v55  ;;  %v9221_v4 = vadd.f32 %v9009_v6, %v10450_v25 }
 0x518   :  { %v3524_v38 = vadd.f32 %v3422_v31, %v8733_v1  ;;  %v4736_v45 = vadd.f32 %v10443_v62, %v4288_v15  ;;  %v4822_v48 = vsel %vm4811_vm6, %v10446_v59, 0  ;;  %v4225_v57 = vsel %vm3905_vm10, %v9129_v63, %v5197_v26  ;;  %v10449_v15 = vld [vmem:[#allocation118_spill] sm:$0xff] }
 0x519   :  { %v3074_v55 = vand.u32 2147483647, %v10449_v15 }
 0x51a   :  { %v9194_v40 = vadd.f32 %v10444_v36, %v3524_v38  ;;  %3747 = vrot.lane.b32.xlu1 %v10445_v18, %s5749_s3  ;;  %v4789_v2 = vpack.c.bf16 %v4736_v45, %v4735_v13  ;;  %v3424_v11 = vpop.permute.xlu0 %3423  ;;  %v10451_v36 = vld [vmem:[#allocation122_spill] sm:$0xff] }
 0x51b   :  { %v9198_v32 = vpop.permute.xlu1 %4667  ;;  %v3525_v23 = vadd.f32 %v3424_v11, %v8742_v54  ;;  %v10448_v54 = vld [vmem:[#allocation109_spill] sm:$0xff]  ;;  %v9235_v18 = vadd.f32 %v10451_v36, %v7742_v35 }
 0x51c   :  { %v3972_v1 = vmin.f32 %v9194_v40, 0.0  ;;  %5385 = vmatprep.subr.msk.bf16.mxu0 %vm4811_vm6, %v4789_v2  ;;  %v3073_v28 = vand.u32 2147483647, %v10448_v54  ;;  %v10452_v2 = vld [vmem:[#allocation35_spill] sm:$0xff]  ;;  %v10455_v54 = vld [vmem:[#allocation101_spill] sm:$0xff]  ;;  %vm3908_vm13 = vcmp.gt.f32.partialorder %v9194_v40, 0.0 }
 0x51d   :  { %5281 = vmatpush3.bf16.xpose.msra.mxu0 %v4822_v48  ;;  %v9213_v33 = vadd.f32 %v10447_v53, %v3525_v23  ;;  %v10453_v48 = vld [vmem:[#allocation58_spill] sm:$0xff] }
 0x51e   :  { %v5636_v0 = vpop.eup %5635  ;;  %v4061_v44 = vmul.f32 1.442695, %v3972_v1  ;;  %3479 = vrot.lane.b32.xlu1 %v9201_v27, %s5751_s6  ;;  %v3292_v38 = vpop.permute.xlu0 %3291  ;;  %v4289_v13 = vmul.f32 %v4225_v57, %v3073_v28  ;;  %v10454_v57 = vld [vmem:[#allocation44_spill] sm:$0xff] }
 0x51f   :  { %v5198_v58 = vadd.f32 -1.0, %v5636_v0  ;;  %v3290_v31 = vpop.permute.xlu1 %3289  ;;  %v3973_v63 = vmin.f32 %v9213_v33, 0.0  ;;  %v9242_v11 = vadd.f32 %v3292_v38, %v8553_v43  ;;  %vm3909_vm14 = vcmp.gt.f32.partialorder %v9213_v33, 0.0 }
 0x520   :  { %5639 = vpow2.f32 %v4061_v44  ;;  %v9226_v52 = vadd.f32 %v3290_v31, %v8530_v19  ;;  %v9239_v19 = vadd.f32 %v9037_v21, %v10452_v2  ;;  %v4737_v44 = vadd.f32 %v10454_v57, %v4289_v13  ;;  %v10456_v21 = vld [vmem:[#allocation97_spill] sm:$0xff]  ;;  %v10457_v31 = vld [vmem:[#allocation123_spill] sm:$0xff] }
 0x521   :  { %v4226_v62 = vsel %vm3906_vm11, %v9156_v47, %v5198_v58  ;;  %v4063_v26 = vmul.f32 1.442695, %v3973_v63  ;;  %v5638_v6 = vpop.eup %5637  ;;  %v9263_v38 = vadd.f32 %v10457_v31, %v7742_v35  ;;  %v10458_v13 = vpack.c.bf16 %v8938_v20, %v8935_v60 }
 0x522   :  { %v4290_v45 = vmul.f32 %v4226_v62, %v3074_v55  ;;  %3481 = vrot.lane.b32.xlu0 %v9226_v52, %s5751_s6  ;;  %3463 = vrot.lane.b32.xlu1 %v9221_v4, %s5751_s6  ;;  %v3428_v1 = vpop.permute.xlu0 %3427  ;;  %v5199_v53 = vadd.f32 -1.0, %v5638_v6  ;;  %v4373_v55 = vmul.f32 0.03125, %v9235_v18 }
 0x523   :  { %v3426_v47 = vpop.permute.xlu1 %3425  ;;  %5641 = vpow2.f32 %v4063_v26  ;;  %v3527_v59 = vadd.f32 %v3428_v1, %v8758_v61  ;;  %v4825_v62 = vsel %vm4811_vm6, %v10458_v13, 0  ;;  %v10459_v26 = vld [vmem:[#allocation115_spill] sm:$0xff]  ;;  %v10460_v1 = vld [vmem:[#allocation126_spill] sm:$0xff] }
 0x524   :  { %v3526_v23 = vadd.f32 %v3426_v47, %v8762_v9  ;;  %v4738_v0 = vadd.f32 %v10453_v48, %v4290_v45  ;;  %v3075_v6 = vand.u32 2147483647, %v10459_v26  ;;  %v4227_v36 = vsel %vm3907_vm12, %v9177_v17, %v5199_v53  ;;  %v10464_v13 = vld [vmem:[#allocation178_spill] sm:$0xff]  ;;  %v10466_v26 = vld [vmem:[#allocation177_spill] sm:$0xff] }
 0x525   :  { %v9252_v15 = vadd.f32 %v10456_v21, %v3527_v59 }
 0x526   :  { %v9249_v28 = vadd.f32 %v10455_v54, %v3526_v23  ;;  %3465 = vrot.lane.b32.xlu0 %v9239_v19, %s5751_s6  ;;  %3483 = vrot.lane.b32.xlu1 %v9242_v11, %s5751_s6  ;;  %v3296_v9 = vpop.permute.xlu0 %3295  ;;  %v4790_v61 = vpack.c.bf16 %v4738_v0, %v4737_v44  ;;  %v3076_v23 = vand.u32 2147483647, %v10460_v1  ;;  %v4374_v44 = vmul.f32 0.03125, %v9263_v38 }
 0x527   :  { %v3294_v43 = vpop.permute.xlu1 %3293  ;;  %v3975_v58 = vmin.f32 %v9252_v15, 0.0  ;;  %v9285_v17 = vadd.f32 %v3296_v9, %v8588_v12  ;;  %v4291_v53 = vmul.f32 %v4227_v36, %v3075_v6  ;;  %v10467_v36 = vld [vmem:[#allocation47_spill] sm:$0xff]  ;;  %vm3911_vm0 = vcmp.gt.f32.partialorder %v9252_v15, 0.0 }
 0x528   :  { %v3974_v25 = vmin.f32 %v9249_v28, 0.0  ;;  %v9267_v63 = vadd.f32 %v3294_v43, %v8566_v42  ;;  %5386 = vmatprep.subr.msk.bf16.mxu0 %vm4811_vm6, %v4790_v61  ;;  %v10461_v42 = vld [vmem:[#allocation48_spill] sm:$0xff]  ;;  %vm3910_vm15 = vcmp.gt.f32.partialorder %v9249_v28, 0.0 }
 0x529   :  { %v4067_v47 = vmul.f32 1.442695, %v3975_v58  ;;  %5283 = vmatpush3.bf16.xpose.msra.mxu0 %v4825_v62  ;;  %v9279_v59 = vadd.f32 %v10461_v42, %v7742_v35  ;;  %v10462_v61 = vld [vmem:[#allocation104_spill] sm:$0xff]  ;;  %v9304_v62 = vadd.f32 %v10464_v13, %v7742_v35  ;;  %v4739_v6 = vadd.f32 %v10466_v26, %v4291_v53  ;;  %v10476_v26 = vld [vmem:[#allocation139_spill] sm:$0xff] }
 0x52a   :  { %v5640_v45 = vpop.eup %5639  ;;  %v4065_v2 = vmul.f32 1.442695, %v3974_v25  ;;  %4607 = vperm.xlu1 %5406, %v4373_v55   ;;  %3485 = vrot.lane.b32.xlu0 %v9267_v63, %s5751_s6  ;;  %v3432_v48 = vpop.permute.xlu0 %3431  ;;  %v10463_v25 = vld [vmem:[#allocation100_spill] sm:$0xff] }
 0x52b   :  { %v5200_v60 = vadd.f32 -1.0, %v5640_v45  ;;  %v3430_v20 = vpop.permute.xlu1 %3429  ;;  %v3529_v57 = vadd.f32 %v3432_v48, %v8789_v50  ;;  %v4389_v9 = vmul.f32 0.03125, %v9279_v59  ;;  %10465 = vst [vmem:[#allocation84_spill] sm:$0xff] %v9304_v62 }
 0x52c   :  { %5643 = vpow2.f32 %v4065_v2  ;;  %v3528_v0 = vadd.f32 %v3430_v20, %v8793_v5 }
 0x52d   :  { %v4228_v54 = vsel %vm3908_vm13, %v9194_v40, %v5200_v60  ;;  %5645 = vpow2.f32 %v4067_v47  ;;  %v5642_v21 = vpop.eup %5641  ;;  %v9295_v58 = vadd.f32 %v10463_v25, %v3529_v57  ;;  %v10469_v60 = vld [vmem:[#allocation132_spill] sm:$0xff] }
 0x52e   :  { %v4292_v43 = vmul.f32 %v4228_v54, %v3076_v23  ;;  %v9292_v55 = vadd.f32 %v10462_v61, %v3528_v0  ;;  %3487 = vrot.lane.b32.xlu1 %v9285_v17, %s5751_s6  ;;  %v5201_v12 = vadd.f32 -1.0, %v5642_v21  ;;  %4612 = vperm.xlu0 %5407, %v4374_v44   ;;  %v3300_v5 = vpop.permute.xlu0 %3299  ;;  %v10468_v23 = vld [vmem:[#allocation120_spill] sm:$0xff]  ;;  %v3078_v20 = vand.u32 2147483647, %v10469_v60 }
 0x52f   :  { %v3298_v50 = vpop.permute.xlu1 %3297  ;;  %v3977_v31 = vmin.f32 %v9295_v58, 0.0  ;;  %v3077_v42 = vand.u32 2147483647, %v10468_v23  ;;  %v9318_v44 = vadd.f32 %v3300_v5, %v8624_v29  ;;  %v10470_v21 = vld [vmem:[#allocation128_spill] sm:$0xff]  ;;  %v4390_v61 = vmul.f32 0.03125, %v9304_v62  ;;  %v10473_v5 = vld [vmem:[#allocation135_spill] sm:$0xff] }
 0x530   :  { %v3976_v40 = vmin.f32 %v9292_v55, 0.0  ;;  %v9307_v45 = vadd.f32 %v3298_v50, %v8598_v51  ;;  %v4740_v2 = vadd.f32 %v10467_v36, %v4292_v43  ;;  %v4229_v48 = vsel %vm3909_vm14, %v9213_v33, %v5201_v12  ;;  %v10472_v50 = vld [vmem:[#allocation136_spill] sm:$0xff]  ;;  %v10478_v23 = vld [vmem:[#allocation155_spill] sm:$0xff] }
 0x531   :  { %v4071_v1 = vmul.f32 1.442695, %v3977_v31  ;;  %v3079_v43 = vand.u32 2147483647, %v10470_v21  ;;  %v10471_v33 = vpack.c.bf16 %v8973_v24, %v8968_v34  ;;  %v3080_v29 = vand.u32 2147483647, %v10472_v50 }
 0x532   :  { %v4069_v47 = vmul.f32 1.442695, %v3976_v40  ;;  %4687 = vperm.xlu1 %5406, %v4389_v9   ;;  %3489 = vrot.lane.b32.xlu0 %v9307_v45, %s5751_s6  ;;  %v3436_v0 = vpop.permute.xlu0 %3435  ;;  %v4791_v57 = vpack.c.bf16 %v4740_v2, %v4739_v6  ;;  %v10477_v24 = vld [vmem:[#allocation142_spill] sm:$0xff]  ;;  %v4293_v36 = vmul.f32 %v4229_v48, %v3077_v42  ;;  %v9343_v60 = vadd.f32 %v10478_v23, %v7742_v35  ;;  %v10480_v21 = vld [vmem:[#allocation161_spill] sm:$0xff]  ;;  %v10484_v23 = vld [vmem:[#allocation72_spill] sm:$0xff] }
 0x533   :  { %v3434_v51 = vpop.permute.xlu1 %3433  ;;  %v3531_v54 = vadd.f32 %v3436_v0, %v8822_v56  ;;  %v4828_v25 = vsel %vm4811_vm6, %v10471_v33, 0  ;;  %v10475_v56 = vld [vmem:[#allocation103_spill] sm:$0xff]  ;;  %vm3912_vm1 = vcmp.gt.f32.partialorder %v9292_v55, 0.0  ;;  %v10498_v6 = vld [vmem:[#allocation69_spill] sm:$0xff]  ;;  %vm3913_vm2 = vcmp.gt.f32.partialorder %v9295_v58, 0.0 }
 0x534   :  { %5647 = vpow2.f32 %v4069_v47  ;;  %v3530_v53 = vadd.f32 %v3434_v51, %v8819_v7  ;;  %5387 = vmatprep.subr.msk.bf16.mxu0 %vm4811_vm6, %v4791_v57  ;;  %v10474_v7 = vld [vmem:[#allocation107_spill] sm:$0xff]  ;;  %v10479_v57 = vld [vmem:[#allocation157_spill] sm:$0xff] }
 0x535   :  { %5649 = vpow2.f32 %v4071_v1  ;;  %v9335_v31 = vadd.f32 %v10475_v56, %v3531_v54  ;;  %5285 = vmatpush3.bf16.xpose.msra.mxu0 %v4828_v25 }
 0x536   :  { %v5644_v12 = vpop.eup %5643  ;;  %v9332_v40 = vadd.f32 %v10474_v7, %v3530_v53  ;;  %3491 = vrot.lane.b32.xlu1 %v9318_v44, %s5751_s6  ;;  %4692 = vperm.xlu0 %5407, %v4390_v61   ;;  %v3304_v1 = vpop.permute.xlu0 %3303  ;;  %v9349_v53 = vadd.f32 %v10479_v57, %v7742_v35  ;;  %v9358_v61 = vadd.f32 %v10480_v21, %v7742_v35  ;;  %v10485_v57 = vld [vmem:[#allocation52_spill] sm:$0xff]  ;;  %v10486_v21 = vld [vmem:[#allocation145_spill] sm:$0xff] }
 0x537   :  { %v5646_v13 = vpop.eup %5645  ;;  %v5202_v2 = vadd.f32 -1.0, %v5644_v12  ;;  %v3302_v47 = vpop.permute.xlu1 %3301  ;;  %v3979_v42 = vmin.f32 %v9335_v31, 0.0  ;;  %v10482_v12 = vld [vmem:[#allocation60_spill] sm:$0xff]  ;;  %vm3915_vm4 = vcmp.gt.f32.partialorder %v9335_v31, 0.0 }
 0x538   :  { %v5203_v51 = vadd.f32 -1.0, %v5646_v13  ;;  %v3978_v0 = vmin.f32 %v9332_v40, 0.0  ;;  %v9354_v48 = vadd.f32 %v3302_v47, %v8633_v30  ;;  %10481 = vst [vmem:[#allocation32_spill] sm:$0xff] %v9358_v61  ;;  %vm3914_vm3 = vcmp.gt.f32.partialorder %v9332_v40, 0.0 }
 0x539   :  { %v4230_v54 = vsel %vm3910_vm15, %v9249_v28, %v5202_v2  ;;  %v4075_v56 = vmul.f32 1.442695, %v3979_v42  ;;  %v9365_v28 = vadd.f32 %v3304_v1, %v8661_v41  ;;  %v10483_v2 = vld [vmem:[#allocation179_spill] sm:$0xff]  ;;  %v9376_v41 = vmul.f32 0.03125, %v9349_v53 }
 0x53a   :  { %v4294_v33 = vmul.f32 %v4230_v54, %v3078_v20  ;;  %v4073_v25 = vmul.f32 1.442695, %v3978_v0  ;;  %3719 = vrot.lane.b32.xlu1 %v10482_v12, %s5749_s3  ;;  %v4231_v7 = vsel %vm3911_vm0, %v9252_v15, %v5203_v51  ;;  %3493 = vrot.lane.b32.xlu0 %v9354_v48, %s5751_s6  ;;  %v3440_v13 = vpop.permute.xlu0 %3439  ;;  %v4741_v47 = vadd.f32 %v10483_v2, %v4293_v36  ;;  %v10487_v36 = vld [vmem:[#allocation110_spill] sm:$0xff] }
 0x53b   :  { %v3438_v30 = vpop.permute.xlu1 %3437  ;;  %v3533_v0 = vadd.f32 %v3440_v13, %v10484_v23  ;;  %v4375_v51 = vmul.f32 0.03125, %v9343_v60  ;;  %v9379_v42 = vmul.f32 0.03125, %v9358_v61  ;;  %v10489_v13 = vld [vmem:[#allocation163_spill] sm:$0xff] }
 0x53c   :  { %5651 = vpow2.f32 %v4073_v25  ;;  %v3532_v20 = vadd.f32 %v3438_v30, %v8848_v46  ;;  %v4742_v54 = vadd.f32 %v10485_v57, %v4294_v33  ;;  %v10488_v46 = vld [vmem:[#allocation105_spill] sm:$0xff]  ;;  %v9391_v2 = vadd.f32 %v10489_v13, %v7742_v35  ;;  %v10495_v13 = vld [vmem:[#allocation168_spill] sm:$0xff] }
 0x53d   :  { %5653 = vpow2.f32 %v4075_v56  ;;  %v9385_v12 = vadd.f32 %v10488_v46, %v3533_v0  ;;  %v10491_v56 = vld [vmem:[#allocation181_spill] sm:$0xff]  ;;  %v4295_v57 = vmul.f32 %v4231_v7, %v3079_v43 }
 0x53e   :  { %v5648_v1 = vpop.eup %5647  ;;  %v9382_v25 = vadd.f32 %v10487_v36, %v3532_v20  ;;  %3495 = vrot.lane.b32.xlu1 %v9365_v28, %s5751_s6  ;;  %v4792_v33 = vpack.c.bf16 %v4742_v54, %v4741_v47  ;;  %10490 = vst [vmem:[#allocation29_spill] sm:$0xff] %v9391_v2  ;;  %v9395_v23 = vadd.f32 %v10491_v56, %v7742_v35  ;;  %v10493_v20 = vld [vmem:[#allocation61_spill] sm:$0xff]  ;;  %v3444_v36 = vpop.permute.xlu0 %3443 }
 0x53f   :  { %v5650_v30 = vpop.eup %5649  ;;  %v5204_v37 = vadd.f32 -1.0, %v5648_v1  ;;  %3721 = vrot.lane.b32.xlu0 %v10493_v20, %s5749_s3  ;;  %v3306_v0 = vpop.permute.xlu1 %3305  ;;  %v10494_v54 = vld [vmem:[#allocation77_spill] sm:$0xff]  ;;  %v3981_v7 = vmin.f32 %v9385_v12, 0.0  ;;  %v3535_v34 = vadd.f32 %v3444_v36, %v10498_v6  ;;  %vm3917_vm7 = vcmp.gt.f32.partialorder %v9385_v12, 0.0 }
 0x540   :  { %10492 = vst [vmem:[#allocation151_spill] sm:$0xff] %v9395_v23  ;;  %v5205_v46 = vadd.f32 -1.0, %v5650_v30  ;;  %v3980_v47 = vmin.f32 %v9382_v25, 0.0  ;;  %5388 = vmatprep.subr.msk.bf16.mxu0 %vm4811_vm6, %v4792_v33  ;;  %v10496_v15 = vpack.c.bf16 %v10494_v54, %v10495_v13  ;;  %v10497_v1 = vld [vmem:[#allocation49_spill] sm:$0xff]  ;;  %v10499_v30 = vld [vmem:[#allocation182_spill] sm:$0xff]  ;;  %v10502_v54 = vld [vmem:[#allocation108_spill] sm:$0xff] }
 0x541   :  { %v4232_v43 = vsel %vm3912_vm1, %v9292_v55, %v5204_v37  ;;  %v9409_v20 = vadd.f32 %v3306_v0, %v10497_v1  ;;  %v9414_v9 = vadd.f32 %v10499_v30, %v7742_v35  ;;  %v10501_v37 = vld [vmem:[#allocation6_spill] sm:$0xff]  ;;  %v4079_v0 = vmul.f32 1.442695, %v3981_v7  ;;  %v10506_v30 = vld [vmem:[#allocation51_spill] sm:$0xff] }
 0x542   :  { %v4831_v56 = vsel %vm4811_vm6, %v10496_v15, 0  ;;  %v4296_v33 = vmul.f32 %v4232_v43, %v3080_v29  ;;  %v4077_v15 = vmul.f32 1.442695, %v3980_v47  ;;  %3751 = vrot.lane.b32.xlu1 %v10501_v37, %s5749_s3  ;;  %v4233_v55 = vsel %vm3913_vm2, %v9295_v58, %v5205_v46  ;;  %v3448_v36 = vpop.permute.xlu0 %3447  ;;  %v10504_v29 = vld [vmem:[#allocation70_spill] sm:$0xff] }
 0x543   :  { %5287 = vmatpush3.bf16.xpose.msra.mxu0 %v4831_v56  ;;  %10500 = vst [vmem:[#allocation42_spill] sm:$0xff] %v9414_v9  ;;  %v9423_v13 = vadd.f32 %v10502_v54, %v3535_v34  ;;  %3497 = vrot.lane.b32.xlu0 %v9409_v20, %s5751_s6  ;;  %v3442_v6 = vpop.permute.xlu1 %3441  ;;  %v10503_v56 = vld [vmem:[#allocation183_spill] sm:$0xff]  ;;  %v10505_v47 = vld [vmem:[#allocation78_spill] sm:$0xff]  ;;  %v9432_v58 = vmul.f32 0.03125, %v9391_v2  ;;  %v4391_v34 = vmul.f32 0.03125, %v9395_v23  ;;  %v10507_v54 = vld [vmem:[#allocation184_spill] sm:$0xff] }
 0x544   :  { %v4743_v50 = vadd.f32 %v10503_v56, %v4295_v57  ;;  %5655 = vpow2.f32 %v4077_v15  ;;  %v3534_v43 = vadd.f32 %v3442_v6, %v10504_v29  ;;  %v3537_v1 = vadd.f32 %v3448_v36, %v10505_v47  ;;  %v10508_v57 = vld [vmem:[#allocation113_spill] sm:$0xff]  ;;  %v10509_v6 = vld [vmem:[#allocation119_spill] sm:$0xff]  ;;  %v10511_v23 = vld [vmem:[#allocation80_spill] sm:$0xff] }
 0x545   :  { %v4744_v37 = vadd.f32 %v10506_v30, %v4296_v33  ;;  %5657 = vpow2.f32 %v4079_v0  ;;  %v3983_v46 = vmin.f32 %v9423_v13, 0.0  ;;  %v9438_v61 = vadd.f32 %v10507_v54, %v7742_v35 }
 0x546   :  { %v5652_v7 = vpop.eup %5651  ;;  %v9441_v15 = vadd.f32 %v10508_v57, %v3534_v43  ;;  %v9444_v36 = vadd.f32 %v10509_v6, %v3537_v1  ;;  %4617 = vperm.xlu1 %5406, %v4375_v51   ;;  %v4392_v29 = vmul.f32 0.03125, %v9414_v9  ;;  %v10510_v0 = vand.u32 2147483647, %v10473_v5  ;;  %v3450_v62 = vpop.permute.xlu0 %3449  ;;  %v10512_v51 = vld [vmem:[#allocation172_spill] sm:$0xff] }
 0x547   :  { %v4793_v33 = vpack.c.bf16 %v4744_v37, %v4743_v50  ;;  %v5654_v56 = vpop.eup %5653  ;;  %v5206_v30 = vadd.f32 -1.0, %v5652_v7  ;;  %v4083_v2 = vmul.f32 1.442695, %v3983_v46  ;;  %3753 = vrot.lane.b32.xlu0 %v10511_v23, %s5749_s3  ;;  %v3446_v54 = vpop.permute.xlu1 %3445  ;;  %v10513_v50 = vld [vmem:[#allocation27_spill] sm:$0xff]  ;;  %v4393_v57 = vmul.f32 0.03125, %v9438_v61 }
 0x548   :  { %v4297_v47 = vmul.f32 %v4233_v55, %v10510_v0  ;;  %v5207_v43 = vadd.f32 -1.0, %v5654_v56  ;;  %v3982_v1 = vmin.f32 %v9441_v15, 0.0  ;;  %v10514_v37 = vpack.c.bf16 %v10512_v51, %v10513_v50  ;;  %v10515_v23 = vld [vmem:[#allocation71_spill] sm:$0xff]  ;;  %v10518_v50 = vld [vmem:[#allocation116_spill] sm:$0xff] }
 0x549   :  { %5389 = vmatprep.subr.msk.bf16.mxu0 %vm4811_vm6, %v4793_v33  ;;  %v4234_v55 = vsel %vm3914_vm3, %v9332_v40, %v5206_v30  ;;  %5659 = vpow2.f32 %v4083_v2  ;;  %v3985_v46 = vmin.f32 %v9444_v36, 0.0  ;;  %v3536_v7 = vadd.f32 %v3446_v54, %v10515_v23  ;;  %v10517_v33 = vld [vmem:[#allocation76_spill] sm:$0xff]  ;;  %v10519_v30 = vld [vmem:[#allocation14_spill] sm:$0xff] }
 0x54a   :  { %v4834_v5 = vsel %vm4811_vm6, %v10514_v37, 0  ;;  %v10516_v6 = vand.u32 2147483647, %v10476_v26  ;;  %v4081_v0 = vmul.f32 1.442695, %v3982_v1  ;;  %v3538_v9 = vadd.f32 %v3450_v62, %v10517_v33  ;;  %4697 = vperm.xlu1 %5406, %v4391_v34   ;;  %v10520_v37 = vld [vmem:[#allocation111_spill] sm:$0xff] }
 0x54b   :  { %5289 = vmatpush3.bf16.xpose.msra.mxu0 %v4834_v5  ;;  %v4087_v51 = vmul.f32 1.442695, %v3985_v46  ;;  %v9467_v40 = vadd.f32 %v10518_v50, %v3536_v7  ;;  %4622 = vperm.xlu0 %5407, %v9376_v41   ;;  %v3452_v2 = vpop.permute.xlu1 %3451  ;;  %v4745_v54 = vadd.f32 %v10519_v30, %v4297_v47  ;;  %v10521_v26 = vld [vmem:[#allocation75_spill] sm:$0xff]  ;;  %v10522_v62 = vld [vmem:[#allocation68_spill] sm:$0xff]  ;;  %v4235_v23 = vsel %vm3915_vm4, %v9335_v31, %v5207_v43  ;;  %v10523_v7 = vld [vmem:[#allocation166_spill] sm:$0xff] }
 0x54c   :  { %v4298_v56 = vmul.f32 %v4234_v55, %v10516_v6  ;;  %5661 = vpow2.f32 %v4081_v0  ;;  %v9472_v5 = vadd.f32 %v10520_v37, %v3538_v9  ;;  %v3539_v1 = vadd.f32 %v3452_v2, %v10521_v26  ;;  %v3454_v55 = vpop.permute.xlu0 %3453  ;;  %v10524_v33 = vld [vmem:[#allocation15_spill] sm:$0xff]  ;;  %v10525_v0 = vld [vmem:[#allocation124_spill] sm:$0xff] }
 0x54d   :  { %5663 = vpow2.f32 %v4087_v51  ;;  %v3984_v46 = vmin.f32 %v9467_v40, 0.0  ;;  %v3540_v6 = vadd.f32 %v3454_v55, %v10523_v7  ;;  %v9481_v47 = vadd.f32 %v10524_v33, %v7742_v35  ;;  %v10526_v51 = vld [vmem:[#allocation114_spill] sm:$0xff]  ;;  %v10530_v7 = vld [vmem:[#allocation144_spill] sm:$0xff] }
 0x54e   :  { %v4746_v34 = vadd.f32 %v10522_v62, %v4298_v56  ;;  %v5656_v41 = vpop.eup %5655  ;;  %v3986_v9 = vmin.f32 %v9472_v5, 0.0  ;;  %v9485_v50 = vadd.f32 %v10525_v0, %v3539_v1  ;;  %4627 = vperm.xlu1 %5406, %v9379_v42   ;;  %v10527_v37 = vpack.c.bf16 %v9098_v8, %v9095_v49  ;;  %v10532_v33 = vld [vmem:[#allocation64_spill] sm:$0xff] }
 0x54f   :  { %v5658_v2 = vpop.eup %5657  ;;  %v5208_v31 = vadd.f32 -1.0, %v5656_v41  ;;  %v4085_v43 = vmul.f32 1.442695, %v3984_v46  ;;  %v9489_v30 = vadd.f32 %v10526_v51, %v3540_v6  ;;  %4702 = vperm.xlu0 %5407, %v4392_v29   ;;  %v10528_v26 = vand.u32 2147483647, %v10477_v24 }
 0x550   :  { %v4794_v56 = vpack.c.bf16 %v4746_v34, %v4745_v54  ;;  %v4837_v35 = vsel %vm4811_vm6, %v10527_v37, 0  ;;  %vm3916_vm5 = vcmp.gt.f32.partialorder %v9382_v25, 0.0  ;;  %v4089_v1 = vmul.f32 1.442695, %v3986_v9  ;;  %v3456_v54 = vpop.permute.xlu1 %3455  ;;  %v10535_v37 = vld [vmem:[#allocation146_spill] sm:$0xff] }
 0x551   :  { %v4299_v55 = vmul.f32 %v4235_v23, %v10528_v26  ;;  %v3987_v42 = vmin.f32 %v9485_v50, 0.0  ;;  %v4236_v62 = vsel %vm3916_vm5, %v9382_v25, %v5208_v31  ;;  %v5209_v34 = vadd.f32 -1.0, %v5658_v2  ;;  %v10531_v25 = vld [vmem:[#allocation188_spill] sm:$0xff] }
 0x552   :  { %5390 = vmatprep.subr.msk.bf16.mxu0 %vm4811_vm6, %v4794_v56  ;;  %5665 = vpow2.f32 %v4085_v43  ;;  %v3988_v29 = vmin.f32 %v9489_v30, 0.0  ;;  %v10529_v49 = vand.u32 2147483647, %v10486_v21  ;;  %4707 = vperm.xlu1 %5406, %v4393_v57   ;;  %v3541_v6 = vadd.f32 %v3456_v54, %v10530_v7  ;;  %v10533_v57 = vld [vmem:[#allocation127_spill] sm:$0xff]  ;;  %v10537_v54 = vld [vmem:[#allocation156_spill] sm:$0xff] }
 0x553   :  { %5291 = vmatpush3.bf16.xpose.msra.mxu0 %v4837_v35  ;;  %5667 = vpow2.f32 %v4089_v1  ;;  %v4091_v24 = vmul.f32 1.442695, %v3987_v42  ;;  %v5660_v23 = vpop.eup %5659  ;;  %4632 = vperm.xlu0 %5407, %v9432_v58   ;;  %v9508_v41 = vadd.f32 %v10531_v25, %v4299_v55  ;;  %v4394_v21 = vmul.f32 0.03125, %v9481_v47  ;;  %v10534_v58 = vld [vmem:[#allocation150_spill] sm:$0xff]  ;;  %v10536_v1 = vld [vmem:[#allocation148_spill] sm:$0xff] }
 0x554   :  { %v4300_v8 = vmul.f32 %v4236_v62, %v10529_v49  ;;  %v4093_v46 = vmul.f32 1.442695, %v3988_v29  ;;  %v4237_v0 = vsel %vm3917_vm7, %v9385_v12, %v5209_v34  ;;  %v9516_v56 = vadd.f32 %v10533_v57, %v3541_v6  ;;  %v3458_v2 = vpop.permute.xlu0 %3457 }
 0x555   :  { %5669 = vpow2.f32 %v4091_v24  ;;  %v3085_v43 = vand.u32 2147483647, %v10534_v58  ;;  %v5211_v51 = vadd.f32 -1.0, %v5660_v23  ;;  %v3542_v35 = vadd.f32 %v3458_v2, %v10535_v37  ;;  %v10541_v2 = vld [vmem:[#allocation165_spill] sm:$0xff]  ;;  %v10542_v58 = vld [vmem:[#allocation162_spill] sm:$0xff] }
 0x556   :  { %v9511_v9 = vadd.f32 %v10532_v33, %v4300_v8  ;;  %5671 = vpow2.f32 %v4093_v46  ;;  %v5662_v31 = vpop.eup %5661  ;;  %v3086_v42 = vand.u32 2147483647, %v10536_v1  ;;  %v3087_v62 = vand.u32 2147483647, %v10537_v54  ;;  %v10538_v8 = vld [vmem:[#allocation117_spill] sm:$0xff]  ;;  %v10543_v1 = vld [vmem:[#allocation63_spill] sm:$0xff] }
 0x557   :  { %v5664_v55 = vpop.eup %5663  ;;  %v5210_v12 = vadd.f32 -1.0, %v5662_v31  ;;  %v3989_v34 = vmin.f32 %v9516_v56, 0.0  ;;  %4712 = vperm.xlu0 %5407, %v4394_v21   ;;  %v4301_v29 = vmul.f32 %v4237_v0, %v3085_v43  ;;  %vm3918_vm8 = vcmp.gt.f32.partialorder %v9441_v15, 0.0  ;;  %v10540_v46 = vld [vmem:[#allocation153_spill] sm:$0xff] }
 0x558   :  { %v5213_v49 = vadd.f32 -1.0, %v5664_v55  ;;  %v9527_v24 = vadd.f32 %v10538_v8, %v3542_v35  ;;  %v10539_v23 = vmov 1065369472   ;;  %v3088_v7 = vand.u32 2147483647, %v10540_v46 }
 0x559   :  { %vm3919_vm9 = vcmp.gt.f32.partialorder %v9423_v13, 0.0  ;;  %v4238_v6 = vsel %vm3918_vm8, %v9441_v15, %v5210_v12  ;;  %v4095_v25 = vmul.f32 1.442695, %v3989_v34  ;;  %vm3921_vm10 = vcmp.gt.f32.partialorder %v9444_v36, 0.0 }
 0x55a   :  { %5293 = vmatmul.mubr.msk.bf16.vlgmr.msra.gmra.mrb[128].mxu0 %vm4811_vm6, %v10539_v23  ;;  %v4239_v33 = vsel %vm3919_vm9, %v9423_v13, %v5211_v51  ;;  %v4302_v21 = vmul.f32 %v4238_v6, %v3086_v42  ;;  %v3990_v0 = vmin.f32 %v9527_v24, 0.0  ;;  %v3089_v31 = vand.u32 2147483647, %v10541_v2  ;;  %v10544_v13 = vld [vmem:[#allocation21_spill] sm:$0xff] }
 0x55b   :  { %5310 = vmatprep.mubr.msk.bf16.mxu0 %vm4811_vm6, %v10539_v23  ;;  %v3090_v43 = vand.u32 2147483647, %v10542_v58  ;;  %v4241_v37 = vsel %vm3921_vm10, %v9444_v36, %v5213_v49  ;;  %5673 = vpow2.f32 %v4095_v25  ;;  %v9543_v54 = vadd.f32 %v10543_v1, %v4301_v29  ;;  %v10545_v29 = vld [vmem:[#allocation171_spill] sm:$0xff] }
 0x55c   :  { %v5666_v57 = vpop.eup %5665  ;;  %v4097_v55 = vmul.f32 1.442695, %v3990_v0  ;;  %v9546_v51 = vadd.f32 %v10544_v13, %v4302_v21  ;;  %v4303_v42 = vmul.f32 %v4239_v33, %v3087_v62  ;;  %vm3920_vm11 = vcmp.gt.f32.partialorder %v9467_v40, 0.0  ;;  %v10546_v33 = vld [vmem:[#allocation170_spill] sm:$0xff]  ;;  %v10566_v23 = vld [vmem:[#allocation147_spill] sm:$0xff] }
 0x55d   :  { %v5668_v15 = vpop.eup %5667  ;;  %v5212_v35 = vadd.f32 -1.0, %v5666_v57  ;;  %vm3922_vm12 = vcmp.gt.f32.partialorder %v9472_v5, 0.0  ;;  %v4305_v8 = vmul.f32 %v4241_v37, %v3089_v31  ;;  %v3091_v6 = vand.u32 2147483647, %v10545_v29  ;;  %v10548_v37 = vld [vmem:[#allocation67_spill] sm:$0xff] }
 0x55e   :  { %v5214_v12 = vadd.f32 -1.0, %v5668_v15  ;;  %5675 = vpow2.f32 %v4097_v55  ;;  %v3092_v0 = vand.u32 2147483647, %v10546_v33  ;;  %vm3923_vm13 = vcmp.gt.f32.partialorder %v9485_v50, 0.0  ;;  %v10552_v29 = vld [vmem:[#allocation23_spill] sm:$0xff] }
 0x55f   :  { %v5670_v34 = vpop.eup %5669  ;;  %v4240_v36 = vsel %vm3920_vm11, %v9467_v40, %v5212_v35  ;;  %vm3924_vm14 = vcmp.gt.f32.partialorder %v9489_v30, 0.0  ;;  %v10547_v40 = vld [vmem:[#allocation66_spill] sm:$0xff]  ;;  %vm3925_vm15 = vcmp.gt.f32.partialorder %v9516_v56, 0.0  ;;  %vm3926_vm0 = vcmp.gt.f32.partialorder %v9527_v24, 0.0 }
 0x560   :  { %v5672_v46 = vpop.eup %5671  ;;  %v4304_v25 = vmul.f32 %v4240_v36, %v3088_v7  ;;  %v4242_v21 = vsel %vm3922_vm12, %v9472_v5, %v5214_v12  ;;  %v5215_v62 = vadd.f32 -1.0, %v5670_v34  ;;  %v9560_v58 = vadd.f32 %v10547_v40, %v4303_v42  ;;  %v10549_v35 = vld [vmem:[#allocation26_spill] sm:$0xff]  ;;  %v3462_v12 = vpop.permute.xlu0 %3461  ;;  %v10551_v34 = vld [vmem:[#allocation25_spill] sm:$0xff] }
 0x561   :  { %v4306_v57 = vmul.f32 %v4242_v21, %v3090_v43  ;;  %v5216_v2 = vadd.f32 -1.0, %v5672_v46  ;;  %v9567_v55 = vadd.f32 %v10549_v35, %v4305_v8  ;;  %v10550_v43 = vld [vmem:[#allocation159_spill] sm:$0xff]  ;;  %v3094_v40 = vand.u32 2147483647, %v9263_v38 }
 0x562   :  { %v4243_v31 = vsel %vm3923_vm13, %v9485_v50, %v5215_v62  ;;  %v9563_v15 = vadd.f32 %v10548_v37, %v4304_v25  ;;  %v10554_v37 = vld [vmem:[#allocation121_spill] sm:$0xff] }
 0x563   :  { %v4307_v7 = vmul.f32 %v4243_v31, %v3091_v6  ;;  %v4244_v5 = vsel %vm3924_vm14, %v9489_v30, %v5216_v2  ;;  %v9570_v1 = vadd.f32 %v10550_v43, %v4306_v57  ;;  %v3093_v6 = vand.u32 2147483647, %v9235_v18 }
 0x564   :  { %v4308_v13 = vmul.f32 %v4244_v5, %v3092_v0  ;;  %v10553_v0 = vld [vmem:[#allocation30_spill] sm:$0xff]  ;;  %v3460_v5 = vpop.permute.xlu1 %3459 }
 0x565   :  { %v9577_v36 = vadd.f32 %v10551_v34, %v4307_v7  ;;  %v5674_v46 = vpop.eup %5673 }
 0x566   :  { %v9580_v30 = vadd.f32 %v10552_v29, %v4308_v13  ;;  %v5217_v8 = vadd.f32 -1.0, %v5674_v46  ;;  %v10556_v29 = vld [vmem:[#allocation130_spill] sm:$0xff] }
 0x567   :  { %v3468_v62 = vpop.permute.xlu0 %3467 }
 0x568   :  { %v5676_v21 = vpop.eup %5675  ;;  %v4245_v33 = vsel %vm3925_vm15, %v9516_v56, %v5217_v8  ;;  %v3547_v57 = vadd.f32 %v3468_v62, %v10553_v0  ;;  %v10555_v56 = vld [vmem:[#allocation12_spill] sm:$0xff] }
 0x569   :  { %v9588_v2 = vmul.f32 %v4245_v33, %v3093_v6  ;;  %v5218_v31 = vadd.f32 -1.0, %v5676_v21 }
 0x56a   :  { %v3867_v18 = vadd.f32 %v10554_v37, %v3547_v57  ;;  %v10559_v37 = vld [vmem:[#allocation125_spill] sm:$0xff] }
 0x56b   :  { %v4246_v7 = vsel %vm3926_vm0, %v9527_v24, %v5218_v31  ;;  %v10557_v24 = vld [vmem:[#allocation53_spill] sm:$0xff]  ;;  %v10558_v31 = vld [vmem:[#allocation82_spill] sm:$0xff] }
 0x56c   :  { %v9594_v35 = vmul.f32 %v4246_v7, %v3094_v40  ;;  %v3995_v43 = vmin.f32 %v3867_v18, 0.0  ;;  %v3544_v40 = vadd.f32 %v3462_v12, %v10558_v31  ;;  %vm3931_vm1 = vcmp.gt.f32.partialorder %v3867_v18, 0.0 }
 0x56e   :  { %v4107_v13 = vmul.f32 1.442695, %v3995_v43 }
 0x570   :  { %v3470_v34 = vpop.permute.xlu1 %3469  ;;  %5677 = vpow2.f32 %v4107_v13 }
 0x571   :  { %v3548_v46 = vadd.f32 %v3470_v34, %v10555_v56 }
 0x573   :  { %v3868_v8 = vadd.f32 %v10556_v29, %v3548_v46 }
 0x575   :  { %v3996_v6 = vmin.f32 %v3868_v8, 0.0  ;;  %vm3932_vm2 = vcmp.gt.f32.partialorder %v3868_v8, 0.0 }
 0x577   :  { %v4109_v21 = vmul.f32 1.442695, %v3996_v6  ;;  %v10560_v6 = vld [vmem:[#allocation46_spill] sm:$0xff] }
 0x578   :  { %v9598_v38 = vpop.permute.xlu0 %4682 }
 0x579   :  { %5679 = vpow2.f32 %v4109_v21  ;;  %v3099_v21 = vand.u32 2147483647, %v10560_v6  ;;  %v10564_v6 = vld [vmem:[#allocation129_spill] sm:$0xff] }
 0x57a   :  { %v5678_v62 = vpop.eup %5677 }
 0x57b   :  { %v5223_v0 = vadd.f32 -1.0, %v5678_v62 }
 0x57c   :  { %v3472_v33 = vpop.permute.xlu0 %3471 }
 0x57d   :  { %v3549_v57 = vadd.f32 %v3472_v33, %v10557_v24  ;;  %v4251_v34 = vsel %vm3931_vm1, %v3867_v18, %v5223_v0  ;;  %v10561_v33 = vld [vmem:[#allocation45_spill] sm:$0xff] }
 0x57e   :  { %v3100_v24 = vand.u32 2147483647, %v10561_v33  ;;  %v4315_v12 = vmul.f32 %v4251_v34, %v3099_v21  ;;  %v10565_v21 = vld [vmem:[#allocation79_spill] sm:$0xff] }
 0x57f   :  { %v9603_v7 = vadd.f32 %v10559_v37, %v3549_v57 }
 0x580   :  { %v3718_v13 = vpop.permute.xlu0 %3717  ;;  %v4763_v33 = vadd.f32 %v10565_v21, %v4315_v12 }
 0x581   :  { %v9605_v43 = vpop.permute.xlu1 %4677  ;;  %v3997_v56 = vmin.f32 %v9603_v7, 0.0  ;;  %v3864_v46 = vadd.f32 %v3718_v13, %v3544_v40  ;;  %v10562_v13 = vld [vmem:[#allocation28_spill] sm:$0xff]  ;;  %vm3933_vm4 = vcmp.gt.f32.partialorder %v9603_v7, 0.0 }
 0x582   :  { %v3543_v49 = vadd.f32 %v3460_v5, %v10562_v13 }
 0x583   :  { %v5680_v29 = vpop.eup %5679  ;;  %v4111_v62 = vmul.f32 1.442695, %v3997_v56  ;;  %v3992_v42 = vmin.f32 %v3864_v46, 0.0  ;;  %vm3928_vm3 = vcmp.gt.f32.partialorder %v3864_v46, 0.0 }
 0x584   :  { %v5224_v25 = vadd.f32 -1.0, %v5680_v29  ;;  %v3476_v31 = vpop.permute.xlu0 %3475  ;;  %v10563_v29 = vld [vmem:[#allocation133_spill] sm:$0xff] }
 0x585   :  { %v3474_v57 = vpop.permute.xlu1 %3473  ;;  %5681 = vpow2.f32 %v4111_v62  ;;  %v4101_v50 = vmul.f32 1.442695, %v3992_v42  ;;  %v3551_v40 = vadd.f32 %v3476_v31, %v9144_v39 }
 0x586   :  { %v4252_v37 = vsel %vm3932_vm2, %v3868_v8, %v5224_v25  ;;  %v3550_v18 = vadd.f32 %v3474_v57, %v9139_v22  ;;  %v10567_v57 = vpack.c.bf16 %v9511_v9, %v9508_v41 }
 0x587   :  { %v4316_v0 = vmul.f32 %v4252_v37, %v3100_v24  ;;  %5683 = vpow2.f32 %v4101_v50  ;;  %v9615_v26 = vadd.f32 %v10564_v6, %v3551_v40  ;;  %v3096_v6 = vand.u32 2147483647, %v9349_v53 }
 0x588   :  { %v3870_v56 = vadd.f32 %v10563_v29, %v3550_v18  ;;  %v4864_v12 = vsel %vm4811_vm6, %v10567_v57, 0  ;;  %v9629_v37 = vpop.permute.xlu0 %3749  ;;  %v10568_v18 = vld [vmem:[#allocation134_spill] sm:$0xff]  ;;  %v10571_v57 = vld [vmem:[#allocation137_spill] sm:$0xff] }
 0x589   :  { %v3716_v34 = vpop.permute.xlu1 %3715  ;;  %v4764_v25 = vadd.f32 %v10566_v23, %v4316_v0  ;;  %v3999_v22 = vmin.f32 %v9615_v26, 0.0  ;;  %vm3935_vm8 = vcmp.gt.f32.partialorder %v9615_v26, 0.0 }
 0x58a   :  { %v3998_v8 = vmin.f32 %v3870_v56, 0.0  ;;  %v9619_v42 = vadd.f32 %v3716_v34, %v3543_v49  ;;  %vm3934_vm5 = vcmp.gt.f32.partialorder %v3870_v56, 0.0 }
 0x58b   :  { %v4803_v62 = vpack.c.bf16 %v4764_v25, %v4763_v33  ;;  %v4115_v50 = vmul.f32 1.442695, %v3999_v22 }
 0x58c   :  { %v4113_v39 = vmul.f32 1.442695, %v3998_v8  ;;  %v3991_v5 = vmin.f32 %v9619_v42, 0.0  ;;  %vm3927_vm7 = vcmp.gt.f32.partialorder %v9619_v42, 0.0 }
 0x58d   :  { %v3478_v24 = vpop.permute.xlu1 %3477  ;;  %5391 = vmatprep.subr.msk.bf16.mxu0 %vm4811_vm6, %v4803_v62 }
 0x58e   :  { %5685 = vpow2.f32 %v4113_v39  ;;  %v4099_v23 = vmul.f32 1.442695, %v3991_v5  ;;  %v3552_v49 = vadd.f32 %v3478_v24, %v9183_v14  ;;  %5295 = vmatpush3.bf16.xpose.msra.mxu0 %v4864_v12  ;;  %v10569_v39 = vld [vmem:[#allocation185_spill] sm:$0xff] }
 0x58f   :  { %5687 = vpow2.f32 %v4115_v50  ;;  %v5682_v31 = vpop.eup %5681  ;;  %v3101_v5 = vand.u32 2147483647, %v10569_v39  ;;  %v10570_v50 = vld [vmem:[#allocation131_spill] sm:$0xff] }
 0x590   :  { %5689 = vpow2.f32 %v4099_v23  ;;  %v9632_v0 = vadd.f32 %v10568_v18, %v3552_v49  ;;  %v5225_v29 = vadd.f32 -1.0, %v5682_v31  ;;  %v10572_v18 = vld [vmem:[#allocation50_spill] sm:$0xff] }
 0x591   :  { %v9634_v40 = vpop.permute.xlu1 %3747  ;;  %v5684_v13 = vpop.eup %5683 }
 0x592   :  { %v4000_v41 = vmin.f32 %v9632_v0, 0.0  ;;  %v5220_v9 = vadd.f32 -1.0, %v5684_v13  ;;  %v4253_v8 = vsel %vm3933_vm4, %v9603_v7, %v5225_v29  ;;  %v3102_v13 = vand.u32 2147483647, %v10572_v18  ;;  %v10576_v18 = vld [vmem:[#allocation140_spill] sm:$0xff] }
 0x593   :  { %vm3936_vm9 = vcmp.gt.f32.partialorder %v9632_v0, 0.0 }
 0x594   :  { %v4117_v14 = vmul.f32 1.442695, %v4000_v41  ;;  %v3482_v34 = vpop.permute.xlu0 %3481  ;;  %v4248_v25 = vsel %vm3928_vm3, %v3864_v46, %v5220_v9  ;;  %v4317_v46 = vmul.f32 %v4253_v8, %v3101_v5 }
 0x595   :  { %v3554_v21 = vadd.f32 %v3482_v34, %v9226_v52  ;;  %v3480_v33 = vpop.permute.xlu1 %3479  ;;  %v9642_v62 = vmul.f32 %v4248_v25, %v3096_v6  ;;  %v3095_v34 = vand.u32 2147483647, %v9343_v60 }
 0x596   :  { %5691 = vpow2.f32 %v4117_v14  ;;  %v3553_v22 = vadd.f32 %v3480_v33, %v9201_v27 }
 0x597   :  { %v9646_v53 = vadd.f32 %v10570_v50, %v3554_v21 }
 0x598   :  { %v5686_v24 = vpop.eup %5685  ;;  %v9649_v12 = vadd.f32 %v10571_v57, %v3553_v22  ;;  %v9651_v23 = vpop.permute.xlu0 %3465  ;;  %v10573_v22 = vld [vmem:[#allocation8_spill] sm:$0xff] }
 0x599   :  { %v5688_v52 = vpop.eup %5687  ;;  %v5226_v49 = vadd.f32 -1.0, %v5686_v24  ;;  %v4002_v7 = vmin.f32 %v9646_v53, 0.0  ;;  %v9654_v31 = vpop.permute.xlu1 %3463  ;;  %v4765_v39 = vadd.f32 %v10573_v22, %v4317_v46  ;;  %v10574_v24 = vld [vmem:[#allocation83_spill] sm:$0xff]  ;;  %vm3938_vm10 = vcmp.gt.f32.partialorder %v9646_v53, 0.0 }
 0x59a   :  { %v5690_v27 = vpop.eup %5689  ;;  %v4001_v29 = vmin.f32 %v9649_v12, 0.0  ;;  %v5227_v9 = vadd.f32 -1.0, %v5688_v52  ;;  %vm3937_vm11 = vcmp.gt.f32.partialorder %v9649_v12, 0.0 }
 0x59b   :  { %v4254_v41 = vsel %vm3934_vm5, %v3870_v56, %v5226_v49  ;;  %v4121_v6 = vmul.f32 1.442695, %v4002_v7  ;;  %v5219_v14 = vadd.f32 -1.0, %v5690_v27  ;;  %v10575_v7 = vld [vmem:[#allocation186_spill] sm:$0xff] }
 0x59c   :  { %v4318_v21 = vmul.f32 %v4254_v41, %v3102_v13  ;;  %v4119_v33 = vmul.f32 1.442695, %v4001_v29  ;;  %v3486_v25 = vpop.permute.xlu0 %3485  ;;  %v4255_v57 = vsel %vm3935_vm8, %v9615_v26, %v5227_v9  ;;  %v3103_v27 = vand.u32 2147483647, %v10575_v7  ;;  %v10577_v29 = vld [vmem:[#allocation138_spill] sm:$0xff]  ;;  %v10578_v41 = vld [vmem:[#allocation65_spill] sm:$0xff] }
 0x59d   :  { %5693 = vpow2.f32 %v4121_v6  ;;  %v3484_v8 = vpop.permute.xlu1 %3483  ;;  %v4247_v5 = vsel %vm3927_vm7, %v9619_v42, %v5219_v14  ;;  %v3556_v56 = vadd.f32 %v3486_v25, %v9267_v63  ;;  %v3104_v6 = vand.u32 2147483647, %v10578_v41 }
 0x59e   :  { %5695 = vpow2.f32 %v4119_v33  ;;  %v3555_v50 = vadd.f32 %v3484_v8, %v9242_v11  ;;  %v4766_v60 = vadd.f32 %v10574_v24, %v4318_v21  ;;  %v9667_v52 = vmul.f32 %v4247_v5, %v3095_v34 }
 0x59f   :  { %v3876_v13 = vadd.f32 %v10576_v18, %v3556_v56  ;;  %v10579_v11 = vpack.c.bf16 %v9546_v51, %v9543_v54  ;;  %v4319_v26 = vmul.f32 %v4255_v57, %v3103_v27  ;;  %v10581_v57 = vld [vmem:[#allocation187_spill] sm:$0xff] }
 0x5a0   :  { %v5692_v49 = vpop.eup %5691  ;;  %v9672_v46 = vadd.f32 %v10577_v29, %v3555_v50  ;;  %v4804_v42 = vpack.c.bf16 %v4766_v60, %v4765_v39  ;;  %v10580_v50 = vld [vmem:[#allocation62_spill] sm:$0xff] }
 0x5a1   :  { %v5228_v63 = vadd.f32 -1.0, %v5692_v49  ;;  %v4867_v14 = vsel %vm4811_vm6, %v10579_v11, 0  ;;  %v4004_v9 = vmin.f32 %v3876_v13, 0.0  ;;  %v4767_v22 = vadd.f32 %v9162_v10, %v4319_v26 }
 0x5a2   :  { %v4003_v34 = vmin.f32 %v9672_v46, 0.0  ;;  %5392 = vmatprep.subr.msk.bf16.mxu0 %vm4811_vm6, %v4804_v42  ;;  %v3106_v24 = vand.u32 2147483647, %v10580_v50  ;;  %v3105_v49 = vand.u32 2147483647, %v10581_v57  ;;  %vm3940_vm12 = vcmp.gt.f32.partialorder %v3876_v13, 0.0 }
 0x5a3   :  { %v4256_v21 = vsel %vm3936_vm9, %v9632_v0, %v5228_v63  ;;  %5297 = vmatpush3.bf16.xpose.msra.mxu0 %v4867_v14  ;;  %v4125_v25 = vmul.f32 1.442695, %v4004_v9  ;;  %v10583_v14 = vld [vmem:[#allocation141_spill] sm:$0xff]  ;;  %vm3939_vm13 = vcmp.gt.f32.partialorder %v9672_v46, 0.0 }
 0x5a4   :  { %v4320_v33 = vmul.f32 %v4256_v21, %v3104_v6  ;;  %v4123_v8 = vmul.f32 1.442695, %v4003_v34  ;;  %v10584_v34 = vld [vmem:[#allocation81_spill] sm:$0xff] }
 0x5a5   :  { %5697 = vpow2.f32 %v4125_v25  ;;  %v3108_v21 = vand.u32 2147483647, %v10584_v34  ;;  %v10585_v25 = vpack.c.bf16 %v9570_v1, %v9567_v55 }
 0x5a6   :  { %v4768_v54 = vadd.f32 %v9150_v3, %v4320_v33  ;;  %5699 = vpow2.f32 %v4123_v8  ;;  %v10582_v3 = vpack.c.bf16 %v9563_v15, %v9560_v58 }
 0x5a7   :  { %v5694_v51 = vpop.eup %5693  ;;  %v4873_v8 = vsel %vm4811_vm6, %v10585_v25, 0 }
 0x5a8   :  { %v5696_v39 = vpop.eup %5695  ;;  %v5230_v5 = vadd.f32 -1.0, %v5694_v51  ;;  %v4805_v56 = vpack.c.bf16 %v4768_v54, %v4767_v22  ;;  %v4870_v10 = vsel %vm4811_vm6, %v10582_v3, 0  ;;  %v10586_v22 = vld [vmem:[#allocation149_spill] sm:$0xff] }
 0x5a9   :  { %v5229_v60 = vadd.f32 -1.0, %v5696_v39  ;;  %v4608_v0 = vpop.permute.xlu1 %4607  ;;  %v3107_v54 = vand.u32 2147483647, %v10586_v22 }
 0x5aa   :  { %v4258_v7 = vsel %vm3938_vm10, %v9646_v53, %v5230_v5  ;;  %5393 = vmatprep.subr.msk.bf16.mxu0 %vm4811_vm6, %v4805_v56  ;;  %v9700_v11 = vadd.f32 %v4608_v0, %v9588_v2 }
 0x5ab   :  { %v4322_v27 = vmul.f32 %v4258_v7, %v3106_v24  ;;  %v4257_v18 = vsel %vm3937_vm11, %v9649_v12, %v5229_v60  ;;  %5299 = vmatpush3.bf16.xpose.msra.mxu0 %v4870_v10  ;;  %v10587_v60 = vld [vmem:[#allocation143_spill] sm:$0xff] }
 0x5ac   :  { %v4321_v29 = vmul.f32 %v4257_v18, %v3105_v49 }
 0x5ad   :  { %v3488_v42 = vpop.permute.xlu1 %3487  ;;  %v4770_v41 = vadd.f32 %v9188_v16, %v4322_v27  ;;  %v4613_v53 = vpop.permute.xlu0 %4612 }
 0x5ae   :  { %v3557_v6 = vadd.f32 %v3488_v42, %v9285_v17  ;;  %v4769_v63 = vadd.f32 %v9198_v32, %v4321_v29  ;;  %v9703_v58 = vadd.f32 %v4613_v53, %v9594_v35  ;;  %v3546_v42 = vadd.f32 %v9651_v23, %v9239_v19 }
 0x5af   :  { %v5698_v15 = vpop.eup %5697 }
 0x5b0   :  { %v9706_v26 = vadd.f32 %v10583_v14, %v3557_v6  ;;  %v4806_v12 = vpack.c.bf16 %v4770_v41, %v4769_v63  ;;  %v5700_v9 = vpop.eup %5699  ;;  %v5232_v16 = vadd.f32 -1.0, %v5698_v15  ;;  %v4800_v17 = vpack.c.bf16 %v9703_v58, %v9700_v11 }
 0x5b1   :  { %v9711_v33 = vpop.permute.xlu1 %4687  ;;  %v5231_v32 = vadd.f32 -1.0, %v5700_v9  ;;  %v3490_v35 = vpop.permute.xlu0 %3489 }
 0x5b2   :  { %v4005_v2 = vmin.f32 %v9706_v26, 0.0  ;;  %5394 = vmatprep.subr.msk.bf16.mxu0 %vm4811_vm6, %v4806_v12  ;;  %v4260_v51 = vsel %vm3940_vm12, %v3876_v13, %v5232_v16  ;;  %v3558_v39 = vadd.f32 %v3490_v35, %v9307_v45  ;;  %v3545_v45 = vadd.f32 %v9654_v31, %v9221_v4 }
 0x5b3   :  { %5301 = vmatpush3.bf16.xpose.msra.mxu0 %v4873_v8  ;;  %v4324_v5 = vmul.f32 %v4260_v51, %v3108_v21  ;;  %v4259_v56 = vsel %vm3939_vm13, %v9672_v46, %v5231_v32  ;;  %vm3941_vm14 = vcmp.gt.f32.partialorder %v9706_v26, 0.0  ;;  %v3109_v16 = vand.u32 2147483647, %v9279_v59 }
 0x5b4   :  { %v4127_v50 = vmul.f32 1.442695, %v4005_v2  ;;  %v4323_v24 = vmul.f32 %v4259_v56, %v3107_v54  ;;  %v3878_v0 = vadd.f32 %v10587_v60, %v3558_v39  ;;  %v10589_v54 = vld [vmem:[#allocation84_spill] sm:$0xff] }
 0x5b5   :  { %v3492_v57 = vpop.permute.xlu1 %3491  ;;  %v9725_v1 = vpop.permute.xlu0 %4692  ;;  %v4772_v13 = vadd.f32 %v9598_v38, %v4324_v5  ;;  %v3110_v51 = vand.u32 2147483647, %v10589_v54 }
 0x5b6   :  { %5701 = vpow2.f32 %v4127_v50  ;;  %v3559_v55 = vadd.f32 %v3492_v57, %v9318_v44  ;;  %v4006_v49 = vmin.f32 %v3878_v0, 0.0  ;;  %v4771_v7 = vadd.f32 %v9605_v43, %v4323_v24 }
 0x5b7   :  { %v10588_v43 = vpack.c.bf16 %v9580_v30, %v9577_v36  ;;  %vm3942_vm15 = vcmp.gt.f32.partialorder %v3878_v0, 0.0 }
 0x5b8   :  { %v9732_v46 = vadd.f32 %v9634_v40, %v3559_v55  ;;  %v4129_v3 = vmul.f32 1.442695, %v4006_v49  ;;  %v4807_v27 = vpack.c.bf16 %v4772_v13, %v4771_v7 }
 0x5b9   :  { %v3720_v10 = vpop.permute.xlu1 %3719  ;;  %v3494_v44 = vpop.permute.xlu0 %3493  ;;  %v4876_v4 = vsel %vm4811_vm6, %v10588_v43, 0 }
 0x5ba   :  { %v4007_v18 = vmin.f32 %v9732_v46, 0.0  ;;  %v9735_v29 = vadd.f32 %v3720_v10, %v3545_v45  ;;  %5703 = vpow2.f32 %v4129_v3  ;;  %v3560_v38 = vadd.f32 %v3494_v44, %v9354_v48  ;;  %5395 = vmatprep.subr.msk.bf16.mxu0 %vm4811_vm6, %v4807_v27  ;;  %v10591_v44 = vld [vmem:[#allocation32_spill] sm:$0xff] }
 0x5bb   :  { %5303 = vmatpush3.bf16.xpose.msra.mxu0 %v4876_v4  ;;  %vm3943_vm0 = vcmp.gt.f32.partialorder %v9732_v46, 0.0 }
 0x5bc   :  { %v4131_v40 = vmul.f32 1.442695, %v4007_v18  ;;  %v3993_v31 = vmin.f32 %v9735_v29, 0.0  ;;  %v9747_v41 = vadd.f32 %v9629_v37, %v3560_v38  ;;  %vm3929_vm1 = vcmp.gt.f32.partialorder %v9735_v29, 0.0 }
 0x5bd   :  { %v3496_v6 = vpop.permute.xlu1 %3495  ;;  %v3722_v53 = vpop.permute.xlu0 %3721  ;;  %v3097_v38 = vand.u32 2147483647, %v10591_v44 }
 0x5be   :  { %5705 = vpow2.f32 %v4131_v40  ;;  %v4103_v48 = vmul.f32 1.442695, %v3993_v31  ;;  %v4008_v63 = vmin.f32 %v9747_v41, 0.0  ;;  %v9750_v15 = vadd.f32 %v3722_v53, %v3546_v42 }
 0x5bf   :  { %v3561_v30 = vadd.f32 %v3496_v6, %v9365_v28  ;;  %vm3944_vm2 = vcmp.gt.f32.partialorder %v9747_v41, 0.0 }
 0x5c0   :  { %v5702_v36 = vpop.eup %5701  ;;  %5707 = vpow2.f32 %v4103_v48  ;;  %v4133_v12 = vmul.f32 1.442695, %v4008_v63  ;;  %v3994_v9 = vmin.f32 %v9750_v15, 0.0  ;;  %vm3930_vm3 = vcmp.gt.f32.partialorder %v9750_v15, 0.0 }
 0x5c1   :  { %v5233_v14 = vadd.f32 -1.0, %v5702_v36  ;;  %v3752_v19 = vpop.permute.xlu1 %3751  ;;  %v3498_v23 = vpop.permute.xlu0 %3497 }
 0x5c2   :  { %v9755_v37 = vadd.f32 %v3752_v19, %v3561_v30  ;;  %5709 = vpow2.f32 %v4133_v12  ;;  %v4105_v21 = vmul.f32 1.442695, %v3994_v9  ;;  %v3562_v28 = vadd.f32 %v3498_v23, %v9409_v20 }
 0x5c3   :  { %v4261_v34 = vsel %vm3941_vm14, %v9706_v26, %v5233_v14 }
 0x5c4   :  { %v4009_v32 = vmin.f32 %v9755_v37, 0.0  ;;  %v5704_v2 = vpop.eup %5703  ;;  %5711 = vpow2.f32 %v4105_v21  ;;  %v4325_v35 = vmul.f32 %v4261_v34, %v3109_v16  ;;  %vm3945_vm4 = vcmp.gt.f32.partialorder %v9755_v37, 0.0 }
 0x5c5   :  { %v5234_v25 = vadd.f32 -1.0, %v5704_v2  ;;  %v3754_v22 = vpop.permute.xlu0 %3753  ;;  %v4618_v56 = vpop.permute.xlu1 %4617 }
 0x5c6   :  { %v4135_v8 = vmul.f32 1.442695, %v4009_v32  ;;  %v9762_v39 = vadd.f32 %v3754_v22, %v3562_v28  ;;  %v4773_v20 = vadd.f32 %v9711_v33, %v4325_v35  ;;  %v4759_v13 = vadd.f32 %v4618_v56, %v9667_v52 }
 0x5c7   :  { %v4262_v5 = vsel %vm3942_vm15, %v3878_v0, %v5234_v25  ;;  %v10590_v0 = vld [vmem:[#allocation151_spill] sm:$0xff]  ;;  %v3113_v32 = vand.u32 2147483647, %v9438_v61  ;;  %v3114_v35 = vand.u32 2147483647, %v9481_v47 }
 0x5c8   :  { %v5706_v26 = vpop.eup %5705  ;;  %5713 = vpow2.f32 %v4135_v8  ;;  %v4326_v59 = vmul.f32 %v4262_v5, %v3110_v51  ;;  %v4010_v50 = vmin.f32 %v9762_v39, 0.0  ;;  %v3111_v45 = vand.u32 2147483647, %v10590_v0 }
 0x5c9   :  { %v5235_v24 = vadd.f32 -1.0, %v5706_v26  ;;  %v4698_v43 = vpop.permute.xlu1 %4697  ;;  %vm3946_vm5 = vcmp.gt.f32.partialorder %v9762_v39, 0.0  ;;  %v10594_v56 = vmov 1065369472  }
 0x5ca   :  { %v5708_v60 = vpop.eup %5707  ;;  %v4623_v57 = vpop.permute.xlu0 %4622  ;;  %v4774_v55 = vadd.f32 %v9725_v1, %v4326_v59  ;;  %v4137_v49 = vmul.f32 1.442695, %v4010_v50 }
 0x5cb   :  { %v4760_v7 = vadd.f32 %v4623_v57, %v9642_v62  ;;  %v4263_v3 = vsel %vm3943_vm0, %v9732_v46, %v5235_v24  ;;  %v5221_v10 = vadd.f32 -1.0, %v5708_v60  ;;  %v10592_v62 = vld [vmem:[#allocation42_spill] sm:$0xff]  ;;  %v4879_v46 = vsel %vm4811_vm6, %v4800_v17, 0 }
 0x5cc   :  { %v5710_v27 = vpop.eup %5709  ;;  %v4808_v18 = vpack.c.bf16 %v4774_v55, %v4773_v20  ;;  %5715 = vpow2.f32 %v4137_v49  ;;  %v3112_v31 = vand.u32 2147483647, %v10592_v62  ;;  %v4327_v42 = vmul.f32 %v4263_v3, %v3111_v45  ;;  %v10595_v55 = vld [vmem:[#allocation5_spill] sm:$0xff] }
 0x5cd   :  { %v4801_v33 = vpack.c.bf16 %v4760_v7, %v4759_v13  ;;  %v4249_v1 = vsel %vm3929_vm1, %v9735_v29, %v5221_v10  ;;  %v5236_v52 = vadd.f32 -1.0, %v5710_v27  ;;  %v10593_v29 = vld [vmem:[#allocation29_spill] sm:$0xff]  ;;  %v4628_v11 = vpop.permute.xlu1 %4627 }
 0x5ce   :  { %v4703_v4 = vpop.permute.xlu0 %4702  ;;  %v5712_v40 = vpop.eup %5711  ;;  %5396 = vmatprep.subr.msk.bf16.mxu0 %vm4811_vm6, %v4808_v18  ;;  %v3098_v53 = vand.u32 2147483647, %v10593_v29  ;;  %v4313_v63 = vmul.f32 %v4249_v1, %v3097_v38  ;;  %v4775_v12 = vadd.f32 %v4698_v43, %v4327_v42 }
 0x5cf   :  { %v4264_v6 = vsel %vm3944_vm2, %v9747_v41, %v5236_v52  ;;  %5305 = vmatpush3.bf16.xpose.msra.mxu0 %v4879_v46  ;;  %v5222_v48 = vadd.f32 -1.0, %v5712_v40 }
 0x5d0   :  { %v4328_v36 = vmul.f32 %v4264_v6, %v3112_v31  ;;  %v4761_v17 = vadd.f32 %v4628_v11, %v4313_v63 }
 0x5d1   :  { %v4250_v14 = vsel %vm3930_vm3, %v9750_v15, %v5222_v48  ;;  %v4882_v15 = vsel %vm4811_vm6, %v4801_v33, 0  ;;  %v4708_v54 = vpop.permute.xlu1 %4707  ;;  %v10596_v33 = vlaneseq }
 0x5d2   :  { %v5714_v30 = vpop.eup %5713  ;;  %v4776_v9 = vadd.f32 %v4703_v4, %v4328_v36  ;;  %v4314_v23 = vmul.f32 %v4250_v14, %v3098_v53  ;;  %v4633_v58 = vpop.permute.xlu0 %4632 }
 0x5d3   :  { %v5237_v19 = vadd.f32 -1.0, %v5714_v30 }
 0x5d4   :  { %v4809_v41 = vpack.c.bf16 %v4776_v9, %v4775_v12  ;;  %v4762_v34 = vadd.f32 %v4633_v58, %v4314_v23 }
 0x5d5   :  { %v4265_v21 = vsel %vm3945_vm4, %v9755_v37, %v5237_v19 }
 0x5d6   :  { %v5716_v16 = vpop.eup %5715  ;;  %v4802_v2 = vpack.c.bf16 %v4762_v34, %v4761_v17  ;;  %5397 = vmatprep.subr.msk.bf16.mxu0 %vm4811_vm6, %v4809_v41  ;;  %v4329_v25 = vmul.f32 %v4265_v21, %v3113_v32  ;;  %v4713_v37 = vpop.permute.xlu0 %4712 }
 0x5d7   :  { %v5238_v28 = vadd.f32 -1.0, %v5716_v16  ;;  %5307 = vmatpush3.bf16.xpose.msra.mxu0 %v4882_v15 }
 0x5d8   :  { %v4777_v51 = vadd.f32 %v4708_v54, %v4329_v25  ;;  %v4885_v5 = vsel %vm4811_vm6, %v4802_v2, 0 }
 0x5d9   :  { %v4266_v8 = vsel %vm3946_vm5, %v9762_v39, %v5238_v28  ;;  %v5753_v39 = vmov 1966171168  }
 0x5da   :  { %v4330_v22 = vmul.f32 %v4266_v8, %v3114_v35  ;;  %v5000_v20 = vunpack.c.l.s4 %v5753_v39 }
 0x5dc   :  { %v4778_v26 = vadd.f32 %v4713_v37, %v4330_v22  ;;  %v5001_v57 = vunpack.c.0.s8 %v5000_v20 }
 0x5de   :  { %v4810_v61 = vpack.c.bf16 %v4778_v26, %v4777_v51  ;;  %v5004_v13 = vsub.s32 %v5001_v57, %v10595_v55 }
 0x5e0   :  { %5398 = vmatprep.subr.msk.bf16.mxu0 %vm4811_vm6, %v4810_v61 }
 0x5e1   :  { %5309 = vmatpush3.bf16.xpose.msra.mxu0 %v4885_v5 }
 0x5e8   :  { %5311 = vmatmul.mubr.msk.bf16.vlgmr.msra.gmra.mrb[132].mxu0 %vm4811_vm6, %v10594_v56  ;;  %vm5024_vm6 = vcmp.lt.s32.totalorder %v10596_v33, 512 }
 0x62d   :  { %v4945_v47 = vpop.f32.mrb[128].mxu0 }
 0x62e   :  { %v4947_v59 = vpop.f32.mrb[129].mxu0 }
 0x62f   :  { %v4997_v50 = vcombine.low %v4945_v47, %v4947_v59  ;;  %v4949_v24 = vpop.f32.mrb[130].mxu0 }
 0x630   :  { %v4950_v60 = vpop.f32.mrb[131].mxu0 }
 0x631   :  { %v5005_v10 = vrot.slane %v4997_v50, %v5004_v13 }
 0x6bb   :  { %v4986_v49 = vpop.f32.mrb[132].mxu0 }
 0x6bc   :  { %v4988_v7 = vpop.f32.mrb[133].mxu0 }
 0x6bd   :  { %v4998_v0 = vcombine.low %v4986_v49, %v4988_v7  ;;  %v4990_v45 = vpop.f32.mrb[134].mxu0 }
 0x6be   :  { %v4991_v3 = vpop.f32.mrb[135].mxu0 }
 0x6bf   :  { %v5012_v27 = vrot.slane %v4998_v0, %v5004_v13 }
 0x6c1   :  { %v5013_v18 = vcombine.low %v5005_v10, %v5012_v27 }
 0x6c3   :  { %v5020_v44 = vrot.slane %v5013_v18, %v5004_v13 }
 0x6c5   :  { %5026 = vst.msk [vmem:[#allocation2] sm:$0xf] %vm5024_vm6, %v5020_v44 }
 0x6c6   :  { %5735 = shalt.err (!%p5732_p4)
}
 0x6c7   :  { %s5736_s20 = scalar_lea.hbm %s9819_s7, 64 }
 0x6c8   :  { %p5737_p5 = scmp.ne.s32.totalorder %s9819_s7, %s5736_s20  ;;  %p5740_p6 = scmp.lt.u32.totalorder %s5736_s20, %s9819_s7 }
 0x6ca   :  { %p5742_p7 = pnand %p5740_p6, %p5737_p5 }
 0x6cc   :  { %5745 = shalt.err (!%p5742_p7)
}
 0x6cd   :  { %5036 = dma.vmem_to_hbm [thread:$0]  %s5034_s16, 64, %s9819_s7, [#allocation3]  }
 0x6ce   :  { %5746 = dma.done.wait [#allocation3], 64  }
 0x6cf   :  { %5747 = vsyncadd [#allocation3], 4294967232 }
 0x6d0   :  { %5040 = vsyncpa [#allocation3], 1 }

</bundles_post_ra>
